<compile_context>
chip_gen: v5e
topology: v5e:2x2
jax: 0.10.0
libtpu: 0.0.40
codegen_flags: <defaults>
</compile_context>

<pallas_src>
import functools

import jax
import jax.numpy as jnp
from jax import lax
from jax.experimental import pallas as pl
from jax.experimental.pallas import tpu as pltpu

LANE = 128     # channel padding target (lane width)
SUBLANE = 8    # width padding target (sublane count)


def _round_up(x, m):
    return (x + m - 1) // m * m


def _fused_kernel(x_hbm, w1_ref, b1_ref, w2_ref, b2_ref, out_ref,
                  xbuf, sem, *, H, W):
    """One (batch, row-stripe) step of (conv3x3 + folded-BN bias + ReLU) x 2.

    x_hbm  : (N, Hp+4, Wi, CP) HBM ref (pl.ANY), compute dtype, zero-padded
             spatially (2-row/col halo) and channel-padded to CP lanes.
    w1_ref : (9, CP, CP) layer-1 weights, BN scale folded, tap-major.
    b1_ref : (1, CP)     layer-1 folded bias (f32).
    w2_ref / b2_ref : same for layer 2.
    out_ref: (1, TH, Wo, CP) output stripe (compute dtype).
    xbuf   : (2, TH+4, Wi, CP) VMEM double buffer for the input stripe.
    sem    : (2,) DMA semaphores.
    """
    n = pl.program_id(0)
    s = pl.program_id(1)
    S = pl.num_programs(1)

    TH = out_ref.shape[1]          # output rows per stripe
    Wo = out_ref.shape[2]          # padded output width (multiple of 8)
    CP = out_ref.shape[3]          # padded channels (multiple of 128)
    RI = xbuf.shape[1]             # TH + 4 input rows per stripe
    R1, C1 = TH + 2, Wo + 2        # x1 stripe extent incl. conv2 halo
    cdt = xbuf.dtype

    # ---- manually double-buffered input-stripe DMA (HBM -> VMEM) ----------
    def start_in(stripe, slot):
        pltpu.make_async_copy(x_hbm.at[n, pl.ds(stripe * TH, RI)],
                              xbuf.at[slot], sem.at[slot]).start()

    def wait_in(slot):
        # Only dst/sem matter for wait; src index is a placeholder.
        pltpu.make_async_copy(x_hbm.at[n, pl.ds(0, RI)],
                              xbuf.at[slot], sem.at[slot]).wait()

    slot = s % 2

    @pl.when(s == 0)               # prime the pipeline for this image
    def _():
        start_in(0, slot)

    wait_in(slot)                  # current stripe is now resident

    @pl.when(s + 1 < S)            # prefetch next stripe during compute
    def _():
        start_in(s + 1, 1 - slot)

    xs = xbuf.at[slot]

    # ---- 3x3 conv as 9 accumulating K=CP matmuls (no im2col patch) --------
    def conv3x3(slab_fn, w_ref, b_ref, Ro, Co):
        acc = None
        for k in range(9):
            dh, dw = k // 3, k % 3
            slab = slab_fn(dh, dw, Ro, Co)                    # (Ro*Co, CP)
            y = jnp.dot(slab, w_ref[k], preferred_element_type=jnp.float32)
            acc = y if acc is None else acc + y
        return acc + b_ref[...]                               # folded bias

    # ---- layer 1: computed over x1's halo extent (rows r0-1 .. r0+TH) -----
    def in_slab(dh, dw, Ro, Co):
        return xs[dh:dh + Ro, dw:dw + Co, :].reshape(Ro * Co, CP)

    r0 = s * TH
    y1 = jnp.maximum(conv3x3(in_slab, w1_ref, b1_ref, R1, C1), 0.0)
    y1 = y1.reshape(R1, C1, CP)

    # conv2's pad=1 zeros: x1 positions outside the real HxW image must be 0
    # (they are NOT relu(bias) -- mask them instead of computing them wrong).
    grow = r0 - 1 + lax.broadcasted_iota(jnp.int32, (R1, 1, 1), 0)
    gcol = lax.broadcasted_iota(jnp.int32, (1, C1, 1), 1) - 1
    keep = (grow >= 0) & (grow < H) & (gcol >= 0) & (gcol < W)
    x1 = jnp.where(keep, y1, 0.0).astype(cdt)                 # never hits HBM

    # ---- layer 2 -----------------------------------------------------------
    def x1_slab(dh, dw, Ro, Co):
        return x1[dh:dh + Ro, dw:dw + Co, :].reshape(Ro * Co, CP)

    y2 = jnp.maximum(conv3x3(x1_slab, w2_ref, b2_ref, TH, Wo), 0.0)
    out_ref[...] = y2.reshape(1, TH, Wo, CP).astype(out_ref.dtype)


def _fold_conv_bn(w_oihw, conv_b, gamma, beta, mean, var, cp, compute_dtype,
                  eps=1e-5):
    """Fold BN(eval) scale into conv weights, pad channels to cp, tap-major."""
    cout, cin = w_oihw.shape[0], w_oihw.shape[1]
    inv_std = gamma / jnp.sqrt(var + eps)                      # (cout,)
    w = jnp.transpose(w_oihw, (2, 3, 1, 0)) * inv_std          # (3,3,cin,cout)
    w = jnp.pad(w, ((0, 0), (0, 0), (0, cp - cin), (0, cp - cout)))
    w = w.reshape(9, cp, cp).astype(compute_dtype)
    bias = (conv_b - mean) * inv_std + beta
    bias = jnp.pad(bias, (0, cp - cout)).reshape(1, cp).astype(jnp.float32)
    return w, bias


@functools.partial(jax.jit, static_argnames=("compute_dtype", "row_tile"))
def conv_block_nested_forward(x_nchw, params, compute_dtype=jnp.bfloat16,
                              row_tile=16):
    """Fused conv1+bn1+relu -> conv2+bn2+relu (inference). NCHW in / out."""
    N, Cin, H, W = x_nchw.shape
    Cmid = params["w1"].shape[0]
    Cout = params["w2"].shape[0]
    CP = _round_up(max(Cin, Cmid, Cout), LANE)

    TH = row_tile
    S = pl.cdiv(H, TH)                 # number of row stripes
    Hp = S * TH
    Wo = _round_up(W, SUBLANE)         # padded output width
    Wi = Wo + SUBLANE                  # padded input width (>= Wo + 4)

    # NCHW -> NHWC, compute dtype, pad: 2-row/col zero halo + alignment + CP.
    x = jnp.transpose(x_nchw, (0, 2, 3, 1)).astype(compute_dtype)
    x = jnp.pad(x, ((0, 0), (2, Hp - H + 2), (2, Wi - W - 2), (0, CP - Cin)))

    w1, b1 = _fold_conv_bn(params["w1"], params["b1"], params["g1"],
                           params["be1"], params["m1"], params["v1"],
                           CP, compute_dtype)
    w2, b2 = _fold_conv_bn(params["w2"], params["b2"], params["g2"],
                           params["be2"], params["m2"], params["v2"],
                           CP, compute_dtype)

    kernel = functools.partial(_fused_kernel, H=H, W=W)

    flops = 2 * 9 * CP * CP * ((TH + 2) * (Wo + 2) + TH * Wo) * N * S
    bytes_accessed = ((x.size + N * Hp * Wo * CP) * x.dtype.itemsize
                      + (w1.size + w2.size) * w1.dtype.itemsize
                      + (b1.size + b2.size) * 4)

    out = pl.pallas_call(
        kernel,
        out_shape=jax.ShapeDtypeStruct((N, Hp, Wo, CP), compute_dtype),
        grid=(N, S),
        in_specs=[
            pl.BlockSpec(memory_space=pl.ANY),                  # x stays in HBM
            pl.BlockSpec((9, CP, CP), lambda n, s: (0, 0, 0)),  # w1
            pl.BlockSpec((1, CP), lambda n, s: (0, 0)),         # b1
            pl.BlockSpec((9, CP, CP), lambda n, s: (0, 0, 0)),  # w2
            pl.BlockSpec((1, CP), lambda n, s: (0, 0)),         # b2
        ],
        out_specs=pl.BlockSpec((1, TH, Wo, CP), lambda n, s: (n, s, 0, 0)),
        scratch_shapes=[
            pltpu.VMEM((2, TH + 4, Wi, CP), compute_dtype),     # stripe dbl-buf
            pltpu.SemaphoreType.DMA((2,)),
        ],
        compiler_params=pltpu.CompilerParams(
            dimension_semantics=("parallel", "arbitrary"),
            vmem_limit_bytes=64 * 1024 * 1024),
        cost_estimate=pl.CostEstimate(flops=flops, transcendentals=0,
                                      bytes_accessed=bytes_accessed),
    )(x, w1, b1, w2, b2)

    # Drop padding, NHWC -> NCHW.
    return jnp.transpose(out[:, :H, :W, :Cout], (0, 3, 1, 2)).astype(jnp.float32)


def init_conv_block_nested_params(key, in_ch, out_ch):
    """Deterministic parameter init matching the module's shapes."""
    mid_ch = in_ch if in_ch < out_ch else out_ch
    ks = jax.random.split(key, 12)

    def conv_params(kw, kb, cin, cout):
        bound = 1.0 / jnp.sqrt(cin * 9)
        w = jax.random.uniform(kw, (cout, cin, 3, 3), jnp.float32, -bound, bound)
        b = jax.random.uniform(kb, (cout,), jnp.float32, -bound, bound)
        return w, b

    def bn_params(kg, kb, km, kv, c):
        gamma = 1.0 + 0.1 * jax.random.normal(kg, (c,), jnp.float32)
        beta = 0.1 * jax.random.normal(kb, (c,), jnp.float32)
        mean = 0.1 * jax.random.normal(km, (c,), jnp.float32)
        var = jax.random.uniform(kv, (c,), jnp.float32, 0.5, 1.5)
        return gamma, beta, mean, var

    w1, b1 = conv_params(ks[0], ks[1], in_ch, mid_ch)
    g1, be1, m1, v1 = bn_params(ks[2], ks[3], ks[4], ks[5], mid_ch)
    w2, b2 = conv_params(ks[6], ks[7], mid_ch, out_ch)
    g2, be2, m2, v2 = bn_params(ks[8], ks[9], ks[10], ks[11], out_ch)
    return dict(w1=w1, b1=b1, g1=g1, be1=be1, m1=m1, v1=v1,
                w2=w2, b2=b2, g2=g2, be2=be2, m2=m2, v2=v2)


def _reference_forward(x_nchw, params, eps=1e-5):
    """Pure-JAX f32 reference (lax conv) for correctness checking."""
    x = jnp.transpose(x_nchw, (0, 2, 3, 1)).astype(jnp.float32)

    def block(x, w, b, g, be, m, v):
        w_hwio = jnp.transpose(w, (2, 3, 1, 0))
        y = jax.lax.conv_general_dilated(
            x, w_hwio, window_strides=(1, 1), padding="SAME",
            dimension_numbers=("NHWC", "HWIO", "NHWC")) + b
        y = g * (y - m) / jnp.sqrt(v + eps) + be
        return jnp.maximum(y, 0.0)

    y = block(x, params["w1"], params["b1"], params["g1"], params["be1"],
              params["m1"], params["v1"])
    y = block(y, params["w2"], params["b2"], params["g2"], params["be2"],
              params["m2"], params["v2"])
    return jnp.transpose(y, (0, 3, 1, 2))


if __name__ == "__main__":
    key = jax.random.PRNGKey(0)
    k_x, k_p, k_x2 = jax.random.split(key, 3)

    # Config 1: small, evenly tiled (2 row stripes with row_tile=8 so the
    # prefetch / stripe-boundary masking paths are exercised).
    N, in_ch, out_ch, H, W = 2, 4, 8, 16, 16
    x = jax.random.normal(k_x, (N, in_ch, H, W), jnp.float32)
    params = init_conv_block_nested_params(k_p, in_ch, out_ch)
    ref = _reference_forward(x, params)

    out_f32 = jax.block_until_ready(
        conv_block_nested_forward(x, params, compute_dtype=jnp.float32,
                                  row_tile=8))
    assert out_f32.shape == (N, out_ch, H, W), out_f32.shape
    assert jnp.allclose(out_f32, ref, atol=1e-4, rtol=1e-4), (
        float(jnp.max(jnp.abs(out_f32 - ref))))

    # Default bf16 MXU path (f32 accumulation): bf16-scaled tolerance.
    out_bf16 = jax.block_until_ready(
        conv_block_nested_forward(x, params, row_tile=8))
    assert out_bf16.shape == (N, out_ch, H, W), out_bf16.shape
    assert jnp.allclose(out_bf16, ref, atol=1e-1, rtol=1e-1), (
        float(jnp.max(jnp.abs(out_bf16 - ref))))

    # Config 2: ragged H/W (exercises row/column masking and padded slices).
    H2, W2 = 10, 12
    x2 = jax.random.normal(k_x2, (N, in_ch, H2, W2), jnp.float32)
    ref2 = _reference_forward(x2, params)
    out2 = jax.block_until_ready(
        conv_block_nested_forward(x2, params, compute_dtype=jnp.float32,
                                  row_tile=8))
    assert out2.shape == (N, out_ch, H2, W2), out2.shape
    assert jnp.allclose(out2, ref2, atol=1e-4, rtol=1e-4), (
        float(jnp.max(jnp.abs(out2 - ref2))))

    print("KERNEL_OK")
</pallas_src>

<mosaic_0001>
module attributes {stable_mosaic.version = 11 : i64} {
  func.func @_fused_kernel(%arg0: i32, %arg1: i32, %arg2: memref<2x20x24x128xf32, #tpu.memory_space<any>>, %arg3: memref<9x128x128xf32, #tpu.memory_space<vmem>>, %arg4: memref<1x128xf32, #tpu.memory_space<vmem>>, %arg5: memref<9x128x128xf32, #tpu.memory_space<vmem>>, %arg6: memref<1x128xf32, #tpu.memory_space<vmem>>, %arg7: memref<1x8x16x128xf32, #tpu.memory_space<vmem>>, %arg8: memref<2x12x24x128xf32, #tpu.memory_space<vmem>>, %arg9: memref<2x!tpu.dma_semaphore, #tpu.memory_space<semaphore_mem>>) attributes {dimension_semantics = [#tpu.dimension_semantics<parallel>, #tpu.dimension_semantics<arbitrary>], iteration_bounds = array<i64: 2, 2>, scalar_prefetch = 0 : i64, scratch_operands = 2 : i64, tpu.core_type = #tpu.core_type<tc>, window_params = [{}, {pipeline_mode = #tpu.pipeline_mode<synchronous>, transform_indices = @transform_1, window_bounds = array<i64: 9, 128, 128>}, {pipeline_mode = #tpu.pipeline_mode<synchronous>, transform_indices = @transform_2, window_bounds = array<i64: 1, 128>}, {pipeline_mode = #tpu.pipeline_mode<synchronous>, transform_indices = @transform_3, window_bounds = array<i64: 9, 128, 128>}, {pipeline_mode = #tpu.pipeline_mode<synchronous>, transform_indices = @transform_4, window_bounds = array<i64: 1, 128>}, {transform_indices = @transform_5, window_bounds = array<i64: 1, 8, 16, 128>}]} {
    %c2_i32 = arith.constant 2 : i32
    %c0_i32 = arith.constant 0 : i32
    %0 = arith.cmpi eq, %c2_i32, %c0_i32 : i32
    %c1_i32 = arith.constant 1 : i32
    %1 = arith.select %0, %c1_i32, %c2_i32 : i32
    %2 = arith.remsi %arg1, %1 : i32
    %c0_i32_0 = arith.constant 0 : i32
    %3 = arith.cmpi ne, %2, %c0_i32_0 : i32
    %c0_i32_1 = arith.constant 0 : i32
    %4 = arith.cmpi slt, %2, %c0_i32_1 : i32
    %c0_i32_2 = arith.constant 0 : i32
    %5 = arith.cmpi slt, %1, %c0_i32_2 : i32
    %6 = arith.xori %4, %5 : i1
    %7 = arith.andi %6, %3 : i1
    %8 = arith.addi %2, %1 : i32
    %9 = arith.select %7, %8, %2 : i32
    %c0_i32_3 = arith.constant 0 : i32
    %10 = arith.cmpi eq, %arg1, %c0_i32_3 : i32
    %11 = arith.extui %10 : i1 to i32
    %c0_i32_4 = arith.constant 0 : i32
    %12 = arith.cmpi ne, %11, %c0_i32_4 : i32
    scf.if %12 {
      %c0_i32_146 = arith.constant 0 : i32
      %c0_i32_147 = arith.constant 0 : i32
      %c0_i32_148 = arith.constant 0 : i32
      %186 = tpu.memref_slice %arg2[%arg0, %c0_i32_146, %c0_i32_147, %c0_i32_148] : memref<2x20x24x128xf32, #tpu.memory_space<any>> -> memref<1x12x24x128xf32, #tpu.memory_space<any>>
      %187 = tpu.memref_squeeze %186 : memref<1x12x24x128xf32, #tpu.memory_space<any>> -> memref<12x24x128xf32, #tpu.memory_space<any>>
      %c0_i32_149 = arith.constant 0 : i32
      %c0_i32_150 = arith.constant 0 : i32
      %c0_i32_151 = arith.constant 0 : i32
      %188 = tpu.memref_slice %arg8[%9, %c0_i32_149, %c0_i32_150, %c0_i32_151] : memref<2x12x24x128xf32, #tpu.memory_space<vmem>> -> memref<1x12x24x128xf32, #tpu.memory_space<vmem>>
      %189 = tpu.memref_squeeze %188 : memref<1x12x24x128xf32, #tpu.memory_space<vmem>> -> memref<12x24x128xf32, #tpu.memory_space<vmem>>
      %190 = tpu.memref_slice %arg9[%9] : memref<2x!tpu.dma_semaphore, #tpu.memory_space<semaphore_mem>> -> memref<1x!tpu.dma_semaphore, #tpu.memory_space<semaphore_mem>>
      %191 = tpu.memref_squeeze %190 : memref<1x!tpu.dma_semaphore, #tpu.memory_space<semaphore_mem>> -> memref<!tpu.dma_semaphore, #tpu.memory_space<semaphore_mem>>
      tpu.enqueue_dma source(%187 : memref<12x24x128xf32, #tpu.memory_space<any>>) target(%189 : memref<12x24x128xf32, #tpu.memory_space<vmem>>) target_semaphore(%191 : memref<!tpu.dma_semaphore, #tpu.memory_space<semaphore_mem>>)
    } else {
    }
    %c0_i32_5 = arith.constant 0 : i32
    %c0_i32_6 = arith.constant 0 : i32
    %c0_i32_7 = arith.constant 0 : i32
    %13 = tpu.memref_slice %arg2[%arg0, %c0_i32_5, %c0_i32_6, %c0_i32_7] : memref<2x20x24x128xf32, #tpu.memory_space<any>> -> memref<1x12x24x128xf32, #tpu.memory_space<any>>
    %14 = tpu.memref_squeeze %13 : memref<1x12x24x128xf32, #tpu.memory_space<any>> -> memref<12x24x128xf32, #tpu.memory_space<any>>
    %c0_i32_8 = arith.constant 0 : i32
    %c0_i32_9 = arith.constant 0 : i32
    %c0_i32_10 = arith.constant 0 : i32
    %15 = tpu.memref_slice %arg8[%9, %c0_i32_8, %c0_i32_9, %c0_i32_10] : memref<2x12x24x128xf32, #tpu.memory_space<vmem>> -> memref<1x12x24x128xf32, #tpu.memory_space<vmem>>
    %16 = tpu.memref_squeeze %15 : memref<1x12x24x128xf32, #tpu.memory_space<vmem>> -> memref<12x24x128xf32, #tpu.memory_space<vmem>>
    %17 = tpu.memref_slice %arg9[%9] : memref<2x!tpu.dma_semaphore, #tpu.memory_space<semaphore_mem>> -> memref<1x!tpu.dma_semaphore, #tpu.memory_space<semaphore_mem>>
    %18 = tpu.memref_squeeze %17 : memref<1x!tpu.dma_semaphore, #tpu.memory_space<semaphore_mem>> -> memref<!tpu.dma_semaphore, #tpu.memory_space<semaphore_mem>>
    tpu.wait_dma2 semaphore(%18 : memref<!tpu.dma_semaphore, #tpu.memory_space<semaphore_mem>>) src(%14 : memref<12x24x128xf32, #tpu.memory_space<any>>) dst(%16 : memref<12x24x128xf32, #tpu.memory_space<vmem>>)
    %c1_i32_11 = arith.constant 1 : i32
    %19 = arith.addi %arg1, %c1_i32_11 : i32
    %c2_i32_12 = arith.constant 2 : i32
    %20 = arith.cmpi slt, %19, %c2_i32_12 : i32
    %21 = arith.extui %20 : i1 to i32
    %c0_i32_13 = arith.constant 0 : i32
    %22 = arith.cmpi ne, %21, %c0_i32_13 : i32
    scf.if %22 {
      %c1_i32_146 = arith.constant 1 : i32
      %186 = arith.addi %arg1, %c1_i32_146 : i32
      %c1_i32_147 = arith.constant 1 : i32
      %187 = arith.subi %c1_i32_147, %9 : i32
      %c8_i32_148 = arith.constant 8 : i32
      %188 = arith.muli %186, %c8_i32_148 : i32
      %c0_i32_149 = arith.constant 0 : i32
      %c0_i32_150 = arith.constant 0 : i32
      %189 = tpu.memref_slice %arg2[%arg0, %188, %c0_i32_149, %c0_i32_150] : memref<2x20x24x128xf32, #tpu.memory_space<any>> -> memref<1x12x24x128xf32, #tpu.memory_space<any>>
      %190 = tpu.memref_squeeze %189 : memref<1x12x24x128xf32, #tpu.memory_space<any>> -> memref<12x24x128xf32, #tpu.memory_space<any>>
      %c0_i32_151 = arith.constant 0 : i32
      %c0_i32_152 = arith.constant 0 : i32
      %c0_i32_153 = arith.constant 0 : i32
      %191 = tpu.memref_slice %arg8[%187, %c0_i32_151, %c0_i32_152, %c0_i32_153] : memref<2x12x24x128xf32, #tpu.memory_space<vmem>> -> memref<1x12x24x128xf32, #tpu.memory_space<vmem>>
      %192 = tpu.memref_squeeze %191 : memref<1x12x24x128xf32, #tpu.memory_space<vmem>> -> memref<12x24x128xf32, #tpu.memory_space<vmem>>
      %193 = tpu.memref_slice %arg9[%187] : memref<2x!tpu.dma_semaphore, #tpu.memory_space<semaphore_mem>> -> memref<1x!tpu.dma_semaphore, #tpu.memory_space<semaphore_mem>>
      %194 = tpu.memref_squeeze %193 : memref<1x!tpu.dma_semaphore, #tpu.memory_space<semaphore_mem>> -> memref<!tpu.dma_semaphore, #tpu.memory_space<semaphore_mem>>
      tpu.enqueue_dma source(%190 : memref<12x24x128xf32, #tpu.memory_space<any>>) target(%192 : memref<12x24x128xf32, #tpu.memory_space<vmem>>) target_semaphore(%194 : memref<!tpu.dma_semaphore, #tpu.memory_space<semaphore_mem>>)
    } else {
    }
    %c8_i32 = arith.constant 8 : i32
    %23 = arith.muli %arg1, %c8_i32 : i32
    %c0_i32_14 = arith.constant 0 : i32
    %c0_i32_15 = arith.constant 0 : i32
    %c0_i32_16 = arith.constant 0 : i32
    %24 = tpu.memref_slice %arg8[%9, %c0_i32_14, %c0_i32_15, %c0_i32_16] : memref<2x12x24x128xf32, #tpu.memory_space<vmem>> -> memref<1x12x24x128xf32, #tpu.memory_space<vmem>>
    %25 = tpu.memref_squeeze %24 : memref<1x12x24x128xf32, #tpu.memory_space<vmem>> -> memref<12x24x128xf32, #tpu.memory_space<vmem>>
    %c0 = arith.constant 0 : index
    %c0_17 = arith.constant 0 : index
    %c0_18 = arith.constant 0 : index
    %26 = vector.load %25[%c0, %c0_17, %c0_18] : memref<12x24x128xf32, #tpu.memory_space<vmem>>, vector<10x18x128xf32>
    %27 = vector.shape_cast %26 : vector<10x18x128xf32> to vector<180x128xf32>
    %c0_19 = arith.constant 0 : index
    %c0_20 = arith.constant 0 : index
    %c0_21 = arith.constant 0 : index
    %28 = vector.load %arg3[%c0_19, %c0_20, %c0_21] : memref<9x128x128xf32, #tpu.memory_space<vmem>>, vector<1x128x128xf32>
    %29 = vector.shape_cast %28 : vector<1x128x128xf32> to vector<128x128xf32>
    %cst = arith.constant dense<0.000000e+00> : vector<180x128xf32>
    %30 = tpu.matmul %27, %29, %cst {dimension_numbers = #tpu.dot_dimension_numbers<[1], [0], [0], [1], [0, 0, 1, 1], [], []>} : vector<180x128xf32>, vector<128x128xf32>, vector<180x128xf32> -> vector<180x128xf32>
    %c0_i32_22 = arith.constant 0 : i32
    %c0_i32_23 = arith.constant 0 : i32
    %c0_i32_24 = arith.constant 0 : i32
    %31 = tpu.memref_slice %arg8[%9, %c0_i32_22, %c0_i32_23, %c0_i32_24] : memref<2x12x24x128xf32, #tpu.memory_space<vmem>> -> memref<1x12x24x128xf32, #tpu.memory_space<vmem>>
    %32 = tpu.memref_squeeze %31 : memref<1x12x24x128xf32, #tpu.memory_space<vmem>> -> memref<12x24x128xf32, #tpu.memory_space<vmem>>
    %c0_25 = arith.constant 0 : index
    %c1 = arith.constant 1 : index
    %c0_26 = arith.constant 0 : index
    %33 = vector.load %32[%c0_25, %c1, %c0_26] : memref<12x24x128xf32, #tpu.memory_space<vmem>>, vector<10x18x128xf32>
    %34 = vector.shape_cast %33 : vector<10x18x128xf32> to vector<180x128xf32>
    %c1_27 = arith.constant 1 : index
    %c0_28 = arith.constant 0 : index
    %c0_29 = arith.constant 0 : index
    %35 = vector.load %arg3[%c1_27, %c0_28, %c0_29] : memref<9x128x128xf32, #tpu.memory_space<vmem>>, vector<1x128x128xf32>
    %36 = vector.shape_cast %35 : vector<1x128x128xf32> to vector<128x128xf32>
    %cst_30 = arith.constant dense<0.000000e+00> : vector<180x128xf32>
    %37 = tpu.matmul %34, %36, %cst_30 {dimension_numbers = #tpu.dot_dimension_numbers<[1], [0], [0], [1], [0, 0, 1, 1], [], []>} : vector<180x128xf32>, vector<128x128xf32>, vector<180x128xf32> -> vector<180x128xf32>
    %38 = arith.addf %30, %37 : vector<180x128xf32>
    %c0_i32_31 = arith.constant 0 : i32
    %c0_i32_32 = arith.constant 0 : i32
    %c0_i32_33 = arith.constant 0 : i32
    %39 = tpu.memref_slice %arg8[%9, %c0_i32_31, %c0_i32_32, %c0_i32_33] : memref<2x12x24x128xf32, #tpu.memory_space<vmem>> -> memref<1x12x24x128xf32, #tpu.memory_space<vmem>>
    %40 = tpu.memref_squeeze %39 : memref<1x12x24x128xf32, #tpu.memory_space<vmem>> -> memref<12x24x128xf32, #tpu.memory_space<vmem>>
    %c0_34 = arith.constant 0 : index
    %c2 = arith.constant 2 : index
    %c0_35 = arith.constant 0 : index
    %41 = vector.load %40[%c0_34, %c2, %c0_35] : memref<12x24x128xf32, #tpu.memory_space<vmem>>, vector<10x18x128xf32>
    %42 = vector.shape_cast %41 : vector<10x18x128xf32> to vector<180x128xf32>
    %c2_36 = arith.constant 2 : index
    %c0_37 = arith.constant 0 : index
    %c0_38 = arith.constant 0 : index
    %43 = vector.load %arg3[%c2_36, %c0_37, %c0_38] : memref<9x128x128xf32, #tpu.memory_space<vmem>>, vector<1x128x128xf32>
    %44 = vector.shape_cast %43 : vector<1x128x128xf32> to vector<128x128xf32>
    %cst_39 = arith.constant dense<0.000000e+00> : vector<180x128xf32>
    %45 = tpu.matmul %42, %44, %cst_39 {dimension_numbers = #tpu.dot_dimension_numbers<[1], [0], [0], [1], [0, 0, 1, 1], [], []>} : vector<180x128xf32>, vector<128x128xf32>, vector<180x128xf32> -> vector<180x128xf32>
    %46 = arith.addf %38, %45 : vector<180x128xf32>
    %c0_i32_40 = arith.constant 0 : i32
    %c0_i32_41 = arith.constant 0 : i32
    %c0_i32_42 = arith.constant 0 : i32
    %47 = tpu.memref_slice %arg8[%9, %c0_i32_40, %c0_i32_41, %c0_i32_42] : memref<2x12x24x128xf32, #tpu.memory_space<vmem>> -> memref<1x12x24x128xf32, #tpu.memory_space<vmem>>
    %48 = tpu.memref_squeeze %47 : memref<1x12x24x128xf32, #tpu.memory_space<vmem>> -> memref<12x24x128xf32, #tpu.memory_space<vmem>>
    %c1_43 = arith.constant 1 : index
    %c0_44 = arith.constant 0 : index
    %c0_45 = arith.constant 0 : index
    %49 = vector.load %48[%c1_43, %c0_44, %c0_45] : memref<12x24x128xf32, #tpu.memory_space<vmem>>, vector<10x18x128xf32>
    %50 = vector.shape_cast %49 : vector<10x18x128xf32> to vector<180x128xf32>
    %c3 = arith.constant 3 : index
    %c0_46 = arith.constant 0 : index
    %c0_47 = arith.constant 0 : index
    %51 = vector.load %arg3[%c3, %c0_46, %c0_47] : memref<9x128x128xf32, #tpu.memory_space<vmem>>, vector<1x128x128xf32>
    %52 = vector.shape_cast %51 : vector<1x128x128xf32> to vector<128x128xf32>
    %cst_48 = arith.constant dense<0.000000e+00> : vector<180x128xf32>
    %53 = tpu.matmul %50, %52, %cst_48 {dimension_numbers = #tpu.dot_dimension_numbers<[1], [0], [0], [1], [0, 0, 1, 1], [], []>} : vector<180x128xf32>, vector<128x128xf32>, vector<180x128xf32> -> vector<180x128xf32>
    %54 = arith.addf %46, %53 : vector<180x128xf32>
    %c0_i32_49 = arith.constant 0 : i32
    %c0_i32_50 = arith.constant 0 : i32
    %c0_i32_51 = arith.constant 0 : i32
    %55 = tpu.memref_slice %arg8[%9, %c0_i32_49, %c0_i32_50, %c0_i32_51] : memref<2x12x24x128xf32, #tpu.memory_space<vmem>> -> memref<1x12x24x128xf32, #tpu.memory_space<vmem>>
    %56 = tpu.memref_squeeze %55 : memref<1x12x24x128xf32, #tpu.memory_space<vmem>> -> memref<12x24x128xf32, #tpu.memory_space<vmem>>
    %c1_52 = arith.constant 1 : index
    %c1_53 = arith.constant 1 : index
    %c0_54 = arith.constant 0 : index
    %57 = vector.load %56[%c1_52, %c1_53, %c0_54] : memref<12x24x128xf32, #tpu.memory_space<vmem>>, vector<10x18x128xf32>
    %58 = vector.shape_cast %57 : vector<10x18x128xf32> to vector<180x128xf32>
    %c4 = arith.constant 4 : index
    %c0_55 = arith.constant 0 : index
    %c0_56 = arith.constant 0 : index
    %59 = vector.load %arg3[%c4, %c0_55, %c0_56] : memref<9x128x128xf32, #tpu.memory_space<vmem>>, vector<1x128x128xf32>
    %60 = vector.shape_cast %59 : vector<1x128x128xf32> to vector<128x128xf32>
    %cst_57 = arith.constant dense<0.000000e+00> : vector<180x128xf32>
    %61 = tpu.matmul %58, %60, %cst_57 {dimension_numbers = #tpu.dot_dimension_numbers<[1], [0], [0], [1], [0, 0, 1, 1], [], []>} : vector<180x128xf32>, vector<128x128xf32>, vector<180x128xf32> -> vector<180x128xf32>
    %62 = arith.addf %54, %61 : vector<180x128xf32>
    %c0_i32_58 = arith.constant 0 : i32
    %c0_i32_59 = arith.constant 0 : i32
    %c0_i32_60 = arith.constant 0 : i32
    %63 = tpu.memref_slice %arg8[%9, %c0_i32_58, %c0_i32_59, %c0_i32_60] : memref<2x12x24x128xf32, #tpu.memory_space<vmem>> -> memref<1x12x24x128xf32, #tpu.memory_space<vmem>>
    %64 = tpu.memref_squeeze %63 : memref<1x12x24x128xf32, #tpu.memory_space<vmem>> -> memref<12x24x128xf32, #tpu.memory_space<vmem>>
    %c1_61 = arith.constant 1 : index
    %c2_62 = arith.constant 2 : index
    %c0_63 = arith.constant 0 : index
    %65 = vector.load %64[%c1_61, %c2_62, %c0_63] : memref<12x24x128xf32, #tpu.memory_space<vmem>>, vector<10x18x128xf32>
    %66 = vector.shape_cast %65 : vector<10x18x128xf32> to vector<180x128xf32>
    %c5 = arith.constant 5 : index
    %c0_64 = arith.constant 0 : index
    %c0_65 = arith.constant 0 : index
    %67 = vector.load %arg3[%c5, %c0_64, %c0_65] : memref<9x128x128xf32, #tpu.memory_space<vmem>>, vector<1x128x128xf32>
    %68 = vector.shape_cast %67 : vector<1x128x128xf32> to vector<128x128xf32>
    %cst_66 = arith.constant dense<0.000000e+00> : vector<180x128xf32>
    %69 = tpu.matmul %66, %68, %cst_66 {dimension_numbers = #tpu.dot_dimension_numbers<[1], [0], [0], [1], [0, 0, 1, 1], [], []>} : vector<180x128xf32>, vector<128x128xf32>, vector<180x128xf32> -> vector<180x128xf32>
    %70 = arith.addf %62, %69 : vector<180x128xf32>
    %c0_i32_67 = arith.constant 0 : i32
    %c0_i32_68 = arith.constant 0 : i32
    %c0_i32_69 = arith.constant 0 : i32
    %71 = tpu.memref_slice %arg8[%9, %c0_i32_67, %c0_i32_68, %c0_i32_69] : memref<2x12x24x128xf32, #tpu.memory_space<vmem>> -> memref<1x12x24x128xf32, #tpu.memory_space<vmem>>
    %72 = tpu.memref_squeeze %71 : memref<1x12x24x128xf32, #tpu.memory_space<vmem>> -> memref<12x24x128xf32, #tpu.memory_space<vmem>>
    %c2_70 = arith.constant 2 : index
    %c0_71 = arith.constant 0 : index
    %c0_72 = arith.constant 0 : index
    %73 = vector.load %72[%c2_70, %c0_71, %c0_72] : memref<12x24x128xf32, #tpu.memory_space<vmem>>, vector<10x18x128xf32>
    %74 = vector.shape_cast %73 : vector<10x18x128xf32> to vector<180x128xf32>
    %c6 = arith.constant 6 : index
    %c0_73 = arith.constant 0 : index
    %c0_74 = arith.constant 0 : index
    %75 = vector.load %arg3[%c6, %c0_73, %c0_74] : memref<9x128x128xf32, #tpu.memory_space<vmem>>, vector<1x128x128xf32>
    %76 = vector.shape_cast %75 : vector<1x128x128xf32> to vector<128x128xf32>
    %cst_75 = arith.constant dense<0.000000e+00> : vector<180x128xf32>
    %77 = tpu.matmul %74, %76, %cst_75 {dimension_numbers = #tpu.dot_dimension_numbers<[1], [0], [0], [1], [0, 0, 1, 1], [], []>} : vector<180x128xf32>, vector<128x128xf32>, vector<180x128xf32> -> vector<180x128xf32>
    %78 = arith.addf %70, %77 : vector<180x128xf32>
    %c0_i32_76 = arith.constant 0 : i32
    %c0_i32_77 = arith.constant 0 : i32
    %c0_i32_78 = arith.constant 0 : i32
    %79 = tpu.memref_slice %arg8[%9, %c0_i32_76, %c0_i32_77, %c0_i32_78] : memref<2x12x24x128xf32, #tpu.memory_space<vmem>> -> memref<1x12x24x128xf32, #tpu.memory_space<vmem>>
    %80 = tpu.memref_squeeze %79 : memref<1x12x24x128xf32, #tpu.memory_space<vmem>> -> memref<12x24x128xf32, #tpu.memory_space<vmem>>
    %c2_79 = arith.constant 2 : index
    %c1_80 = arith.constant 1 : index
    %c0_81 = arith.constant 0 : index
    %81 = vector.load %80[%c2_79, %c1_80, %c0_81] : memref<12x24x128xf32, #tpu.memory_space<vmem>>, vector<10x18x128xf32>
    %82 = vector.shape_cast %81 : vector<10x18x128xf32> to vector<180x128xf32>
    %c7 = arith.constant 7 : index
    %c0_82 = arith.constant 0 : index
    %c0_83 = arith.constant 0 : index
    %83 = vector.load %arg3[%c7, %c0_82, %c0_83] : memref<9x128x128xf32, #tpu.memory_space<vmem>>, vector<1x128x128xf32>
    %84 = vector.shape_cast %83 : vector<1x128x128xf32> to vector<128x128xf32>
    %cst_84 = arith.constant dense<0.000000e+00> : vector<180x128xf32>
    %85 = tpu.matmul %82, %84, %cst_84 {dimension_numbers = #tpu.dot_dimension_numbers<[1], [0], [0], [1], [0, 0, 1, 1], [], []>} : vector<180x128xf32>, vector<128x128xf32>, vector<180x128xf32> -> vector<180x128xf32>
    %86 = arith.addf %78, %85 : vector<180x128xf32>
    %c0_i32_85 = arith.constant 0 : i32
    %c0_i32_86 = arith.constant 0 : i32
    %c0_i32_87 = arith.constant 0 : i32
    %87 = tpu.memref_slice %arg8[%9, %c0_i32_85, %c0_i32_86, %c0_i32_87] : memref<2x12x24x128xf32, #tpu.memory_space<vmem>> -> memref<1x12x24x128xf32, #tpu.memory_space<vmem>>
    %88 = tpu.memref_squeeze %87 : memref<1x12x24x128xf32, #tpu.memory_space<vmem>> -> memref<12x24x128xf32, #tpu.memory_space<vmem>>
    %c2_88 = arith.constant 2 : index
    %c2_89 = arith.constant 2 : index
    %c0_90 = arith.constant 0 : index
    %89 = vector.load %88[%c2_88, %c2_89, %c0_90] : memref<12x24x128xf32, #tpu.memory_space<vmem>>, vector<10x18x128xf32>
    %90 = vector.shape_cast %89 : vector<10x18x128xf32> to vector<180x128xf32>
    %c8 = arith.constant 8 : index
    %c0_91 = arith.constant 0 : index
    %c0_92 = arith.constant 0 : index
    %91 = vector.load %arg3[%c8, %c0_91, %c0_92] : memref<9x128x128xf32, #tpu.memory_space<vmem>>, vector<1x128x128xf32>
    %92 = vector.shape_cast %91 : vector<1x128x128xf32> to vector<128x128xf32>
    %cst_93 = arith.constant dense<0.000000e+00> : vector<180x128xf32>
    %93 = tpu.matmul %90, %92, %cst_93 {dimension_numbers = #tpu.dot_dimension_numbers<[1], [0], [0], [1], [0, 0, 1, 1], [], []>} : vector<180x128xf32>, vector<128x128xf32>, vector<180x128xf32> -> vector<180x128xf32>
    %94 = arith.addf %86, %93 : vector<180x128xf32>
    %c0_94 = arith.constant 0 : index
    %c0_95 = arith.constant 0 : index
    %95 = vector.load %arg4[%c0_94, %c0_95] : memref<1x128xf32, #tpu.memory_space<vmem>>, vector<1x128xf32>
    %96 = vector.broadcast %95 : vector<1x128xf32> to vector<180x128xf32>
    %97 = arith.addf %94, %96 : vector<180x128xf32>
    %cst_96 = arith.constant 0.000000e+00 : f32
    %98 = vector.broadcast %cst_96 : f32 to vector<180x128xf32>
    %99 = arith.maximumf %97, %98 : vector<180x128xf32>
    %100 = vector.shape_cast %99 : vector<180x128xf32> to vector<10x18x128xf32>
    %c1_i32_97 = arith.constant 1 : i32
    %101 = arith.subi %23, %c1_i32_97 : i32
    %102 = tpu.iota {dimensions = array<i32: 0>} : vector<10x1x1xi32>
    %103 = vector.broadcast %101 : i32 to vector<10x1x1xi32>
    %104 = arith.addi %103, %102 : vector<10x1x1xi32>
    %105 = tpu.iota {dimensions = array<i32: 1>} : vector<1x18x1xi32>
    %c1_i32_98 = arith.constant 1 : i32
    %106 = vector.broadcast %c1_i32_98 : i32 to vector<1x18x1xi32>
    %107 = arith.subi %105, %106 : vector<1x18x1xi32>
    %c0_i32_99 = arith.constant 0 : i32
    %108 = vector.broadcast %c0_i32_99 : i32 to vector<10x1x1xi32>
    %109 = arith.cmpi sge, %104, %108 : vector<10x1x1xi32>
    %c16_i32 = arith.constant 16 : i32
    %110 = vector.broadcast %c16_i32 : i32 to vector<10x1x1xi32>
    %111 = arith.cmpi slt, %104, %110 : vector<10x1x1xi32>
    %112 = arith.andi %109, %111 : vector<10x1x1xi1>
    %c0_i32_100 = arith.constant 0 : i32
    %113 = vector.broadcast %c0_i32_100 : i32 to vector<1x18x1xi32>
    %114 = arith.cmpi sge, %107, %113 : vector<1x18x1xi32>
    %115 = vector.broadcast %112 : vector<10x1x1xi1> to vector<10x18x1xi1>
    %116 = vector.broadcast %114 : vector<1x18x1xi1> to vector<10x18x1xi1>
    %117 = arith.andi %115, %116 : vector<10x18x1xi1>
    %c16_i32_101 = arith.constant 16 : i32
    %118 = vector.broadcast %c16_i32_101 : i32 to vector<1x18x1xi32>
    %119 = arith.cmpi slt, %107, %118 : vector<1x18x1xi32>
    %120 = vector.broadcast %119 : vector<1x18x1xi1> to vector<10x18x1xi1>
    %121 = arith.andi %117, %120 : vector<10x18x1xi1>
    %cst_102 = arith.constant 0.000000e+00 : f32
    %122 = vector.shape_cast %121 : vector<10x18x1xi1> to vector<10x18x1xi1>
    %123 = vector.broadcast %122 : vector<10x18x1xi1> to vector<10x18x128xi1>
    %124 = vector.broadcast %cst_102 : f32 to vector<10x18x128xf32>
    %125 = arith.select %123, %100, %124 : vector<10x18x128xi1>, vector<10x18x128xf32>
    %126 = vector.extract_strided_slice %125 {offsets = [0, 0, 0], sizes = [8, 16, 128], strides = [1, 1, 1]} : vector<10x18x128xf32> to vector<8x16x128xf32>
    %127 = vector.shape_cast %126 : vector<8x16x128xf32> to vector<128x128xf32>
    %c0_103 = arith.constant 0 : index
    %c0_104 = arith.constant 0 : index
    %c0_105 = arith.constant 0 : index
    %128 = vector.load %arg5[%c0_103, %c0_104, %c0_105] : memref<9x128x128xf32, #tpu.memory_space<vmem>>, vector<1x128x128xf32>
    %129 = vector.shape_cast %128 : vector<1x128x128xf32> to vector<128x128xf32>
    %cst_106 = arith.constant dense<0.000000e+00> : vector<128x128xf32>
    %130 = tpu.matmul %127, %129, %cst_106 {dimension_numbers = #tpu.dot_dimension_numbers<[1], [0], [0], [1], [0, 0, 1, 1], [], []>} : vector<128x128xf32>, vector<128x128xf32>, vector<128x128xf32> -> vector<128x128xf32>
    %131 = vector.extract_strided_slice %125 {offsets = [0, 1, 0], sizes = [8, 16, 128], strides = [1, 1, 1]} : vector<10x18x128xf32> to vector<8x16x128xf32>
    %132 = vector.shape_cast %131 : vector<8x16x128xf32> to vector<128x128xf32>
    %c1_107 = arith.constant 1 : index
    %c0_108 = arith.constant 0 : index
    %c0_109 = arith.constant 0 : index
    %133 = vector.load %arg5[%c1_107, %c0_108, %c0_109] : memref<9x128x128xf32, #tpu.memory_space<vmem>>, vector<1x128x128xf32>
    %134 = vector.shape_cast %133 : vector<1x128x128xf32> to vector<128x128xf32>
    %cst_110 = arith.constant dense<0.000000e+00> : vector<128x128xf32>
    %135 = tpu.matmul %132, %134, %cst_110 {dimension_numbers = #tpu.dot_dimension_numbers<[1], [0], [0], [1], [0, 0, 1, 1], [], []>} : vector<128x128xf32>, vector<128x128xf32>, vector<128x128xf32> -> vector<128x128xf32>
    %136 = arith.addf %130, %135 : vector<128x128xf32>
    %137 = vector.extract_strided_slice %125 {offsets = [0, 2, 0], sizes = [8, 16, 128], strides = [1, 1, 1]} : vector<10x18x128xf32> to vector<8x16x128xf32>
    %138 = vector.shape_cast %137 : vector<8x16x128xf32> to vector<128x128xf32>
    %c2_111 = arith.constant 2 : index
    %c0_112 = arith.constant 0 : index
    %c0_113 = arith.constant 0 : index
    %139 = vector.load %arg5[%c2_111, %c0_112, %c0_113] : memref<9x128x128xf32, #tpu.memory_space<vmem>>, vector<1x128x128xf32>
    %140 = vector.shape_cast %139 : vector<1x128x128xf32> to vector<128x128xf32>
    %cst_114 = arith.constant dense<0.000000e+00> : vector<128x128xf32>
    %141 = tpu.matmul %138, %140, %cst_114 {dimension_numbers = #tpu.dot_dimension_numbers<[1], [0], [0], [1], [0, 0, 1, 1], [], []>} : vector<128x128xf32>, vector<128x128xf32>, vector<128x128xf32> -> vector<128x128xf32>
    %142 = arith.addf %136, %141 : vector<128x128xf32>
    %143 = vector.extract_strided_slice %125 {offsets = [1, 0, 0], sizes = [8, 16, 128], strides = [1, 1, 1]} : vector<10x18x128xf32> to vector<8x16x128xf32>
    %144 = vector.shape_cast %143 : vector<8x16x128xf32> to vector<128x128xf32>
    %c3_115 = arith.constant 3 : index
    %c0_116 = arith.constant 0 : index
    %c0_117 = arith.constant 0 : index
    %145 = vector.load %arg5[%c3_115, %c0_116, %c0_117] : memref<9x128x128xf32, #tpu.memory_space<vmem>>, vector<1x128x128xf32>
    %146 = vector.shape_cast %145 : vector<1x128x128xf32> to vector<128x128xf32>
    %cst_118 = arith.constant dense<0.000000e+00> : vector<128x128xf32>
    %147 = tpu.matmul %144, %146, %cst_118 {dimension_numbers = #tpu.dot_dimension_numbers<[1], [0], [0], [1], [0, 0, 1, 1], [], []>} : vector<128x128xf32>, vector<128x128xf32>, vector<128x128xf32> -> vector<128x128xf32>
    %148 = arith.addf %142, %147 : vector<128x128xf32>
    %149 = vector.extract_strided_slice %125 {offsets = [1, 1, 0], sizes = [8, 16, 128], strides = [1, 1, 1]} : vector<10x18x128xf32> to vector<8x16x128xf32>
    %150 = vector.shape_cast %149 : vector<8x16x128xf32> to vector<128x128xf32>
    %c4_119 = arith.constant 4 : index
    %c0_120 = arith.constant 0 : index
    %c0_121 = arith.constant 0 : index
    %151 = vector.load %arg5[%c4_119, %c0_120, %c0_121] : memref<9x128x128xf32, #tpu.memory_space<vmem>>, vector<1x128x128xf32>
    %152 = vector.shape_cast %151 : vector<1x128x128xf32> to vector<128x128xf32>
    %cst_122 = arith.constant dense<0.000000e+00> : vector<128x128xf32>
    %153 = tpu.matmul %150, %152, %cst_122 {dimension_numbers = #tpu.dot_dimension_numbers<[1], [0], [0], [1], [0, 0, 1, 1], [], []>} : vector<128x128xf32>, vector<128x128xf32>, vector<128x128xf32> -> vector<128x128xf32>
    %154 = arith.addf %148, %153 : vector<128x128xf32>
    %155 = vector.extract_strided_slice %125 {offsets = [1, 2, 0], sizes = [8, 16, 128], strides = [1, 1, 1]} : vector<10x18x128xf32> to vector<8x16x128xf32>
    %156 = vector.shape_cast %155 : vector<8x16x128xf32> to vector<128x128xf32>
    %c5_123 = arith.constant 5 : index
    %c0_124 = arith.constant 0 : index
    %c0_125 = arith.constant 0 : index
    %157 = vector.load %arg5[%c5_123, %c0_124, %c0_125] : memref<9x128x128xf32, #tpu.memory_space<vmem>>, vector<1x128x128xf32>
    %158 = vector.shape_cast %157 : vector<1x128x128xf32> to vector<128x128xf32>
    %cst_126 = arith.constant dense<0.000000e+00> : vector<128x128xf32>
    %159 = tpu.matmul %156, %158, %cst_126 {dimension_numbers = #tpu.dot_dimension_numbers<[1], [0], [0], [1], [0, 0, 1, 1], [], []>} : vector<128x128xf32>, vector<128x128xf32>, vector<128x128xf32> -> vector<128x128xf32>
    %160 = arith.addf %154, %159 : vector<128x128xf32>
    %161 = vector.extract_strided_slice %125 {offsets = [2, 0, 0], sizes = [8, 16, 128], strides = [1, 1, 1]} : vector<10x18x128xf32> to vector<8x16x128xf32>
    %162 = vector.shape_cast %161 : vector<8x16x128xf32> to vector<128x128xf32>
    %c6_127 = arith.constant 6 : index
    %c0_128 = arith.constant 0 : index
    %c0_129 = arith.constant 0 : index
    %163 = vector.load %arg5[%c6_127, %c0_128, %c0_129] : memref<9x128x128xf32, #tpu.memory_space<vmem>>, vector<1x128x128xf32>
    %164 = vector.shape_cast %163 : vector<1x128x128xf32> to vector<128x128xf32>
    %cst_130 = arith.constant dense<0.000000e+00> : vector<128x128xf32>
    %165 = tpu.matmul %162, %164, %cst_130 {dimension_numbers = #tpu.dot_dimension_numbers<[1], [0], [0], [1], [0, 0, 1, 1], [], []>} : vector<128x128xf32>, vector<128x128xf32>, vector<128x128xf32> -> vector<128x128xf32>
    %166 = arith.addf %160, %165 : vector<128x128xf32>
    %167 = vector.extract_strided_slice %125 {offsets = [2, 1, 0], sizes = [8, 16, 128], strides = [1, 1, 1]} : vector<10x18x128xf32> to vector<8x16x128xf32>
    %168 = vector.shape_cast %167 : vector<8x16x128xf32> to vector<128x128xf32>
    %c7_131 = arith.constant 7 : index
    %c0_132 = arith.constant 0 : index
    %c0_133 = arith.constant 0 : index
    %169 = vector.load %arg5[%c7_131, %c0_132, %c0_133] : memref<9x128x128xf32, #tpu.memory_space<vmem>>, vector<1x128x128xf32>
    %170 = vector.shape_cast %169 : vector<1x128x128xf32> to vector<128x128xf32>
    %cst_134 = arith.constant dense<0.000000e+00> : vector<128x128xf32>
    %171 = tpu.matmul %168, %170, %cst_134 {dimension_numbers = #tpu.dot_dimension_numbers<[1], [0], [0], [1], [0, 0, 1, 1], [], []>} : vector<128x128xf32>, vector<128x128xf32>, vector<128x128xf32> -> vector<128x128xf32>
    %172 = arith.addf %166, %171 : vector<128x128xf32>
    %173 = vector.extract_strided_slice %125 {offsets = [2, 2, 0], sizes = [8, 16, 128], strides = [1, 1, 1]} : vector<10x18x128xf32> to vector<8x16x128xf32>
    %174 = vector.shape_cast %173 : vector<8x16x128xf32> to vector<128x128xf32>
    %c8_135 = arith.constant 8 : index
    %c0_136 = arith.constant 0 : index
    %c0_137 = arith.constant 0 : index
    %175 = vector.load %arg5[%c8_135, %c0_136, %c0_137] : memref<9x128x128xf32, #tpu.memory_space<vmem>>, vector<1x128x128xf32>
    %176 = vector.shape_cast %175 : vector<1x128x128xf32> to vector<128x128xf32>
    %cst_138 = arith.constant dense<0.000000e+00> : vector<128x128xf32>
    %177 = tpu.matmul %174, %176, %cst_138 {dimension_numbers = #tpu.dot_dimension_numbers<[1], [0], [0], [1], [0, 0, 1, 1], [], []>} : vector<128x128xf32>, vector<128x128xf32>, vector<128x128xf32> -> vector<128x128xf32>
    %178 = arith.addf %172, %177 : vector<128x128xf32>
    %c0_139 = arith.constant 0 : index
    %c0_140 = arith.constant 0 : index
    %179 = vector.load %arg6[%c0_139, %c0_140] : memref<1x128xf32, #tpu.memory_space<vmem>>, vector<1x128xf32>
    %180 = vector.broadcast %179 : vector<1x128xf32> to vector<128x128xf32>
    %181 = arith.addf %178, %180 : vector<128x128xf32>
    %cst_141 = arith.constant 0.000000e+00 : f32
    %182 = vector.broadcast %cst_141 : f32 to vector<128x128xf32>
    %183 = arith.maximumf %181, %182 : vector<128x128xf32>
    %184 = vector.shape_cast %183 : vector<128x128xf32> to vector<1x8x16x128xf32>
    %c0_142 = arith.constant 0 : index
    %c0_143 = arith.constant 0 : index
    %c0_144 = arith.constant 0 : index
    %c0_145 = arith.constant 0 : index
    %185 = vector.load %arg7[%c0_142, %c0_143, %c0_144, %c0_145] : memref<1x8x16x128xf32, #tpu.memory_space<vmem>>, vector<1x8x16x128xf32>
    tpu.vector_store %arg7[%c0_142, %c0_143, %c0_144, %c0_145], %184 {strides = array<i32>} : memref<1x8x16x128xf32, #tpu.memory_space<vmem>>, vector<1x8x16x128xf32>,
    return
  }
  func.func @transform_1(%arg0: i32, %arg1: i32) -> (i32, i32, i32) {
    %c0_i32 = arith.constant 0 : i32
    %c0_i32_0 = arith.constant 0 : i32
    %c0_i32_1 = arith.constant 0 : i32
    %c0_i32_2 = arith.constant 0 : i32
    return %c0_i32, %c0_i32_0, %c0_i32_1 : i32, i32, i32
  }
  func.func @transform_2(%arg0: i32, %arg1: i32) -> (i32, i32) {
    %c0_i32 = arith.constant 0 : i32
    %c0_i32_0 = arith.constant 0 : i32
    %c0_i32_1 = arith.constant 0 : i32
    return %c0_i32, %c0_i32_0 : i32, i32
  }
  func.func @transform_3(%arg0: i32, %arg1: i32) -> (i32, i32, i32) {
    %c0_i32 = arith.constant 0 : i32
    %c0_i32_0 = arith.constant 0 : i32
    %c0_i32_1 = arith.constant 0 : i32
    %c0_i32_2 = arith.constant 0 : i32
    return %c0_i32, %c0_i32_0, %c0_i32_1 : i32, i32, i32
  }
  func.func @transform_4(%arg0: i32, %arg1: i32) -> (i32, i32) {
    %c0_i32 = arith.constant 0 : i32
    %c0_i32_0 = arith.constant 0 : i32
    %c0_i32_1 = arith.constant 0 : i32
    return %c0_i32, %c0_i32_0 : i32, i32
  }
  func.func @transform_5(%arg0: i32, %arg1: i32) -> (i32, i32, i32, i32) {
    %c0_i32 = arith.constant 0 : i32
    %c0_i32_0 = arith.constant 0 : i32
    %c0_i32_1 = arith.constant 0 : i32
    return %arg0, %arg1, %c0_i32, %c0_i32_0 : i32, i32, i32, i32
  }
}

</mosaic_0001>

<bundles_post_ra>
// kernel: conv_block_nested_forward.1
= control target key start
LH: loop header
LB: loop body
LE: loop exit
PB: predicated region body
PF: predicated region fallthrough
CT: control target
= control target key end

     0   :  { %s6305_s18 = smov 0   ;;  %s6307_s19 = smov 0   ;;  %s9396_s0 = inlined_call_operand.vmem [shape: f32[2,20,24,128], index: 0, kind: input, shape index: {}]   ;;  %s9397_s1 = inlined_call_operand.vmem [shape: f32[9,128,128], index: 1, kind: input, shape index: {}]   ;;  %s9398_s2 = inlined_call_operand.vmem [shape: f32[1,128], index: 2, kind: input, shape index: {}]   ;;  %s9399_s3 = inlined_call_operand.vmem [shape: f32[9,128,128], index: 3, kind: input, shape index: {}]   ;;  %s9400_s4 = inlined_call_operand.vmem [shape: f32[1,128], index: 4, kind: input, shape index: {}]   ;;  %s9401_s5 = inlined_call_operand.vmem [shape: f32[2,16,16,128], index: 5, kind: output, shape index: {}]  }
   0x1   :  { %s6309_s20 = smov 0   ;;  %s6311_s21 = smov 0  }
   0x2   :  { %s6313_s22 = smov 0  }
   0x3 LB: > { %s24_s23 = sadd.s32 1, %s6265_s20  ;;  %s27_s24 = sadd.s32 1, %s6269_s21  ;;  %s6273_s22 = sphi %s6313_s22, %s15_s22   ;;  %s6269_s21 = sphi %s6311_s21, %s9777_s21   ;;  %s6265_s20 = sphi %s6309_s20, %s9776_s20   ;;  %s6261_s19 = sphi %s6307_s19, %s9775_s19   ;;  %s6257_s18 = sphi %s6305_s18, %s9774_s18  }
   0x4   : > { %p25_p0 = scmp.ge.s32.totalorder %s24_s23, 2  ;;  %p5603_p1 = scmp.ge.s32.totalorder %s6273_s22, 1 }
   0x5   : > { %p167_p2 = scmp.lt.s32.totalorder %s6273_s22, 5 }
   0x6   : > { %s9779_s23 = smov (%p25_p0, %s24_s23), 0  ;;  %s9781_s24 = smov (!%p25_p0, %s27_s24), %s6269_s21 }
   0x7   : > { %p168_p3 = pnand %p5603_p1, %p167_p2  ;;  %p29_p4 = scmp.ge.s32.totalorder %s9781_s24, 2 }
   0x9   : > { %s9783_s24 = smov (%p29_p4, %s9781_s24), 0  ;;  %171 = sbr.rel (%p168_p3) target bundleno = 1866 (0x74a), region = 36 }
   0xe   : > { %s6340_s25 = sshll.u32 %s6257_s18, 3  ;;  %p194_p5 = scmp.lt.s32.totalorder %s6261_s19, 1 }
   0xf   : > { %p196_p6 = scmp.lt.s32.totalorder %s6340_s25, 15  ;;  %p204_p7 = scmp.lt.s32.totalorder %s6257_s18, 0 }
  0x10   : > { %s195_s26 = scalar_select %p194_p5, %s6261_s19, 1 }
  0x11   : > { %s197_s27 = scalar_select %p196_p6, %s6340_s25, 15 }
  0x12   : > { %s5606_s28 = sshll.u32 %s195_s26, 5  ;;  %s205_s29 = ssub.s32 0, %s6257_s18 }
  0x13   : > { %s5605_s30 = sshll.u32 %s197_s27, 1  ;;  %s5608_s6 = smin.u32 %s6257_s18, %s205_s29 }
  0x14   : > { %s200_s7 = sadd.s32 %s5606_s28, %s5605_s30  ;;  %s207_s8 = sand.u32 1, %s5608_s6  }
  0x15   : > { %s5607_s9 = sshll.u32 %s200_s7, 3  ;;  %s208_s10 = ssub.s32 0, %s207_s8 }
  0x16   : > { %s6352_s13 = scalar_lea.vmem %s9401_s5, %s5607_s9  ;;  %s9785_s10 = smov (!%p204_p7, %s208_s10), %s207_s8 }
  0x17   : > { %p5610_p8 = scmp.lt.s32.totalorder %s9785_s10, 0  ;;  %s214_s14 = sadd.s32 2, %s9785_s10 }
  0x18   : > { %p5611_p9 = scmp.ne.s32.totalorder %s6257_s18, 0 }
  0x19   : > { %s9787_s14 = smov (!%p5610_p8, %s214_s14), %s9785_s10  ;;  %s220_s15 = smul.u32 (!%p5611_p9), 480, %s6261_s19 }
  0x1a   : > { %219 = sbr.rel (%p5611_p9) target bundleno = 69 (0x45), region = 40  ;;  %s224_s29 = scalar_lea.sflag (!%p5611_p9), [#allocation3], %s9787_s14 }
  0x1b   : > { %s222_s16 = smul.u32 (!%p5611_p9), 288, %s9787_s14  ;;  %s6362_s27 = scalar_lea.vmem (!%p5611_p9), %s9396_s0, %s220_s15 }
  0x1d   : > { %s6367_s28 = scalar_lea.vmem (!%p5611_p9), [#allocation2], %s222_s16 }
  0x1f   : > { %v235_v0 = vld [vmem:[%s6362_s27] sm:$0xff]  ;;  %v237_v1 = vld [vmem:[%s6362_s27 + $0x8] sm:$0xff]  ;;  %v239_v2 = vld [vmem:[%s6362_s27 + $0x10] sm:$0xff] }
  0x20   : > { %236 = vst [vmem:[%s6367_s28] sm:$0xff] %v235_v0  ;;  %v241_v3 = vld [vmem:[%s6362_s27 + $0x18] sm:$0xff]  ;;  %v243_v4 = vld [vmem:[%s6362_s27 + $0x20] sm:$0xff]  ;;  %v245_v5 = vld [vmem:[%s6362_s27 + $0x28] sm:$0xff] }
  0x21   : > { %238 = vst [vmem:[%s6367_s28 + $0x8] sm:$0xff] %v237_v1  ;;  %v247_v6 = vld [vmem:[%s6362_s27 + $0x30] sm:$0xff]  ;;  %v249_v7 = vld [vmem:[%s6362_s27 + $0x38] sm:$0xff]  ;;  %v251_v8 = vld [vmem:[%s6362_s27 + $0x40] sm:$0xff] }
  0x22   : > { %240 = vst [vmem:[%s6367_s28 + $0x10] sm:$0xff] %v239_v2  ;;  %v253_v9 = vld [vmem:[%s6362_s27 + $0x48] sm:$0xff]  ;;  %v255_v10 = vld [vmem:[%s6362_s27 + $0x50] sm:$0xff]  ;;  %v257_v11 = vld [vmem:[%s6362_s27 + $0x58] sm:$0xff] }
  0x23   : > { %242 = vst [vmem:[%s6367_s28 + $0x18] sm:$0xff] %v241_v3  ;;  %v259_v12 = vld [vmem:[%s6362_s27 + $0x60] sm:$0xff]  ;;  %v261_v13 = vld [vmem:[%s6362_s27 + $0x68] sm:$0xff]  ;;  %v263_v14 = vld [vmem:[%s6362_s27 + $0x70] sm:$0xff] }
  0x24   : > { %244 = vst [vmem:[%s6367_s28 + $0x20] sm:$0xff] %v243_v4  ;;  %v265_v15 = vld [vmem:[%s6362_s27 + $0x78] sm:$0xff]  ;;  %v267_v16 = vld [vmem:[%s6362_s27 + $0x80] sm:$0xff]  ;;  %v269_v17 = vld [vmem:[%s6362_s27 + $0x88] sm:$0xff] }
  0x25   : > { %246 = vst [vmem:[%s6367_s28 + $0x28] sm:$0xff] %v245_v5  ;;  %v271_v18 = vld [vmem:[%s6362_s27 + $0x90] sm:$0xff]  ;;  %v273_v19 = vld [vmem:[%s6362_s27 + $0x98] sm:$0xff]  ;;  %v275_v20 = vld [vmem:[%s6362_s27 + $0xa0] sm:$0xff] }
  0x26   : > { %248 = vst [vmem:[%s6367_s28 + $0x30] sm:$0xff] %v247_v6  ;;  %v277_v21 = vld [vmem:[%s6362_s27 + $0xa8] sm:$0xff]  ;;  %v279_v22 = vld [vmem:[%s6362_s27 + $0xb0] sm:$0xff]  ;;  %v281_v23 = vld [vmem:[%s6362_s27 + $0xb8] sm:$0xff] }
  0x27   : > { %250 = vst [vmem:[%s6367_s28 + $0x38] sm:$0xff] %v249_v7  ;;  %v283_v24 = vld [vmem:[%s6362_s27 + $0xc0] sm:$0xff]  ;;  %v285_v25 = vld [vmem:[%s6362_s27 + $0xc8] sm:$0xff]  ;;  %v287_v26 = vld [vmem:[%s6362_s27 + $0xd0] sm:$0xff] }
  0x28   : > { %252 = vst [vmem:[%s6367_s28 + $0x40] sm:$0xff] %v251_v8  ;;  %v289_v27 = vld [vmem:[%s6362_s27 + $0xd8] sm:$0xff]  ;;  %v291_v28 = vld [vmem:[%s6362_s27 + $0xe0] sm:$0xff]  ;;  %v293_v29 = vld [vmem:[%s6362_s27 + $0xe8] sm:$0xff] }
  0x29   : > { %254 = vst [vmem:[%s6367_s28 + $0x48] sm:$0xff] %v253_v9  ;;  %v295_v30 = vld [vmem:[%s6362_s27 + $0xf0] sm:$0xff]  ;;  %v297_v31 = vld [vmem:[%s6362_s27 + $0xf8] sm:$0xff]  ;;  %v299_v32 = vld [vmem:[%s6362_s27 + $0x100] sm:$0xff] }
  0x2a   : > { %256 = vst [vmem:[%s6367_s28 + $0x50] sm:$0xff] %v255_v10  ;;  %v301_v33 = vld [vmem:[%s6362_s27 + $0x108] sm:$0xff]  ;;  %v303_v34 = vld [vmem:[%s6362_s27 + $0x110] sm:$0xff]  ;;  %v305_v35 = vld [vmem:[%s6362_s27 + $0x118] sm:$0xff] }
  0x2b   : > { %258 = vst [vmem:[%s6367_s28 + $0x58] sm:$0xff] %v257_v11 }
  0x2c   : > { %260 = vst [vmem:[%s6367_s28 + $0x60] sm:$0xff] %v259_v12 }
  0x2d   : > { %262 = vst [vmem:[%s6367_s28 + $0x68] sm:$0xff] %v261_v13 }
  0x2e   : > { %264 = vst [vmem:[%s6367_s28 + $0x70] sm:$0xff] %v263_v14 }
  0x2f   : > { %266 = vst [vmem:[%s6367_s28 + $0x78] sm:$0xff] %v265_v15 }
  0x30   : > { %268 = vst [vmem:[%s6367_s28 + $0x80] sm:$0xff] %v267_v16 }
  0x31   : > { %270 = vst [vmem:[%s6367_s28 + $0x88] sm:$0xff] %v269_v17 }
  0x32   : > { %272 = vst [vmem:[%s6367_s28 + $0x90] sm:$0xff] %v271_v18 }
  0x33   : > { %274 = vst [vmem:[%s6367_s28 + $0x98] sm:$0xff] %v273_v19 }
  0x34   : > { %276 = vst [vmem:[%s6367_s28 + $0xa0] sm:$0xff] %v275_v20 }
  0x35   : > { %278 = vst [vmem:[%s6367_s28 + $0xa8] sm:$0xff] %v277_v21 }
  0x36   : > { %280 = vst [vmem:[%s6367_s28 + $0xb0] sm:$0xff] %v279_v22 }
  0x37   : > { %282 = vst [vmem:[%s6367_s28 + $0xb8] sm:$0xff] %v281_v23 }
  0x38   : > { %284 = vst [vmem:[%s6367_s28 + $0xc0] sm:$0xff] %v283_v24 }
  0x39   : > { %286 = vst [vmem:[%s6367_s28 + $0xc8] sm:$0xff] %v285_v25 }
  0x3a   : > { %288 = vst [vmem:[%s6367_s28 + $0xd0] sm:$0xff] %v287_v26 }
  0x3b   : > { %290 = vst [vmem:[%s6367_s28 + $0xd8] sm:$0xff] %v289_v27 }
  0x3c   : > { %292 = vst [vmem:[%s6367_s28 + $0xe0] sm:$0xff] %v291_v28 }
  0x3d   : > { %294 = vst [vmem:[%s6367_s28 + $0xe8] sm:$0xff] %v293_v29 }
  0x3e   : > { %296 = vst [vmem:[%s6367_s28 + $0xf0] sm:$0xff] %v295_v30 }
  0x3f   : > { %298 = vst [vmem:[%s6367_s28 + $0xf8] sm:$0xff] %v297_v31 }
  0x40   : > { %300 = vst [vmem:[%s6367_s28 + $0x100] sm:$0xff] %v299_v32 }
  0x41   : > { %302 = vst [vmem:[%s6367_s28 + $0x108] sm:$0xff] %v301_v33 }
  0x42   : > { %304 = vst [vmem:[%s6367_s28 + $0x110] sm:$0xff] %v303_v34 }
  0x43   : > { %306 = vst [vmem:[%s6367_s28 + $0x118] sm:$0xff] %v305_v35 }
  0x44   : > { %312 = vsyncadd %s224_s29, 4608 }
  0x45 PF: > { %s313_s30 = smul.u32 288, %s9787_s14  ;;  %s315_s7 = scalar_lea.sflag [#allocation3], %s9787_s14 }
  0x47   : > { %s6440_s6 = scalar_lea.vmem [#allocation2], %s313_s30 }
  0x48   : > { %6253 = dma.done.wait %s315_s7, 4608 }
  0x49   : > { %6254 = vsyncadd %s315_s7, 4294962688  ;;  %s320_s8 = sadd.s32 1, %s6257_s18 }
  0x4a   : > { %p5612_p10 = scmp.ge.s32.totalorder %s320_s8, 2 }
  0x4b   : > { %s325_s9 = ssub.s32 (!%p5612_p10), 1, %s9787_s14  ;;  %s5548_s10 = smul.u32 (!%p5612_p10), 192, %s6257_s18 }
  0x4c   : > { %324 = sbr.rel (%p5612_p10) target bundleno = 119 (0x77), region = 63 }
  0x4d   : > { %s5549_s11 = smul.u32 (!%p5612_p10), 480, %s6261_s19  ;;  %s333_s19 = scalar_lea.sflag (!%p5612_p10), [#allocation3], %s325_s9 }
  0x4e   : > { %s331_s12 = smul.u32 (!%p5612_p10), 288, %s325_s9 }
  0x4f   : > { %s5550_s15 = sadd.s32 (!%p5612_p10), %s5549_s11, %s5548_s10 }
  0x50   : > { %s6452_s26 = scalar_lea.vmem (!%p5612_p10), %s9396_s0, %s5550_s15  ;;  %s6457_s18 = scalar_lea.vmem (!%p5612_p10), [#allocation2], %s331_s12 }
  0x51   : > { %v5613_v36 = vld [vmem:[%s6452_s26 + $0xc0] sm:$0xff]  ;;  %v5614_v37 = vld [vmem:[%s6452_s26 + $0xc8] sm:$0xff]  ;;  %v5615_v38 = vld [vmem:[%s6452_s26 + $0xd0] sm:$0xff] }
  0x52   : > { %345 = vst [vmem:[%s6457_s18] sm:$0xff] %v5613_v36  ;;  %v5616_v39 = vld [vmem:[%s6452_s26 + $0xd8] sm:$0xff]  ;;  %v5617_v40 = vld [vmem:[%s6452_s26 + $0xe0] sm:$0xff]  ;;  %v5618_v41 = vld [vmem:[%s6452_s26 + $0xe8] sm:$0xff] }
  0x53   : > { %347 = vst [vmem:[%s6457_s18 + $0x8] sm:$0xff] %v5614_v37  ;;  %v5619_v42 = vld [vmem:[%s6452_s26 + $0xf0] sm:$0xff]  ;;  %v5620_v43 = vld [vmem:[%s6452_s26 + $0xf8] sm:$0xff]  ;;  %v5621_v44 = vld [vmem:[%s6452_s26 + $0x100] sm:$0xff] }
  0x54   : > { %349 = vst [vmem:[%s6457_s18 + $0x10] sm:$0xff] %v5615_v38  ;;  %v5622_v45 = vld [vmem:[%s6452_s26 + $0x108] sm:$0xff]  ;;  %v5623_v46 = vld [vmem:[%s6452_s26 + $0x110] sm:$0xff]  ;;  %v5624_v47 = vld [vmem:[%s6452_s26 + $0x118] sm:$0xff] }
  0x55   : > { %351 = vst [vmem:[%s6457_s18 + $0x18] sm:$0xff] %v5616_v39  ;;  %v5625_v48 = vld [vmem:[%s6452_s26 + $0x120] sm:$0xff]  ;;  %v5626_v49 = vld [vmem:[%s6452_s26 + $0x128] sm:$0xff]  ;;  %v5627_v50 = vld [vmem:[%s6452_s26 + $0x130] sm:$0xff] }
  0x56   : > { %353 = vst [vmem:[%s6457_s18 + $0x20] sm:$0xff] %v5617_v40  ;;  %v5628_v51 = vld [vmem:[%s6452_s26 + $0x138] sm:$0xff]  ;;  %v5629_v52 = vld [vmem:[%s6452_s26 + $0x140] sm:$0xff]  ;;  %v5630_v53 = vld [vmem:[%s6452_s26 + $0x148] sm:$0xff] }
  0x57   : > { %355 = vst [vmem:[%s6457_s18 + $0x28] sm:$0xff] %v5618_v41  ;;  %v5631_v54 = vld [vmem:[%s6452_s26 + $0x150] sm:$0xff]  ;;  %v5632_v55 = vld [vmem:[%s6452_s26 + $0x158] sm:$0xff]  ;;  %v5633_v56 = vld [vmem:[%s6452_s26 + $0x160] sm:$0xff] }
  0x58   : > { %357 = vst [vmem:[%s6457_s18 + $0x30] sm:$0xff] %v5619_v42  ;;  %v5634_v57 = vld [vmem:[%s6452_s26 + $0x168] sm:$0xff]  ;;  %v5635_v58 = vld [vmem:[%s6452_s26 + $0x170] sm:$0xff]  ;;  %v5636_v59 = vld [vmem:[%s6452_s26 + $0x178] sm:$0xff] }
  0x59   : > { %359 = vst [vmem:[%s6457_s18 + $0x38] sm:$0xff] %v5620_v43  ;;  %v5637_v60 = vld [vmem:[%s6452_s26 + $0x180] sm:$0xff]  ;;  %v5638_v61 = vld [vmem:[%s6452_s26 + $0x188] sm:$0xff]  ;;  %v5639_v62 = vld [vmem:[%s6452_s26 + $0x190] sm:$0xff] }
  0x5a   : > { %361 = vst [vmem:[%s6457_s18 + $0x40] sm:$0xff] %v5621_v44  ;;  %v5640_v63 = vld [vmem:[%s6452_s26 + $0x198] sm:$0xff]  ;;  %v5641_v0 = vld [vmem:[%s6452_s26 + $0x1a0] sm:$0xff]  ;;  %v5642_v1 = vld [vmem:[%s6452_s26 + $0x1a8] sm:$0xff] }
  0x5b   : > { %363 = vst [vmem:[%s6457_s18 + $0x48] sm:$0xff] %v5622_v45  ;;  %v5643_v2 = vld [vmem:[%s6452_s26 + $0x1b0] sm:$0xff]  ;;  %v5644_v3 = vld [vmem:[%s6452_s26 + $0x1b8] sm:$0xff]  ;;  %v5645_v4 = vld [vmem:[%s6452_s26 + $0x1c0] sm:$0xff] }
  0x5c   : > { %365 = vst [vmem:[%s6457_s18 + $0x50] sm:$0xff] %v5623_v46  ;;  %v5646_v5 = vld [vmem:[%s6452_s26 + $0x1c8] sm:$0xff]  ;;  %v5647_v6 = vld [vmem:[%s6452_s26 + $0x1d0] sm:$0xff]  ;;  %v5648_v7 = vld [vmem:[%s6452_s26 + $0x1d8] sm:$0xff] }
  0x5d   : > { %367 = vst [vmem:[%s6457_s18 + $0x58] sm:$0xff] %v5624_v47 }
  0x5e   : > { %369 = vst [vmem:[%s6457_s18 + $0x60] sm:$0xff] %v5625_v48 }
  0x5f   : > { %371 = vst [vmem:[%s6457_s18 + $0x68] sm:$0xff] %v5626_v49 }
  0x60   : > { %373 = vst [vmem:[%s6457_s18 + $0x70] sm:$0xff] %v5627_v50 }
  0x61   : > { %375 = vst [vmem:[%s6457_s18 + $0x78] sm:$0xff] %v5628_v51 }
  0x62   : > { %377 = vst [vmem:[%s6457_s18 + $0x80] sm:$0xff] %v5629_v52 }
  0x63   : > { %379 = vst [vmem:[%s6457_s18 + $0x88] sm:$0xff] %v5630_v53 }
  0x64   : > { %381 = vst [vmem:[%s6457_s18 + $0x90] sm:$0xff] %v5631_v54 }
  0x65   : > { %383 = vst [vmem:[%s6457_s18 + $0x98] sm:$0xff] %v5632_v55 }
  0x66   : > { %385 = vst [vmem:[%s6457_s18 + $0xa0] sm:$0xff] %v5633_v56 }
  0x67   : > { %387 = vst [vmem:[%s6457_s18 + $0xa8] sm:$0xff] %v5634_v57 }
  0x68   : > { %389 = vst [vmem:[%s6457_s18 + $0xb0] sm:$0xff] %v5635_v58 }
  0x69   : > { %391 = vst [vmem:[%s6457_s18 + $0xb8] sm:$0xff] %v5636_v59 }
  0x6a   : > { %393 = vst [vmem:[%s6457_s18 + $0xc0] sm:$0xff] %v5637_v60 }
  0x6b   : > { %395 = vst [vmem:[%s6457_s18 + $0xc8] sm:$0xff] %v5638_v61 }
  0x6c   : > { %397 = vst [vmem:[%s6457_s18 + $0xd0] sm:$0xff] %v5639_v62 }
  0x6d   : > { %399 = vst [vmem:[%s6457_s18 + $0xd8] sm:$0xff] %v5640_v63 }
  0x6e   : > { %401 = vst [vmem:[%s6457_s18 + $0xe0] sm:$0xff] %v5641_v0 }
  0x6f   : > { %403 = vst [vmem:[%s6457_s18 + $0xe8] sm:$0xff] %v5642_v1 }
  0x70   : > { %405 = vst [vmem:[%s6457_s18 + $0xf0] sm:$0xff] %v5643_v2 }
  0x71   : > { %407 = vst [vmem:[%s6457_s18 + $0xf8] sm:$0xff] %v5644_v3 }
  0x72   : > { %409 = vst [vmem:[%s6457_s18 + $0x100] sm:$0xff] %v5645_v4 }
  0x73   : > { %411 = vst [vmem:[%s6457_s18 + $0x108] sm:$0xff] %v5646_v5 }
  0x74   : > { %413 = vst [vmem:[%s6457_s18 + $0x110] sm:$0xff] %v5647_v6 }
  0x75   : > { %415 = vst [vmem:[%s6457_s18 + $0x118] sm:$0xff] %v5648_v7 }
  0x76   : > { %421 = vsyncadd %s333_s19, 4608 }
  0x77 PF: > { %v5665_v8 = vld [vmem:[%s9397_s1 + $0xf8] sm:$0xff]  ;;  %v5664_v9 = vld [vmem:[%s9397_s1 + $0xf0] sm:$0xff]  ;;  %v5663_v10 = vld [vmem:[%s9397_s1 + $0xe8] sm:$0xff]  ;;  %s5958_s19 = sadd.s32 4294967295, %s6340_s25  ;;  %vm9425_vm6 = vcmask 1046528   ;;  %vm9424_vm7 = vcmask 1045504  }
  0x78   : > { %839 = vmatpush.msra.mxu0 %v5665_v8  ;;  %v5662_v11 = vld [vmem:[%s9397_s1 + $0xe0] sm:$0xff]  ;;  %v5661_v14 = vld [vmem:[%s9397_s1 + $0xd8] sm:$0xff]  ;;  %v5660_v19 = vld [vmem:[%s9397_s1 + $0xd0] sm:$0xff] }
  0x79   : > { %v5659_v22 = vld [vmem:[%s9397_s1 + $0xc8] sm:$0xff]  ;;  %v5658_v23 = vld [vmem:[%s9397_s1 + $0xc0] sm:$0xff]  ;;  %v5657_v25 = vld [vmem:[%s9397_s1 + $0xb8] sm:$0xff] }
  0x7a   : > { %840 = vmatpush.msra.mxu0 %v5664_v9  ;;  %v5656_v27 = vld [vmem:[%s9397_s1 + $0xb0] sm:$0xff]  ;;  %v5655_v31 = vld [vmem:[%s9397_s1 + $0xa8] sm:$0xff]  ;;  %v5654_v33 = vld [vmem:[%s9397_s1 + $0xa0] sm:$0xff] }
  0x7b   : > { %v5653_v38 = vld [vmem:[%s9397_s1 + $0x98] sm:$0xff]  ;;  %v5652_v39 = vld [vmem:[%s9397_s1 + $0x90] sm:$0xff]  ;;  %v5651_v42 = vld [vmem:[%s9397_s1 + $0x88] sm:$0xff] }
  0x7c   : > { %841 = vmatpush.msra.mxu0 %v5663_v10  ;;  %v559_v12 = vld [vmem:[%s6440_s6 + $0x1] sm:$0xff]  ;;  %v560_v13 = vld [vmem:[%s6440_s6 + $0x9] sm:$0xff]  ;;  %v562_v24 = vld [vmem:[%s6440_s6 + $0x19] sm:$0xff] }
  0x7d   : > { %v619_v15 = vrot.slane %v559_v12, 2  ;;  %v620_v16 = vrot.slane %v559_v12, 4  ;;  %v621_v17 = vrot.slane %v559_v12, 6  ;;  %696 = vst [vmem:[#allocation1] ss:$4 sm:$0xff] %v559_v12  ;;  %v622_v18 = vrot.slane %v560_v13, 2 }
  0x7e   : > { %842 = vmatpush.msra.mxu0 %v5662_v11  ;;  %704 = vst [vmem:[#allocation1 + $0x20] ss:$4 sm:$0xff] %v560_v13  ;;  %v623_v20 = vrot.slane %v560_v13, 4  ;;  %v624_v21 = vrot.slane %v560_v13, 6  ;;  %v561_v26 = vld [vmem:[%s6440_s6 + $0x11] sm:$0x3] }
  0x7f   : > { %698 = vst [vmem:[#allocation1 + $0x1] ss:$4 sm:$0xff] %v619_v15  ;;  %v625_v28 = vrot.slane %v562_v24, 2  ;;  %v626_v30 = vrot.slane %v562_v24, 4  ;;  %v627_v32 = vrot.slane %v562_v24, 6  ;;  %v563_v34 = vld [vmem:[%s6440_s6 + $0x21] sm:$0xff] }
  0x80   : > { %843 = vmatpush.msra.mxu0 %v5661_v14  ;;  %700 = vst [vmem:[#allocation1 + $0x2] ss:$4 sm:$0xff] %v620_v16  ;;  %v628_v36 = vrot.slane %v563_v34, 2  ;;  %v629_v37 = vrot.slane %v563_v34, 4  ;;  %v565_v40 = vld [vmem:[%s6440_s6 + $0x31] sm:$0xff]  ;;  %v630_v41 = vrot.slane %v563_v34, 6 }
  0x81   : > { %702 = vst [vmem:[#allocation1 + $0x3] ss:$4 sm:$0xff] %v621_v17  ;;  %v564_v43 = vld [vmem:[%s6440_s6 + $0x29] sm:$0x3]  ;;  %v5650_v44 = vld [vmem:[%s9397_s1 + $0x80] sm:$0xff]  ;;  %v631_v46 = vrot.slane %v565_v40, 2 }
  0x82   : > { %844 = vmatpush.msra.mxu0 %v5660_v19  ;;  %706 = vst [vmem:[#allocation1 + $0x21] ss:$4 sm:$0xff] %v622_v18  ;;  %v566_v47 = vld [vmem:[%s6440_s6 + $0x39] sm:$0xff]  ;;  %v632_v49 = vrot.slane %v565_v40, 4  ;;  %v633_v50 = vrot.slane %v565_v40, 6  ;;  %v568_v56 = vld [vmem:[%s6440_s6 + $0x49] sm:$0xff] }
  0x83   : > { %708 = vst [vmem:[#allocation1 + $0x22] ss:$4 sm:$0xff] %v623_v20  ;;  %v634_v51 = vrot.slane %v566_v47, 2  ;;  %v635_v52 = vrot.slane %v566_v47, 4  ;;  %v636_v53 = vrot.slane %v566_v47, 6  ;;  %v569_v58 = vld [vmem:[%s6440_s6 + $0x51] sm:$0xff] }
  0x84   : > { %845 = vmatpush.msra.mxu0 %v5659_v22  ;;  %710 = vst [vmem:[#allocation1 + $0x23] ss:$4 sm:$0xff] %v624_v21  ;;  %v567_v55 = vld [vmem:[%s6440_s6 + $0x41] sm:$0x3]  ;;  %v558_v59 = vld [vmem:[%s9397_s1 + $0x78] sm:$0xff]  ;;  %v557_v60 = vld [vmem:[%s9397_s1 + $0x70] sm:$0xff] }
  0x85   : > { %v637_v61 = vrot.slane %v568_v56, 2  ;;  %v638_v62 = vrot.slane %v568_v56, 4  ;;  %v639_v63 = vrot.slane %v568_v56, 6  ;;  %6143 = vmatpush.msra.mxu3 %v558_v59  ;;  %v640_v0 = vrot.slane %v569_v58, 2  ;;  %6142 = vmatpush.msra.mxu1 %v558_v59  ;;  %v570_v4 = vld [vmem:[%s6440_s6 + $0x59] sm:$0x3] }
  0x86   : > { %846 = vmatpush.msra.mxu0 %v5658_v23  ;;  %v641_v2 = vrot.slane %v569_v58, 4  ;;  %v642_v3 = vrot.slane %v569_v58, 6  ;;  %v556_v5 = vld [vmem:[%s9397_s1 + $0x68] sm:$0xff]  ;;  %v555_v6 = vld [vmem:[%s9397_s1 + $0x60] sm:$0xff]  ;;  %v572_v7 = vld [vmem:[%s6440_s6 + $0x69] sm:$0xff] }
  0x87   : > { %6145 = vmatpush.msra.mxu3 %v557_v60  ;;  %6144 = vmatpush.msra.mxu1 %v557_v60  ;;  %v554_v8 = vld [vmem:[%s9397_s1 + $0x58] sm:$0xff]  ;;  %v553_v9 = vld [vmem:[%s9397_s1 + $0x50] sm:$0xff]  ;;  %v646_v10 = vrot.slane %v572_v7, 2  ;;  %v647_v11 = vrot.slane %v572_v7, 4  ;;  %v648_v12 = vrot.slane %v572_v7, 6  ;;  %v552_v14 = vld [vmem:[%s9397_s1 + $0x48] sm:$0xff] }
  0x88   : > { %847 = vmatpush.msra.mxu0 %v5657_v25  ;;  %v711_v29 = vld.sshfl [vmem:[#allocation1] sm:$0xff pattern:$0x73625140]  ;;  %v571_v17 = vld [vmem:[%s6440_s6 + $0x61] sm:$0xff]  ;;  %v550_v18 = vld [vmem:[%s9397_s1 + $0x38] sm:$0xff] }
  0x89   : > { %713 = vst [vmem:[#allocation1] ss:$4 sm:$0xff] %v561_v26  ;;  %6147 = vmatpush.msra.mxu3 %v556_v5  ;;  %6146 = vmatpush.msra.mxu1 %v556_v5  ;;  %v551_v15 = vld [vmem:[%s9397_s1 + $0x40] sm:$0xff]  ;;  %v643_v19 = vrot.slane %v571_v17, 2  ;;  %v644_v20 = vrot.slane %v571_v17, 4  ;;  %v645_v21 = vrot.slane %v571_v17, 6 }
  0x8a   : > { %848 = vmatpush.msra.mxu0 %v5656_v27  ;;  %714 = vst [vmem:[#allocation1 + $0x1] ss:$4 sm:$0xff] %v562_v24  ;;  %v549_v22 = vld [vmem:[%s9397_s1 + $0x30] sm:$0xff]  ;;  %v574_v23 = vld [vmem:[%s6440_s6 + $0x79] sm:$0xff] }
  0x8b   : > { %v712_v35 = vld.sshfl [vmem:[#allocation1 + $0x20] sm:$0xff pattern:$0x73625140]  ;;  %715 = vst [vmem:[#allocation1 + $0x2] ss:$4 sm:$0xff] %v625_v28  ;;  %6149 = vmatpush.msra.mxu3 %v555_v6  ;;  %6148 = vmatpush.msra.mxu1 %v555_v6  ;;  %v6632_v24 = vld [vmem:[%s6440_s6 + $0x81] sm:$0xff] }
  0x8c   : > { %849 = vmatpush.msra.mxu0 %v5655_v31  ;;  %716 = vst [vmem:[#allocation1 + $0x3] ss:$4 sm:$0xff] %v626_v30  ;;  %v651_v25 = vrot.slane %v574_v23, 6  ;;  %v548_v26 = vld [vmem:[%s9397_s1 + $0x28] sm:$0xff]  ;;  %v547_v27 = vld [vmem:[%s9397_s1 + $0x20] sm:$0xff]  ;;  %v652_v28 = vrot.slane %v6632_v24, 2 }
  0x8d   : > { %717 = vst [vmem:[#allocation1 + $0x20] ss:$4 sm:$0xff] %v627_v32  ;;  %6151 = vmatpush.msra.mxu3 %v554_v8  ;;  %6150 = vmatpush.msra.mxu1 %v554_v8  ;;  %v546_v30 = vld [vmem:[%s9397_s1 + $0x18] sm:$0xff]  ;;  %v653_v31 = vrot.slane %v6632_v24, 4  ;;  %v545_v32 = vld [vmem:[%s9397_s1 + $0x10] sm:$0xff] }
  0x8e   : > { %850 = vmatpush.msra.mxu0 %v5654_v33  ;;  %718 = vst [vmem:[#allocation1 + $0x21] ss:$4 sm:$0xff] %v563_v34  ;;  %v573_v33 = vld [vmem:[%s6440_s6 + $0x71] sm:$0x3] }
  0x8f   : > { %719 = vst [vmem:[#allocation1 + $0x22] ss:$4 sm:$0xff] %v628_v36  ;;  %6153 = vmatpush.msra.mxu3 %v553_v9  ;;  %6152 = vmatpush.msra.mxu1 %v553_v9  ;;  %v543_v36 = vld [vmem:[%s9397_s1] sm:$0xff] }
  0x90   : > { %851 = vmatpush.msra.mxu0 %v5653_v38  ;;  %720 = vst [vmem:[#allocation1 + $0x23] ss:$4 sm:$0xff] %v629_v37  ;;  %v649_v37 = vrot.slane %v574_v23, 2  ;;  %v650_v38 = vrot.slane %v574_v23, 4 }
  0x91   : > { %6155 = vmatpush.msra.mxu3 %v552_v14  ;;  %6154 = vmatpush.msra.mxu1 %v552_v14 }
  0x92   : > { %852 = vmatpush.msra.mxu0 %v5652_v39  ;;  %v577_v39 = vld [vmem:[%s6440_s6 + $0x91] sm:$0xff] }
  0x93   : > { %v721_v45 = vld.sshfl [vmem:[#allocation1] sm:$0xff pattern:$0x73625140]  ;;  %6157 = vmatpush.msra.mxu3 %v551_v15  ;;  %6156 = vmatpush.msra.mxu1 %v551_v15 }
  0x94   : > { %853 = vmatpush.msra.mxu0 %v5651_v42  ;;  %723 = vst [vmem:[#allocation1] ss:$4 sm:$0xff] %v630_v41  ;;  %v657_v41 = vrot.slane %v577_v39, 6  ;;  %v654_v42 = vrot.slane %v6632_v24, 6 }
  0x95   : > { %724 = vst [vmem:[#allocation1 + $0x1] ss:$4 sm:$0xff] %v564_v43  ;;  %6159 = vmatpush.msra.mxu3 %v550_v18  ;;  %6158 = vmatpush.msra.mxu1 %v550_v18 }
  0x96   : > { %854 = vmatpush.msra.mxu0 %v5650_v44  ;;  %725 = vst [vmem:[#allocation1 + $0x2] ss:$4 sm:$0xff] %v565_v40  ;;  %v656_v40 = vrot.slane %v577_v39, 4  ;;  %v578_v44 = vld [vmem:[%s6440_s6 + $0x99] sm:$0xff] }
  0x97   : > { %855 = vmatmul.f32.vlgmr.msra.gmra.mxu0 %v711_v29  ;;  %v722_v48 = vld.sshfl [vmem:[#allocation1 + $0x20] sm:$0xff pattern:$0x73625140]  ;;  %726 = vst [vmem:[#allocation1 + $0x3] ss:$4 sm:$0xff] %v631_v46  ;;  %6161 = vmatpush.msra.mxu3 %v549_v22  ;;  %v655_v46 = vrot.slane %v577_v39, 2 }
  0x98   : > { %729 = vst [vmem:[#allocation1 + $0x22] ss:$4 sm:$0xff] %v566_v47  ;;  %1068 = vmatpush.msrb.mxu0 %v558_v59  ;;  %6160 = vmatpush.msra.mxu1 %v549_v22 }
  0x99   : > { %727 = vst [vmem:[#allocation1 + $0x20] ss:$4 sm:$0xff] %v632_v49  ;;  %6163 = vmatpush.msra.mxu3 %v548_v26  ;;  %v659_v49 = vrot.slane %v578_v44, 4 }
  0x9a   : > { %728 = vst [vmem:[#allocation1 + $0x21] ss:$4 sm:$0xff] %v633_v50  ;;  %1069 = vmatpush.msrb.mxu0 %v557_v60  ;;  %6162 = vmatpush.msra.mxu1 %v548_v26  ;;  %v580_v50 = vld [vmem:[%s6440_s6 + $0xa9] sm:$0xff] }
  0x9b   : > { %730 = vst [vmem:[#allocation1 + $0x23] ss:$4 sm:$0xff] %v634_v51  ;;  %6165 = vmatpush.msra.mxu3 %v547_v27  ;;  %v660_v51 = vrot.slane %v578_v44, 6 }
  0x9c   : > { %1070 = vmatpush.msrb.mxu0 %v556_v5  ;;  %6164 = vmatpush.msra.mxu1 %v547_v27  ;;  %v584_v5 = vld [vmem:[%s6440_s6 + $0xc9] sm:$0xff] }
  0x9d   : > { %6167 = vmatpush.msra.mxu3 %v546_v30 }
  0x9e   : > { %v731_v54 = vld.sshfl [vmem:[#allocation1] sm:$0xff pattern:$0x73625140]  ;;  %1071 = vmatpush.msrb.mxu0 %v555_v6  ;;  %6166 = vmatpush.msra.mxu1 %v546_v30  ;;  %v670_v6 = vrot.slane %v584_v5, 2 }
  0x9f   : > { %858 = vmatmul.f32.gmra.mxu0 %v712_v35  ;;  %733 = vst [vmem:[#allocation1] ss:$4 sm:$0xff] %v635_v52  ;;  %6169 = vmatpush.msra.mxu3 %v545_v32  ;;  %v544_v35 = vld [vmem:[%s9397_s1 + $0x8] sm:$0xff] }
  0xa0   : > { %734 = vst [vmem:[#allocation1 + $0x1] ss:$4 sm:$0xff] %v636_v53  ;;  %1072 = vmatpush.msrb.mxu0 %v554_v8  ;;  %6168 = vmatpush.msra.mxu1 %v545_v32  ;;  %v579_v52 = vld [vmem:[%s6440_s6 + $0xa1] sm:$0x3]  ;;  %v586_v8 = vld [vmem:[%s6440_s6 + $0xd9] sm:$0xff] }
  0xa1   : > { %735 = vst [vmem:[#allocation1 + $0x2] ss:$4 sm:$0xff] %v567_v55  ;;  %6171 = vmatpush.msra.mxu3 %v544_v35  ;;  %v662_v55 = vrot.slane %v580_v50, 4 }
  0xa2   : > { %v6588_v57 = vld.sshfl [vmem:[#allocation1 + $0x20] sm:$0xff pattern:$0x73625140]  ;;  %736 = vst [vmem:[#allocation1 + $0x3] ss:$4 sm:$0xff] %v568_v56  ;;  %1073 = vmatpush.msrb.mxu0 %v553_v9  ;;  %6170 = vmatpush.msra.mxu1 %v544_v35  ;;  %v672_v9 = vrot.slane %v584_v5, 6 }
  0xa3   : > { %740 = vst [vmem:[#allocation1 + $0x23] ss:$4 sm:$0xff] %v569_v58  ;;  %6173 = vmatpush.msra.mxu3 %v543_v36  ;;  %v581_v58 = vld [vmem:[%s6440_s6 + $0xb1] sm:$0xff] }
  0xa4   : > { %737 = vst [vmem:[#allocation1 + $0x20] ss:$4 sm:$0xff] %v637_v61  ;;  %1074 = vmatpush.msrb.mxu0 %v552_v14  ;;  %6172 = vmatpush.msra.mxu1 %v543_v36  ;;  %v664_v59 = vrot.slane %v581_v58, 2  ;;  %v665_v60 = vrot.slane %v581_v58, 4  ;;  %v583_v61 = vld [vmem:[%s6440_s6 + $0xc1] sm:$0xff] }
  0xa5   : > { %738 = vst [vmem:[#allocation1 + $0x21] ss:$4 sm:$0xff] %v638_v62  ;;  %v666_v62 = vrot.slane %v581_v58, 6 }
  0xa6   : > { %739 = vst [vmem:[#allocation1 + $0x22] ss:$4 sm:$0xff] %v639_v63  ;;  %1075 = vmatpush.msrb.mxu0 %v551_v15  ;;  %v675_v15 = vrot.slane %v586_v8, 6 }
  0xa7   : > { %861 = vmatmul.f32.gmra.mxu0 %v721_v45  ;;  %v576_v45 = vld [vmem:[%s6440_s6 + $0x89] sm:$0x3] }
  0xa8   : > { %1076 = vmatpush.msrb.mxu0 %v550_v18 }
  0xa9   : > { %v6597_v1 = vld.sshfl [vmem:[#allocation1] sm:$0xff pattern:$0x73625140] }
  0xaa   : > { %743 = vst [vmem:[#allocation1] ss:$4 sm:$0xff] %v640_v0  ;;  %1077 = vmatpush.msrb.mxu0 %v549_v22  ;;  %v582_v0 = vld [vmem:[%s6440_s6 + $0xb9] sm:$0x3] }
  0xab   : > { %744 = vst [vmem:[#allocation1 + $0x1] ss:$4 sm:$0xff] %v641_v2  ;;  %v668_v2 = vrot.slane %v583_v61, 4 }
  0xac   : > { %745 = vst [vmem:[#allocation1 + $0x2] ss:$4 sm:$0xff] %v642_v3  ;;  %1078 = vmatpush.msrb.mxu0 %v548_v26  ;;  %v669_v3 = vrot.slane %v583_v61, 6 }
  0xad   : > { %746 = vst [vmem:[#allocation1 + $0x3] ss:$4 sm:$0xff] %v570_v4  ;;  %v6621_v16 = vld.sshfl [vmem:[#allocation1 + $0x20] sm:$0xff pattern:$0x73625140] }
  0xae   : > { %747 = vst [vmem:[#allocation1 + $0x20] ss:$4 sm:$0xff] %v571_v17  ;;  %1079 = vmatpush.msrb.mxu0 %v547_v27 }
  0xaf   : > { %864 = vmatmul.f32.gmra.mxu0 %v722_v48  ;;  %748 = vst [vmem:[#allocation1 + $0x21] ss:$4 sm:$0xff] %v643_v19  ;;  %v658_v48 = vrot.slane %v578_v44, 2 }
  0xb0   : > { %749 = vst [vmem:[#allocation1 + $0x22] ss:$4 sm:$0xff] %v644_v20  ;;  %1080 = vmatpush.msrb.mxu0 %v546_v30 }
  0xb1   : > { %750 = vst [vmem:[#allocation1 + $0x23] ss:$4 sm:$0xff] %v645_v21  ;;  %v588_v21 = vld [vmem:[%s6440_s6 + $0xe9] sm:$0x3] }
  0xb2   : > { %1081 = vmatpush.msrb.mxu0 %v545_v32 }
  0xb4   : > { %v6613_v13 = vld.sshfl [vmem:[#allocation1] sm:$0xff pattern:$0x73625140]  ;;  %1082 = vmatpush.msrb.mxu0 %v544_v35 }
  0xb5   : > { %753 = vst [vmem:[#allocation1] ss:$4 sm:$0xff] %v572_v7  ;;  %v671_v7 = vrot.slane %v584_v5, 4 }
  0xb6   : > { %754 = vst [vmem:[#allocation1 + $0x1] ss:$4 sm:$0xff] %v646_v10  ;;  %1083 = vmatpush.msrb.mxu0 %v543_v36 }
  0xb7   : > { %867 = vmatmul.f32.gmra.mxu0 %v731_v54  ;;  %755 = vst [vmem:[#allocation1 + $0x2] ss:$4 sm:$0xff] %v647_v11  ;;  %v661_v54 = vrot.slane %v580_v50, 2  ;;  %v585_v11 = vld [vmem:[%s6440_s6 + $0xd1] sm:$0x3] }
  0xb8   : > { %756 = vst [vmem:[#allocation1 + $0x3] ss:$4 sm:$0xff] %v648_v12  ;;  %v752_v34 = vld.sshfl [vmem:[#allocation1 + $0x20] sm:$0xff pattern:$0x73625140]  ;;  %v673_v12 = vrot.slane %v586_v8, 2 }
  0xb9   : > { %757 = vst [vmem:[#allocation1 + $0x20] ss:$4 sm:$0xff] %v573_v33  ;;  %v426_v33 = vld [vmem:[%s6440_s6 + $0x18] sm:$0xff] }
  0xba   : > { %758 = vst [vmem:[#allocation1 + $0x21] ss:$4 sm:$0xff] %v574_v23  ;;  %v424_v23 = vld [vmem:[%s6440_s6 + $0x8] sm:$0xff]  ;;  %v489_v35 = vrot.slane %v426_v33, 2  ;;  %v490_v36 = vrot.slane %v426_v33, 4 }
  0xbb   : > { %759 = vst [vmem:[#allocation1 + $0x22] ss:$4 sm:$0xff] %v649_v37  ;;  %v488_v32 = vrot.slane %v424_v23, 6 }
  0xbc   : > { %760 = vst [vmem:[#allocation1 + $0x23] ss:$4 sm:$0xff] %v650_v38  ;;  %v491_v38 = vrot.slane %v426_v33, 6 }
  0xbf   : > { %870 = vmatmul.f32.gmra.mxu0 %v6588_v57  ;;  %v761_v29 = vld.sshfl [vmem:[#allocation1] sm:$0xff pattern:$0x73625140]  ;;  %v663_v57 = vrot.slane %v580_v50, 6 }
  0xc0   : > { %763 = vst [vmem:[#allocation1] ss:$4 sm:$0xff] %v651_v25  ;;  %v486_v25 = vrot.slane %v424_v23, 2 }
  0xc1   : > { %764 = vst [vmem:[#allocation1 + $0x1] ss:$4 sm:$0xff] %v6632_v24  ;;  %v423_v24 = vld [vmem:[%s6440_s6] sm:$0xff] }
  0xc2   : > { %765 = vst [vmem:[#allocation1 + $0x2] ss:$4 sm:$0xff] %v652_v28  ;;  %v483_v26 = vrot.slane %v423_v24, 2  ;;  %v484_v28 = vrot.slane %v423_v24, 4 }
  0xc3   : > { %766 = vst [vmem:[#allocation1 + $0x3] ss:$4 sm:$0xff] %v653_v31  ;;  %v762_v47 = vld.sshfl [vmem:[#allocation1 + $0x20] sm:$0xff pattern:$0x73625140]  ;;  %v487_v31 = vrot.slane %v424_v23, 4 }
  0xc4   : > { %767 = vst [vmem:[#allocation1 + $0x20] ss:$4 sm:$0xff] %v654_v42 }
  0xc5   : > { %768 = vst [vmem:[#allocation1 + $0x21] ss:$4 sm:$0xff] %v576_v45  ;;  %v428_v45 = vld [vmem:[%s6440_s6 + $0x28] sm:$0x3] }
  0xc6   : > { %769 = vst [vmem:[#allocation1 + $0x22] ss:$4 sm:$0xff] %v577_v39  ;;  %v427_v39 = vld [vmem:[%s6440_s6 + $0x20] sm:$0xff] }
  0xc7   : > { %873 = vmatmul.f32.gmra.mxu0 %v6597_v1  ;;  %770 = vst [vmem:[#allocation1 + $0x23] ss:$4 sm:$0xff] %v655_v46  ;;  %v667_v1 = vrot.slane %v583_v61, 2  ;;  %v493_v42 = vrot.slane %v427_v39, 4 }
  0xca   : > { %v771_v43 = vld.sshfl [vmem:[#allocation1] sm:$0xff pattern:$0x73625140] }
  0xcb   : > { %773 = vst [vmem:[#allocation1] ss:$4 sm:$0xff] %v656_v40 }
  0xcc   : > { %774 = vst [vmem:[#allocation1 + $0x1] ss:$4 sm:$0xff] %v657_v41  ;;  %v492_v41 = vrot.slane %v427_v39, 2 }
  0xcd   : > { %775 = vst [vmem:[#allocation1 + $0x2] ss:$4 sm:$0xff] %v578_v44  ;;  %v494_v44 = vrot.slane %v427_v39, 6 }
  0xce   : > { %776 = vst [vmem:[#allocation1 + $0x3] ss:$4 sm:$0xff] %v658_v48  ;;  %v772_v53 = vld.sshfl [vmem:[#allocation1 + $0x20] sm:$0xff pattern:$0x73625140] }
  0xcf   : > { %876 = vmatmul.f32.gmra.mxu0 %v6621_v16  ;;  %777 = vst [vmem:[#allocation1 + $0x20] ss:$4 sm:$0xff] %v659_v49  ;;  %v587_v16 = vld [vmem:[%s6440_s6 + $0xe1] sm:$0xff] }
  0xd0   : > { %778 = vst [vmem:[#allocation1 + $0x21] ss:$4 sm:$0xff] %v660_v51  ;;  %v676_v17 = vrot.slane %v587_v16, 2  ;;  %v677_v18 = vrot.slane %v587_v16, 4  ;;  %v678_v20 = vrot.slane %v587_v16, 6 }
  0xd1   : > { %779 = vst [vmem:[#allocation1 + $0x22] ss:$4 sm:$0xff] %v579_v52 }
  0xd2   : > { %780 = vst [vmem:[#allocation1 + $0x23] ss:$4 sm:$0xff] %v580_v50  ;;  %v430_v50 = vld [vmem:[%s6440_s6 + $0x38] sm:$0xff] }
  0xd3   : > { %v498_v51 = vrot.slane %v430_v50, 2 }
  0xd5   : > { %v781_v56 = vld.sshfl [vmem:[#allocation1] sm:$0xff pattern:$0x73625140] }
  0xd6   : > { %783 = vst [vmem:[#allocation1] ss:$4 sm:$0xff] %v661_v54  ;;  %v500_v54 = vrot.slane %v430_v50, 6 }
  0xd7   : > { %879 = vmatmul.f32.gmra.mxu0 %v6613_v13  ;;  %784 = vst [vmem:[#allocation1 + $0x1] ss:$4 sm:$0xff] %v662_v55  ;;  %v674_v13 = vrot.slane %v586_v8, 4  ;;  %v431_v55 = vld [vmem:[%s6440_s6 + $0x40] sm:$0x3] }
  0xd8   : > { %785 = vst [vmem:[#allocation1 + $0x2] ss:$4 sm:$0xff] %v663_v57 }
  0xd9   : > { %786 = vst [vmem:[#allocation1 + $0x3] ss:$4 sm:$0xff] %v581_v58  ;;  %v782_v63 = vld.sshfl [vmem:[#allocation1 + $0x20] sm:$0xff pattern:$0x73625140] }
  0xda   : > { %787 = vst [vmem:[#allocation1 + $0x20] ss:$4 sm:$0xff] %v664_v59 }
  0xdb   : > { %788 = vst [vmem:[#allocation1 + $0x21] ss:$4 sm:$0xff] %v665_v60 }
  0xdc   : > { %789 = vst [vmem:[#allocation1 + $0x22] ss:$4 sm:$0xff] %v666_v62  ;;  %v433_v62 = vld [vmem:[%s6440_s6 + $0x50] sm:$0xff] }
  0xdd   : > { %790 = vst [vmem:[#allocation1 + $0x23] ss:$4 sm:$0xff] %v582_v0  ;;  %v505_v0 = vrot.slane %v433_v62, 4 }
  0xdf   : > { %882 = vmatmul.f32.gmra.mxu0 %v752_v34  ;;  %v425_v34 = vld [vmem:[%s6440_s6 + $0x10] sm:$0x3] }
  0xe0   : > { %v791_v4 = vld.sshfl [vmem:[#allocation1] sm:$0xff pattern:$0x73625140] }
  0xe1   : > { %793 = vst [vmem:[#allocation1] ss:$4 sm:$0xff] %v583_v61 }
  0xe2   : > { %794 = vst [vmem:[#allocation1 + $0x1] ss:$4 sm:$0xff] %v667_v1  ;;  %v435_v1 = vld [vmem:[%s6440_s6 + $0x60] sm:$0xff] }
  0xe3   : > { %795 = vst [vmem:[#allocation1 + $0x2] ss:$4 sm:$0xff] %v668_v2  ;;  %v506_v2 = vrot.slane %v433_v62, 6 }
  0xe4   : > { %796 = vst [vmem:[#allocation1 + $0x3] ss:$4 sm:$0xff] %v669_v3  ;;  %v792_v10 = vld.sshfl [vmem:[#allocation1 + $0x20] sm:$0xff pattern:$0x73625140] }
  0xe5   : > { %797 = vst [vmem:[#allocation1 + $0x20] ss:$4 sm:$0xff] %v584_v5  ;;  %v507_v5 = vrot.slane %v435_v1, 2 }
  0xe6   : > { %798 = vst [vmem:[#allocation1 + $0x21] ss:$4 sm:$0xff] %v670_v6  ;;  %v508_v6 = vrot.slane %v435_v1, 4 }
  0xe7   : > { %885 = vmatmul.f32.gmra.mxu0 %v761_v29  ;;  %799 = vst [vmem:[#allocation1 + $0x22] ss:$4 sm:$0xff] %v671_v7  ;;  %v485_v29 = vrot.slane %v423_v24, 6  ;;  %v509_v7 = vrot.slane %v435_v1, 6 }
  0xe8   : > { %800 = vst [vmem:[#allocation1 + $0x23] ss:$4 sm:$0xff] %v672_v9  ;;  %v436_v9 = vld [vmem:[%s6440_s6 + $0x68] sm:$0xff] }
  0xeb   : > { %v801_v14 = vld.sshfl [vmem:[#allocation1] sm:$0xff pattern:$0x73625140] }
  0xec   : > { %803 = vst [vmem:[#allocation1] ss:$4 sm:$0xff] %v585_v11  ;;  %v511_v11 = vrot.slane %v436_v9, 4 }
  0xed   : > { %804 = vst [vmem:[#allocation1 + $0x1] ss:$4 sm:$0xff] %v586_v8 }
  0xee   : > { %805 = vst [vmem:[#allocation1 + $0x2] ss:$4 sm:$0xff] %v673_v12  ;;  %v512_v12 = vrot.slane %v436_v9, 6 }
  0xef   : > { %888 = vmatmul.f32.gmra.mxu0 %v762_v47  ;;  %806 = vst [vmem:[#allocation1 + $0x3] ss:$4 sm:$0xff] %v674_v13  ;;  %v802_v19 = vld.sshfl [vmem:[#allocation1 + $0x20] sm:$0xff pattern:$0x73625140] }
  0xf0   : > { %807 = vst [vmem:[#allocation1 + $0x20] ss:$4 sm:$0xff] %v675_v15  ;;  %v438_v15 = vld [vmem:[%s6440_s6 + $0x78] sm:$0xff] }
  0xf1   : > { %808 = vst [vmem:[#allocation1 + $0x21] ss:$4 sm:$0xff] %v587_v16  ;;  %v513_v16 = vrot.slane %v438_v15, 2 }
  0xf2   : > { %809 = vst [vmem:[#allocation1 + $0x22] ss:$4 sm:$0xff] %v676_v17  ;;  %v514_v17 = vrot.slane %v438_v15, 4 }
  0xf3   : > { %810 = vst [vmem:[#allocation1 + $0x23] ss:$4 sm:$0xff] %v677_v18 }
  0xf6   : > { %v811_v22 = vld.sshfl [vmem:[#allocation1] sm:$0xff pattern:$0x73625140] }
  0xf7   : > { %891 = vmatmul.f32.gmra.mxu0 %v771_v43  ;;  %813 = vst [vmem:[#allocation1] ss:$4 sm:$0xff] %v678_v20  ;;  %v429_v43 = vld [vmem:[%s6440_s6 + $0x30] sm:$0xff]  ;;  %v515_v20 = vrot.slane %v438_v15, 6 }
  0xf8   : > { %814 = vst [vmem:[#allocation1 + $0x1] ss:$4 sm:$0xff] %v588_v21  ;;  %v495_v46 = vrot.slane %v429_v43, 2  ;;  %v496_v48 = vrot.slane %v429_v43, 4  ;;  %v497_v49 = vrot.slane %v429_v43, 6 }
  0xfa   : > { %v6676_v27 = vld.sshfl [vmem:[#allocation1 + $0x20] sm:$0xff pattern:$0x73625140] }
  0xfb   : > { %933 = vst [vmem:[#allocation1 + $0x20] ss:$4 sm:$0xff] %v424_v23 }
  0xfc   : > { %935 = vst [vmem:[#allocation1 + $0x21] ss:$4 sm:$0xff] %v486_v25  ;;  %v440_v25 = vld [vmem:[%s6440_s6 + $0x88] sm:$0x3] }
  0xfd   : > { %937 = vst [vmem:[#allocation1 + $0x22] ss:$4 sm:$0xff] %v487_v31 }
  0xfe   : > { %939 = vst [vmem:[#allocation1 + $0x23] ss:$4 sm:$0xff] %v488_v32 }
  0xff   : > { %894 = vmatmul.f32.gmra.mxu0 %v772_v53  ;;  %v6678_v30 = vld.sshfl [vmem:[#allocation1] sm:$0xff pattern:$0x73625140]  ;;  %v499_v53 = vrot.slane %v430_v50, 4 }
 0x100   : > { %925 = vst [vmem:[#allocation1] ss:$4 sm:$0xff] %v423_v24 }
 0x101   : > { %927 = vst [vmem:[#allocation1 + $0x1] ss:$4 sm:$0xff] %v483_v26  ;;  %v441_v26 = vld [vmem:[%s6440_s6 + $0x90] sm:$0xff] }
 0x102   : > { %929 = vst [vmem:[#allocation1 + $0x2] ss:$4 sm:$0xff] %v484_v28  ;;  %v521_v31 = vrot.slane %v441_v26, 6 }
 0x103   : > { %931 = vst [vmem:[#allocation1 + $0x3] ss:$4 sm:$0xff] %v485_v29  ;;  %v442_v29 = vld [vmem:[%s6440_s6 + $0x98] sm:$0xff] }
 0x104   : > { %v522_v32 = vrot.slane %v442_v29, 2 }
 0x105   : > { %v6685_v40 = vld.sshfl [vmem:[#allocation1 + $0x20] sm:$0xff pattern:$0x73625140] }
 0x106   : > { %946 = vst [vmem:[#allocation1 + $0x20] ss:$4 sm:$0xff] %v491_v38  ;;  %v444_v38 = vld [vmem:[%s6440_s6 + $0xa8] sm:$0xff] }
 0x107   : > { %897 = vmatmul.f32.gmra.mxu0 %v781_v56  ;;  %947 = vst [vmem:[#allocation1 + $0x21] ss:$4 sm:$0xff] %v427_v39  ;;  %v432_v56 = vld [vmem:[%s6440_s6 + $0x48] sm:$0xff]  ;;  %v525_v39 = vrot.slane %v444_v38, 2 }
 0x108   : > { %948 = vst [vmem:[#allocation1 + $0x22] ss:$4 sm:$0xff] %v492_v41  ;;  %v501_v58 = vrot.slane %v432_v56, 2  ;;  %v502_v59 = vrot.slane %v432_v56, 4  ;;  %v503_v60 = vrot.slane %v432_v56, 6  ;;  %v526_v41 = vrot.slane %v444_v38, 4 }
 0x109   : > { %949 = vst [vmem:[#allocation1 + $0x23] ss:$4 sm:$0xff] %v493_v42  ;;  %v527_v42 = vrot.slane %v444_v38, 6 }
 0x10a   : > { %v6682_v37 = vld.sshfl [vmem:[#allocation1] sm:$0xff pattern:$0x73625140] }
 0x10b   : > { %942 = vst [vmem:[#allocation1] ss:$4 sm:$0xff] %v425_v34  ;;  %v523_v34 = vrot.slane %v442_v29, 4 }
 0x10c   : > { %943 = vst [vmem:[#allocation1 + $0x1] ss:$4 sm:$0xff] %v426_v33 }
 0x10d   : > { %944 = vst [vmem:[#allocation1 + $0x2] ss:$4 sm:$0xff] %v489_v35  ;;  %v524_v35 = vrot.slane %v442_v29, 6 }
 0x10e   : > { %945 = vst [vmem:[#allocation1 + $0x3] ss:$4 sm:$0xff] %v490_v36  ;;  %v443_v36 = vld [vmem:[%s6440_s6 + $0xa0] sm:$0x3] }
 0x10f   : > { %900 = vmatmul.f32.gmra.mxu0 %v782_v63  ;;  %v504_v63 = vrot.slane %v433_v62, 2 }
 0x110   : > { %v951_v52 = vld.sshfl [vmem:[#allocation1 + $0x20] sm:$0xff pattern:$0x73625140] }
 0x111   : > { %956 = vst [vmem:[#allocation1 + $0x20] ss:$4 sm:$0xff] %v496_v48  ;;  %v5680_v48 = vld [vmem:[%s9397_s1 + $0x170] sm:$0xff] }
 0x112   : > { %957 = vst [vmem:[#allocation1 + $0x21] ss:$4 sm:$0xff] %v497_v49 }
 0x113   : > { %958 = vst [vmem:[#allocation1 + $0x22] ss:$4 sm:$0xff] %v430_v50 }
 0x114   : > { %959 = vst [vmem:[#allocation1 + $0x23] ss:$4 sm:$0xff] %v498_v51  ;;  %v5679_v51 = vld [vmem:[%s9397_s1 + $0x168] sm:$0xff] }
 0x115   : > { %v950_v47 = vld.sshfl [vmem:[#allocation1] sm:$0xff pattern:$0x73625140] }
 0x116   : > { %952 = vst [vmem:[#allocation1] ss:$4 sm:$0xff] %v494_v44  ;;  %1090 = vmatmul.f32.vlgmr.msra.gmra.mxu1 %v950_v47  ;;  %v5681_v47 = vld [vmem:[%s9397_s1 + $0x178] sm:$0xff] }
 0x117   : > { %903 = vmatmul.f32.gmra.mxu0 %v791_v4  ;;  %953 = vst [vmem:[#allocation1 + $0x1] ss:$4 sm:$0xff] %v428_v45  ;;  %v434_v4 = vld [vmem:[%s6440_s6 + $0x58] sm:$0x3]  ;;  %6174 = vmatpush.msrb.mxu3 %v5681_v47 }
 0x118   : > { %954 = vst [vmem:[#allocation1 + $0x2] ss:$4 sm:$0xff] %v429_v43  ;;  %v445_v43 = vld [vmem:[%s6440_s6 + $0xb0] sm:$0xff]  ;;  %1434 = vmatpush.msra.mxu2 %v5681_v47 }
 0x119   : > { %955 = vst [vmem:[#allocation1 + $0x3] ss:$4 sm:$0xff] %v495_v46  ;;  %v528_v45 = vrot.slane %v445_v43, 2  ;;  %v529_v46 = vrot.slane %v445_v43, 4  ;;  %v530_v49 = vrot.slane %v445_v43, 6  ;;  %6175 = vmatpush.msrb.mxu3 %v5680_v48 }
 0x11a   : > { %1435 = vmatpush.msra.mxu2 %v5680_v48 }
 0x11b   : > { %v961_v61 = vld.sshfl [vmem:[#allocation1 + $0x20] sm:$0xff pattern:$0x73625140]  ;;  %6176 = vmatpush.msrb.mxu3 %v5679_v51 }
 0x11c   : > { %966 = vst [vmem:[#allocation1 + $0x20] ss:$4 sm:$0xff] %v501_v58  ;;  %1436 = vmatpush.msra.mxu2 %v5679_v51 }
 0x11d   : > { %967 = vst [vmem:[#allocation1 + $0x21] ss:$4 sm:$0xff] %v502_v59  ;;  %v5676_v59 = vld [vmem:[%s9397_s1 + $0x150] sm:$0xff] }
 0x11e   : > { %1093 = vmatmul.f32.gmra.mxu1 %v951_v52  ;;  %968 = vst [vmem:[#allocation1 + $0x22] ss:$4 sm:$0xff] %v503_v60  ;;  %v446_v52 = vld [vmem:[%s6440_s6 + $0xb8] sm:$0x3] }
 0x11f   : > { %906 = vmatmul.f32.gmra.mxu0 %v792_v10  ;;  %969 = vst [vmem:[#allocation1 + $0x23] ss:$4 sm:$0xff] %v433_v62  ;;  %v510_v10 = vrot.slane %v436_v9, 2  ;;  %v5675_v62 = vld [vmem:[%s9397_s1 + $0x148] sm:$0xff] }
 0x120   : > { %v960_v57 = vld.sshfl [vmem:[#allocation1] sm:$0xff pattern:$0x73625140] }
 0x121   : > { %962 = vst [vmem:[#allocation1] ss:$4 sm:$0xff] %v499_v53  ;;  %v447_v53 = vld [vmem:[%s6440_s6 + $0xc0] sm:$0xff] }
 0x122   : > { %963 = vst [vmem:[#allocation1 + $0x1] ss:$4 sm:$0xff] %v500_v54  ;;  %v5678_v54 = vld [vmem:[%s9397_s1 + $0x160] sm:$0xff]  ;;  %v532_v58 = vrot.slane %v447_v53, 4  ;;  %v533_v60 = vrot.slane %v447_v53, 6 }
 0x123   : > { %964 = vst [vmem:[#allocation1 + $0x2] ss:$4 sm:$0xff] %v431_v55  ;;  %v5677_v55 = vld [vmem:[%s9397_s1 + $0x158] sm:$0xff]  ;;  %6177 = vmatpush.msrb.mxu3 %v5678_v54  ;;  %1437 = vmatpush.msra.mxu2 %v5678_v54 }
 0x124   : > { %965 = vst [vmem:[#allocation1 + $0x3] ss:$4 sm:$0xff] %v432_v56  ;;  %v531_v56 = vrot.slane %v447_v53, 2 }
 0x125   : > { %6178 = vmatpush.msrb.mxu3 %v5677_v55  ;;  %1438 = vmatpush.msra.mxu2 %v5677_v55 }
 0x126   : > { %1096 = vmatmul.f32.gmra.mxu1 %v960_v57  ;;  %v971_v8 = vld.sshfl [vmem:[#allocation1 + $0x20] sm:$0xff pattern:$0x73625140]  ;;  %v448_v57 = vld [vmem:[%s6440_s6 + $0xc8] sm:$0xff] }
 0x127   : > { %909 = vmatmul.f32.gmra.mxu0 %v801_v14  ;;  %976 = vst [vmem:[#allocation1 + $0x20] ss:$4 sm:$0xff] %v435_v1  ;;  %v437_v14 = vld [vmem:[%s6440_s6 + $0x70] sm:$0x3]  ;;  %6179 = vmatpush.msrb.mxu3 %v5676_v59  ;;  %v5674_v1 = vld [vmem:[%s9397_s1 + $0x140] sm:$0xff] }
 0x128   : > { %977 = vst [vmem:[#allocation1 + $0x21] ss:$4 sm:$0xff] %v507_v5  ;;  %1439 = vmatpush.msra.mxu2 %v5676_v59  ;;  %v450_v5 = vld [vmem:[%s6440_s6 + $0xd8] sm:$0xff] }
 0x129   : > { %978 = vst [vmem:[#allocation1 + $0x22] ss:$4 sm:$0xff] %v508_v6  ;;  %6180 = vmatpush.msrb.mxu3 %v5675_v62  ;;  %v5672_v6 = vld [vmem:[%s9397_s1 + $0x130] sm:$0xff] }
 0x12a   : > { %979 = vst [vmem:[#allocation1 + $0x23] ss:$4 sm:$0xff] %v509_v7  ;;  %1440 = vmatpush.msra.mxu2 %v5675_v62  ;;  %v449_v7 = vld [vmem:[%s6440_s6 + $0xd0] sm:$0x3]  ;;  %v1164_v62 = vld [vmem:[%s6440_s6 + $0x52] sm:$0xff] }
 0x12b   : > { %v970_v3 = vld.sshfl [vmem:[#allocation1] sm:$0xff pattern:$0x73625140]  ;;  %6181 = vmatpush.msrb.mxu3 %v5674_v1 }
 0x12c   : > { %972 = vst [vmem:[#allocation1] ss:$4 sm:$0xff] %v504_v63  ;;  %v534_v63 = vrot.slane %v448_v57, 2  ;;  %1441 = vmatpush.msra.mxu2 %v5674_v1 }
 0x12d   : > { %973 = vst [vmem:[#allocation1 + $0x1] ss:$4 sm:$0xff] %v505_v0  ;;  %v535_v0 = vrot.slane %v448_v57, 4 }
 0x12e   : > { %974 = vst [vmem:[#allocation1 + $0x2] ss:$4 sm:$0xff] %v506_v2  ;;  %1099 = vmatmul.f32.gmra.mxu1 %v961_v61  ;;  %v536_v2 = vrot.slane %v448_v57, 6 }
 0x12f   : > { %912 = vmatmul.f32.gmra.mxu0 %v802_v19  ;;  %975 = vst [vmem:[#allocation1 + $0x3] ss:$4 sm:$0xff] %v434_v4  ;;  %v439_v19 = vld [vmem:[%s6440_s6 + $0x80] sm:$0xff]  ;;  %v5673_v4 = vld [vmem:[%s9397_s1 + $0x138] sm:$0xff] }
 0x130   : > { %v516_v21 = vrot.slane %v439_v19, 2  ;;  %v518_v24 = vrot.slane %v439_v19, 6  ;;  %6182 = vmatpush.msrb.mxu3 %v5673_v4  ;;  %1442 = vmatpush.msra.mxu2 %v5673_v4 }
 0x131   : > { %v981_v18 = vld.sshfl [vmem:[#allocation1 + $0x20] sm:$0xff pattern:$0x73625140] }
 0x132   : > { %986 = vst [vmem:[#allocation1 + $0x20] ss:$4 sm:$0xff] %v437_v14  ;;  %6183 = vmatpush.msrb.mxu3 %v5672_v6  ;;  %1443 = vmatpush.msra.mxu2 %v5672_v6  ;;  %v451_v14 = vld [vmem:[%s6440_s6 + $0xe0] sm:$0xff] }
 0x133   : > { %987 = vst [vmem:[#allocation1 + $0x21] ss:$4 sm:$0xff] %v438_v15  ;;  %v540_v15 = vrot.slane %v451_v14, 2 }
 0x134   : > { %988 = vst [vmem:[#allocation1 + $0x22] ss:$4 sm:$0xff] %v513_v16  ;;  %v5669_v16 = vld [vmem:[%s9397_s1 + $0x118] sm:$0xff] }
 0x135   : > { %989 = vst [vmem:[#allocation1 + $0x23] ss:$4 sm:$0xff] %v514_v17 }
 0x136   : > { %v980_v13 = vld.sshfl [vmem:[#allocation1] sm:$0xff pattern:$0x73625140]  ;;  %1102 = vmatmul.f32.gmra.mxu1 %v970_v3 }
 0x137   : > { %915 = vmatmul.f32.gmra.mxu0 %v811_v22  ;;  %982 = vst [vmem:[#allocation1] ss:$4 sm:$0xff] %v436_v9  ;;  %v517_v22 = vrot.slane %v439_v19, 4  ;;  %v537_v9 = vrot.slane %v450_v5, 2 }
 0x138   : > { %983 = vst [vmem:[#allocation1 + $0x1] ss:$4 sm:$0xff] %v510_v10  ;;  %v538_v10 = vrot.slane %v450_v5, 4 }
 0x139   : > { %984 = vst [vmem:[#allocation1 + $0x2] ss:$4 sm:$0xff] %v511_v11 }
 0x13a   : > { %985 = vst [vmem:[#allocation1 + $0x3] ss:$4 sm:$0xff] %v512_v12  ;;  %v5670_v12 = vld [vmem:[%s9397_s1 + $0x120] sm:$0xff] }
 0x13c   : > { %v991_v28 = vld.sshfl [vmem:[#allocation1 + $0x20] sm:$0xff pattern:$0x73625140] }
 0x13d   : > { %996 = vst [vmem:[#allocation1 + $0x20] ss:$4 sm:$0xff] %v518_v24  ;;  %v1155_v24 = vld [vmem:[%s6440_s6 + $0xa] sm:$0xff] }
 0x13e   : > { %1105 = vmatmul.f32.gmra.mxu1 %v971_v8  ;;  %997 = vst [vmem:[#allocation1 + $0x21] ss:$4 sm:$0xff] %v440_v25  ;;  %v5671_v8 = vld [vmem:[%s9397_s1 + $0x128] sm:$0xff] }
 0x13f   : > { %918 = vmatmul.f32.gmra.mxu0 %v6676_v27  ;;  %v519_v27 = vrot.slane %v441_v26, 2  ;;  %998 = vst [vmem:[#allocation1 + $0x22] ss:$4 sm:$0xff] %v441_v26  ;;  %6184 = vmatpush.msrb.mxu3 %v5671_v8 }
 0x140   : > { %1444 = vmatpush.msra.mxu2 %v5671_v8  ;;  %v1236_v8 = vrot.slane %v1164_v62, 4 }
 0x141   : > { %v990_v23 = vld.sshfl [vmem:[#allocation1] sm:$0xff pattern:$0x73625140]  ;;  %999 = vst [vmem:[#allocation1 + $0x23] ss:$4 sm:$0xff] %v519_v27  ;;  %6185 = vmatpush.msrb.mxu3 %v5670_v12  ;;  %v1218_v27 = vrot.slane %v1155_v24, 4 }
 0x142   : > { %992 = vst [vmem:[#allocation1] ss:$4 sm:$0xff] %v515_v20  ;;  %1445 = vmatpush.msra.mxu2 %v5670_v12  ;;  %v5667_v20 = vld [vmem:[%s9397_s1 + $0x108] sm:$0xff]  ;;  %v1168_v12 = vld [vmem:[%s6440_s6 + $0x72] sm:$0x3] }
 0x143   : > { %993 = vst [vmem:[#allocation1 + $0x1] ss:$4 sm:$0xff] %v439_v19  ;;  %v5668_v19 = vld [vmem:[%s9397_s1 + $0x110] sm:$0xff]  ;;  %6186 = vmatpush.msrb.mxu3 %v5669_v16 }
 0x144   : > { %994 = vst [vmem:[#allocation1 + $0x2] ss:$4 sm:$0xff] %v516_v21  ;;  %1446 = vmatpush.msra.mxu2 %v5669_v16  ;;  %v452_v21 = vld [vmem:[%s6440_s6 + $0xe8] sm:$0x3] }
 0x145   : > { %995 = vst [vmem:[#allocation1 + $0x3] ss:$4 sm:$0xff] %v517_v22  ;;  %6187 = vmatpush.msrb.mxu3 %v5668_v19  ;;  %v542_v22 = vrot.slane %v451_v14, 6 }
 0x146   : > { %1108 = vmatmul.f32.gmra.mxu1 %v980_v13  ;;  %v539_v13 = vrot.slane %v450_v5, 6  ;;  %1447 = vmatpush.msra.mxu2 %v5668_v19 }
 0x147   : > { %921 = vmatmul.f32.gmra.mxu0 %v6678_v30  ;;  %v520_v30 = vrot.slane %v441_v26, 4  ;;  %6188 = vmatpush.msrb.mxu3 %v5667_v20  ;;  %v1217_v26 = vrot.slane %v1155_v24, 2 }
 0x148   : > { %1448 = vmatpush.msra.mxu2 %v5667_v20 }
 0x14c   : > { %v6705_v33 = vld.sshfl [vmem:[#allocation1] sm:$0xff pattern:$0x73625140] }
 0x14d   : > { %1002 = vst [vmem:[#allocation1] ss:$4 sm:$0xff] %v520_v30  ;;  %v1219_v30 = vrot.slane %v1155_v24, 6 }
 0x14e   : > { %1003 = vst [vmem:[#allocation1 + $0x1] ss:$4 sm:$0xff] %v521_v31  ;;  %1111 = vmatmul.f32.gmra.mxu1 %v981_v18  ;;  %v541_v18 = vrot.slane %v451_v14, 4 }
 0x14f   : > { %1084 = vmatmul.f32.vlgmr.msrb.gmra.mxu0 %v6682_v37  ;;  %1004 = vst [vmem:[#allocation1 + $0x2] ss:$4 sm:$0xff] %v442_v29  ;;  %v6708_v37 = vld.sshfl [vmem:[#allocation1 + $0x20] sm:$0xff pattern:$0x73625140]  ;;  %v1154_v29 = vld [vmem:[%s6440_s6 + $0x2] sm:$0xff] }
 0x150   : > { %1005 = vst [vmem:[#allocation1 + $0x3] ss:$4 sm:$0xff] %v522_v32  ;;  %v1214_v31 = vrot.slane %v1154_v29, 2  ;;  %v1215_v32 = vrot.slane %v1154_v29, 4 }
 0x151   : > { %1006 = vst [vmem:[#allocation1 + $0x20] ss:$4 sm:$0xff] %v523_v34  ;;  %v1216_v34 = vrot.slane %v1154_v29, 6 }
 0x152   : > { %1007 = vst [vmem:[#allocation1 + $0x21] ss:$4 sm:$0xff] %v524_v35  ;;  %v1157_v35 = vld [vmem:[%s6440_s6 + $0x1a] sm:$0xff] }
 0x153   : > { %1008 = vst [vmem:[#allocation1 + $0x22] ss:$4 sm:$0xff] %v443_v36  ;;  %v1222_v36 = vrot.slane %v1157_v35, 6 }
 0x154   : > { %1009 = vst [vmem:[#allocation1 + $0x23] ss:$4 sm:$0xff] %v444_v38 }
 0x156   : > { %1114 = vmatmul.f32.gmra.mxu1 %v990_v23  ;;  %v5666_v23 = vld [vmem:[%s9397_s1 + $0x100] sm:$0xff] }
 0x157   : > { %v6712_v44 = vld.sshfl [vmem:[#allocation1] sm:$0xff pattern:$0x73625140]  ;;  %1449 = vmatpush.msra.mxu2 %v5666_v23  ;;  %6189 = vmatpush.msrb.mxu3 %v5666_v23 }
 0x158   : > { %1012 = vst [vmem:[#allocation1] ss:$4 sm:$0xff] %v525_v39 }
 0x159   : > { %1013 = vst [vmem:[#allocation1 + $0x1] ss:$4 sm:$0xff] %v526_v41 }
 0x15a   : > { %1014 = vst [vmem:[#allocation1 + $0x2] ss:$4 sm:$0xff] %v527_v42  ;;  %v1156_v42 = vld [vmem:[%s6440_s6 + $0x12] sm:$0x3] }
 0x15b   : > { %v6720_v50 = vld.sshfl [vmem:[#allocation1 + $0x20] sm:$0xff pattern:$0x73625140]  ;;  %1015 = vst [vmem:[#allocation1 + $0x3] ss:$4 sm:$0xff] %v445_v43  ;;  %v1220_v43 = vrot.slane %v1157_v35, 2 }
 0x15c   : > { %1016 = vst [vmem:[#allocation1 + $0x20] ss:$4 sm:$0xff] %v528_v45 }
 0x15d   : > { %1017 = vst [vmem:[#allocation1 + $0x21] ss:$4 sm:$0xff] %v529_v46  ;;  %v1160_v46 = vld [vmem:[%s6440_s6 + $0x32] sm:$0xff] }
 0x15e   : > { %1018 = vst [vmem:[#allocation1 + $0x22] ss:$4 sm:$0xff] %v530_v49  ;;  %1117 = vmatmul.f32.gmra.mxu1 %v991_v28  ;;  %v1227_v47 = vrot.slane %v1160_v46, 4  ;;  %v1228_v48 = vrot.slane %v1160_v46, 6  ;;  %v1161_v49 = vld [vmem:[%s6440_s6 + $0x3a] sm:$0xff]  ;;  %v1226_v54 = vrot.slane %v1160_v46, 2 }
 0x15f   : > { %1019 = vst [vmem:[#allocation1 + $0x23] ss:$4 sm:$0xff] %v446_v52 }
 0x162   : > { %v6737_v61 = vld.sshfl [vmem:[#allocation1] sm:$0xff pattern:$0x73625140] }
 0x163   : > { %1022 = vst [vmem:[#allocation1] ss:$4 sm:$0xff] %v447_v53  ;;  %v1159_v53 = vld [vmem:[%s6440_s6 + $0x2a] sm:$0x3] }
 0x164   : > { %1023 = vst [vmem:[#allocation1 + $0x1] ss:$4 sm:$0xff] %v531_v56  ;;  %v1163_v56 = vld [vmem:[%s6440_s6 + $0x4a] sm:$0xff] }
 0x165   : > { %1024 = vst [vmem:[#allocation1 + $0x2] ss:$4 sm:$0xff] %v532_v58  ;;  %v1233_v58 = vrot.slane %v1163_v56, 4  ;;  %v1234_v59 = vrot.slane %v1163_v56, 6 }
 0x166   : > { %v6745_v3 = vld.sshfl [vmem:[#allocation1 + $0x20] sm:$0xff pattern:$0x73625140]  ;;  %1025 = vst [vmem:[#allocation1 + $0x3] ss:$4 sm:$0xff] %v533_v60  ;;  %1120 = vmatmul.f32.gmra.mxu1 %v6705_v33 }
 0x167   : > { %1026 = vst [vmem:[#allocation1 + $0x20] ss:$4 sm:$0xff] %v448_v57  ;;  %v1232_v57 = vrot.slane %v1163_v56, 2 }
 0x168   : > { %1027 = vst [vmem:[#allocation1 + $0x21] ss:$4 sm:$0xff] %v534_v63  ;;  %v1231_v63 = vrot.slane %v1161_v49, 6 }
 0x169   : > { %1028 = vst [vmem:[#allocation1 + $0x22] ss:$4 sm:$0xff] %v535_v0  ;;  %v1162_v0 = vld [vmem:[%s6440_s6 + $0x42] sm:$0x3] }
 0x16a   : > { %1029 = vst [vmem:[#allocation1 + $0x23] ss:$4 sm:$0xff] %v536_v2  ;;  %v1166_v2 = vld [vmem:[%s6440_s6 + $0x62] sm:$0xff] }
 0x16b   : > { %v1239_v4 = vrot.slane %v1166_v2, 4 }
 0x16d   : > { %v6759_v11 = vld.sshfl [vmem:[#allocation1] sm:$0xff pattern:$0x73625140] }
 0x16e   : > { %1032 = vst [vmem:[#allocation1] ss:$4 sm:$0xff] %v449_v7  ;;  %1123 = vmatmul.f32.gmra.mxu1 %v6708_v37  ;;  %v1158_v37 = vld [vmem:[%s6440_s6 + $0x22] sm:$0xff]  ;;  %v1235_v7 = vrot.slane %v1164_v62, 2 }
 0x16f   : > { %1033 = vst [vmem:[#allocation1 + $0x1] ss:$4 sm:$0xff] %v450_v5  ;;  %v1223_v38 = vrot.slane %v1158_v37, 2  ;;  %v1224_v39 = vrot.slane %v1158_v37, 4  ;;  %v1225_v52 = vrot.slane %v1158_v37, 6  ;;  %v1240_v5 = vrot.slane %v1166_v2, 6 }
 0x170   : > { %1034 = vst [vmem:[#allocation1 + $0x2] ss:$4 sm:$0xff] %v537_v9  ;;  %v1237_v9 = vrot.slane %v1164_v62, 6 }
 0x171   : > { %v1031_v17 = vld.sshfl [vmem:[#allocation1 + $0x20] sm:$0xff pattern:$0x73625140]  ;;  %1035 = vst [vmem:[#allocation1 + $0x3] ss:$4 sm:$0xff] %v538_v10 }
 0x172   : > { %1141 = vmatmul.f32.vlgmr.msra.gmra.mxu3 %v1031_v17  ;;  %1036 = vst [vmem:[#allocation1 + $0x20] ss:$4 sm:$0xff] %v539_v13  ;;  %v1169_v13 = vld [vmem:[%s6440_s6 + $0x7a] sm:$0xff] }
 0x173   : > { %1037 = vst [vmem:[#allocation1 + $0x21] ss:$4 sm:$0xff] %v451_v14  ;;  %v1244_v14 = vrot.slane %v1169_v13, 2  ;;  %v1245_v16 = vrot.slane %v1169_v13, 4 }
 0x174   : > { %1038 = vst [vmem:[#allocation1 + $0x22] ss:$4 sm:$0xff] %v540_v15  ;;  %v1167_v15 = vld [vmem:[%s6440_s6 + $0x6a] sm:$0xff] }
 0x175   : > { %1039 = vst [vmem:[#allocation1 + $0x23] ss:$4 sm:$0xff] %v541_v18  ;;  %v1241_v18 = vrot.slane %v1167_v15, 2  ;;  %v1242_v19 = vrot.slane %v1167_v15, 4  ;;  %v1243_v20 = vrot.slane %v1167_v15, 6 }
 0x176   : > { %1126 = vmatmul.f32.gmra.mxu1 %v6712_v44  ;;  %v1221_v44 = vrot.slane %v1157_v35, 4 }
 0x178   : > { %v1040_v25 = vld.sshfl [vmem:[#allocation1] sm:$0xff pattern:$0x73625140] }
 0x179   : > { %1043 = vst [vmem:[#allocation1 + $0x1] ss:$4 sm:$0xff] %v452_v21 }
 0x17a   : > { %1144 = vmatmul.f32.gmra.mxu3 %v1040_v25  ;;  %1042 = vst [vmem:[#allocation1] ss:$4 sm:$0xff] %v542_v22  ;;  %v1170_v22 = vld [vmem:[%s6440_s6 + $0x82] sm:$0xff]  ;;  %v1172_v25 = vld [vmem:[%s6440_s6 + $0x92] sm:$0xff] }
 0x17b   : > { %v1249_v23 = vrot.slane %v1170_v22, 6 }
 0x17c   : > { %v1041_v28 = vld.sshfl [vmem:[#allocation1 + $0x20] sm:$0xff pattern:$0x73625140] }
 0x17d   : > { %1299 = vst [vmem:[#allocation1 + $0x20] ss:$4 sm:$0xff] %v1155_v24  ;;  %v1171_v24 = vld [vmem:[%s6440_s6 + $0x8a] sm:$0x3] }
 0x17e   : > { %1301 = vst [vmem:[#allocation1 + $0x21] ss:$4 sm:$0xff] %v1217_v26  ;;  %1129 = vmatmul.f32.gmra.mxu1 %v6720_v50  ;;  %v1229_v50 = vrot.slane %v1161_v49, 2  ;;  %v1250_v26 = vrot.slane %v1172_v25, 2 }
 0x17f   : > { %1303 = vst [vmem:[#allocation1 + $0x22] ss:$4 sm:$0xff] %v1218_v27 }
 0x180   : > { %1305 = vst [vmem:[#allocation1 + $0x23] ss:$4 sm:$0xff] %v1219_v30  ;;  %v1248_v30 = vrot.slane %v1170_v22, 4 }
 0x181   : > { %v1044_v33 = vld.sshfl [vmem:[#allocation1] sm:$0xff pattern:$0x73625140] }
 0x182   : > { %1147 = vmatmul.f32.gmra.mxu3 %v1041_v28  ;;  %1291 = vst [vmem:[#allocation1] ss:$4 sm:$0xff] %v1154_v29  ;;  %v1246_v28 = vrot.slane %v1169_v13, 6  ;;  %v1247_v29 = vrot.slane %v1170_v22, 2 }
 0x183   : > { %1293 = vst [vmem:[#allocation1 + $0x1] ss:$4 sm:$0xff] %v1214_v31 }
 0x184   : > { %1295 = vst [vmem:[#allocation1 + $0x2] ss:$4 sm:$0xff] %v1215_v32  ;;  %v1173_v32 = vld [vmem:[%s6440_s6 + $0x9a] sm:$0xff] }
 0x185   : > { %1297 = vst [vmem:[#allocation1 + $0x3] ss:$4 sm:$0xff] %v1216_v34  ;;  %v1255_v34 = vrot.slane %v1173_v32, 6 }
 0x186   : > { %1132 = vmatmul.f32.gmra.mxu1 %v6737_v61  ;;  %v1230_v61 = vrot.slane %v1161_v49, 4 }
 0x187   : > { %v1307_v41 = vld.sshfl [vmem:[#allocation1 + $0x20] sm:$0xff pattern:$0x73625140] }
 0x188   : > { %1312 = vst [vmem:[#allocation1 + $0x20] ss:$4 sm:$0xff] %v1222_v36 }
 0x189   : > { %1313 = vst [vmem:[#allocation1 + $0x21] ss:$4 sm:$0xff] %v1158_v37  ;;  %v1251_v37 = vrot.slane %v1172_v25, 4 }
 0x18a   : > { %1150 = vmatmul.f32.gmra.mxu3 %v1044_v33  ;;  %1314 = vst [vmem:[#allocation1 + $0x22] ss:$4 sm:$0xff] %v1223_v38  ;;  %v1254_v33 = vrot.slane %v1173_v32, 4  ;;  %v1175_v38 = vld [vmem:[%s6440_s6 + $0xaa] sm:$0xff] }
 0x18b   : > { %1315 = vst [vmem:[#allocation1 + $0x23] ss:$4 sm:$0xff] %v1224_v39  ;;  %v1252_v39 = vrot.slane %v1172_v25, 6 }
 0x18c   : > { %v1306_v45 = vld.sshfl [vmem:[#allocation1] sm:$0xff pattern:$0x73625140] }
 0x18d   : > { %1308 = vst [vmem:[#allocation1] ss:$4 sm:$0xff] %v1156_v42  ;;  %1450 = vmatmul.f32.vlgmr.msra.gmra.mxu2 %v1306_v45 }
 0x18e   : > { %1309 = vst [vmem:[#allocation1 + $0x1] ss:$4 sm:$0xff] %v1157_v35  ;;  %1135 = vmatmul.f32.gmra.mxu1 %v6745_v3  ;;  %v1238_v3 = vrot.slane %v1166_v2, 2  ;;  %v1174_v35 = vld [vmem:[%s6440_s6 + $0xa2] sm:$0x3] }
 0x18f   : > { %1310 = vst [vmem:[#allocation1 + $0x2] ss:$4 sm:$0xff] %v1220_v43  ;;  %v1176_v43 = vld [vmem:[%s6440_s6 + $0xb2] sm:$0xff] }
 0x190   : > { %1311 = vst [vmem:[#allocation1 + $0x3] ss:$4 sm:$0xff] %v1221_v44  ;;  %v6813_v44 = vpop.f32.mrf.mxu0  ;;  %1087 = vmatmul.f32.gmra.mxu0 %v6685_v40  ;;  %v1259_v45 = vrot.slane %v1176_v43, 2  ;;  %v5727_v40 = vld [vmem:[%s9397_s1 + $0x1f8] sm:$0xff] }
 0x191   : > { %1824 = vmatpush.msra.mxu3 %v5727_v40  ;;  %v5767_v40 = vld [vmem:[%s9397_s1 + $0x248] sm:$0xff] }
 0x192   : > { %v1317_v51 = vld.sshfl [vmem:[#allocation1 + $0x20] sm:$0xff pattern:$0x73625140] }
 0x193   : > { %1322 = vst [vmem:[#allocation1 + $0x20] ss:$4 sm:$0xff] %v1227_v47  ;;  %v1261_v47 = vrot.slane %v1176_v43, 6 }
 0x194   : > { %1323 = vst [vmem:[#allocation1 + $0x21] ss:$4 sm:$0xff] %v1228_v48 }
 0x195   : > { %1324 = vst [vmem:[#allocation1 + $0x22] ss:$4 sm:$0xff] %v1161_v49  ;;  %1453 = vmatmul.f32.gmra.mxu2 %v1307_v41  ;;  %v1253_v41 = vrot.slane %v1173_v32, 2  ;;  %v1177_v49 = vld [vmem:[%s6440_s6 + $0xba] sm:$0x3] }
 0x196   : > { %1325 = vst [vmem:[#allocation1 + $0x23] ss:$4 sm:$0xff] %v1229_v50  ;;  %1138 = vmatmul.f32.gmra.mxu1 %v6759_v11  ;;  %v1165_v11 = vld [vmem:[%s6440_s6 + $0x5a] sm:$0x3]  ;;  %v1256_v50 = vrot.slane %v1175_v38, 2 }
 0x197   : > { %v1316_v55 = vld.sshfl [vmem:[#allocation1] sm:$0xff pattern:$0x73625140] }
 0x198   : > { %1318 = vst [vmem:[#allocation1] ss:$4 sm:$0xff] %v1225_v52  ;;  %v1258_v52 = vrot.slane %v1175_v38, 6 }
 0x199   : > { %1319 = vst [vmem:[#allocation1 + $0x1] ss:$4 sm:$0xff] %v1159_v53  ;;  %v5726_v53 = vld [vmem:[%s9397_s1 + $0x1f0] sm:$0xff] }
 0x19a   : > { %1320 = vst [vmem:[#allocation1 + $0x2] ss:$4 sm:$0xff] %v1160_v46  ;;  %v1260_v46 = vrot.slane %v1176_v43, 4  ;;  %1825 = vmatpush.msra.mxu3 %v5726_v53  ;;  %v5766_v53 = vld [vmem:[%s9397_s1 + $0x240] sm:$0xff] }
 0x19b   : > { %1321 = vst [vmem:[#allocation1 + $0x3] ss:$4 sm:$0xff] %v1226_v54 }
 0x19d   : > { %v1327_v60 = vld.sshfl [vmem:[#allocation1 + $0x20] sm:$0xff pattern:$0x73625140]  ;;  %1456 = vmatmul.f32.gmra.mxu2 %v1316_v55  ;;  %v1179_v55 = vld [vmem:[%s6440_s6 + $0xca] sm:$0xff] }
 0x19e   : > { %1332 = vst [vmem:[#allocation1 + $0x20] ss:$4 sm:$0xff] %v1232_v57  ;;  %v5724_v57 = vld [vmem:[%s9397_s1 + $0x1e0] sm:$0xff] }
 0x19f   : > { %1333 = vst [vmem:[#allocation1 + $0x21] ss:$4 sm:$0xff] %v1233_v58  ;;  %v1265_v58 = vrot.slane %v1179_v55, 2 }
 0x1a0   : > { %1334 = vst [vmem:[#allocation1 + $0x22] ss:$4 sm:$0xff] %v1234_v59  ;;  %v1266_v59 = vrot.slane %v1179_v55, 4 }
 0x1a1   : > { %1335 = vst [vmem:[#allocation1 + $0x23] ss:$4 sm:$0xff] %v1164_v62  ;;  %v1267_v62 = vrot.slane %v1179_v55, 6 }
 0x1a2   : > { %v1326_v1 = vld.sshfl [vmem:[#allocation1] sm:$0xff pattern:$0x73625140] }
 0x1a3   : > { %1328 = vst [vmem:[#allocation1] ss:$4 sm:$0xff] %v1230_v61 }
 0x1a4   : > { %1329 = vst [vmem:[#allocation1 + $0x1] ss:$4 sm:$0xff] %v1231_v63  ;;  %v5723_v63 = vld [vmem:[%s9397_s1 + $0x1d8] sm:$0xff] }
 0x1a5   : > { %1330 = vst [vmem:[#allocation1 + $0x2] ss:$4 sm:$0xff] %v1162_v0  ;;  %1459 = vmatmul.f32.gmra.mxu2 %v1317_v51  ;;  %v1257_v51 = vrot.slane %v1175_v38, 4  ;;  %v5722_v0 = vld [vmem:[%s9397_s1 + $0x1d0] sm:$0xff] }
 0x1a6   : > { %1331 = vst [vmem:[#allocation1 + $0x3] ss:$4 sm:$0xff] %v1163_v56  ;;  %v5725_v56 = vld [vmem:[%s9397_s1 + $0x1e8] sm:$0xff] }
 0x1a7   : > { %1826 = vmatpush.msra.mxu3 %v5725_v56 }
 0x1a8   : > { %v1337_v6 = vld.sshfl [vmem:[#allocation1 + $0x20] sm:$0xff pattern:$0x73625140] }
 0x1a9   : > { %1342 = vst [vmem:[#allocation1 + $0x20] ss:$4 sm:$0xff] %v1166_v2  ;;  %1827 = vmatpush.msra.mxu3 %v5724_v57  ;;  %v5721_v2 = vld [vmem:[%s9397_s1 + $0x1c8] sm:$0xff] }
 0x1aa   : > { %1343 = vst [vmem:[#allocation1 + $0x21] ss:$4 sm:$0xff] %v1238_v3 }
 0x1ab   : > { %1344 = vst [vmem:[#allocation1 + $0x22] ss:$4 sm:$0xff] %v1239_v4  ;;  %1828 = vmatpush.msra.mxu3 %v5723_v63  ;;  %v5689_v63 = vld [vmem:[%s6440_s6 + $0x50] sm:$0xff] }
 0x1ac   : > { %1345 = vst [vmem:[#allocation1 + $0x23] ss:$4 sm:$0xff] %v1240_v5 }
 0x1ad   : > { %v1336_v10 = vld.sshfl [vmem:[#allocation1] sm:$0xff pattern:$0x73625140]  ;;  %1462 = vmatmul.f32.gmra.mxu2 %v1326_v1  ;;  %1829 = vmatpush.msra.mxu3 %v5722_v0  ;;  %v5760_v0 = vld [vmem:[%s9397_s1 + $0x210] sm:$0xff] }
 0x1ae   : > { %1338 = vst [vmem:[#allocation1] ss:$4 sm:$0xff] %v1235_v7  ;;  %v1181_v7 = vld [vmem:[%s6440_s6 + $0xda] sm:$0xff] }
 0x1af   : > { %1339 = vst [vmem:[#allocation1 + $0x1] ss:$4 sm:$0xff] %v1236_v8  ;;  %1830 = vmatpush.msra.mxu3 %v5721_v2  ;;  %v1270_v8 = vrot.slane %v1181_v7, 6 }
 0x1b0   : > { %1340 = vst [vmem:[#allocation1 + $0x2] ss:$4 sm:$0xff] %v1237_v9  ;;  %v1182_v9 = vld [vmem:[%s6440_s6 + $0xe2] sm:$0xff] }
 0x1b1   : > { %1341 = vst [vmem:[#allocation1 + $0x3] ss:$4 sm:$0xff] %v1165_v11  ;;  %v5718_v11 = vld [vmem:[%s9397_s1 + $0x1b0] sm:$0xff] }
 0x1b3   : > { %v1347_v17 = vld.sshfl [vmem:[#allocation1 + $0x20] sm:$0xff pattern:$0x73625140] }
 0x1b4   : > { %1352 = vst [vmem:[#allocation1 + $0x20] ss:$4 sm:$0xff] %v1168_v12  ;;  %v1271_v12 = vrot.slane %v1182_v9, 2 }
 0x1b5   : > { %1353 = vst [vmem:[#allocation1 + $0x21] ss:$4 sm:$0xff] %v1169_v13  ;;  %1465 = vmatmul.f32.gmra.mxu2 %v1327_v60  ;;  %v1178_v60 = vld [vmem:[%s6440_s6 + $0xc2] sm:$0xff] }
 0x1b6   : > { %1354 = vst [vmem:[#allocation1 + $0x22] ss:$4 sm:$0xff] %v1244_v14  ;;  %v1262_v1 = vrot.slane %v1178_v60, 2  ;;  %v1263_v3 = vrot.slane %v1178_v60, 4  ;;  %v1264_v4 = vrot.slane %v1178_v60, 6  ;;  %v1272_v14 = vrot.slane %v1182_v9, 4 }
 0x1b7   : > { %1355 = vst [vmem:[#allocation1 + $0x23] ss:$4 sm:$0xff] %v1245_v16  ;;  %v5716_v16 = vld [vmem:[%s9397_s1 + $0x1a0] sm:$0xff] }
 0x1b8   : > { %v1346_v21 = vld.sshfl [vmem:[#allocation1] sm:$0xff pattern:$0x73625140] }
 0x1b9   : > { %1348 = vst [vmem:[#allocation1] ss:$4 sm:$0xff] %v1167_v15  ;;  %v5717_v15 = vld [vmem:[%s9397_s1 + $0x1a8] sm:$0xff] }
 0x1ba   : > { %1349 = vst [vmem:[#allocation1 + $0x1] ss:$4 sm:$0xff] %v1241_v18  ;;  %v1268_v18 = vrot.slane %v1181_v7, 2 }
 0x1bb   : > { %1350 = vst [vmem:[#allocation1 + $0x2] ss:$4 sm:$0xff] %v1242_v19 }
 0x1bc   : > { %1351 = vst [vmem:[#allocation1 + $0x3] ss:$4 sm:$0xff] %v1243_v20  ;;  %v1269_v20 = vrot.slane %v1181_v7, 4 }
 0x1bd   : > { %1468 = vmatmul.f32.gmra.mxu2 %v1336_v10  ;;  %v5719_v10 = vld [vmem:[%s9397_s1 + $0x1b8] sm:$0xff] }
 0x1be   : > { %v6803_v27 = vld.sshfl [vmem:[#allocation1 + $0x20] sm:$0xff pattern:$0x73625140] }
 0x1bf   : > { %1362 = vst [vmem:[#allocation1 + $0x20] ss:$4 sm:$0xff] %v1249_v23  ;;  %v5713_v23 = vld [vmem:[%s9397_s1 + $0x188] sm:$0xff] }
 0x1c0   : > { %1363 = vst [vmem:[#allocation1 + $0x21] ss:$4 sm:$0xff] %v1171_v24  ;;  %v5712_v24 = vld [vmem:[%s9397_s1 + $0x180] sm:$0xff] }
 0x1c1   : > { %1364 = vst [vmem:[#allocation1 + $0x22] ss:$4 sm:$0xff] %v1172_v25  ;;  %v5683_v25 = vld [vmem:[%s6440_s6 + $0x20] sm:$0xff] }
 0x1c2   : > { %1365 = vst [vmem:[#allocation1 + $0x23] ss:$4 sm:$0xff] %v1250_v26 }
 0x1c3   : > { %v1356_v31 = vld.sshfl [vmem:[#allocation1] sm:$0xff pattern:$0x73625140] }
 0x1c4   : > { %1358 = vst [vmem:[#allocation1] ss:$4 sm:$0xff] %v1246_v28  ;;  %v1608_v28 = vrot.slane %v5683_v25, 4 }
 0x1c5   : > { %1359 = vst [vmem:[#allocation1 + $0x1] ss:$4 sm:$0xff] %v1170_v22  ;;  %1471 = vmatmul.f32.gmra.mxu2 %v1337_v6  ;;  %v5720_v6 = vld [vmem:[%s9397_s1 + $0x1c0] sm:$0xff]  ;;  %v5714_v22 = vld [vmem:[%s9397_s1 + $0x190] sm:$0xff] }
 0x1c6   : > { %1360 = vst [vmem:[#allocation1 + $0x2] ss:$4 sm:$0xff] %v1247_v29  ;;  %1831 = vmatpush.msra.mxu3 %v5720_v6  ;;  %v1609_v29 = vrot.slane %v5683_v25, 6 }
 0x1c7   : > { %1361 = vst [vmem:[#allocation1 + $0x3] ss:$4 sm:$0xff] %v1248_v30  ;;  %v1273_v30 = vrot.slane %v1182_v9, 6 }
 0x1c8   : > { %1832 = vmatpush.msra.mxu3 %v5719_v10 }
 0x1c9   : > { %v6807_v36 = vld.sshfl [vmem:[#allocation1 + $0x20] sm:$0xff pattern:$0x73625140] }
 0x1ca   : > { %1372 = vst [vmem:[#allocation1 + $0x20] ss:$4 sm:$0xff] %v1254_v33  ;;  %1833 = vmatpush.msra.mxu3 %v5718_v11  ;;  %v1183_v33 = vld [vmem:[%s6440_s6 + $0xea] sm:$0x3]  ;;  %v5690_v11 = vld [vmem:[%s6440_s6 + $0x58] sm:$0x3] }
 0x1cb   : > { %1373 = vst [vmem:[#allocation1 + $0x21] ss:$4 sm:$0xff] %v1255_v34 }
 0x1cc   : > { %1374 = vst [vmem:[#allocation1 + $0x22] ss:$4 sm:$0xff] %v1174_v35  ;;  %1834 = vmatpush.msra.mxu3 %v5717_v15  ;;  %v5682_v35 = vld [vmem:[%s6440_s6 + $0x18] sm:$0xff]  ;;  %v1619_v15 = vrot.slane %v5689_v63, 2 }
 0x1cd   : > { %1375 = vst [vmem:[#allocation1 + $0x23] ss:$4 sm:$0xff] %v1175_v38  ;;  %1474 = vmatmul.f32.gmra.mxu2 %v1346_v21  ;;  %v5715_v21 = vld [vmem:[%s9397_s1 + $0x198] sm:$0xff] }
 0x1ce   : > { %v6810_v42 = vld.sshfl [vmem:[#allocation1] sm:$0xff pattern:$0x73625140]  ;;  %1835 = vmatpush.msra.mxu3 %v5716_v16  ;;  %v5692_v16 = vld [vmem:[%s6440_s6 + $0x68] sm:$0xff] }
 0x1cf   : > { %1368 = vst [vmem:[#allocation1] ss:$4 sm:$0xff] %v1251_v37  ;;  %v6891_v37 = vld [vmem:[%s6440_s6 + $0x38] sm:$0xff] }
 0x1d0   : > { %1369 = vst [vmem:[#allocation1 + $0x1] ss:$4 sm:$0xff] %v1252_v39  ;;  %1836 = vmatpush.msra.mxu3 %v5715_v21  ;;  %v5771_v39 = vld [vmem:[%s9397_s1 + $0x268] sm:$0xff]  ;;  %v1615_v2 = vrot.slane %v6891_v37, 6  ;;  %v5693_v21 = vld [vmem:[%s6440_s6 + $0x70] sm:$0x3] }
 0x1d1   : > { %1370 = vst [vmem:[#allocation1 + $0x2] ss:$4 sm:$0xff] %v1173_v32  ;;  %v5772_v32 = vld [vmem:[%s9397_s1 + $0x270] sm:$0xff] }
 0x1d2   : > { %1371 = vst [vmem:[#allocation1 + $0x3] ss:$4 sm:$0xff] %v1253_v41  ;;  %1837 = vmatpush.msra.mxu3 %v5714_v22  ;;  %v5770_v41 = vld [vmem:[%s9397_s1 + $0x260] sm:$0xff] }
 0x1d4   : > { %v6816_v48 = vld.sshfl [vmem:[#allocation1 + $0x20] sm:$0xff pattern:$0x73625140]  ;;  %1838 = vmatpush.msra.mxu3 %v5713_v23 }
 0x1d5   : > { %1382 = vst [vmem:[#allocation1 + $0x20] ss:$4 sm:$0xff] %v1259_v45  ;;  %1477 = vmatmul.f32.gmra.mxu2 %v1347_v17  ;;  %v1180_v17 = vld [vmem:[%s6440_s6 + $0xd2] sm:$0x3]  ;;  %v1613_v45 = vrot.slane %v6891_v37, 2 }
 0x1d6   : > { %1383 = vst [vmem:[#allocation1 + $0x21] ss:$4 sm:$0xff] %v1260_v46  ;;  %1839 = vmatpush.msra.mxu3 %v5712_v24  ;;  %v1605_v46 = vrot.slane %v5682_v35, 4 }
 0x1d7   : > { %1384 = vst [vmem:[#allocation1 + $0x22] ss:$4 sm:$0xff] %v1261_v47  ;;  %v5769_v47 = vld [vmem:[%s9397_s1 + $0x258] sm:$0xff] }
 0x1d8   : > { %1385 = vst [vmem:[#allocation1 + $0x23] ss:$4 sm:$0xff] %v1177_v49 }
 0x1d9   : > { %v6825_v54 = vld.sshfl [vmem:[#allocation1] sm:$0xff pattern:$0x73625140] }
 0x1da   : > { %1378 = vst [vmem:[#allocation1] ss:$4 sm:$0xff] %v1256_v50  ;;  %v1606_v50 = vrot.slane %v5682_v35, 6 }
 0x1db   : > { %1379 = vst [vmem:[#allocation1 + $0x1] ss:$4 sm:$0xff] %v1257_v51  ;;  %v5768_v51 = vld [vmem:[%s9397_s1 + $0x250] sm:$0xff] }
 0x1dc   : > { %1380 = vst [vmem:[#allocation1 + $0x2] ss:$4 sm:$0xff] %v1258_v52  ;;  %v1614_v52 = vrot.slane %v6891_v37, 4 }
 0x1dd   : > { %1381 = vst [vmem:[#allocation1 + $0x3] ss:$4 sm:$0xff] %v1176_v43  ;;  %1480 = vmatmul.f32.gmra.mxu2 %v1356_v31  ;;  %v5773_v31 = vld [vmem:[%s9397_s1 + $0x278] sm:$0xff]  ;;  %v1604_v43 = vrot.slane %v5682_v35, 2 }
 0x1de   : > { %2213 = vmatpush.msra.mxu0 %v5773_v31 }
 0x1df   : > { %v1387_v61 = vld.sshfl [vmem:[#allocation1 + $0x20] sm:$0xff pattern:$0x73625140] }
 0x1e0   : > { %1501 = vmatmul.f32.vlgmr.msrb.gmra.mxu3 %v1387_v61  ;;  %1392 = vst [vmem:[#allocation1 + $0x20] ss:$4 sm:$0xff] %v1179_v55  ;;  %2214 = vmatpush.msra.mxu0 %v5772_v32  ;;  %v5764_v55 = vld [vmem:[%s9397_s1 + $0x230] sm:$0xff]  ;;  %v5762_v61 = vld [vmem:[%s9397_s1 + $0x220] sm:$0xff] }
 0x1e1   : > { %1393 = vst [vmem:[#allocation1 + $0x21] ss:$4 sm:$0xff] %v1265_v58 }
 0x1e2   : > { %1394 = vst [vmem:[#allocation1 + $0x22] ss:$4 sm:$0xff] %v1266_v59  ;;  %2215 = vmatpush.msra.mxu0 %v5771_v39 }
 0x1e3   : > { %1395 = vst [vmem:[#allocation1 + $0x23] ss:$4 sm:$0xff] %v1267_v62  ;;  %v5761_v62 = vld [vmem:[%s9397_s1 + $0x218] sm:$0xff] }
 0x1e4   : > { %v6844_v5 = vld.sshfl [vmem:[#allocation1] sm:$0xff pattern:$0x73625140]  ;;  %2216 = vmatpush.msra.mxu0 %v5770_v41 }
 0x1e5   : > { %1388 = vst [vmem:[#allocation1] ss:$4 sm:$0xff] %v1178_v60  ;;  %1483 = vmatmul.f32.gmra.mxu2 %v6803_v27  ;;  %v1607_v27 = vrot.slane %v5683_v25, 2  ;;  %v5763_v60 = vld [vmem:[%s9397_s1 + $0x228] sm:$0xff] }
 0x1e6   : > { %1389 = vst [vmem:[#allocation1 + $0x1] ss:$4 sm:$0xff] %v1262_v1  ;;  %2217 = vmatpush.msra.mxu0 %v5769_v47  ;;  %v5688_v1 = vld [vmem:[%s6440_s6 + $0x48] sm:$0xff] }
 0x1e7   : > { %1390 = vst [vmem:[#allocation1 + $0x2] ss:$4 sm:$0xff] %v1263_v3  ;;  %v5687_v3 = vld [vmem:[%s6440_s6 + $0x40] sm:$0x3] }
 0x1e8   : > { %1391 = vst [vmem:[#allocation1 + $0x3] ss:$4 sm:$0xff] %v1264_v4  ;;  %2218 = vmatpush.msra.mxu0 %v5768_v51  ;;  %v5759_v4 = vld [vmem:[%s9397_s1 + $0x208] sm:$0xff] }
 0x1ea   : > { %v1397_v13 = vld.sshfl [vmem:[#allocation1 + $0x20] sm:$0xff pattern:$0x73625140]  ;;  %2219 = vmatpush.msra.mxu0 %v5767_v40 }
 0x1eb   : > { %1402 = vst [vmem:[#allocation1 + $0x20] ss:$4 sm:$0xff] %v1270_v8  ;;  %v1620_v8 = vrot.slane %v5689_v63, 4 }
 0x1ec   : > { %1403 = vst [vmem:[#allocation1 + $0x21] ss:$4 sm:$0xff] %v1182_v9  ;;  %2220 = vmatpush.msra.mxu0 %v5766_v53  ;;  %v1621_v9 = vrot.slane %v5689_v63, 6 }
 0x1ed   : > { %1404 = vst [vmem:[#allocation1 + $0x22] ss:$4 sm:$0xff] %v1271_v12  ;;  %1486 = vmatmul.f32.gmra.mxu2 %v6810_v42  ;;  %v5691_v12 = vld [vmem:[%s6440_s6 + $0x60] sm:$0xff] }
 0x1ee   : > { %1405 = vst [vmem:[#allocation1 + $0x23] ss:$4 sm:$0xff] %v1272_v14  ;;  %v1618_v14 = vrot.slane %v5688_v1, 6  ;;  %v1622_v22 = vrot.slane %v5691_v12, 2  ;;  %v1623_v24 = vrot.slane %v5691_v12, 4 }
 0x1ef   : > { %v1396_v19 = vld.sshfl [vmem:[#allocation1] sm:$0xff pattern:$0x73625140] }
 0x1f0   : > { %1504 = vmatmul.f32.gmra.mxu3 %v1396_v19  ;;  %1398 = vst [vmem:[#allocation1] ss:$4 sm:$0xff] %v1180_v17  ;;  %v1625_v17 = vrot.slane %v5692_v16, 2  ;;  %v1627_v19 = vrot.slane %v5692_v16, 6 }
 0x1f1   : > { %1399 = vst [vmem:[#allocation1 + $0x1] ss:$4 sm:$0xff] %v1181_v7  ;;  %v1616_v7 = vrot.slane %v5688_v1, 2 }
 0x1f2   : > { %1400 = vst [vmem:[#allocation1 + $0x2] ss:$4 sm:$0xff] %v1268_v18  ;;  %v1626_v18 = vrot.slane %v5692_v16, 4 }
 0x1f3   : > { %1401 = vst [vmem:[#allocation1 + $0x3] ss:$4 sm:$0xff] %v1269_v20 }
 0x1f5   : > { %v1407_v26 = vld.sshfl [vmem:[#allocation1 + $0x20] sm:$0xff pattern:$0x73625140]  ;;  %1489 = vmatmul.f32.gmra.mxu2 %v6807_v36  ;;  %v5685_v36 = vld [vmem:[%s6440_s6 + $0x30] sm:$0xff] }
 0x1f6   : > { %1689 = vst [vmem:[#allocation1 + $0x20] ss:$4 sm:$0xff] %v5683_v25  ;;  %v1612_v42 = vrot.slane %v5685_v36, 6  ;;  %v1610_v56 = vrot.slane %v5685_v36, 2  ;;  %v1611_v58 = vrot.slane %v5685_v36, 4  ;;  %v1624_v25 = vrot.slane %v5691_v12, 6 }
 0x1f7   : > { %1691 = vst [vmem:[#allocation1 + $0x21] ss:$4 sm:$0xff] %v1607_v27 }
 0x1f8   : > { %1507 = vmatmul.f32.gmra.mxu3 %v1397_v13  ;;  %1693 = vst [vmem:[#allocation1 + $0x22] ss:$4 sm:$0xff] %v1608_v28  ;;  %v1617_v13 = vrot.slane %v5688_v1, 4 }
 0x1f9   : > { %1695 = vst [vmem:[#allocation1 + $0x23] ss:$4 sm:$0xff] %v1609_v29  ;;  %v5694_v29 = vld [vmem:[%s6440_s6 + $0x78] sm:$0xff] }
 0x1fa   : > { %v1406_v34 = vld.sshfl [vmem:[#allocation1] sm:$0xff pattern:$0x73625140]  ;;  %v1628_v32 = vrot.slane %v5694_v29, 2 }
 0x1fb   : > { %1408 = vst [vmem:[#allocation1] ss:$4 sm:$0xff] %v1273_v30 }
 0x1fc   : > { %1409 = vst [vmem:[#allocation1 + $0x1] ss:$4 sm:$0xff] %v1183_v33  ;;  %v1629_v33 = vrot.slane %v5694_v29, 4 }
 0x1fd   : > { %1492 = vmatmul.f32.gmra.mxu2 %v6825_v54  ;;  %v5765_v54 = vld [vmem:[%s9397_s1 + $0x238] sm:$0xff] }
 0x1fe   : > { %2221 = vmatpush.msra.mxu0 %v5765_v54 }
 0x200   : > { %1510 = vmatmul.f32.gmra.mxu3 %v1406_v34  ;;  %v6893_v38 = vld.sshfl [vmem:[#allocation1 + $0x20] sm:$0xff pattern:$0x73625140]  ;;  %2222 = vmatpush.msra.mxu0 %v5764_v55  ;;  %v1630_v34 = vrot.slane %v5694_v29, 6 }
 0x201   : > { %1703 = vst [vmem:[#allocation1 + $0x21] ss:$4 sm:$0xff] %v6891_v37  ;;  %v5698_v37 = vld [vmem:[%s6440_s6 + $0x98] sm:$0xff] }
 0x202   : > { %1702 = vst [vmem:[#allocation1 + $0x20] ss:$4 sm:$0xff] %v1612_v42  ;;  %2223 = vmatpush.msra.mxu0 %v5763_v60  ;;  %v1637_v39 = vrot.slane %v5698_v37, 2  ;;  %v1638_v41 = vrot.slane %v5698_v37, 4  ;;  %v1639_v54 = vrot.slane %v5698_v37, 6 }
 0x203   : > { %v1410_v49 = vld.sshfl [vmem:[#allocation1] sm:$0xff pattern:$0x73625140]  ;;  %1704 = vst [vmem:[#allocation1 + $0x22] ss:$4 sm:$0xff] %v1613_v45 }
 0x204   : > { %1681 = vst [vmem:[#allocation1] ss:$4 sm:$0xff] %v5682_v35  ;;  %2224 = vmatpush.msra.mxu0 %v5762_v61 }
 0x205   : > { %1683 = vst [vmem:[#allocation1 + $0x1] ss:$4 sm:$0xff] %v1604_v43  ;;  %1495 = vmatmul.f32.gmra.mxu2 %v6816_v48  ;;  %v5684_v48 = vld [vmem:[%s6440_s6 + $0x28] sm:$0x3] }
 0x206   : > { %1685 = vst [vmem:[#allocation1 + $0x2] ss:$4 sm:$0xff] %v1605_v46  ;;  %2225 = vmatpush.msra.mxu0 %v5761_v62  ;;  %v5696_v43 = vld [vmem:[%s6440_s6 + $0x88] sm:$0x3] }
 0x207   : > { %1687 = vst [vmem:[#allocation1 + $0x3] ss:$4 sm:$0xff] %v1606_v50  ;;  %v5701_v50 = vld [vmem:[%s6440_s6 + $0xb0] sm:$0xff]  ;;  %v5704_v62 = vld [vmem:[%s6440_s6 + $0xc8] sm:$0xff] }
 0x208   : > { %1513 = vmatmul.f32.gmra.mxu3 %v1407_v26  ;;  %1705 = vst [vmem:[#allocation1 + $0x23] ss:$4 sm:$0xff] %v1614_v52  ;;  %2226 = vmatpush.msra.mxu0 %v5760_v0  ;;  %v5695_v26 = vld [vmem:[%s6440_s6 + $0x80] sm:$0xff]  ;;  %v1643_v40 = vrot.slane %v5701_v50, 2  ;;  %v1645_v0 = vrot.slane %v5701_v50, 6 }
 0x209   : > { %v1631_v27 = vrot.slane %v5695_v26, 2  ;;  %v1632_v28 = vrot.slane %v5695_v26, 4  ;;  %v1633_v30 = vrot.slane %v5695_v26, 6 }
 0x20a   : > { %2227 = vmatpush.msra.mxu0 %v5759_v4 }
 0x20d   : > { %1498 = vmatmul.f32.gmra.mxu2 %v6844_v5  ;;  %v5758_v5 = vld [vmem:[%s9397_s1 + $0x200] sm:$0xff] }
 0x20e   : > { %v1696_v57 = vld.sshfl [vmem:[#allocation1] sm:$0xff pattern:$0x73625140]  ;;  %2228 = vmatpush.msra.mxu0 %v5758_v5  ;;  %v6968_v5 = vpop.f32.mrf.mxu0 }
 0x20f   : > { %1698 = vst [vmem:[#allocation1] ss:$4 sm:$0xff] %v5684_v48  ;;  %v1707_v59 = vld.sshfl [vmem:[#allocation1 + $0x20] sm:$0xff pattern:$0x73625140] }
 0x210   : > { %1516 = vmatmul.f32.gmra.mxu3 %v1410_v49  ;;  %1699 = vst [vmem:[#allocation1 + $0x1] ss:$4 sm:$0xff] %v5685_v36  ;;  %v5697_v36 = vld [vmem:[%s6440_s6 + $0x90] sm:$0xff]  ;;  %v5700_v49 = vld [vmem:[%s6440_s6 + $0xa8] sm:$0xff]  ;;  %v5699_v48 = vld [vmem:[%s6440_s6 + $0xa0] sm:$0x3] }
 0x211   : > { %1700 = vst [vmem:[#allocation1 + $0x2] ss:$4 sm:$0xff] %v1610_v56  ;;  %v1634_v45 = vrot.slane %v5697_v36, 2  ;;  %v1635_v46 = vrot.slane %v5697_v36, 4  ;;  %v1641_v51 = vrot.slane %v5700_v49, 4  ;;  %v1642_v52 = vrot.slane %v5700_v49, 6 }
 0x212   : > { %1701 = vst [vmem:[#allocation1 + $0x3] ss:$4 sm:$0xff] %v1611_v58  ;;  %v1640_v55 = vrot.slane %v5700_v49, 2 }
 0x213   : > { %1714 = vst [vmem:[#allocation1 + $0x22] ss:$4 sm:$0xff] %v5689_v63  ;;  %v1644_v63 = vrot.slane %v5701_v50, 4 }
 0x214   : > { %1712 = vst [vmem:[#allocation1 + $0x20] ss:$4 sm:$0xff] %v1617_v13  ;;  %v5705_v13 = vld [vmem:[%s6440_s6 + $0xd0] sm:$0x3] }
 0x215   : > { %1713 = vst [vmem:[#allocation1 + $0x21] ss:$4 sm:$0xff] %v1618_v14  ;;  %v5709_v14 = vld [vmem:[%s6440_s6 + $0xf0] sm:$0xff] }
 0x216   : > { %1715 = vst [vmem:[#allocation1 + $0x23] ss:$4 sm:$0xff] %v1619_v15  ;;  %v6976_v15 = vpop.f32.mrf.mxu0 }
 0x218   : > { %1840 = vmatmul.f32.vlgmr.msra.gmra.mxu3 %v1696_v57  ;;  %v5703_v57 = vld [vmem:[%s6440_s6 + $0xc0] sm:$0xff] }
 0x219   : > { %v1706_v6 = vld.sshfl [vmem:[#allocation1] sm:$0xff pattern:$0x73625140]  ;;  %v1646_v58 = vrot.slane %v5703_v57, 2  ;;  %v1648_v60 = vrot.slane %v5703_v57, 6 }
 0x21a   : > { %1708 = vst [vmem:[#allocation1] ss:$4 sm:$0xff] %v1615_v2 }
 0x21b   : > { %1709 = vst [vmem:[#allocation1 + $0x1] ss:$4 sm:$0xff] %v5687_v3  ;;  %v5706_v3 = vld [vmem:[%s6440_s6 + $0xd8] sm:$0xff] }
 0x21c   : > { %1710 = vst [vmem:[#allocation1 + $0x2] ss:$4 sm:$0xff] %v5688_v1  ;;  %v5702_v1 = vld [vmem:[%s6440_s6 + $0xb8] sm:$0x3]  ;;  %v1652_v4 = vrot.slane %v5706_v3, 2 }
 0x21d   : > { %1711 = vst [vmem:[#allocation1 + $0x3] ss:$4 sm:$0xff] %v1616_v7  ;;  %v1717_v23 = vld.sshfl [vmem:[#allocation1 + $0x20] sm:$0xff pattern:$0x73625140]  ;;  %v1654_v7 = vrot.slane %v5706_v3, 6 }
 0x21e   : > { %1725 = vst [vmem:[#allocation1 + $0x23] ss:$4 sm:$0xff] %v5692_v16  ;;  %v5708_v16 = vld [vmem:[%s6440_s6 + $0xe8] sm:$0x3] }
 0x21f   : > { %1722 = vst [vmem:[#allocation1 + $0x20] ss:$4 sm:$0xff] %v1622_v22 }
 0x220   : > { %1843 = vmatmul.f32.gmra.mxu3 %v6893_v38  ;;  %1723 = vst [vmem:[#allocation1 + $0x21] ss:$4 sm:$0xff] %v1623_v24  ;;  %v1636_v38 = vrot.slane %v5697_v36, 6 }
 0x221   : > { %1724 = vst [vmem:[#allocation1 + $0x22] ss:$4 sm:$0xff] %v1624_v25 }
 0x224   : > { %v1716_v10 = vld.sshfl [vmem:[#allocation1] sm:$0xff pattern:$0x73625140] }
 0x225   : > { %1718 = vst [vmem:[#allocation1] ss:$4 sm:$0xff] %v1620_v8 }
 0x226   : > { %1719 = vst [vmem:[#allocation1 + $0x1] ss:$4 sm:$0xff] %v1621_v9  ;;  %v1649_v9 = vrot.slane %v5704_v62, 2 }
 0x227   : > { %1720 = vst [vmem:[#allocation1 + $0x2] ss:$4 sm:$0xff] %v5690_v11  ;;  %v1651_v11 = vrot.slane %v5704_v62, 6 }
 0x228   : > { %1846 = vmatmul.f32.gmra.mxu3 %v1706_v6  ;;  %1721 = vst [vmem:[#allocation1 + $0x3] ss:$4 sm:$0xff] %v5691_v12  ;;  %v1727_v35 = vld.sshfl [vmem:[#allocation1 + $0x20] sm:$0xff pattern:$0x73625140]  ;;  %v1653_v6 = vrot.slane %v5706_v3, 4 }
 0x229   : > { %1732 = vst [vmem:[#allocation1 + $0x20] ss:$4 sm:$0xff] %v5694_v29  ;;  %v5711_v29 = vld [vmem:[%s6440_s6 + $0x100] sm:$0x3] }
 0x22a   : > { %1733 = vst [vmem:[#allocation1 + $0x21] ss:$4 sm:$0xff] %v1628_v32  ;;  %v5728_v32 = vld [vmem:[%s6440_s6 + $0x19] sm:$0xff] }
 0x22b   : > { %1734 = vst [vmem:[#allocation1 + $0x22] ss:$4 sm:$0xff] %v1629_v33 }
 0x22c   : > { %1735 = vst [vmem:[#allocation1 + $0x23] ss:$4 sm:$0xff] %v1630_v34 }
 0x22f   : > { %v1726_v20 = vld.sshfl [vmem:[#allocation1] sm:$0xff pattern:$0x73625140] }
 0x230   : > { %1849 = vmatmul.f32.gmra.mxu3 %v1707_v59  ;;  %1728 = vst [vmem:[#allocation1] ss:$4 sm:$0xff] %v1625_v17  ;;  %v1647_v59 = vrot.slane %v5703_v57, 4  ;;  %v1658_v17 = vrot.slane %v5709_v14, 2 }
 0x231   : > { %1729 = vst [vmem:[#allocation1 + $0x1] ss:$4 sm:$0xff] %v1626_v18  ;;  %v1659_v18 = vrot.slane %v5709_v14, 4 }
 0x232   : > { %1730 = vst [vmem:[#allocation1 + $0x2] ss:$4 sm:$0xff] %v1627_v19 }
 0x233   : > { %1731 = vst [vmem:[#allocation1 + $0x3] ss:$4 sm:$0xff] %v5693_v21  ;;  %v1737_v47 = vld.sshfl [vmem:[#allocation1 + $0x20] sm:$0xff pattern:$0x73625140] }
 0x234   : > { %1742 = vst [vmem:[#allocation1 + $0x20] ss:$4 sm:$0xff] %v5696_v43  ;;  %v5729_v43 = vld [vmem:[%s6440_s6 + $0x21] sm:$0xff] }
 0x235   : > { %1743 = vst [vmem:[#allocation1 + $0x21] ss:$4 sm:$0xff] %v5697_v36 }
 0x236   : > { %1744 = vst [vmem:[#allocation1 + $0x22] ss:$4 sm:$0xff] %v1634_v45  ;;  %v1996_v45 = vrot.slane %v5729_v43, 2 }
 0x237   : > { %1745 = vst [vmem:[#allocation1 + $0x23] ss:$4 sm:$0xff] %v1635_v46  ;;  %v1997_v46 = vrot.slane %v5729_v43, 4 }
 0x238   : > { %1852 = vmatmul.f32.gmra.mxu3 %v1716_v10  ;;  %v1650_v10 = vrot.slane %v5704_v62, 4 }
 0x23a   : > { %v1736_v31 = vld.sshfl [vmem:[#allocation1] sm:$0xff pattern:$0x73625140] }
 0x23b   : > { %1738 = vst [vmem:[#allocation1] ss:$4 sm:$0xff] %v5695_v26  ;;  %v6986_v26 = vpop.f32.mrf.mxu0 }
 0x23c   : > { %1739 = vst [vmem:[#allocation1 + $0x1] ss:$4 sm:$0xff] %v1631_v27 }
 0x23d   : > { %1740 = vst [vmem:[#allocation1 + $0x2] ss:$4 sm:$0xff] %v1632_v28  ;;  %v6988_v28 = vpop.f32.mrf.mxu3 }
 0x23e   : > { %1741 = vst [vmem:[#allocation1 + $0x3] ss:$4 sm:$0xff] %v1633_v30  ;;  %v1747_v56 = vld.sshfl [vmem:[#allocation1 + $0x20] sm:$0xff pattern:$0x73625140] }
 0x23f   : > { %1752 = vst [vmem:[#allocation1 + $0x20] ss:$4 sm:$0xff] %v1639_v54 }
 0x240   : > { %1855 = vmatmul.f32.gmra.mxu3 %v1717_v23  ;;  %1753 = vst [vmem:[#allocation1 + $0x21] ss:$4 sm:$0xff] %v5699_v48  ;;  %v5710_v23 = vld [vmem:[%s6440_s6 + $0xf8] sm:$0xff] }
 0x241   : > { %1754 = vst [vmem:[#allocation1 + $0x22] ss:$4 sm:$0xff] %v5700_v49  ;;  %v1663_v27 = vrot.slane %v5710_v23, 6  ;;  %v1661_v33 = vrot.slane %v5710_v23, 2  ;;  %v1662_v34 = vrot.slane %v5710_v23, 4  ;;  %v1998_v49 = vrot.slane %v5729_v43, 6 }
 0x242   : > { %1755 = vst [vmem:[#allocation1 + $0x23] ss:$4 sm:$0xff] %v1640_v55 }
 0x243   : > { %9442 = vst [vmem:[#allocation7_spill] sm:$0xff] %v6988_v28  ;;  %v5847_v28 = vld [vmem:[%s6440_s6 + $0x108] sm:$0xff] }
 0x245   : > { %v1746_v42 = vld.sshfl [vmem:[#allocation1] sm:$0xff pattern:$0x73625140]  ;;  %v6996_v36 = vpop.f32.mrf.mxu3 }
 0x246   : > { %1748 = vst [vmem:[#allocation1] ss:$4 sm:$0xff] %v1636_v38  ;;  %v1993_v38 = vrot.slane %v5728_v32, 2 }
 0x247   : > { %1749 = vst [vmem:[#allocation1 + $0x1] ss:$4 sm:$0xff] %v5698_v37  ;;  %v6998_v37 = vpop.f32.mrf.mxu0 }
 0x248   : > { %1750 = vst [vmem:[#allocation1 + $0x2] ss:$4 sm:$0xff] %v1637_v39  ;;  %1858 = vmatmul.f32.gmra.mxu3 %v1726_v20  ;;  %v5707_v20 = vld [vmem:[%s6440_s6 + $0xe0] sm:$0xff]  ;;  %v1994_v39 = vrot.slane %v5728_v32, 4 }
 0x249   : > { %1751 = vst [vmem:[#allocation1 + $0x3] ss:$4 sm:$0xff] %v1638_v41  ;;  %v1757_v2 = vld.sshfl [vmem:[#allocation1 + $0x20] sm:$0xff pattern:$0x73625140]  ;;  %v1655_v21 = vrot.slane %v5707_v20, 2 }
 0x24a   : > { %1762 = vst [vmem:[#allocation1 + $0x20] ss:$4 sm:$0xff] %v1644_v63  ;;  %v1656_v22 = vrot.slane %v5707_v20, 4  ;;  %v1657_v24 = vrot.slane %v5707_v20, 6  ;;  %v5734_v63 = vld [vmem:[%s6440_s6 + $0x49] sm:$0xff] }
 0x24b   : > { %1763 = vst [vmem:[#allocation1 + $0x21] ss:$4 sm:$0xff] %v1645_v0  ;;  %v5733_v0 = vld [vmem:[%s6440_s6 + $0x41] sm:$0x3] }
 0x24c   : > { %1764 = vst [vmem:[#allocation1 + $0x22] ss:$4 sm:$0xff] %v5702_v1 }
 0x24d   : > { %1765 = vst [vmem:[#allocation1 + $0x23] ss:$4 sm:$0xff] %v5703_v57 }
 0x24e   : > { %9443 = vst [vmem:[#allocation8_spill] sm:$0xff] %v6996_v36  ;;  %v5840_v36 = vld [vmem:[%s6440_s6 + $0xd0] sm:$0x3] }
 0x250   : > { %v6959_v53 = vld.sshfl [vmem:[#allocation1] sm:$0xff pattern:$0x73625140]  ;;  %1861 = vmatmul.f32.gmra.mxu3 %v1727_v35 }
 0x251   : > { %1758 = vst [vmem:[#allocation1] ss:$4 sm:$0xff] %v1641_v51  ;;  %v7007_v51 = vpop.f32.mrf.mxu3 }
 0x252   : > { %1759 = vst [vmem:[#allocation1 + $0x1] ss:$4 sm:$0xff] %v1642_v52  ;;  %v7009_v52 = vpop.f32.mrf.mxu0 }
 0x253   : > { %1760 = vst [vmem:[#allocation1 + $0x2] ss:$4 sm:$0xff] %v5701_v50  ;;  %v5731_v50 = vld [vmem:[%s6440_s6 + $0x31] sm:$0xff] }
 0x254   : > { %1761 = vst [vmem:[#allocation1 + $0x3] ss:$4 sm:$0xff] %v1643_v40  ;;  %v6972_v12 = vld.sshfl [vmem:[#allocation1 + $0x20] sm:$0xff pattern:$0x73625140]  ;;  %v2000_v48 = vrot.slane %v5731_v50, 4 }
 0x255   : > { %1772 = vst [vmem:[#allocation1 + $0x20] ss:$4 sm:$0xff] %v1649_v9  ;;  %v5730_v40 = vld [vmem:[%s6440_s6 + $0x29] sm:$0x3]  ;;  %v2001_v55 = vrot.slane %v5731_v50, 6 }
 0x256   : > { %1773 = vst [vmem:[#allocation1 + $0x21] ss:$4 sm:$0xff] %v1650_v10 }
 0x257   : > { %1774 = vst [vmem:[#allocation1 + $0x22] ss:$4 sm:$0xff] %v1651_v11 }
 0x258   : > { %1864 = vmatmul.f32.gmra.mxu3 %v1736_v31  ;;  %1775 = vst [vmem:[#allocation1 + $0x23] ss:$4 sm:$0xff] %v5705_v13  ;;  %v1660_v31 = vrot.slane %v5709_v14, 6  ;;  %v5736_v13 = vld [vmem:[%s6440_s6 + $0x59] sm:$0x3] }
 0x259   : > { %9444 = vst [vmem:[#allocation9_spill] sm:$0xff] %v7007_v51 }
 0x25b   : > { %v6963_v61 = vld.sshfl [vmem:[#allocation1] sm:$0xff pattern:$0x73625140] }
 0x25c   : > { %1768 = vst [vmem:[#allocation1] ss:$4 sm:$0xff] %v1646_v58  ;;  %v7014_v58 = vpop.f32.mrf.mxu3 }
 0x25d   : > { %1769 = vst [vmem:[#allocation1 + $0x1] ss:$4 sm:$0xff] %v1647_v59  ;;  %v7016_v59 = vpop.f32.mrf.mxu0 }
 0x25e   : > { %1770 = vst [vmem:[#allocation1 + $0x2] ss:$4 sm:$0xff] %v1648_v60 }
 0x25f   : > { %1771 = vst [vmem:[#allocation1 + $0x3] ss:$4 sm:$0xff] %v5704_v62  ;;  %v6983_v25 = vld.sshfl [vmem:[#allocation1 + $0x20] sm:$0xff pattern:$0x73625140] }
 0x260   : > { %1867 = vmatmul.f32.gmra.mxu3 %v1737_v47  ;;  %1782 = vst [vmem:[#allocation1 + $0x20] ss:$4 sm:$0xff] %v5707_v20 }
 0x261   : > { %1783 = vst [vmem:[#allocation1 + $0x21] ss:$4 sm:$0xff] %v1655_v21  ;;  %v5738_v21 = vld [vmem:[%s6440_s6 + $0x69] sm:$0xff] }
 0x262   : > { %1784 = vst [vmem:[#allocation1 + $0x22] ss:$4 sm:$0xff] %v1656_v22 }
 0x263   : > { %1785 = vst [vmem:[#allocation1 + $0x23] ss:$4 sm:$0xff] %v1657_v24 }
 0x264   : > { %9445 = vst [vmem:[#allocation10_spill] sm:$0xff] %v7014_v58 }
 0x266   : > { %v6970_v8 = vld.sshfl [vmem:[#allocation1] sm:$0xff pattern:$0x73625140] }
 0x267   : > { %1778 = vst [vmem:[#allocation1] ss:$4 sm:$0xff] %v5706_v3  ;;  %v2006_v3 = vrot.slane %v5734_v63, 4 }
 0x268   : > { %1779 = vst [vmem:[#allocation1 + $0x1] ss:$4 sm:$0xff] %v1652_v4  ;;  %1870 = vmatmul.f32.gmra.mxu3 %v1746_v42  ;;  %v1995_v42 = vrot.slane %v5728_v32, 6  ;;  %v5735_v4 = vld [vmem:[%s6440_s6 + $0x51] sm:$0xff] }
 0x269   : > { %1780 = vst [vmem:[#allocation1 + $0x2] ss:$4 sm:$0xff] %v1653_v6  ;;  %v2007_v6 = vrot.slane %v5734_v63, 6  ;;  %v2008_v10 = vrot.slane %v5735_v4, 2  ;;  %v2009_v11 = vrot.slane %v5735_v4, 4 }
 0x26a   : > { %1781 = vst [vmem:[#allocation1 + $0x3] ss:$4 sm:$0xff] %v1654_v7  ;;  %v6994_v35 = vld.sshfl [vmem:[#allocation1 + $0x20] sm:$0xff pattern:$0x73625140]  ;;  %v7022_v7 = vpop.f32.mrf.mxu3 }
 0x26b   : > { %1792 = vst [vmem:[#allocation1 + $0x20] ss:$4 sm:$0xff] %v1660_v31  ;;  %v5819_v31 = vld [vmem:[%s9397_s1 + $0x2f8] sm:$0xff] }
 0x26c   : > { %1793 = vst [vmem:[#allocation1 + $0x21] ss:$4 sm:$0xff] %v5710_v23  ;;  %2602 = vmatpush.msrb.mxu1 %v5819_v31 }
 0x26d   : > { %1794 = vst [vmem:[#allocation1 + $0x22] ss:$4 sm:$0xff] %v1661_v33  ;;  %v5818_v33 = vld [vmem:[%s9397_s1 + $0x2f0] sm:$0xff] }
 0x26e   : > { %1795 = vst [vmem:[#allocation1 + $0x23] ss:$4 sm:$0xff] %v1662_v34  ;;  %v5817_v34 = vld [vmem:[%s9397_s1 + $0x2e8] sm:$0xff]  ;;  %2603 = vmatpush.msrb.mxu1 %v5818_v33 }
 0x26f   : > { %9446 = vst [vmem:[#allocation11_spill] sm:$0xff] %v7022_v7 }
 0x270   : > { %1873 = vmatmul.f32.gmra.mxu3 %v1747_v56  ;;  %v5732_v56 = vld [vmem:[%s6440_s6 + $0x39] sm:$0xff]  ;;  %2604 = vmatpush.msrb.mxu1 %v5817_v34  ;;  %v5745_v34 = vld [vmem:[%s6440_s6 + $0xa1] sm:$0x3] }
 0x271   : > { %v6979_v19 = vld.sshfl [vmem:[#allocation1] sm:$0xff pattern:$0x73625140]  ;;  %v2002_v57 = vrot.slane %v5732_v56, 2  ;;  %v2004_v62 = vrot.slane %v5732_v56, 6 }
 0x272   : > { %1788 = vst [vmem:[#allocation1] ss:$4 sm:$0xff] %v5708_v16  ;;  %v5737_v16 = vld [vmem:[%s6440_s6 + $0x61] sm:$0xff] }
 0x273   : > { %1789 = vst [vmem:[#allocation1 + $0x1] ss:$4 sm:$0xff] %v5709_v14  ;;  %v2012_v22 = vrot.slane %v5737_v16, 4  ;;  %v2013_v23 = vrot.slane %v5737_v16, 6 }
 0x274   : > { %1790 = vst [vmem:[#allocation1 + $0x2] ss:$4 sm:$0xff] %v1658_v17  ;;  %v7030_v17 = vpop.f32.mrf.mxu3 }
 0x275   : > { %1791 = vst [vmem:[#allocation1 + $0x3] ss:$4 sm:$0xff] %v1659_v18  ;;  %v7004_v47 = vld.sshfl [vmem:[#allocation1 + $0x20] sm:$0xff pattern:$0x73625140]  ;;  %v2011_v18 = vrot.slane %v5737_v16, 2 }
 0x276   : > { %2078 = vst [vmem:[#allocation1 + $0x20] ss:$4 sm:$0xff] %v5729_v43 }
 0x277   : > { %2080 = vst [vmem:[#allocation1 + $0x21] ss:$4 sm:$0xff] %v1996_v45 }
 0x278   : > { %1876 = vmatmul.f32.gmra.mxu3 %v6959_v53  ;;  %2082 = vst [vmem:[#allocation1 + $0x22] ss:$4 sm:$0xff] %v1997_v46  ;;  %v1999_v53 = vrot.slane %v5731_v50, 2  ;;  %v5741_v46 = vld [vmem:[%s6440_s6 + $0x81] sm:$0xff] }
 0x279   : > { %2084 = vst [vmem:[#allocation1 + $0x23] ss:$4 sm:$0xff] %v1998_v49 }
 0x27a   : > { %9448 = vst [vmem:[#allocation13_spill] sm:$0xff] %v7030_v17 }
 0x27c   : > { %v6991_v30 = vld.sshfl [vmem:[#allocation1] sm:$0xff pattern:$0x73625140] }
 0x27d   : > { %1798 = vst [vmem:[#allocation1] ss:$4 sm:$0xff] %v1663_v27  ;;  %v2015_v27 = vrot.slane %v5738_v21, 4 }
 0x27e   : > { %1799 = vst [vmem:[#allocation1 + $0x1] ss:$4 sm:$0xff] %v5711_v29  ;;  %v2016_v29 = vrot.slane %v5738_v21, 6 }
 0x280   : > { %1879 = vmatmul.f32.gmra.mxu3 %v1757_v2  ;;  %v2086_v60 = vld.sshfl [vmem:[#allocation1 + $0x20] sm:$0xff pattern:$0x73625140]  ;;  %v2005_v2 = vrot.slane %v5734_v63, 2 }
 0x281   : > { %2091 = vst [vmem:[#allocation1 + $0x20] ss:$4 sm:$0xff] %v2001_v55 }
 0x282   : > { %2092 = vst [vmem:[#allocation1 + $0x21] ss:$4 sm:$0xff] %v5732_v56 }
 0x283   : > { %2093 = vst [vmem:[#allocation1 + $0x22] ss:$4 sm:$0xff] %v2002_v57  ;;  %v5812_v57 = vld [vmem:[%s9397_s1 + $0x2c0] sm:$0xff] }
 0x285   : > { %v7000_v41 = vld.sshfl [vmem:[#allocation1] sm:$0xff pattern:$0x73625140] }
 0x286   : > { %2070 = vst [vmem:[#allocation1] ss:$4 sm:$0xff] %v5728_v32  ;;  %v5739_v32 = vld [vmem:[%s6440_s6 + $0x71] sm:$0x3] }
 0x287   : > { %2072 = vst [vmem:[#allocation1 + $0x1] ss:$4 sm:$0xff] %v1993_v38  ;;  %v7047_v38 = vpop.f32.mrf.mxu3 }
 0x288   : > { %2074 = vst [vmem:[#allocation1 + $0x2] ss:$4 sm:$0xff] %v1994_v39  ;;  %1882 = vmatmul.f32.gmra.mxu3 %v6963_v61  ;;  %v2003_v61 = vrot.slane %v5732_v56, 4  ;;  %v2022_v56 = vrot.slane %v5741_v46, 6 }
 0x289   : > { %2076 = vst [vmem:[#allocation1 + $0x3] ss:$4 sm:$0xff] %v1995_v42  ;;  %v5816_v42 = vld [vmem:[%s9397_s1 + $0x2e0] sm:$0xff] }
 0x28a   : > { %2094 = vst [vmem:[#allocation1 + $0x23] ss:$4 sm:$0xff] %v2003_v61  ;;  %2605 = vmatpush.msrb.mxu1 %v5816_v42  ;;  %v5749_v42 = vld [vmem:[%s6440_s6 + $0xc1] sm:$0xff] }
 0x28b   : > { %9450 = vst [vmem:[#allocation15_spill] sm:$0xff] %v7047_v38 }
 0x290   : > { %v2085_v54 = vld.sshfl [vmem:[#allocation1] sm:$0xff pattern:$0x73625140]  ;;  %1885 = vmatmul.f32.gmra.mxu3 %v6972_v12  ;;  %v2010_v12 = vrot.slane %v5735_v4, 6 }
 0x291   : > { %2229 = vmatmul.f32.vlgmr.msra.gmra.mxu0 %v2085_v54  ;;  %2087 = vst [vmem:[#allocation1] ss:$4 sm:$0xff] %v5730_v40  ;;  %v2096_v9 = vld.sshfl [vmem:[#allocation1 + $0x20] sm:$0xff pattern:$0x73625140]  ;;  %v5815_v40 = vld [vmem:[%s9397_s1 + $0x2d8] sm:$0xff] }
 0x292   : > { %2088 = vst [vmem:[#allocation1 + $0x1] ss:$4 sm:$0xff] %v5731_v50  ;;  %2606 = vmatpush.msrb.mxu1 %v5815_v40  ;;  %v2020_v54 = vrot.slane %v5741_v46, 2  ;;  %v5750_v40 = vld [vmem:[%s6440_s6 + $0xc9] sm:$0xff] }
 0x293   : > { %2089 = vst [vmem:[#allocation1 + $0x2] ss:$4 sm:$0xff] %v1999_v53  ;;  %v5814_v53 = vld [vmem:[%s9397_s1 + $0x2d0] sm:$0xff] }
 0x294   : > { %2090 = vst [vmem:[#allocation1 + $0x3] ss:$4 sm:$0xff] %v2000_v48  ;;  %v5813_v48 = vld [vmem:[%s9397_s1 + $0x2c8] sm:$0xff]  ;;  %2607 = vmatpush.msrb.mxu1 %v5814_v53 }
 0x295   : > { %2101 = vst [vmem:[#allocation1 + $0x20] ss:$4 sm:$0xff] %v2006_v3 }
 0x296   : > { %2102 = vst [vmem:[#allocation1 + $0x21] ss:$4 sm:$0xff] %v2007_v6  ;;  %2608 = vmatpush.msrb.mxu1 %v5813_v48 }
 0x297   : > { %2103 = vst [vmem:[#allocation1 + $0x22] ss:$4 sm:$0xff] %v5735_v4  ;;  %v5809_v4 = vld [vmem:[%s9397_s1 + $0x2a8] sm:$0xff] }
 0x298   : > { %1888 = vmatmul.f32.gmra.mxu3 %v6970_v8  ;;  %v7025_v8 = vpop.f32.mrf.mxu0  ;;  %2104 = vst [vmem:[#allocation1 + $0x23] ss:$4 sm:$0xff] %v2008_v10  ;;  %2609 = vmatpush.msrb.mxu1 %v5812_v57  ;;  %v5808_v10 = vld [vmem:[%s9397_s1 + $0x2a0] sm:$0xff] }
 0x299   : > { %2232 = vmatmul.f32.gmra.mxu0 %v2086_v60  ;;  %9447 = vst [vmem:[#allocation12_spill] sm:$0xff] %v7025_v8  ;;  %v7068_v60 = vpop.f32.mrf.mxu3  ;;  %v6005_v8 = vld [vmem:[%s9399_s3 + $0x158] sm:$0xff] }
 0x29a   : > { %9452 = vst [vmem:[#allocation17_spill] sm:$0xff] %v7068_v60 }
 0x29b   : > { %v2095_v1 = vld.sshfl [vmem:[#allocation1] sm:$0xff pattern:$0x73625140] }
 0x29c   : > { %2097 = vst [vmem:[#allocation1] ss:$4 sm:$0xff] %v2004_v62  ;;  %v5743_v62 = vld [vmem:[%s6440_s6 + $0x91] sm:$0xff] }
 0x29d   : > { %2098 = vst [vmem:[#allocation1 + $0x1] ss:$4 sm:$0xff] %v5733_v0  ;;  %v5810_v0 = vld [vmem:[%s9397_s1 + $0x2b0] sm:$0xff]  ;;  %v2024_v6 = vrot.slane %v5743_v62, 4 }
 0x29e   : > { %2099 = vst [vmem:[#allocation1 + $0x2] ss:$4 sm:$0xff] %v5734_v63  ;;  %v5811_v63 = vld [vmem:[%s9397_s1 + $0x2b8] sm:$0xff] }
 0x29f   : > { %2100 = vst [vmem:[#allocation1 + $0x3] ss:$4 sm:$0xff] %v2005_v2  ;;  %v2106_v24 = vld.sshfl [vmem:[#allocation1 + $0x20] sm:$0xff pattern:$0x73625140]  ;;  %2610 = vmatpush.msrb.mxu1 %v5811_v63  ;;  %v2023_v2 = vrot.slane %v5743_v62, 2 }
 0x2a0   : > { %1891 = vmatmul.f32.gmra.mxu3 %v6983_v25  ;;  %v7032_v20 = vpop.f32.mrf.mxu0  ;;  %v2014_v25 = vrot.slane %v5738_v21, 2  ;;  %2111 = vst [vmem:[#allocation1 + $0x20] ss:$4 sm:$0xff] %v2011_v18  ;;  %v5807_v18 = vld [vmem:[%s9397_s1 + $0x298] sm:$0xff] }
 0x2a1   : > { %2235 = vmatmul.f32.gmra.mxu0 %v2095_v1  ;;  %9449 = vst [vmem:[#allocation14_spill] sm:$0xff] %v7032_v20  ;;  %v5742_v1 = vld [vmem:[%s6440_s6 + $0x89] sm:$0x3]  ;;  %2611 = vmatpush.msrb.mxu1 %v5810_v0 }
 0x2a2   : > { %2112 = vst [vmem:[#allocation1 + $0x21] ss:$4 sm:$0xff] %v2012_v22  ;;  %v5805_v22 = vld [vmem:[%s9397_s1 + $0x288] sm:$0xff] }
 0x2a3   : > { %2113 = vst [vmem:[#allocation1 + $0x22] ss:$4 sm:$0xff] %v2013_v23  ;;  %2612 = vmatpush.msrb.mxu1 %v5809_v4 }
 0x2a4   : > { %2114 = vst [vmem:[#allocation1 + $0x23] ss:$4 sm:$0xff] %v5738_v21  ;;  %v5806_v21 = vld [vmem:[%s9397_s1 + $0x290] sm:$0xff] }
 0x2a5   : > { %2613 = vmatpush.msrb.mxu1 %v5808_v10  ;;  %v5754_v10 = vld [vmem:[%s6440_s6 + $0xe9] sm:$0x3] }
 0x2a6   : > { %v2105_v14 = vld.sshfl [vmem:[#allocation1] sm:$0xff pattern:$0x73625140] }
 0x2a7   : > { %2107 = vst [vmem:[#allocation1] ss:$4 sm:$0xff] %v2009_v11  ;;  %2614 = vmatpush.msrb.mxu1 %v5807_v18 }
 0x2a8   : > { %2108 = vst [vmem:[#allocation1 + $0x1] ss:$4 sm:$0xff] %v2010_v12  ;;  %1894 = vmatmul.f32.gmra.mxu3 %v6979_v19  ;;  %v7049_v39 = vpop.f32.mrf.mxu0 }
 0x2a9   : > { %2238 = vmatmul.f32.gmra.mxu0 %v2096_v9  ;;  %2109 = vst [vmem:[#allocation1 + $0x2] ss:$4 sm:$0xff] %v5736_v13  ;;  %v5744_v9 = vld [vmem:[%s6440_s6 + $0x99] sm:$0xff]  ;;  %2615 = vmatpush.msrb.mxu1 %v5806_v21 }
 0x2aa   : > { %2110 = vst [vmem:[#allocation1 + $0x3] ss:$4 sm:$0xff] %v5737_v16  ;;  %v2026_v11 = vrot.slane %v5744_v9, 2  ;;  %v2027_v13 = vrot.slane %v5744_v9, 4  ;;  %v2028_v23 = vrot.slane %v5744_v9, 6 }
 0x2ab   : > { %9451 = vst [vmem:[#allocation16_spill] sm:$0xff] %v7049_v39  ;;  %v2116_v49 = vld.sshfl [vmem:[#allocation1 + $0x20] sm:$0xff pattern:$0x73625140]  ;;  %2616 = vmatpush.msrb.mxu1 %v5805_v22 }
 0x2ac   : > { %v5916_v39 = vld [vmem:[%s6440_s6 + $0x52] sm:$0xff] }
 0x2b0   : > { %1897 = vmatmul.f32.gmra.mxu3 %v6994_v35  ;;  %v5740_v35 = vld [vmem:[%s6440_s6 + $0x79] sm:$0xff]  ;;  %v7070_v61 = vpop.f32.mrf.mxu0 }
 0x2b1   : > { %2241 = vmatmul.f32.gmra.mxu0 %v2105_v14  ;;  %v2115_v19 = vld.sshfl [vmem:[#allocation1] sm:$0xff pattern:$0x73625140]  ;;  %v2017_v43 = vrot.slane %v5740_v35, 2  ;;  %v2018_v45 = vrot.slane %v5740_v35, 4  ;;  %v2019_v50 = vrot.slane %v5740_v35, 6  ;;  %v7088_v14 = vpop.f32.mrf.mxu3 }
 0x2b2   : > { %2117 = vst [vmem:[#allocation1] ss:$4 sm:$0xff] %v2014_v25 }
 0x2b3   : > { %2118 = vst [vmem:[#allocation1 + $0x1] ss:$4 sm:$0xff] %v2015_v27  ;;  %v5747_v27 = vld [vmem:[%s6440_s6 + $0xb1] sm:$0xff] }
 0x2b4   : > { %2119 = vst [vmem:[#allocation1 + $0x2] ss:$4 sm:$0xff] %v2016_v29  ;;  %v2032_v31 = vrot.slane %v5747_v27, 2  ;;  %v2033_v53 = vrot.slane %v5747_v27, 4 }
 0x2b5   : > { %2120 = vst [vmem:[#allocation1 + $0x3] ss:$4 sm:$0xff] %v5739_v32 }
 0x2b6   : > { %2121 = vst [vmem:[#allocation1 + $0x20] ss:$4 sm:$0xff] %v5740_v35 }
 0x2b7   : > { %2122 = vst [vmem:[#allocation1 + $0x21] ss:$4 sm:$0xff] %v2017_v43  ;;  %v2035_v43 = vrot.slane %v5749_v42, 2 }
 0x2b8   : > { %1900 = vmatmul.f32.gmra.mxu3 %v6991_v30  ;;  %2123 = vst [vmem:[#allocation1 + $0x22] ss:$4 sm:$0xff] %v2018_v45  ;;  %v2021_v30 = vrot.slane %v5741_v46, 4  ;;  %v7091_v16 = vpop.f32.mrf.mxu0  ;;  %v2036_v45 = vrot.slane %v5749_v42, 4 }
 0x2b9   : > { %2244 = vmatmul.f32.gmra.mxu0 %v2106_v24  ;;  %2124 = vst [vmem:[#allocation1 + $0x23] ss:$4 sm:$0xff] %v2019_v50  ;;  %v5804_v24 = vld [vmem:[%s9397_s1 + $0x280] sm:$0xff] }
 0x2ba   : > { %9453 = vst [vmem:[#allocation18_spill] sm:$0xff] %v7070_v61  ;;  %2617 = vmatpush.msrb.mxu1 %v5804_v24  ;;  %v5756_v24 = vld [vmem:[%s6440_s6 + $0xf9] sm:$0xff]  ;;  %v5892_v61 = vld [vmem:[%s6440_s6 + $0x101] sm:$0x3] }
 0x2bb   : > { %9454 = vst [vmem:[#allocation19_spill] sm:$0xff] %v7088_v14 }
 0x2bc   : > { %v2125_v55 = vld.sshfl [vmem:[#allocation1] sm:$0xff pattern:$0x73625140]  ;;  %9455 = vst [vmem:[#allocation20_spill] sm:$0xff] %v7091_v16 }
 0x2bd   : > { %2127 = vst [vmem:[#allocation1] ss:$4 sm:$0xff] %v5741_v46  ;;  %v2037_v46 = vrot.slane %v5749_v42, 6  ;;  %v5887_v16 = vld [vmem:[%s6440_s6 + $0xd9] sm:$0xff] }
 0x2be   : > { %2128 = vst [vmem:[#allocation1 + $0x1] ss:$4 sm:$0xff] %v2020_v54  ;;  %v2034_v54 = vrot.slane %v5747_v27, 6 }
 0x2bf   : > { %2129 = vst [vmem:[#allocation1 + $0x2] ss:$4 sm:$0xff] %v2021_v30  ;;  %v5748_v30 = vld [vmem:[%s6440_s6 + $0xb9] sm:$0x3] }
 0x2c0   : > { %2130 = vst [vmem:[#allocation1 + $0x3] ss:$4 sm:$0xff] %v2022_v56  ;;  %1903 = vmatmul.f32.gmra.mxu3 %v7004_v47  ;;  %v2126_v3 = vld.sshfl [vmem:[#allocation1 + $0x20] sm:$0xff pattern:$0x73625140]  ;;  %v2025_v47 = vrot.slane %v5743_v62, 6  ;;  %v7107_v33 = vpop.f32.mrf.mxu0 }
 0x2c1   : > { %2247 = vmatmul.f32.gmra.mxu0 %v2115_v19  ;;  %2131 = vst [vmem:[#allocation1 + $0x20] ss:$4 sm:$0xff] %v5742_v1  ;;  %v2038_v1 = vrot.slane %v5750_v40, 2 }
 0x2c2   : > { %2132 = vst [vmem:[#allocation1 + $0x21] ss:$4 sm:$0xff] %v5743_v62 }
 0x2c3   : > { %2133 = vst [vmem:[#allocation1 + $0x22] ss:$4 sm:$0xff] %v2023_v2  ;;  %v2039_v2 = vrot.slane %v5750_v40, 4 }
 0x2c4   : > { %2134 = vst [vmem:[#allocation1 + $0x23] ss:$4 sm:$0xff] %v2024_v6  ;;  %v5751_v6 = vld [vmem:[%s6440_s6 + $0xd1] sm:$0x3] }
 0x2c5   : > { %9456 = vst [vmem:[#allocation21_spill] sm:$0xff] %v7107_v33 }
 0x2c7   : > { %v2135_v12 = vld.sshfl [vmem:[#allocation1] sm:$0xff pattern:$0x73625140] }
 0x2c8   : > { %2137 = vst [vmem:[#allocation1] ss:$4 sm:$0xff] %v2025_v47  ;;  %1906 = vmatmul.f32.gmra.mxu3 %v7000_v41  ;;  %v5746_v41 = vld [vmem:[%s6440_s6 + $0xa9] sm:$0xff] }
 0x2c9   : > { %2250 = vmatmul.f32.gmra.mxu0 %v2116_v49  ;;  %2138 = vst [vmem:[#allocation1 + $0x1] ss:$4 sm:$0xff] %v5744_v9  ;;  %v2030_v29 = vrot.slane %v5746_v41, 4  ;;  %v2031_v19 = vrot.slane %v5746_v41, 6  ;;  %v2029_v35 = vrot.slane %v5746_v41, 2  ;;  %v7111_v49 = vpop.f32.mrf.mxu0  ;;  %v5755_v9 = vld [vmem:[%s6440_s6 + $0xf1] sm:$0xff] }
 0x2ca   : > { %2139 = vst [vmem:[#allocation1 + $0x2] ss:$4 sm:$0xff] %v2026_v11  ;;  %v2047_v11 = vrot.slane %v5755_v9, 2 }
 0x2cb   : > { %2140 = vst [vmem:[#allocation1 + $0x3] ss:$4 sm:$0xff] %v2027_v13  ;;  %v2136_v25 = vld.sshfl [vmem:[#allocation1 + $0x20] sm:$0xff pattern:$0x73625140]  ;;  %v2048_v13 = vrot.slane %v5755_v9, 4 }
 0x2cc   : > { %2143 = vst [vmem:[#allocation1 + $0x22] ss:$4 sm:$0xff] %v5746_v41 }
 0x2cd   : > { %2141 = vst [vmem:[#allocation1 + $0x20] ss:$4 sm:$0xff] %v2028_v23 }
 0x2ce   : > { %2142 = vst [vmem:[#allocation1 + $0x21] ss:$4 sm:$0xff] %v5745_v34  ;;  %v5774_v34 = vld [vmem:[%s6440_s6 + $0x1a] sm:$0xff] }
 0x2cf   : > { %2144 = vst [vmem:[#allocation1 + $0x23] ss:$4 sm:$0xff] %v2029_v35  ;;  %v2051_v35 = vrot.slane %v5756_v24, 4 }
 0x2d0   : > { %9457 = vst [vmem:[#allocation22_spill] sm:$0xff] %v7111_v49 }
 0x2d1   : > { %2253 = vmatmul.f32.gmra.mxu0 %v2125_v55  ;;  %v5752_v55 = vld [vmem:[%s6440_s6 + $0xd9] sm:$0xff]  ;;  %v7118_v57 = vpop.f32.mrf.mxu0 }
 0x2d2   : > { %v2145_v32 = vld.sshfl [vmem:[#allocation1] sm:$0xff pattern:$0x73625140]  ;;  %v2041_v56 = vrot.slane %v5752_v55, 2  ;;  %9458 = vst [vmem:[#allocation23_spill] sm:$0xff] %v7118_v57  ;;  %v2042_v62 = vrot.slane %v5752_v55, 4 }
 0x2d3   : > { %2147 = vst [vmem:[#allocation1] ss:$4 sm:$0xff] %v2030_v29  ;;  %v2043_v63 = vrot.slane %v5752_v55, 6  ;;  %v5757_v29 = vld [vmem:[%s6440_s6 + $0x101] sm:$0x3] }
 0x2d4   : > { %2148 = vst [vmem:[#allocation1 + $0x1] ss:$4 sm:$0xff] %v2031_v19 }
 0x2d5   : > { %2149 = vst [vmem:[#allocation1 + $0x2] ss:$4 sm:$0xff] %v5747_v27  ;;  %v2052_v27 = vrot.slane %v5756_v24, 6 }
 0x2d6   : > { %2150 = vst [vmem:[#allocation1 + $0x3] ss:$4 sm:$0xff] %v2032_v31  ;;  %v2146_v48 = vld.sshfl [vmem:[#allocation1 + $0x20] sm:$0xff pattern:$0x73625140]  ;;  %v2049_v31 = vrot.slane %v5755_v9, 6 }
 0x2d7   : > { %2151 = vst [vmem:[#allocation1 + $0x20] ss:$4 sm:$0xff] %v2033_v53  ;;  %v2384_v53 = vrot.slane %v5774_v34, 6 }
 0x2d8   : > { %2152 = vst [vmem:[#allocation1 + $0x21] ss:$4 sm:$0xff] %v2034_v54  ;;  %v5775_v54 = vld [vmem:[%s6440_s6 + $0x22] sm:$0xff] }
 0x2d9   : > { %2256 = vmatmul.f32.gmra.mxu0 %v2126_v3  ;;  %2153 = vst [vmem:[#allocation1 + $0x22] ss:$4 sm:$0xff] %v5748_v30  ;;  %v2040_v3 = vrot.slane %v5750_v40, 6  ;;  %v7124_v47 = vpop.f32.mrf.mxu0 }
 0x2da   : > { %2154 = vst [vmem:[#allocation1 + $0x23] ss:$4 sm:$0xff] %v5749_v42 }
 0x2db   : > { %9459 = vst [vmem:[#allocation24_spill] sm:$0xff] %v7124_v47 }
 0x2dd   : > { %v7113_v50 = vld.sshfl [vmem:[#allocation1] sm:$0xff pattern:$0x73625140] }
 0x2de   : > { %2157 = vst [vmem:[#allocation1] ss:$4 sm:$0xff] %v2035_v43 }
 0x2df   : > { %2158 = vst [vmem:[#allocation1 + $0x1] ss:$4 sm:$0xff] %v2036_v45  ;;  %v2382_v45 = vrot.slane %v5774_v34, 2 }
 0x2e0   : > { %2159 = vst [vmem:[#allocation1 + $0x2] ss:$4 sm:$0xff] %v2037_v46  ;;  %v2383_v46 = vrot.slane %v5774_v34, 4 }
 0x2e1   : > { %2259 = vmatmul.f32.gmra.mxu0 %v2135_v12  ;;  %2160 = vst [vmem:[#allocation1 + $0x3] ss:$4 sm:$0xff] %v5750_v40  ;;  %v2156_v4 = vld.sshfl [vmem:[#allocation1 + $0x20] sm:$0xff pattern:$0x73625140]  ;;  %v5753_v12 = vld [vmem:[%s6440_s6 + $0xe1] sm:$0xff] }
 0x2e2   : > { %2161 = vst [vmem:[#allocation1 + $0x20] ss:$4 sm:$0xff] %v2038_v1  ;;  %v2044_v21 = vrot.slane %v5753_v12, 2  ;;  %v2045_v22 = vrot.slane %v5753_v12, 4  ;;  %v2046_v41 = vrot.slane %v5753_v12, 6 }
 0x2e3   : > { %2162 = vst [vmem:[#allocation1 + $0x21] ss:$4 sm:$0xff] %v2039_v2 }
 0x2e4   : > { %2163 = vst [vmem:[#allocation1 + $0x22] ss:$4 sm:$0xff] %v2040_v3 }
 0x2e5   : > { %2164 = vst [vmem:[#allocation1 + $0x23] ss:$4 sm:$0xff] %v5751_v6  ;;  %v5778_v6 = vld [vmem:[%s6440_s6 + $0x3a] sm:$0xff] }
 0x2e8   : > { %v7120_v0 = vld.sshfl [vmem:[#allocation1] sm:$0xff pattern:$0x73625140] }
 0x2e9   : > { %2262 = vmatmul.f32.gmra.mxu0 %v2136_v25  ;;  %2167 = vst [vmem:[#allocation1] ss:$4 sm:$0xff] %v5752_v55  ;;  %v7131_v25 = vpop.f32.mrf.mxu0  ;;  %v2387_v55 = vrot.slane %v5775_v54, 6 }
 0x2ea   : > { %2168 = vst [vmem:[#allocation1 + $0x1] ss:$4 sm:$0xff] %v2041_v56  ;;  %v5777_v56 = vld [vmem:[%s6440_s6 + $0x32] sm:$0xff] }
 0x2eb   : > { %2169 = vst [vmem:[#allocation1 + $0x2] ss:$4 sm:$0xff] %v2042_v62  ;;  %v2388_v1 = vrot.slane %v5777_v56, 2  ;;  %v2389_v3 = vrot.slane %v5777_v56, 4 }
 0x2ec   : > { %2170 = vst [vmem:[#allocation1 + $0x3] ss:$4 sm:$0xff] %v2043_v63  ;;  %v2166_v23 = vld.sshfl [vmem:[#allocation1 + $0x20] sm:$0xff pattern:$0x73625140] }
 0x2ed   : > { %2171 = vst [vmem:[#allocation1 + $0x20] ss:$4 sm:$0xff] %v5753_v12  ;;  %v5776_v63 = vld [vmem:[%s6440_s6 + $0x2a] sm:$0x3] }
 0x2ee   : > { %2172 = vst [vmem:[#allocation1 + $0x21] ss:$4 sm:$0xff] %v2044_v21  ;;  %v5779_v21 = vld [vmem:[%s6440_s6 + $0x42] sm:$0x3] }
 0x2ef   : > { %2173 = vst [vmem:[#allocation1 + $0x22] ss:$4 sm:$0xff] %v2045_v22 }
 0x2f0   : > { %9460 = vst [vmem:[#allocation25_spill] sm:$0xff] %v7131_v25 }
 0x2f1   : > { %2265 = vmatmul.f32.gmra.mxu0 %v2145_v32  ;;  %2174 = vst [vmem:[#allocation1 + $0x23] ss:$4 sm:$0xff] %v2046_v41  ;;  %v2050_v32 = vrot.slane %v5756_v24, 2  ;;  %v7140_v43 = vpop.f32.mrf.mxu0 }
 0x2f2   : > { %9461 = vst [vmem:[#allocation26_spill] sm:$0xff] %v7140_v43  ;;  %v5869_v43 = vld [vmem:[%s6440_s6 + $0x49] sm:$0xff] }
 0x2f3   : > { %v7128_v18 = vld.sshfl [vmem:[#allocation1] sm:$0xff pattern:$0x73625140] }
 0x2f4   : > { %2177 = vst [vmem:[#allocation1] ss:$4 sm:$0xff] %v5754_v10 }
 0x2f5   : > { %2178 = vst [vmem:[#allocation1 + $0x1] ss:$4 sm:$0xff] %v5755_v9  ;;  %v2391_v9 = vrot.slane %v5778_v6, 2 }
 0x2f6   : > { %2179 = vst [vmem:[#allocation1 + $0x2] ss:$4 sm:$0xff] %v2047_v11  ;;  %v2392_v11 = vrot.slane %v5778_v6, 4 }
 0x2f7   : > { %2180 = vst [vmem:[#allocation1 + $0x3] ss:$4 sm:$0xff] %v2048_v13  ;;  %v2393_v13 = vrot.slane %v5778_v6, 6 }
 0x2f8   : > { %v7138_v42 = vld.sshfl [vmem:[#allocation1 + $0x20] sm:$0xff pattern:$0x73625140] }
 0x2f9   : > { %2268 = vmatmul.f32.gmra.mxu0 %v2146_v48  ;;  %2181 = vst [vmem:[#allocation1 + $0x20] ss:$4 sm:$0xff] %v2049_v31  ;;  %v2386_v48 = vrot.slane %v5775_v54, 4  ;;  %v7148_v62 = vpop.f32.mrf.mxu0 }
 0x2fa   : > { %2182 = vst [vmem:[#allocation1 + $0x21] ss:$4 sm:$0xff] %v5756_v24 }
 0x2fb   : > { %2183 = vst [vmem:[#allocation1 + $0x22] ss:$4 sm:$0xff] %v2050_v32 }
 0x2fc   : > { %2184 = vst [vmem:[#allocation1 + $0x23] ss:$4 sm:$0xff] %v2051_v35 }
 0x2fd   : > { %9462 = vst [vmem:[#allocation27_spill] sm:$0xff] %v7148_v62 }
 0x2fe   : > { %v7134_v19 = vld.sshfl [vmem:[#allocation1] sm:$0xff pattern:$0x73625140] }
 0x2ff   : > { %2187 = vst [vmem:[#allocation1] ss:$4 sm:$0xff] %v2052_v27 }
 0x300   : > { %2188 = vst [vmem:[#allocation1 + $0x1] ss:$4 sm:$0xff] %v5757_v29 }
 0x301   : > { %2271 = vmatmul.f32.gmra.mxu0 %v7113_v50  ;;  %v2385_v50 = vrot.slane %v5775_v54, 2  ;;  %v7153_v12 = vpop.f32.mrf.mxu0 }
 0x302   : > { %9463 = vst [vmem:[#allocation28_spill] sm:$0xff] %v7153_v12 }
 0x303   : > { %v7145_v30 = vld.sshfl [vmem:[#allocation1 + $0x20] sm:$0xff pattern:$0x73625140] }
 0x304   : > { %2467 = vst [vmem:[#allocation1 + $0x20] ss:$4 sm:$0xff] %v5775_v54 }
 0x305   : > { %2469 = vst [vmem:[#allocation1 + $0x21] ss:$4 sm:$0xff] %v2385_v50  ;;  %v7164_v50 = vpop.f32.mrf.mxu1 }
 0x306   : > { %2471 = vst [vmem:[#allocation1 + $0x22] ss:$4 sm:$0xff] %v2386_v48 }
 0x307   : > { %v7142_v40 = vld.sshfl [vmem:[#allocation1] sm:$0xff pattern:$0x73625140]  ;;  %2473 = vst [vmem:[#allocation1 + $0x23] ss:$4 sm:$0xff] %v2387_v55  ;;  %v5784_v55 = vld [vmem:[%s6440_s6 + $0x6a] sm:$0xff] }
 0x308   : > { %2459 = vst [vmem:[#allocation1] ss:$4 sm:$0xff] %v5774_v34 }
 0x309   : > { %2461 = vst [vmem:[#allocation1 + $0x1] ss:$4 sm:$0xff] %v2382_v45  ;;  %2274 = vmatmul.f32.gmra.mxu0 %v2156_v4  ;;  %v2390_v4 = vrot.slane %v5777_v56, 6  ;;  %v7159_v29 = vpop.f32.mrf.mxu0 }
 0x30a   : > { %2463 = vst [vmem:[#allocation1 + $0x2] ss:$4 sm:$0xff] %v2383_v46  ;;  %v5782_v46 = vld [vmem:[%s6440_s6 + $0x5a] sm:$0x3] }
 0x30b   : > { %2465 = vst [vmem:[#allocation1 + $0x3] ss:$4 sm:$0xff] %v2384_v53  ;;  %v5783_v53 = vld [vmem:[%s6440_s6 + $0x62] sm:$0xff] }
 0x30c   : > { %9464 = vst [vmem:[#allocation29_spill] sm:$0xff] %v7159_v29  ;;  %v2401_v54 = vrot.slane %v5783_v53, 4 }
 0x30e   : > { %v2475_v10 = vld.sshfl [vmem:[#allocation1 + $0x20] sm:$0xff pattern:$0x73625140] }
 0x30f   : > { %2480 = vst [vmem:[#allocation1 + $0x20] ss:$4 sm:$0xff] %v2390_v4  ;;  %v5865_v4 = vld [vmem:[%s9397_s1 + $0x378] sm:$0xff] }
 0x310   : > { %2481 = vst [vmem:[#allocation1 + $0x21] ss:$4 sm:$0xff] %v5778_v6  ;;  %v5864_v6 = vld [vmem:[%s9397_s1 + $0x370] sm:$0xff]  ;;  %2992 = vmatpush.msrb.mxu2 %v5865_v4  ;;  %v5790_v4 = vld [vmem:[%s6440_s6 + $0x9a] sm:$0xff] }
 0x311   : > { %2277 = vmatmul.f32.gmra.mxu0 %v7120_v0  ;;  %v5780_v0 = vld [vmem:[%s6440_s6 + $0x4a] sm:$0xff]  ;;  %2482 = vst [vmem:[#allocation1 + $0x22] ss:$4 sm:$0xff] %v2391_v9  ;;  %v7166_v48 = vpop.f32.mrf.mxu0  ;;  %v5785_v9 = vld [vmem:[%s6440_s6 + $0x72] sm:$0x3] }
 0x312   : > { %v2474_v2 = vld.sshfl [vmem:[#allocation1] sm:$0xff pattern:$0x73625140]  ;;  %2483 = vst [vmem:[#allocation1 + $0x23] ss:$4 sm:$0xff] %v2392_v11  ;;  %v2394_v41 = vrot.slane %v5780_v0, 2  ;;  %2993 = vmatpush.msrb.mxu2 %v5864_v6  ;;  %v7181_v11 = vpop.f32.mrf.mxu1 }
 0x313   : > { %2618 = vmatmul.f32.vlgmr.msrb.gmra.mxu1 %v2474_v2  ;;  %2476 = vst [vmem:[#allocation1] ss:$4 sm:$0xff] %v5776_v63  ;;  %v2395_v24 = vrot.slane %v5780_v0, 4  ;;  %v2396_v27 = vrot.slane %v5780_v0, 6  ;;  %v2404_v2 = vrot.slane %v5784_v55, 4  ;;  %v5854_v6 = vld [vmem:[%s9397_s1 + $0x320] sm:$0xff] }
 0x314   : > { %2477 = vst [vmem:[#allocation1 + $0x1] ss:$4 sm:$0xff] %v5777_v56  ;;  %v2402_v56 = vrot.slane %v5783_v53, 6 }
 0x315   : > { %2478 = vst [vmem:[#allocation1 + $0x2] ss:$4 sm:$0xff] %v2388_v1  ;;  %v2403_v1 = vrot.slane %v5784_v55, 2 }
 0x316   : > { %2479 = vst [vmem:[#allocation1 + $0x3] ss:$4 sm:$0xff] %v2389_v3 }
 0x317   : > { %9465 = vst [vmem:[#allocation30_spill] sm:$0xff] %v7166_v48  ;;  %v5837_v48 = vld [vmem:[%s6440_s6 + $0xb8] sm:$0x3] }
 0x319   : > { %2280 = vmatmul.f32.gmra.mxu0 %v2166_v23  ;;  %v5781_v23 = vld [vmem:[%s6440_s6 + $0x52] sm:$0xff] }
 0x31a   : > { %v2485_v31 = vld.sshfl [vmem:[#allocation1 + $0x20] sm:$0xff pattern:$0x73625140]  ;;  %v2397_v32 = vrot.slane %v5781_v23, 2  ;;  %v2398_v34 = vrot.slane %v5781_v23, 4  ;;  %v2399_v35 = vrot.slane %v5781_v23, 6 }
 0x31b   : > { %2621 = vmatmul.f32.gmra.mxu1 %v2475_v10  ;;  %2490 = vst [vmem:[#allocation1 + $0x20] ss:$4 sm:$0xff] %v2395_v24  ;;  %v5786_v10 = vld [vmem:[%s6440_s6 + $0x7a] sm:$0xff] }
 0x31c   : > { %2491 = vst [vmem:[#allocation1 + $0x21] ss:$4 sm:$0xff] %v2396_v27  ;;  %v2408_v24 = vrot.slane %v5786_v10, 6  ;;  %v5787_v27 = vld [vmem:[%s6440_s6 + $0x82] sm:$0xff] }
 0x31d   : > { %v2484_v22 = vld.sshfl [vmem:[#allocation1] sm:$0xff pattern:$0x73625140]  ;;  %2492 = vst [vmem:[#allocation1 + $0x22] ss:$4 sm:$0xff] %v5781_v23  ;;  %v5861_v23 = vld [vmem:[%s9397_s1 + $0x358] sm:$0xff] }
 0x31e   : > { %2486 = vst [vmem:[#allocation1] ss:$4 sm:$0xff] %v2393_v13  ;;  %v7183_v13 = vpop.f32.mrf.mxu0 }
 0x31f   : > { %2487 = vst [vmem:[#allocation1 + $0x1] ss:$4 sm:$0xff] %v5779_v21  ;;  %v2406_v21 = vrot.slane %v5786_v10, 2 }
 0x320   : > { %2488 = vst [vmem:[#allocation1 + $0x2] ss:$4 sm:$0xff] %v5780_v0  ;;  %v5862_v0 = vld [vmem:[%s9397_s1 + $0x360] sm:$0xff] }
 0x321   : > { %2489 = vst [vmem:[#allocation1 + $0x3] ss:$4 sm:$0xff] %v2394_v41  ;;  %2283 = vmatmul.f32.gmra.mxu0 %v7128_v18  ;;  %v2400_v18 = vrot.slane %v5783_v53, 2 }
 0x322   : > { %2493 = vst [vmem:[#allocation1 + $0x23] ss:$4 sm:$0xff] %v2397_v32  ;;  %v2409_v32 = vrot.slane %v5787_v27, 2 }
 0x323   : > { %2624 = vmatmul.f32.gmra.mxu1 %v2484_v22  ;;  %9466 = vst [vmem:[#allocation31_spill] sm:$0xff] %v7183_v13  ;;  %v2407_v22 = vrot.slane %v5786_v10, 4  ;;  %v5833_v13 = vld [vmem:[%s6440_s6 + $0x98] sm:$0xff] }
 0x328   : > { %v2494_v45 = vld.sshfl [vmem:[#allocation1] sm:$0xff pattern:$0x73625140] }
 0x329   : > { %2496 = vst [vmem:[#allocation1] ss:$4 sm:$0xff] %v2398_v34  ;;  %2286 = vmatmul.f32.gmra.mxu0 %v7138_v42  ;;  %v2495_v63 = vld.sshfl [vmem:[#allocation1 + $0x20] sm:$0xff pattern:$0x73625140]  ;;  %v2405_v42 = vrot.slane %v5784_v55, 6 }
 0x32a   : > { %2497 = vst [vmem:[#allocation1 + $0x1] ss:$4 sm:$0xff] %v2399_v35  ;;  %v2410_v34 = vrot.slane %v5787_v27, 4 }
 0x32b   : > { %2627 = vmatmul.f32.gmra.mxu1 %v2485_v31  ;;  %2498 = vst [vmem:[#allocation1 + $0x2] ss:$4 sm:$0xff] %v5782_v46  ;;  %v5860_v31 = vld [vmem:[%s9397_s1 + $0x350] sm:$0xff]  ;;  %v5858_v46 = vld [vmem:[%s9397_s1 + $0x340] sm:$0xff] }
 0x32c   : > { %2499 = vst [vmem:[#allocation1 + $0x3] ss:$4 sm:$0xff] %v5783_v53  ;;  %v7202_v53 = vpop.f32.mrf.mxu1 }
 0x32d   : > { %2500 = vst [vmem:[#allocation1 + $0x20] ss:$4 sm:$0xff] %v2400_v18  ;;  %v7204_v18 = vpop.f32.mrf.mxu0 }
 0x32e   : > { %2501 = vst [vmem:[#allocation1 + $0x21] ss:$4 sm:$0xff] %v2401_v54  ;;  %v5788_v54 = vld [vmem:[%s6440_s6 + $0x8a] sm:$0x3] }
 0x32f   : > { %2502 = vst [vmem:[#allocation1 + $0x22] ss:$4 sm:$0xff] %v2402_v56  ;;  %v5857_v56 = vld [vmem:[%s9397_s1 + $0x338] sm:$0xff] }
 0x330   : > { %2503 = vst [vmem:[#allocation1 + $0x23] ss:$4 sm:$0xff] %v5784_v55  ;;  %v5789_v55 = vld [vmem:[%s6440_s6 + $0x92] sm:$0xff] }
 0x331   : > { %2289 = vmatmul.f32.gmra.mxu0 %v7134_v19  ;;  %v5863_v19 = vld [vmem:[%s9397_s1 + $0x368] sm:$0xff] }
 0x332   : > { %2994 = vmatpush.msrb.mxu2 %v5863_v19  ;;  %v2416_v19 = vrot.slane %v5790_v4, 4 }
 0x333   : > { %2630 = vmatmul.f32.gmra.mxu1 %v2494_v45  ;;  %v2504_v3 = vld.sshfl [vmem:[#allocation1] sm:$0xff pattern:$0x73625140]  ;;  %v2411_v45 = vrot.slane %v5787_v27, 6 }
 0x334   : > { %2506 = vst [vmem:[#allocation1] ss:$4 sm:$0xff] %v2403_v1  ;;  %2995 = vmatpush.msrb.mxu2 %v5862_v0  ;;  %v2412_v1 = vrot.slane %v5789_v55, 2  ;;  %v7222_v0 = vpop.f32.mrf.mxu1 }
 0x335   : > { %2507 = vst [vmem:[#allocation1 + $0x1] ss:$4 sm:$0xff] %v2404_v2 }
 0x336   : > { %2508 = vst [vmem:[#allocation1 + $0x2] ss:$4 sm:$0xff] %v2405_v42  ;;  %2996 = vmatpush.msrb.mxu2 %v5861_v23  ;;  %v2413_v42 = vrot.slane %v5789_v55, 4 }
 0x337   : > { %2509 = vst [vmem:[#allocation1 + $0x3] ss:$4 sm:$0xff] %v5785_v9  ;;  %v2505_v41 = vld.sshfl [vmem:[#allocation1 + $0x20] sm:$0xff pattern:$0x73625140]  ;;  %v2415_v9 = vrot.slane %v5790_v4, 2 }
 0x338   : > { %2510 = vst [vmem:[#allocation1 + $0x20] ss:$4 sm:$0xff] %v5786_v10  ;;  %2997 = vmatpush.msrb.mxu2 %v5860_v31  ;;  %v5850_v31 = vld [vmem:[%s9397_s1 + $0x300] sm:$0xff] }
 0x339   : > { %2292 = vmatmul.f32.gmra.mxu0 %v7145_v30  ;;  %2511 = vst [vmem:[#allocation1 + $0x21] ss:$4 sm:$0xff] %v2406_v21  ;;  %v5859_v30 = vld [vmem:[%s9397_s1 + $0x348] sm:$0xff]  ;;  %v5853_v21 = vld [vmem:[%s9397_s1 + $0x318] sm:$0xff] }
 0x33a   : > { %2512 = vst [vmem:[#allocation1 + $0x22] ss:$4 sm:$0xff] %v2407_v22  ;;  %2998 = vmatpush.msrb.mxu2 %v5859_v30  ;;  %v5852_v22 = vld [vmem:[%s9397_s1 + $0x310] sm:$0xff]  ;;  %v5793_v30 = vld [vmem:[%s6440_s6 + $0xb2] sm:$0xff] }
 0x33b   : > { %2633 = vmatmul.f32.gmra.mxu1 %v2495_v63  ;;  %2513 = vst [vmem:[#allocation1 + $0x23] ss:$4 sm:$0xff] %v2408_v24  ;;  %v5856_v63 = vld [vmem:[%s9397_s1 + $0x330] sm:$0xff]  ;;  %v2417_v24 = vrot.slane %v5790_v4, 6 }
 0x33c   : > { %2999 = vmatpush.msrb.mxu2 %v5858_v46  ;;  %v2421_v46 = vrot.slane %v5793_v30, 2 }
 0x33e   : > { %v2514_v35 = vld.sshfl [vmem:[#allocation1] sm:$0xff pattern:$0x73625140]  ;;  %3000 = vmatpush.msrb.mxu2 %v5857_v56 }
 0x33f   : > { %2516 = vst [vmem:[#allocation1] ss:$4 sm:$0xff] %v5787_v27  ;;  %v5851_v27 = vld [vmem:[%s9397_s1 + $0x308] sm:$0xff] }
 0x340   : > { %2517 = vst [vmem:[#allocation1 + $0x1] ss:$4 sm:$0xff] %v2409_v32  ;;  %3001 = vmatpush.msrb.mxu2 %v5856_v63  ;;  %v5791_v32 = vld [vmem:[%s6440_s6 + $0xa2] sm:$0x3] }
 0x341   : > { %2295 = vmatmul.f32.gmra.mxu0 %v7142_v40  ;;  %2518 = vst [vmem:[#allocation1 + $0x2] ss:$4 sm:$0xff] %v2410_v34  ;;  %v5855_v40 = vld [vmem:[%s9397_s1 + $0x328] sm:$0xff] }
 0x342   : > { %2519 = vst [vmem:[#allocation1 + $0x3] ss:$4 sm:$0xff] %v2411_v45  ;;  %v2515_v2 = vld.sshfl [vmem:[#allocation1 + $0x20] sm:$0xff pattern:$0x73625140]  ;;  %3002 = vmatpush.msrb.mxu2 %v5855_v40  ;;  %v5795_v63 = vld [vmem:[%s6440_s6 + $0xc2] sm:$0xff] }
 0x343   : > { %2636 = vmatmul.f32.gmra.mxu1 %v2504_v3  ;;  %2520 = vst [vmem:[#allocation1 + $0x20] ss:$4 sm:$0xff] %v5788_v54  ;;  %v2414_v3 = vrot.slane %v5789_v55, 6  ;;  %v2426_v40 = vrot.slane %v5795_v63, 6 }
 0x344   : > { %2521 = vst [vmem:[#allocation1 + $0x21] ss:$4 sm:$0xff] %v5789_v55  ;;  %3003 = vmatpush.msrb.mxu2 %v5854_v6  ;;  %v7239_v55 = vpop.f32.mrf.mxu1  ;;  %v2422_v6 = vrot.slane %v5793_v30, 4 }
 0x345   : > { %2522 = vst [vmem:[#allocation1 + $0x22] ss:$4 sm:$0xff] %v2412_v1  ;;  %v2424_v1 = vrot.slane %v5795_v63, 2 }
 0x346   : > { %2523 = vst [vmem:[#allocation1 + $0x23] ss:$4 sm:$0xff] %v2413_v42  ;;  %3004 = vmatpush.msrb.mxu2 %v5853_v21  ;;  %v2425_v42 = vrot.slane %v5795_v63, 4  ;;  %v5794_v21 = vld [vmem:[%s6440_s6 + $0xba] sm:$0x3] }
 0x348   : > { %3005 = vmatpush.msrb.mxu2 %v5852_v22 }
 0x349   : > { %v2524_v10 = vld.sshfl [vmem:[#allocation1] sm:$0xff pattern:$0x73625140] }
 0x34a   : > { %2526 = vst [vmem:[#allocation1] ss:$4 sm:$0xff] %v2414_v3  ;;  %3006 = vmatpush.msrb.mxu2 %v5851_v27  ;;  %v5796_v3 = vld [vmem:[%s6440_s6 + $0xca] sm:$0xff] }
 0x34b   : > { %2639 = vmatmul.f32.gmra.mxu1 %v2505_v41  ;;  %2527 = vst [vmem:[#allocation1 + $0x1] ss:$4 sm:$0xff] %v5790_v4  ;;  %v5792_v41 = vld [vmem:[%s6440_s6 + $0xaa] sm:$0xff] }
 0x34c   : > { %2528 = vst [vmem:[#allocation1 + $0x2] ss:$4 sm:$0xff] %v2415_v9  ;;  %v2419_v34 = vrot.slane %v5792_v41, 4  ;;  %3007 = vmatpush.msrb.mxu2 %v5850_v31  ;;  %v2420_v45 = vrot.slane %v5792_v41, 6  ;;  %v2418_v56 = vrot.slane %v5792_v41, 2  ;;  %v7242_v4 = vpop.f32.mrf.mxu1  ;;  %v2423_v9 = vrot.slane %v5793_v30, 6 }
 0x34d   : > { %2529 = vst [vmem:[#allocation1 + $0x3] ss:$4 sm:$0xff] %v2416_v19  ;;  %v2525_v23 = vld.sshfl [vmem:[#allocation1 + $0x20] sm:$0xff pattern:$0x73625140] }
 0x34e   : > { %2530 = vst [vmem:[#allocation1 + $0x20] ss:$4 sm:$0xff] %v2417_v24 }
 0x34f   : > { %2532 = vst [vmem:[#allocation1 + $0x22] ss:$4 sm:$0xff] %v5792_v41 }
 0x350   : > { %2531 = vst [vmem:[#allocation1 + $0x21] ss:$4 sm:$0xff] %v5791_v32  ;;  %v2428_v32 = vrot.slane %v5796_v3, 4 }
 0x351   : > { %2533 = vst [vmem:[#allocation1 + $0x23] ss:$4 sm:$0xff] %v2418_v56 }
 0x352   : > { %9467 = vst [vmem:[#allocation32_spill] sm:$0xff] %v7242_v4 }
 0x353   : > { %2642 = vmatmul.f32.gmra.mxu1 %v2514_v35 }
 0x354   : > { %v2534_v54 = vld.sshfl [vmem:[#allocation1] sm:$0xff pattern:$0x73625140]  ;;  %v7249_v24 = vpop.f32.mrf.mxu1 }
 0x355   : > { %2536 = vst [vmem:[#allocation1] ss:$4 sm:$0xff] %v2419_v34 }
 0x356   : > { %2537 = vst [vmem:[#allocation1 + $0x1] ss:$4 sm:$0xff] %v2420_v45  ;;  %v5797_v45 = vld [vmem:[%s6440_s6 + $0xd2] sm:$0x3] }
 0x357   : > { %2538 = vst [vmem:[#allocation1 + $0x2] ss:$4 sm:$0xff] %v5793_v30  ;;  %v2429_v30 = vrot.slane %v5796_v3, 6 }
 0x358   : > { %2539 = vst [vmem:[#allocation1 + $0x3] ss:$4 sm:$0xff] %v2421_v46  ;;  %v2535_v19 = vld.sshfl [vmem:[#allocation1 + $0x20] sm:$0xff pattern:$0x73625140] }
 0x359   : > { %2540 = vst [vmem:[#allocation1 + $0x20] ss:$4 sm:$0xff] %v2422_v6  ;;  %v5801_v46 = vld [vmem:[%s6440_s6 + $0xf2] sm:$0xff] }
 0x35a   : > { %2541 = vst [vmem:[#allocation1 + $0x21] ss:$4 sm:$0xff] %v2423_v9 }
 0x35b   : > { %2645 = vmatmul.f32.gmra.mxu1 %v2515_v2  ;;  %v5798_v2 = vld [vmem:[%s6440_s6 + $0xda] sm:$0xff]  ;;  %2542 = vst [vmem:[#allocation1 + $0x22] ss:$4 sm:$0xff] %v5794_v21 }
 0x35c   : > { %2543 = vst [vmem:[#allocation1 + $0x23] ss:$4 sm:$0xff] %v5795_v63  ;;  %v2430_v22 = vrot.slane %v5798_v2, 2  ;;  %v2431_v27 = vrot.slane %v5798_v2, 4  ;;  %v2432_v41 = vrot.slane %v5798_v2, 6  ;;  %v7255_v56 = vpop.f32.mrf.mxu1  ;;  %v2436_v63 = vrot.slane %v5801_v46, 2 }
 0x35d   : > { %9468 = vst [vmem:[#allocation33_spill] sm:$0xff] %v7249_v24  ;;  %v5934_v24 = vld [vmem:[%s6440_s6 + $0xe2] sm:$0xff] }
 0x35e   : > { %9469 = vst [vmem:[#allocation34_spill] sm:$0xff] %v7255_v56 }
 0x35f   : > { %v7244_v35 = vld.sshfl [vmem:[#allocation1] sm:$0xff pattern:$0x73625140] }
 0x360   : > { %2546 = vst [vmem:[#allocation1] ss:$4 sm:$0xff] %v2424_v1  ;;  %v5799_v1 = vld [vmem:[%s6440_s6 + $0xe2] sm:$0xff] }
 0x361   : > { %2547 = vst [vmem:[#allocation1 + $0x1] ss:$4 sm:$0xff] %v2425_v42  ;;  %v2437_v42 = vrot.slane %v5801_v46, 4  ;;  %v2433_v6 = vrot.slane %v5799_v1, 2  ;;  %v2434_v9 = vrot.slane %v5799_v1, 4 }
 0x362   : > { %2548 = vst [vmem:[#allocation1 + $0x2] ss:$4 sm:$0xff] %v2426_v40 }
 0x363   : > { %2648 = vmatmul.f32.gmra.mxu1 %v2524_v10  ;;  %2549 = vst [vmem:[#allocation1 + $0x3] ss:$4 sm:$0xff] %v5796_v3  ;;  %v2427_v10 = vrot.slane %v5796_v3, 2  ;;  %v2545_v34 = vld.sshfl [vmem:[#allocation1 + $0x20] sm:$0xff pattern:$0x73625140] }
 0x364   : > { %2551 = vst [vmem:[#allocation1 + $0x21] ss:$4 sm:$0xff] %v2428_v32  ;;  %v5911_v3 = vld [vmem:[%s9397_s1 + $0x3f8] sm:$0xff]  ;;  %v5803_v32 = vld [vmem:[%s6440_s6 + $0x102] sm:$0x3] }
 0x365   : > { %2550 = vst [vmem:[#allocation1 + $0x20] ss:$4 sm:$0xff] %v2427_v10  ;;  %3381 = vmatpush.msrb.mxu3 %v5911_v3  ;;  %v5910_v10 = vld [vmem:[%s9397_s1 + $0x3f0] sm:$0xff]  ;;  %v5909_v3 = vld [vmem:[%s9397_s1 + $0x3e8] sm:$0xff] }
 0x366   : > { %2552 = vst [vmem:[#allocation1 + $0x22] ss:$4 sm:$0xff] %v2429_v30 }
 0x367   : > { %2553 = vst [vmem:[#allocation1 + $0x23] ss:$4 sm:$0xff] %v5797_v45  ;;  %3382 = vmatpush.msrb.mxu3 %v5910_v10 }
 0x369   : > { %3383 = vmatpush.msrb.mxu3 %v5909_v3 }
 0x36a   : > { %v7251_v31 = vld.sshfl [vmem:[#allocation1] sm:$0xff pattern:$0x73625140] }
 0x36b   : > { %2651 = vmatmul.f32.gmra.mxu1 %v2525_v23  ;;  %2556 = vst [vmem:[#allocation1] ss:$4 sm:$0xff] %v5798_v2  ;;  %v5800_v23 = vld [vmem:[%s6440_s6 + $0xea] sm:$0x3]  ;;  %v5802_v2 = vld [vmem:[%s6440_s6 + $0xfa] sm:$0xff] }
 0x36c   : > { %2557 = vst [vmem:[#allocation1 + $0x1] ss:$4 sm:$0xff] %v2430_v22  ;;  %v7267_v22 = vpop.f32.mrf.mxu1  ;;  %v2439_v45 = vrot.slane %v5802_v2, 2 }
 0x36d   : > { %2558 = vst [vmem:[#allocation1 + $0x2] ss:$4 sm:$0xff] %v2431_v27  ;;  %v2441_v27 = vrot.slane %v5802_v2, 6 }
 0x36e   : > { %2559 = vst [vmem:[#allocation1 + $0x3] ss:$4 sm:$0xff] %v2432_v41  ;;  %v7264_v21 = vld.sshfl [vmem:[#allocation1 + $0x20] sm:$0xff pattern:$0x73625140]  ;;  %v5957_v41 = vld [vmem:[%s9397_s1 + $0x478] sm:$0xff] }
 0x36f   : > { %2560 = vst [vmem:[#allocation1 + $0x20] ss:$4 sm:$0xff] %v5799_v1  ;;  %3770 = vmatpush.msrb.mxu0 %v5957_v41  ;;  %v5955_v41 = vld [vmem:[%s9397_s1 + $0x468] sm:$0xff] }
 0x370   : > { %2561 = vst [vmem:[#allocation1 + $0x21] ss:$4 sm:$0xff] %v2433_v6 }
 0x371   : > { %2562 = vst [vmem:[#allocation1 + $0x22] ss:$4 sm:$0xff] %v2434_v9 }
 0x372   : > { %9470 = vst [vmem:[#allocation35_spill] sm:$0xff] %v7267_v22  ;;  %v5891_v22 = vld [vmem:[%s6440_s6 + $0xf9] sm:$0xff] }
 0x373   : > { %2654 = vmatmul.f32.gmra.mxu1 %v2534_v54  ;;  %v2435_v54 = vrot.slane %v5799_v1, 6 }
 0x375   : > { %v7259_v40 = vld.sshfl [vmem:[#allocation1] sm:$0xff pattern:$0x73625140]  ;;  %2563 = vst [vmem:[#allocation1 + $0x23] ss:$4 sm:$0xff] %v2435_v54 }
 0x376   : > { %2566 = vst [vmem:[#allocation1] ss:$4 sm:$0xff] %v5800_v23  ;;  %v5820_v23 = vld [vmem:[%s6440_s6 + $0x30] sm:$0xff] }
 0x377   : > { %2567 = vst [vmem:[#allocation1 + $0x1] ss:$4 sm:$0xff] %v5801_v46  ;;  %v2773_v6 = vrot.slane %v5820_v23, 4  ;;  %v2774_v54 = vrot.slane %v5820_v23, 6 }
 0x378   : > { %2568 = vst [vmem:[#allocation1 + $0x2] ss:$4 sm:$0xff] %v2436_v63  ;;  %v2440_v63 = vrot.slane %v5802_v2, 4 }
 0x379   : > { %2569 = vst [vmem:[#allocation1 + $0x3] ss:$4 sm:$0xff] %v2437_v42  ;;  %v5956_v42 = vld [vmem:[%s9397_s1 + $0x470] sm:$0xff] }
 0x37a   : > { %3771 = vmatpush.msrb.mxu0 %v5956_v42 }
 0x37b   : > { %2657 = vmatmul.f32.gmra.mxu1 %v2535_v19  ;;  %v2438_v19 = vrot.slane %v5801_v46, 6  ;;  %v7288_v46 = vpop.f32.mrf.mxu1 }
 0x37c   : > { %v7280_v1 = vld.sshfl [vmem:[#allocation1 + $0x20] sm:$0xff pattern:$0x73625140]  ;;  %9471 = vst [vmem:[#allocation36_spill] sm:$0xff] %v7288_v46  ;;  %3772 = vmatpush.msrb.mxu0 %v5955_v41 }
 0x37d   : > { %2570 = vst [vmem:[#allocation1 + $0x20] ss:$4 sm:$0xff] %v2438_v19 }
 0x37e   : > { %2571 = vst [vmem:[#allocation1 + $0x21] ss:$4 sm:$0xff] %v5802_v2 }
 0x37f   : > { %2572 = vst [vmem:[#allocation1 + $0x22] ss:$4 sm:$0xff] %v2439_v45  ;;  %v5823_v45 = vld [vmem:[%s6440_s6 + $0x48] sm:$0xff] }
 0x380   : > { %v7276_v30 = vld.sshfl [vmem:[#allocation1] sm:$0xff pattern:$0x73625140]  ;;  %2573 = vst [vmem:[#allocation1 + $0x23] ss:$4 sm:$0xff] %v2440_v63  ;;  %v2779_v3 = vrot.slane %v5823_v45, 4 }
 0x381   : > { %2576 = vst [vmem:[#allocation1] ss:$4 sm:$0xff] %v2441_v27  ;;  %v5821_v27 = vld [vmem:[%s6440_s6 + $0x38] sm:$0xff] }
 0x382   : > { %2577 = vst [vmem:[#allocation1 + $0x1] ss:$4 sm:$0xff] %v5803_v32  ;;  %v2775_v2 = vrot.slane %v5821_v27, 2  ;;  %v2776_v10 = vrot.slane %v5821_v27, 4  ;;  %v2777_v19 = vrot.slane %v5821_v27, 6 }
 0x383   : > { %2660 = vmatmul.f32.gmra.mxu1 %v7244_v35  ;;  %v2772_v35 = vrot.slane %v5820_v23, 2  ;;  %v7299_v63 = vpop.f32.mrf.mxu1 }
 0x384   : > { %9472 = vst [vmem:[#allocation37_spill] sm:$0xff] %v7299_v63 }
 0x387   : > { %v7296_v32 = vld.sshfl [vmem:[#allocation1 + $0x20] sm:$0xff pattern:$0x73625140] }
 0x388   : > { %2857 = vst [vmem:[#allocation1 + $0x20] ss:$4 sm:$0xff] %v5821_v27 }
 0x389   : > { %v7290_v9 = vld.sshfl [vmem:[#allocation1] sm:$0xff pattern:$0x73625140]  ;;  %2859 = vst [vmem:[#allocation1 + $0x21] ss:$4 sm:$0xff] %v2775_v2 }
 0x38a   : > { %2849 = vst [vmem:[#allocation1] ss:$4 sm:$0xff] %v5820_v23  ;;  %v2778_v23 = vrot.slane %v5823_v45, 2 }
 0x38b   : > { %2851 = vst [vmem:[#allocation1 + $0x1] ss:$4 sm:$0xff] %v2772_v35  ;;  %2663 = vmatmul.f32.gmra.mxu1 %v2545_v34  ;;  %v5822_v34 = vld [vmem:[%s6440_s6 + $0x40] sm:$0x3]  ;;  %v5908_v35 = vld [vmem:[%s9397_s1 + $0x3e0] sm:$0xff] }
 0x38c   : > { %2853 = vst [vmem:[#allocation1 + $0x2] ss:$4 sm:$0xff] %v2773_v6  ;;  %3384 = vmatpush.msrb.mxu3 %v5908_v35  ;;  %v2780_v6 = vrot.slane %v5823_v45, 6 }
 0x38d   : > { %2855 = vst [vmem:[#allocation1 + $0x3] ss:$4 sm:$0xff] %v2774_v54  ;;  %v5824_v54 = vld [vmem:[%s6440_s6 + $0x50] sm:$0xff] }
 0x38e   : > { %2861 = vst [vmem:[#allocation1 + $0x22] ss:$4 sm:$0xff] %v2776_v10  ;;  %v2781_v27 = vrot.slane %v5824_v54, 2  ;;  %v2782_v41 = vrot.slane %v5824_v54, 4  ;;  %v2783_v10 = vrot.slane %v5824_v54, 6 }
 0x38f   : > { %2863 = vst [vmem:[#allocation1 + $0x23] ss:$4 sm:$0xff] %v2777_v19  ;;  %v5826_v19 = vld [vmem:[%s6440_s6 + $0x60] sm:$0xff] }
 0x390   : > { %v2786_v35 = vrot.slane %v5826_v19, 6 }
 0x393   : > { %2666 = vmatmul.f32.gmra.mxu1 %v7251_v31  ;;  %v7307_v31 = vpop.f32.mrf.mxu1 }
 0x394   : > { %v2864_v42 = vld.sshfl [vmem:[#allocation1] sm:$0xff pattern:$0x73625140]  ;;  %9473 = vst [vmem:[#allocation38_spill] sm:$0xff] %v7307_v31 }
 0x395   : > { %3008 = vmatmul.f32.vlgmr.msrb.gmra.mxu2 %v2864_v42  ;;  %2866 = vst [vmem:[#allocation1] ss:$4 sm:$0xff] %v5822_v34  ;;  %v5907_v34 = vld [vmem:[%s9397_s1 + $0x3d8] sm:$0xff] }
 0x396   : > { %2867 = vst [vmem:[#allocation1 + $0x1] ss:$4 sm:$0xff] %v5823_v45  ;;  %v2865_v2 = vld.sshfl [vmem:[#allocation1 + $0x20] sm:$0xff pattern:$0x73625140]  ;;  %3385 = vmatpush.msrb.mxu3 %v5907_v34 }
 0x397   : > { %2868 = vst [vmem:[#allocation1 + $0x2] ss:$4 sm:$0xff] %v2778_v23  ;;  %v5954_v45 = vld [vmem:[%s9397_s1 + $0x460] sm:$0xff] }
 0x398   : > { %2869 = vst [vmem:[#allocation1 + $0x3] ss:$4 sm:$0xff] %v2779_v3  ;;  %v5825_v23 = vld [vmem:[%s6440_s6 + $0x58] sm:$0x3]  ;;  %3773 = vmatpush.msrb.mxu0 %v5954_v45  ;;  %v2785_v3 = vrot.slane %v5826_v19, 4 }
 0x399   : > { %2870 = vst [vmem:[#allocation1 + $0x20] ss:$4 sm:$0xff] %v2780_v6  ;;  %v5827_v6 = vld [vmem:[%s6440_s6 + $0x68] sm:$0xff]  ;;  %v5829_v34 = vld [vmem:[%s6440_s6 + $0x78] sm:$0xff] }
 0x39a   : > { %2871 = vst [vmem:[#allocation1 + $0x21] ss:$4 sm:$0xff] %v5824_v54  ;;  %v5878_v31 = vld [vmem:[%s6440_s6 + $0x91] sm:$0xff] }
 0x39b   : > { %2669 = vmatmul.f32.gmra.mxu1 %v7264_v21  ;;  %2872 = vst [vmem:[#allocation1 + $0x22] ss:$4 sm:$0xff] %v2781_v27  ;;  %v2784_v21 = vrot.slane %v5826_v19, 2  ;;  %v7320_v54 = vpop.f32.mrf.mxu1 }
 0x39c   : > { %2873 = vst [vmem:[#allocation1 + $0x23] ss:$4 sm:$0xff] %v2782_v41  ;;  %v5953_v41 = vld [vmem:[%s9397_s1 + $0x458] sm:$0xff] }
 0x39d   : > { %3011 = vmatmul.f32.gmra.mxu2 %v2865_v2  ;;  %9474 = vst [vmem:[#allocation39_spill] sm:$0xff] %v7320_v54  ;;  %v2787_v2 = vrot.slane %v5827_v6, 2  ;;  %3774 = vmatpush.msrb.mxu0 %v5953_v41 }
 0x39f   : > { %v2874_v42 = vld.sshfl [vmem:[#allocation1] sm:$0xff pattern:$0x73625140] }
 0x3a0   : > { %2876 = vst [vmem:[#allocation1] ss:$4 sm:$0xff] %v2783_v10  ;;  %v2788_v10 = vrot.slane %v5827_v6, 4 }
 0x3a1   : > { %2877 = vst [vmem:[#allocation1 + $0x1] ss:$4 sm:$0xff] %v5825_v23  ;;  %v2790_v23 = vrot.slane %v5829_v34, 2 }
 0x3a2   : > { %2878 = vst [vmem:[#allocation1 + $0x2] ss:$4 sm:$0xff] %v5826_v19  ;;  %v2789_v19 = vrot.slane %v5827_v6, 6 }
 0x3a3   : > { %2879 = vst [vmem:[#allocation1 + $0x3] ss:$4 sm:$0xff] %v2784_v21  ;;  %2672 = vmatmul.f32.gmra.mxu1 %v7259_v40  ;;  %v2875_v27 = vld.sshfl [vmem:[#allocation1 + $0x20] sm:$0xff pattern:$0x73625140]  ;;  %v2791_v21 = vrot.slane %v5829_v34, 4 }
 0x3a4   : > { %2880 = vst [vmem:[#allocation1 + $0x20] ss:$4 sm:$0xff] %v2785_v3  ;;  %v5828_v40 = vld [vmem:[%s6440_s6 + $0x70] sm:$0x3]  ;;  %v7331_v3 = vpop.f32.mrf.mxu2 }
 0x3a5   : > { %3014 = vmatmul.f32.gmra.mxu2 %v2874_v42  ;;  %2881 = vst [vmem:[#allocation1 + $0x21] ss:$4 sm:$0xff] %v2786_v35  ;;  %v5906_v42 = vld [vmem:[%s9397_s1 + $0x3d0] sm:$0xff]  ;;  %v7333_v35 = vpop.f32.mrf.mxu1 }
 0x3a6   : > { %2882 = vst [vmem:[#allocation1 + $0x22] ss:$4 sm:$0xff] %v5827_v6  ;;  %3386 = vmatpush.msrb.mxu3 %v5906_v42  ;;  %v2792_v6 = vrot.slane %v5829_v34, 6  ;;  %v5832_v42 = vld [vmem:[%s6440_s6 + $0x90] sm:$0xff] }
 0x3a7   : > { %2883 = vst [vmem:[#allocation1 + $0x23] ss:$4 sm:$0xff] %v2787_v2  ;;  %v5830_v2 = vld [vmem:[%s6440_s6 + $0x80] sm:$0xff]  ;;  %v2798_v58 = vrot.slane %v5832_v42, 6 }
 0x3a8   : > { %9475 = vst [vmem:[#allocation40_spill] sm:$0xff] %v7333_v35 }
 0x3aa   : > { %v2884_v45 = vld.sshfl [vmem:[#allocation1] sm:$0xff pattern:$0x73625140] }
 0x3ab   : > { %2886 = vst [vmem:[#allocation1] ss:$4 sm:$0xff] %v2788_v10  ;;  %2675 = vmatmul.f32.gmra.mxu1 %v7280_v1  ;;  %v2793_v1 = vrot.slane %v5830_v2, 2  ;;  %v2795_v10 = vrot.slane %v5830_v2, 6 }
 0x3ac   : > { %2887 = vst [vmem:[#allocation1 + $0x1] ss:$4 sm:$0xff] %v2789_v19 }
 0x3ad   : > { %3017 = vmatmul.f32.gmra.mxu2 %v2875_v27  ;;  %2888 = vst [vmem:[#allocation1 + $0x2] ss:$4 sm:$0xff] %v5828_v40  ;;  %v2794_v27 = vrot.slane %v5830_v2, 4  ;;  %v5952_v40 = vld [vmem:[%s9397_s1 + $0x450] sm:$0xff] }
 0x3ae   : > { %2889 = vst [vmem:[#allocation1 + $0x3] ss:$4 sm:$0xff] %v5829_v34  ;;  %v2885_v41 = vld.sshfl [vmem:[#allocation1 + $0x20] sm:$0xff pattern:$0x73625140]  ;;  %v5905_v34 = vld [vmem:[%s9397_s1 + $0x3c8] sm:$0xff]  ;;  %3775 = vmatpush.msrb.mxu0 %v5952_v40 }
 0x3af   : > { %2890 = vst [vmem:[#allocation1 + $0x20] ss:$4 sm:$0xff] %v2790_v23  ;;  %v5831_v23 = vld [vmem:[%s6440_s6 + $0x88] sm:$0x3]  ;;  %3387 = vmatpush.msrb.mxu3 %v5905_v34  ;;  %v2801_v34 = vrot.slane %v5833_v13, 6 }
 0x3b0   : > { %2891 = vst [vmem:[#allocation1 + $0x21] ss:$4 sm:$0xff] %v2791_v21  ;;  %v2796_v21 = vrot.slane %v5832_v42, 2 }
 0x3b1   : > { %2892 = vst [vmem:[#allocation1 + $0x22] ss:$4 sm:$0xff] %v2792_v6  ;;  %v2797_v6 = vrot.slane %v5832_v42, 4 }
 0x3b2   : > { %2893 = vst [vmem:[#allocation1 + $0x23] ss:$4 sm:$0xff] %v5830_v2 }
 0x3b3   : > { %2678 = vmatmul.f32.gmra.mxu1 %v7276_v30  ;;  %v7345_v30 = vpop.f32.mrf.mxu2 }
 0x3b5   : > { %3020 = vmatmul.f32.gmra.mxu2 %v2884_v45  ;;  %v2894_v19 = vld.sshfl [vmem:[#allocation1] sm:$0xff pattern:$0x73625140]  ;;  %v7347_v45 = vpop.f32.mrf.mxu1 }
 0x3b6   : > { %2896 = vst [vmem:[#allocation1] ss:$4 sm:$0xff] %v2793_v1  ;;  %v5951_v1 = vld [vmem:[%s9397_s1 + $0x448] sm:$0xff] }
 0x3b7   : > { %2897 = vst [vmem:[#allocation1 + $0x1] ss:$4 sm:$0xff] %v2794_v27  ;;  %v5904_v27 = vld [vmem:[%s9397_s1 + $0x3c0] sm:$0xff]  ;;  %3776 = vmatpush.msrb.mxu0 %v5951_v1 }
 0x3b8   : > { %2898 = vst [vmem:[#allocation1 + $0x2] ss:$4 sm:$0xff] %v2795_v10  ;;  %3388 = vmatpush.msrb.mxu3 %v5904_v27  ;;  %v2799_v10 = vrot.slane %v5833_v13, 2 }
 0x3b9   : > { %9476 = vst [vmem:[#allocation41_spill] sm:$0xff] %v7347_v45  ;;  %v2895_v2 = vld.sshfl [vmem:[#allocation1 + $0x20] sm:$0xff pattern:$0x73625140] }
 0x3ba   : > { %2899 = vst [vmem:[#allocation1 + $0x3] ss:$4 sm:$0xff] %v5831_v23 }
 0x3bb   : > { %2681 = vmatmul.f32.gmra.mxu1 %v7296_v32  ;;  %2900 = vst [vmem:[#allocation1 + $0x20] ss:$4 sm:$0xff] %v5832_v42  ;;  %v2800_v32 = vrot.slane %v5833_v13, 4  ;;  %v5834_v42 = vld [vmem:[%s6440_s6 + $0xa0] sm:$0x3] }
 0x3bc   : > { %2901 = vst [vmem:[#allocation1 + $0x21] ss:$4 sm:$0xff] %v2796_v21  ;;  %v5835_v21 = vld [vmem:[%s6440_s6 + $0xa8] sm:$0xff] }
 0x3bd   : > { %3023 = vmatmul.f32.gmra.mxu2 %v2885_v41  ;;  %2902 = vst [vmem:[#allocation1 + $0x22] ss:$4 sm:$0xff] %v2797_v6  ;;  %v7357_v41 = vpop.f32.mrf.mxu2  ;;  %v7359_v23 = vpop.f32.mrf.mxu1  ;;  %v2802_v6 = vrot.slane %v5835_v21, 2  ;;  %v2803_v27 = vrot.slane %v5835_v21, 4 }
 0x3be   : > { %2903 = vst [vmem:[#allocation1 + $0x23] ss:$4 sm:$0xff] %v2798_v58  ;;  %v5903_v58 = vld [vmem:[%s9397_s1 + $0x3b8] sm:$0xff] }
 0x3bf   : > { %9477 = vst [vmem:[#allocation42_spill] sm:$0xff] %v7359_v23  ;;  %3389 = vmatpush.msrb.mxu3 %v5903_v58 }
 0x3c1   : > { %v2904_v40 = vld.sshfl [vmem:[#allocation1] sm:$0xff pattern:$0x73625140] }
 0x3c2   : > { %2906 = vst [vmem:[#allocation1] ss:$4 sm:$0xff] %v5833_v13  ;;  %v5902_v13 = vld [vmem:[%s9397_s1 + $0x3b0] sm:$0xff] }
 0x3c3   : > { %2907 = vst [vmem:[#allocation1 + $0x1] ss:$4 sm:$0xff] %v2799_v10  ;;  %2684 = vmatmul.f32.gmra.mxu1 %v7290_v9  ;;  %v5901_v9 = vld [vmem:[%s9397_s1 + $0x3a8] sm:$0xff]  ;;  %v5836_v10 = vld [vmem:[%s6440_s6 + $0xb0] sm:$0xff]  ;;  %3390 = vmatpush.msrb.mxu3 %v5902_v13  ;;  %v5898_v13 = vld [vmem:[%s9397_s1 + $0x390] sm:$0xff] }
 0x3c4   : > { %2908 = vst [vmem:[#allocation1 + $0x2] ss:$4 sm:$0xff] %v2800_v32  ;;  %v5900_v32 = vld [vmem:[%s9397_s1 + $0x3a0] sm:$0xff]  ;;  %v2806_v14 = vrot.slane %v5836_v10, 4 }
 0x3c5   : > { %2909 = vst [vmem:[#allocation1 + $0x3] ss:$4 sm:$0xff] %v2801_v34  ;;  %3026 = vmatmul.f32.gmra.mxu2 %v2894_v19  ;;  %v2905_v1 = vld.sshfl [vmem:[#allocation1 + $0x20] sm:$0xff pattern:$0x73625140]  ;;  %v2804_v19 = vrot.slane %v5835_v21, 6  ;;  %3391 = vmatpush.msrb.mxu3 %v5901_v9  ;;  %v7377_v51 = vpop.f32.mrf.mxu2 }
 0x3c6   : > { %2910 = vst [vmem:[#allocation1 + $0x20] ss:$4 sm:$0xff] %v5834_v42  ;;  %v2805_v34 = vrot.slane %v5836_v10, 2  ;;  %v5899_v42 = vld [vmem:[%s9397_s1 + $0x398] sm:$0xff] }
 0x3c7   : > { %2911 = vst [vmem:[#allocation1 + $0x21] ss:$4 sm:$0xff] %v5835_v21  ;;  %3392 = vmatpush.msrb.mxu3 %v5900_v32  ;;  %v5950_v21 = vld [vmem:[%s9397_s1 + $0x440] sm:$0xff] }
 0x3c8   : > { %2912 = vst [vmem:[#allocation1 + $0x22] ss:$4 sm:$0xff] %v2802_v6  ;;  %3777 = vmatpush.msrb.mxu0 %v5950_v21  ;;  %v2807_v6 = vrot.slane %v5836_v10, 6  ;;  %v5896_v32 = vld [vmem:[%s9397_s1 + $0x380] sm:$0xff] }
 0x3c9   : > { %2913 = vst [vmem:[#allocation1 + $0x23] ss:$4 sm:$0xff] %v2803_v27  ;;  %3393 = vmatpush.msrb.mxu3 %v5899_v42  ;;  %v5838_v27 = vld [vmem:[%s6440_s6 + $0xc0] sm:$0xff]  ;;  %v5839_v42 = vld [vmem:[%s6440_s6 + $0xc8] sm:$0xff] }
 0x3ca   : > { %v2808_v9 = vrot.slane %v5838_v27, 2  ;;  %v2809_v21 = vrot.slane %v5838_v27, 4  ;;  %v2812_v60 = vrot.slane %v5839_v42, 4 }
 0x3cb   : > { %3394 = vmatpush.msrb.mxu3 %v5898_v13 }
 0x3cc   : > { %v2914_v58 = vld.sshfl [vmem:[#allocation1] sm:$0xff pattern:$0x73625140] }
 0x3cd   : > { %2916 = vst [vmem:[#allocation1] ss:$4 sm:$0xff] %v2804_v19  ;;  %3029 = vmatmul.f32.gmra.mxu2 %v2895_v2  ;;  %v5897_v2 = vld [vmem:[%s9397_s1 + $0x388] sm:$0xff]  ;;  %v7397_v13 = vpop.f32.mrf.mxu2 }
 0x3ce   : > { %2917 = vst [vmem:[#allocation1 + $0x1] ss:$4 sm:$0xff] %v5836_v10  ;;  %3395 = vmatpush.msrb.mxu3 %v5897_v2  ;;  %v2810_v10 = vrot.slane %v5838_v27, 6  ;;  %v5841_v2 = vld [vmem:[%s6440_s6 + $0xd8] sm:$0xff] }
 0x3cf   : > { %2918 = vst [vmem:[#allocation1 + $0x2] ss:$4 sm:$0xff] %v2805_v34 }
 0x3d0   : > { %2919 = vst [vmem:[#allocation1 + $0x3] ss:$4 sm:$0xff] %v2806_v14  ;;  %v2915_v19 = vld.sshfl [vmem:[#allocation1 + $0x20] sm:$0xff pattern:$0x73625140]  ;;  %3396 = vmatpush.msrb.mxu3 %v5896_v32  ;;  %v2811_v14 = vrot.slane %v5839_v42, 2 }
 0x3d1   : > { %2920 = vst [vmem:[#allocation1 + $0x20] ss:$4 sm:$0xff] %v2807_v6  ;;  %v2813_v6 = vrot.slane %v5839_v42, 6 }
 0x3d2   : > { %2922 = vst [vmem:[#allocation1 + $0x22] ss:$4 sm:$0xff] %v5838_v27  ;;  %v2816_v27 = vrot.slane %v5841_v2, 6 }
 0x3d3   : > { %2921 = vst [vmem:[#allocation1 + $0x21] ss:$4 sm:$0xff] %v5837_v48  ;;  %v2814_v48 = vrot.slane %v5841_v2, 2 }
 0x3d4   : > { %2923 = vst [vmem:[#allocation1 + $0x23] ss:$4 sm:$0xff] %v2808_v9 }
 0x3d5   : > { %3032 = vmatmul.f32.gmra.mxu2 %v2904_v40  ;;  %v2815_v40 = vrot.slane %v5841_v2, 4  ;;  %v7403_v9 = vpop.f32.mrf.mxu2 }
 0x3d7   : > { %v2924_v34 = vld.sshfl [vmem:[#allocation1] sm:$0xff pattern:$0x73625140] }
 0x3d8   : > { %2926 = vst [vmem:[#allocation1] ss:$4 sm:$0xff] %v2809_v21 }
 0x3d9   : > { %2927 = vst [vmem:[#allocation1 + $0x1] ss:$4 sm:$0xff] %v2810_v10  ;;  %v5844_v10 = vld [vmem:[%s6440_s6 + $0xf0] sm:$0xff] }
 0x3da   : > { %2928 = vst [vmem:[#allocation1 + $0x2] ss:$4 sm:$0xff] %v5839_v42  ;;  %v5842_v42 = vld [vmem:[%s6440_s6 + $0xe0] sm:$0xff] }
 0x3db   : > { %2929 = vst [vmem:[#allocation1 + $0x3] ss:$4 sm:$0xff] %v2811_v14  ;;  %v7401_v29 = vld.sshfl [vmem:[#allocation1 + $0x20] sm:$0xff pattern:$0x73625140]  ;;  %v2817_v21 = vrot.slane %v5842_v42, 2 }
 0x3dc   : > { %2930 = vst [vmem:[#allocation1 + $0x20] ss:$4 sm:$0xff] %v2812_v60  ;;  %v2819_v60 = vrot.slane %v5842_v42, 6 }
 0x3dd   : > { %3035 = vmatmul.f32.gmra.mxu2 %v2905_v1  ;;  %2931 = vst [vmem:[#allocation1 + $0x21] ss:$4 sm:$0xff] %v2813_v6  ;;  %v2818_v1 = vrot.slane %v5842_v42, 4  ;;  %v7412_v6 = vpop.f32.mrf.mxu3  ;;  %v7414_v38 = vpop.f32.mrf.mxu2 }
 0x3de   : > { %2932 = vst [vmem:[#allocation1 + $0x22] ss:$4 sm:$0xff] %v5840_v36  ;;  %v5843_v36 = vld [vmem:[%s6440_s6 + $0xe8] sm:$0x3] }
 0x3df   : > { %2933 = vst [vmem:[#allocation1 + $0x23] ss:$4 sm:$0xff] %v5841_v2  ;;  %v2820_v2 = vrot.slane %v5844_v10, 2 }
 0x3e0   : > { %9478 = vst [vmem:[#allocation43_spill] sm:$0xff] %v7412_v6 }
 0x3e1   : > { %9479 = vst [vmem:[#allocation44_spill] sm:$0xff] %v7414_v38 }
 0x3e2   : > { %v7405_v32 = vld.sshfl [vmem:[#allocation1] sm:$0xff pattern:$0x73625140] }
 0x3e3   : > { %2936 = vst [vmem:[#allocation1] ss:$4 sm:$0xff] %v2814_v48  ;;  %v2821_v48 = vrot.slane %v5844_v10, 4 }
 0x3e4   : > { %2937 = vst [vmem:[#allocation1 + $0x1] ss:$4 sm:$0xff] %v2815_v40  ;;  %v2822_v40 = vrot.slane %v5844_v10, 6 }
 0x3e5   : > { %2938 = vst [vmem:[#allocation1 + $0x2] ss:$4 sm:$0xff] %v2816_v27  ;;  %3038 = vmatmul.f32.gmra.mxu2 %v2914_v58  ;;  %v5845_v27 = vld [vmem:[%s6440_s6 + $0xf8] sm:$0xff]  ;;  %v7421_v6 = vpop.f32.mrf.mxu3 }
 0x3e6   : > { %2939 = vst [vmem:[#allocation1 + $0x3] ss:$4 sm:$0xff] %v5842_v42  ;;  %v7409_v14 = vld.sshfl [vmem:[#allocation1 + $0x20] sm:$0xff pattern:$0x73625140]  ;;  %v2823_v42 = vrot.slane %v5845_v27, 2 }
 0x3e7   : > { %2940 = vst [vmem:[#allocation1 + $0x20] ss:$4 sm:$0xff] %v2817_v21  ;;  %v2824_v21 = vrot.slane %v5845_v27, 4 }
 0x3e8   : > { %2941 = vst [vmem:[#allocation1 + $0x21] ss:$4 sm:$0xff] %v2818_v1 }
 0x3e9   : > { %2942 = vst [vmem:[#allocation1 + $0x22] ss:$4 sm:$0xff] %v2819_v60  ;;  %v2825_v60 = vrot.slane %v5845_v27, 6 }
 0x3ea   : > { %2943 = vst [vmem:[#allocation1 + $0x23] ss:$4 sm:$0xff] %v5843_v36  ;;  %v7424_v36 = vpop.f32.mrf.mxu2 }
 0x3eb   : > { %9480 = vst [vmem:[#allocation45_spill] sm:$0xff] %v7424_v36 }
 0x3ed   : > { %v7416_v58 = vld.sshfl [vmem:[#allocation1] sm:$0xff pattern:$0x73625140]  ;;  %3041 = vmatmul.f32.gmra.mxu2 %v2915_v19  ;;  %v5846_v19 = vld [vmem:[%s6440_s6 + $0x100] sm:$0x3] }
 0x3ee   : > { %2946 = vst [vmem:[#allocation1] ss:$4 sm:$0xff] %v5844_v10  ;;  %v2826_v10 = vrot.slane %v5847_v28, 2 }
 0x3ef   : > { %2947 = vst [vmem:[#allocation1 + $0x1] ss:$4 sm:$0xff] %v2820_v2  ;;  %v2827_v2 = vrot.slane %v5847_v28, 4 }
 0x3f0   : > { %2948 = vst [vmem:[#allocation1 + $0x2] ss:$4 sm:$0xff] %v2821_v48 }
 0x3f1   : > { %2949 = vst [vmem:[#allocation1 + $0x3] ss:$4 sm:$0xff] %v2822_v40  ;;  %v7419_v1 = vld.sshfl [vmem:[#allocation1 + $0x20] sm:$0xff pattern:$0x73625140]  ;;  %v5949_v40 = vld [vmem:[%s9397_s1 + $0x438] sm:$0xff] }
 0x3f2   : > { %2950 = vst [vmem:[#allocation1 + $0x20] ss:$4 sm:$0xff] %v5845_v27  ;;  %3778 = vmatpush.msrb.mxu0 %v5949_v40  ;;  %v2828_v27 = vrot.slane %v5847_v28, 6  ;;  %v7438_v17 = vpop.f32.mrf.mxu2  ;;  %v5866_v40 = vld [vmem:[%s6440_s6 + $0x31] sm:$0xff] }
 0x3f3   : > { %2951 = vst [vmem:[#allocation1 + $0x21] ss:$4 sm:$0xff] %v2823_v42  ;;  %v5848_v42 = vld [vmem:[%s6440_s6 + $0x110] sm:$0xff] }
 0x3f4   : > { %2952 = vst [vmem:[#allocation1 + $0x22] ss:$4 sm:$0xff] %v2824_v21  ;;  %v7433_v21 = vpop.f32.mrf.mxu3 }
 0x3f5   : > { %3044 = vmatmul.f32.gmra.mxu2 %v2924_v34  ;;  %2953 = vst [vmem:[#allocation1 + $0x23] ss:$4 sm:$0xff] %v2825_v60  ;;  %v2829_v34 = vrot.slane %v5848_v42, 2  ;;  %v2830_v60 = vrot.slane %v5848_v42, 4 }
 0x3f6   : > { %9481 = vst [vmem:[#allocation46_spill] sm:$0xff] %v7438_v17 }
 0x3f8   : > { %v7427_v48 = vld.sshfl [vmem:[#allocation1] sm:$0xff pattern:$0x73625140] }
 0x3f9   : > { %2956 = vst [vmem:[#allocation1] ss:$4 sm:$0xff] %v5846_v19  ;;  %v2831_v19 = vrot.slane %v5848_v42, 6 }
 0x3fa   : > { %2957 = vst [vmem:[#allocation1 + $0x1] ss:$4 sm:$0xff] %v5847_v28 }
 0x3fb   : > { %2958 = vst [vmem:[#allocation1 + $0x2] ss:$4 sm:$0xff] %v2826_v10  ;;  %v5849_v10 = vld [vmem:[%s6440_s6 + $0x118] sm:$0x3] }
 0x3fc   : > { %2959 = vst [vmem:[#allocation1 + $0x3] ss:$4 sm:$0xff] %v2827_v2  ;;  %v7436_v12 = vld.sshfl [vmem:[#allocation1 + $0x20] sm:$0xff pattern:$0x73625140]  ;;  %v7446_v62 = vpop.f32.mrf.mxu3 }
 0x3fd   : > { %3047 = vmatmul.f32.gmra.mxu2 %v7401_v29  ;;  %2960 = vst [vmem:[#allocation1 + $0x20] ss:$4 sm:$0xff] %v2828_v27  ;;  %v5867_v2 = vld [vmem:[%s6440_s6 + $0x39] sm:$0xff]  ;;  %v5948_v27 = vld [vmem:[%s9397_s1 + $0x430] sm:$0xff] }
 0x3fe   : > { %2961 = vst [vmem:[#allocation1 + $0x21] ss:$4 sm:$0xff] %v5848_v42  ;;  %v3164_v29 = vrot.slane %v5867_v2, 2  ;;  %v3165_v7 = vrot.slane %v5867_v2, 4  ;;  %3779 = vmatpush.msrb.mxu0 %v5948_v27  ;;  %v3166_v23 = vrot.slane %v5867_v2, 6  ;;  %v5947_v27 = vld [vmem:[%s9397_s1 + $0x428] sm:$0xff] }
 0x3ff   : > { %2962 = vst [vmem:[#allocation1 + $0x22] ss:$4 sm:$0xff] %v2829_v34  ;;  %v7453_v34 = vpop.f32.mrf.mxu2 }
 0x400   : > { %2963 = vst [vmem:[#allocation1 + $0x23] ss:$4 sm:$0xff] %v2830_v60  ;;  %v3161_v60 = vrot.slane %v5866_v40, 2  ;;  %3780 = vmatpush.msrb.mxu0 %v5947_v27 }
 0x401   : > { %9482 = vst [vmem:[#allocation47_spill] sm:$0xff] %v7453_v34  ;;  %v5913_v34 = vld [vmem:[%s6440_s6 + $0x3a] sm:$0xff] }
 0x402   : > { %v3555_v56 = vrot.slane %v5913_v34, 6 }
 0x403   : > { %v7441_v28 = vld.sshfl [vmem:[#allocation1] sm:$0xff pattern:$0x73625140] }
 0x404   : > { %2966 = vst [vmem:[#allocation1] ss:$4 sm:$0xff] %v2831_v19  ;;  %v3162_v19 = vrot.slane %v5866_v40, 4 }
 0x405   : > { %2967 = vst [vmem:[#allocation1 + $0x1] ss:$4 sm:$0xff] %v5849_v10  ;;  %3050 = vmatmul.f32.gmra.mxu2 %v7405_v32  ;;  %v3163_v10 = vrot.slane %v5866_v40, 6 }
 0x407   : > { %v7451_v42 = vld.sshfl [vmem:[#allocation1 + $0x20] sm:$0xff pattern:$0x73625140]  ;;  %v7464_v45 = vpop.f32.mrf.mxu2 }
 0x408   : > { %3246 = vst [vmem:[#allocation1 + $0x20] ss:$4 sm:$0xff] %v5867_v2 }
 0x409   : > { %3248 = vst [vmem:[#allocation1 + $0x21] ss:$4 sm:$0xff] %v3164_v29  ;;  %v7461_v29 = vpop.f32.mrf.mxu3 }
 0x40a   : > { %3250 = vst [vmem:[#allocation1 + $0x22] ss:$4 sm:$0xff] %v3165_v7  ;;  %v5868_v7 = vld [vmem:[%s6440_s6 + $0x41] sm:$0x3] }
 0x40b   : > { %3252 = vst [vmem:[#allocation1 + $0x23] ss:$4 sm:$0xff] %v3166_v23  ;;  %v5870_v23 = vld [vmem:[%s6440_s6 + $0x51] sm:$0xff] }
 0x40c   : > { %v7455_v32 = vld.sshfl [vmem:[#allocation1] sm:$0xff pattern:$0x73625140]  ;;  %9483 = vst [vmem:[#allocation48_spill] sm:$0xff] %v7464_v45  ;;  %v3171_v25 = vrot.slane %v5870_v23, 4 }
 0x40d   : > { %3238 = vst [vmem:[#allocation1] ss:$4 sm:$0xff] %v5866_v40  ;;  %3053 = vmatmul.f32.gmra.mxu2 %v7409_v14  ;;  %v3167_v40 = vrot.slane %v5869_v43, 2  ;;  %v3168_v14 = vrot.slane %v5869_v43, 4 }
 0x40e   : > { %3240 = vst [vmem:[#allocation1 + $0x1] ss:$4 sm:$0xff] %v3161_v60  ;;  %v3169_v60 = vrot.slane %v5869_v43, 6 }
 0x40f   : > { %3242 = vst [vmem:[#allocation1 + $0x2] ss:$4 sm:$0xff] %v3162_v19  ;;  %v5946_v19 = vld [vmem:[%s9397_s1 + $0x420] sm:$0xff] }
 0x410   : > { %3244 = vst [vmem:[#allocation1 + $0x3] ss:$4 sm:$0xff] %v3163_v10  ;;  %3781 = vmatpush.msrb.mxu0 %v5946_v19  ;;  %v3170_v10 = vrot.slane %v5870_v23, 2  ;;  %v5871_v19 = vld [vmem:[%s6440_s6 + $0x59] sm:$0x3] }
 0x412   : > { %v3254_v27 = vld.sshfl [vmem:[#allocation1 + $0x20] sm:$0xff pattern:$0x73625140] }
 0x413   : > { %3259 = vst [vmem:[#allocation1 + $0x20] ss:$4 sm:$0xff] %v3169_v60  ;;  %v5873_v60 = vld [vmem:[%s6440_s6 + $0x69] sm:$0xff] }
 0x414   : > { %3260 = vst [vmem:[#allocation1 + $0x21] ss:$4 sm:$0xff] %v5870_v23 }
 0x415   : > { %3056 = vmatmul.f32.gmra.mxu2 %v7416_v58  ;;  %v7472_v58 = vpop.f32.mrf.mxu3  ;;  %3261 = vst [vmem:[#allocation1 + $0x22] ss:$4 sm:$0xff] %v3170_v10  ;;  %v7488_v10 = vpop.f32.mrf.mxu0 }
 0x416   : > { %3262 = vst [vmem:[#allocation1 + $0x23] ss:$4 sm:$0xff] %v3171_v25 }
 0x417   : > { %v3253_v2 = vld.sshfl [vmem:[#allocation1] sm:$0xff pattern:$0x73625140] }
 0x418   : > { %3397 = vmatmul.f32.vlgmr.msrb.gmra.mxu3 %v3253_v2  ;;  %3255 = vst [vmem:[#allocation1] ss:$4 sm:$0xff] %v5868_v7  ;;  %v7474_v7 = vpop.f32.mrf.mxu2  ;;  %v5872_v2 = vld [vmem:[%s6440_s6 + $0x61] sm:$0xff] }
 0x419   : > { %3256 = vst [vmem:[#allocation1 + $0x1] ss:$4 sm:$0xff] %v5869_v43  ;;  %v3172_v43 = vrot.slane %v5870_v23, 6  ;;  %v3173_v35 = vrot.slane %v5872_v2, 2  ;;  %v3175_v47 = vrot.slane %v5872_v2, 6  ;;  %v5945_v23 = vld [vmem:[%s9397_s1 + $0x418] sm:$0xff] }
 0x41a   : > { %3257 = vst [vmem:[#allocation1 + $0x2] ss:$4 sm:$0xff] %v3167_v40  ;;  %3782 = vmatpush.msrb.mxu0 %v5945_v23 }
 0x41b   : > { %3258 = vst [vmem:[#allocation1 + $0x3] ss:$4 sm:$0xff] %v3168_v14  ;;  %v3174_v14 = vrot.slane %v5872_v2, 4 }
 0x41c   : > { %9484 = vst [vmem:[#allocation49_spill] sm:$0xff] %v7474_v7 }
 0x41d   : > { %3059 = vmatmul.f32.gmra.mxu2 %v7419_v1  ;;  %v7480_v54 = vpop.f32.mrf.mxu3  ;;  %v3264_v57 = vld.sshfl [vmem:[#allocation1 + $0x20] sm:$0xff pattern:$0x73625140]  ;;  %v3176_v1 = vrot.slane %v5873_v60, 2 }
 0x41e   : > { %3269 = vst [vmem:[#allocation1 + $0x20] ss:$4 sm:$0xff] %v3174_v14 }
 0x41f   : > { %3270 = vst [vmem:[#allocation1 + $0x21] ss:$4 sm:$0xff] %v3175_v47 }
 0x420   : > { %3400 = vmatmul.f32.gmra.mxu3 %v3254_v27  ;;  %v7483_v25 = vpop.f32.mrf.mxu2  ;;  %3271 = vst [vmem:[#allocation1 + $0x22] ss:$4 sm:$0xff] %v5873_v60  ;;  %v3177_v27 = vrot.slane %v5873_v60, 4 }
 0x421   : > { %9485 = vst [vmem:[#allocation50_spill] sm:$0xff] %v7483_v25  ;;  %v3187_v25 = vrot.slane %v5878_v31, 6 }
 0x422   : > { %v3263_v40 = vld.sshfl [vmem:[#allocation1] sm:$0xff pattern:$0x73625140]  ;;  %3272 = vst [vmem:[#allocation1 + $0x23] ss:$4 sm:$0xff] %v3176_v1 }
 0x423   : > { %3265 = vst [vmem:[#allocation1] ss:$4 sm:$0xff] %v3172_v43 }
 0x424   : > { %3266 = vst [vmem:[#allocation1 + $0x1] ss:$4 sm:$0xff] %v5871_v19  ;;  %v5875_v19 = vld [vmem:[%s6440_s6 + $0x79] sm:$0xff] }
 0x425   : > { %3267 = vst [vmem:[#allocation1 + $0x2] ss:$4 sm:$0xff] %v5872_v2  ;;  %3062 = vmatmul.f32.gmra.mxu2 %v7427_v48  ;;  %v5874_v2 = vld [vmem:[%s6440_s6 + $0x71] sm:$0x3]  ;;  %v3179_v48 = vrot.slane %v5875_v19, 2  ;;  %v3180_v47 = vrot.slane %v5875_v19, 4 }
 0x426   : > { %3268 = vst [vmem:[#allocation1 + $0x3] ss:$4 sm:$0xff] %v3173_v35  ;;  %v3178_v35 = vrot.slane %v5873_v60, 6  ;;  %v3181_v14 = vrot.slane %v5875_v19, 6  ;;  %v5944_v60 = vld [vmem:[%s9397_s1 + $0x410] sm:$0xff] }
 0x427   : > { %3783 = vmatpush.msrb.mxu0 %v5944_v60 }
 0x428   : > { %3403 = vmatmul.f32.gmra.mxu3 %v3263_v40  ;;  %v7493_v40 = vpop.f32.mrf.mxu3  ;;  %v7498_v23 = vpop.f32.mrf.mxu2 }
 0x429   : > { %9486 = vst [vmem:[#allocation51_spill] sm:$0xff] %v7493_v40  ;;  %v3274_v1 = vld.sshfl [vmem:[#allocation1 + $0x20] sm:$0xff pattern:$0x73625140] }
 0x42a   : > { %9487 = vst [vmem:[#allocation52_spill] sm:$0xff] %v7498_v23  ;;  %v3186_v23 = vrot.slane %v5878_v31, 4 }
 0x42b   : > { %3279 = vst [vmem:[#allocation1 + $0x20] ss:$4 sm:$0xff] %v3179_v48  ;;  %v3185_v48 = vrot.slane %v5878_v31, 2 }
 0x42c   : > { %3280 = vst [vmem:[#allocation1 + $0x21] ss:$4 sm:$0xff] %v3180_v47 }
 0x42d   : > { %v3273_v43 = vld.sshfl [vmem:[#allocation1] sm:$0xff pattern:$0x73625140]  ;;  %3065 = vmatmul.f32.gmra.mxu2 %v7436_v12  ;;  %v5876_v12 = vld [vmem:[%s6440_s6 + $0x81] sm:$0xff]  ;;  %3281 = vst [vmem:[#allocation1 + $0x22] ss:$4 sm:$0xff] %v3181_v14 }
 0x42e   : > { %3275 = vst [vmem:[#allocation1] ss:$4 sm:$0xff] %v3177_v27  ;;  %v7501_v27 = vpop.f32.mrf.mxu0 }
 0x42f   : > { %3276 = vst [vmem:[#allocation1 + $0x1] ss:$4 sm:$0xff] %v3178_v35  ;;  %v3183_v35 = vrot.slane %v5876_v12, 4 }
 0x430   : > { %3406 = vmatmul.f32.gmra.mxu3 %v3264_v57  ;;  %3277 = vst [vmem:[#allocation1 + $0x2] ss:$4 sm:$0xff] %v5874_v2  ;;  %v3182_v57 = vrot.slane %v5876_v12, 2  ;;  %v3184_v2 = vrot.slane %v5876_v12, 6  ;;  %v7506_v60 = vpop.f32.mrf.mxu3  ;;  %v7508_v47 = vpop.f32.mrf.mxu2 }
 0x431   : > { %3278 = vst [vmem:[#allocation1 + $0x3] ss:$4 sm:$0xff] %v5875_v19  ;;  %v5877_v19 = vld [vmem:[%s6440_s6 + $0x89] sm:$0x3] }
 0x432   : > { %3282 = vst [vmem:[#allocation1 + $0x23] ss:$4 sm:$0xff] %v5876_v12  ;;  %v4427_v12 = vld [vmem:[%s9399_s3 + $0x78] sm:$0xff] }
 0x433   : > { %9488 = vst [vmem:[#allocation53_spill] sm:$0xff] %v7506_v60  ;;  %4591 = vmatpush.msra.mxu2 %v4427_v12 }
 0x434   : > { %9489 = vst [vmem:[#allocation54_spill] sm:$0xff] %v7508_v47 }
 0x435   : > { %3068 = vmatmul.f32.gmra.mxu2 %v7441_v28  ;;  %v5879_v28 = vld [vmem:[%s6440_s6 + $0x99] sm:$0xff] }
 0x436   : > { %v7510_v63 = vpop.f32.mrf.mxu0 }
 0x438   : > { %3409 = vmatmul.f32.gmra.mxu3 %v3273_v43  ;;  %v3283_v49 = vld.sshfl [vmem:[#allocation1] sm:$0xff pattern:$0x73625140]  ;;  %v5943_v43 = vld [vmem:[%s9397_s1 + $0x408] sm:$0xff] }
 0x439   : > { %3285 = vst [vmem:[#allocation1] ss:$4 sm:$0xff] %v3182_v57  ;;  %v3284_v14 = vld.sshfl [vmem:[#allocation1 + $0x20] sm:$0xff pattern:$0x73625140]  ;;  %3784 = vmatpush.msrb.mxu0 %v5943_v43  ;;  %v3189_v57 = vrot.slane %v5879_v28, 4 }
 0x43a   : > { %3286 = vst [vmem:[#allocation1 + $0x1] ss:$4 sm:$0xff] %v3183_v35  ;;  %v3190_v35 = vrot.slane %v5879_v28, 6 }
 0x43b   : > { %3287 = vst [vmem:[#allocation1 + $0x2] ss:$4 sm:$0xff] %v3184_v2  ;;  %v7520_v2 = vpop.f32.mrf.mxu3 }
 0x43c   : > { %3288 = vst [vmem:[#allocation1 + $0x3] ss:$4 sm:$0xff] %v5877_v19 }
 0x43d   : > { %3289 = vst [vmem:[#allocation1 + $0x20] ss:$4 sm:$0xff] %v5878_v31  ;;  %3071 = vmatmul.f32.gmra.mxu2 %v7451_v42  ;;  %v3188_v31 = vrot.slane %v5879_v28, 2 }
 0x43e   : > { %3290 = vst [vmem:[#allocation1 + $0x21] ss:$4 sm:$0xff] %v3185_v48  ;;  %v7527_v48 = vpop.f32.mrf.mxu0 }
 0x43f   : > { %3291 = vst [vmem:[#allocation1 + $0x22] ss:$4 sm:$0xff] %v3186_v23  ;;  %v7524_v23 = vpop.f32.mrf.mxu2 }
 0x440   : > { %3412 = vmatmul.f32.gmra.mxu3 %v3274_v1  ;;  %3292 = vst [vmem:[#allocation1 + $0x23] ss:$4 sm:$0xff] %v3187_v25  ;;  %v5880_v1 = vld [vmem:[%s6440_s6 + $0xa1] sm:$0x3]  ;;  %v5881_v25 = vld [vmem:[%s6440_s6 + $0xa9] sm:$0xff] }
 0x441   : > { %9490 = vst [vmem:[#allocation55_spill] sm:$0xff] %v7520_v2  ;;  %v3191_v19 = vrot.slane %v5881_v25, 2  ;;  %v3192_v12 = vrot.slane %v5881_v25, 4 }
 0x442   : > { %9491 = vst [vmem:[#allocation56_spill] sm:$0xff] %v7524_v23 }
 0x443   : > { %v3293_v42 = vld.sshfl [vmem:[#allocation1] sm:$0xff pattern:$0x73625140] }
 0x444   : > { %3295 = vst [vmem:[#allocation1] ss:$4 sm:$0xff] %v5879_v28  ;;  %v5977_v28 = vld [vmem:[%s9399_s3 + $0xf8] sm:$0xff] }
 0x445   : > { %3296 = vst [vmem:[#allocation1 + $0x1] ss:$4 sm:$0xff] %v3188_v31  ;;  %3074 = vmatmul.f32.gmra.mxu2 %v7455_v32  ;;  %v5942_v31 = vld [vmem:[%s9397_s1 + $0x400] sm:$0xff]  ;;  %4526 = vmatpush.msra.mxu1 %v5977_v28  ;;  %v5884_v28 = vld [vmem:[%s6440_s6 + $0xc1] sm:$0xff] }
 0x446   : > { %3297 = vst [vmem:[#allocation1 + $0x2] ss:$4 sm:$0xff] %v3189_v57  ;;  %3785 = vmatpush.msrb.mxu0 %v5942_v31  ;;  %v5882_v32 = vld [vmem:[%s6440_s6 + $0xb1] sm:$0xff]  ;;  %v3193_v57 = vrot.slane %v5881_v25, 6  ;;  %v3197_v31 = vrot.slane %v5884_v28, 2  ;;  %v3198_v7 = vrot.slane %v5884_v28, 4 }
 0x447   : > { %v3294_v43 = vld.sshfl [vmem:[#allocation1 + $0x20] sm:$0xff pattern:$0x73625140]  ;;  %3298 = vst [vmem:[#allocation1 + $0x3] ss:$4 sm:$0xff] %v3190_v35  ;;  %v3194_v23 = vrot.slane %v5882_v32, 2  ;;  %v7536_v35 = vpop.f32.mrf.mxu3 }
 0x448   : > { %3415 = vmatmul.f32.gmra.mxu3 %v3283_v49  ;;  %3299 = vst [vmem:[#allocation1 + $0x20] ss:$4 sm:$0xff] %v5880_v1  ;;  %v3195_v47 = vrot.slane %v5882_v32, 4  ;;  %v3196_v33 = vrot.slane %v5882_v32, 6  ;;  %v4426_v1 = vld [vmem:[%s9399_s3 + $0x70] sm:$0xff]  ;;  %v3199_v46 = vrot.slane %v5884_v28, 6 }
 0x449   : > { %3300 = vst [vmem:[#allocation1 + $0x21] ss:$4 sm:$0xff] %v5881_v25  ;;  %v5976_v25 = vld [vmem:[%s9399_s3 + $0xf0] sm:$0xff]  ;;  %4592 = vmatpush.msra.mxu2 %v4426_v1 }
 0x44a   : > { %3301 = vst [vmem:[#allocation1 + $0x22] ss:$4 sm:$0xff] %v3191_v19  ;;  %v7544_v19 = vpop.f32.mrf.mxu0  ;;  %4527 = vmatpush.msra.mxu1 %v5976_v25 }
 0x44b   : > { %3302 = vst [vmem:[#allocation1 + $0x23] ss:$4 sm:$0xff] %v3192_v12 }
 0x44c   : > { %9492 = vst [vmem:[#allocation57_spill] sm:$0xff] %v7536_v35 }
 0x44e   : > { %v3303_v49 = vld.sshfl [vmem:[#allocation1] sm:$0xff pattern:$0x73625140] }
 0x44f   : > { %3305 = vst [vmem:[#allocation1] ss:$4 sm:$0xff] %v3193_v57  ;;  %v5885_v57 = vld [vmem:[%s6440_s6 + $0xc9] sm:$0xff] }
 0x450   : > { %3418 = vmatmul.f32.gmra.mxu3 %v3284_v14  ;;  %3306 = vst [vmem:[#allocation1 + $0x1] ss:$4 sm:$0xff] %v5882_v32  ;;  %v5883_v14 = vld [vmem:[%s6440_s6 + $0xb9] sm:$0x3]  ;;  %v7549_v32 = vpop.f32.mrf.mxu3  ;;  %v3200_v25 = vrot.slane %v5885_v57, 2 }
 0x451   : > { %3307 = vst [vmem:[#allocation1 + $0x2] ss:$4 sm:$0xff] %v3194_v23  ;;  %v3201_v23 = vrot.slane %v5885_v57, 4 }
 0x452   : > { %v3304_v12 = vld.sshfl [vmem:[#allocation1 + $0x20] sm:$0xff pattern:$0x73625140]  ;;  %3308 = vst [vmem:[#allocation1 + $0x3] ss:$4 sm:$0xff] %v3195_v47  ;;  %v7551_v47 = vpop.f32.mrf.mxu0 }
 0x453   : > { %3309 = vst [vmem:[#allocation1 + $0x20] ss:$4 sm:$0xff] %v3196_v33  ;;  %v3202_v33 = vrot.slane %v5885_v57, 6 }
 0x454   : > { %3311 = vst [vmem:[#allocation1 + $0x22] ss:$4 sm:$0xff] %v5884_v28 }
 0x455   : > { %3310 = vst [vmem:[#allocation1 + $0x21] ss:$4 sm:$0xff] %v5883_v14 }
 0x456   : > { %3312 = vst [vmem:[#allocation1 + $0x23] ss:$4 sm:$0xff] %v3197_v31  ;;  %v5886_v31 = vld [vmem:[%s6440_s6 + $0xd1] sm:$0x3] }
 0x457   : > { %9493 = vst [vmem:[#allocation58_spill] sm:$0xff] %v7549_v32  ;;  %v3205_v32 = vrot.slane %v5887_v16, 6 }
 0x458   : > { %3421 = vmatmul.f32.gmra.mxu3 %v3293_v42  ;;  %v3203_v42 = vrot.slane %v5887_v16, 2  ;;  %v7557_v28 = vpop.f32.mrf.mxu3 }
 0x459   : > { %v3313_v1 = vld.sshfl [vmem:[#allocation1] sm:$0xff pattern:$0x73625140]  ;;  %9494 = vst [vmem:[#allocation59_spill] sm:$0xff] %v7557_v28  ;;  %v5889_v28 = vld [vmem:[%s6440_s6 + $0xe9] sm:$0x3] }
 0x45a   : > { %3315 = vst [vmem:[#allocation1] ss:$4 sm:$0xff] %v3198_v7  ;;  %v3204_v7 = vrot.slane %v5887_v16, 4 }
 0x45b   : > { %3316 = vst [vmem:[#allocation1 + $0x1] ss:$4 sm:$0xff] %v3199_v46 }
 0x45c   : > { %3317 = vst [vmem:[#allocation1 + $0x2] ss:$4 sm:$0xff] %v5885_v57  ;;  %v7561_v57 = vpop.f32.mrf.mxu0 }
 0x45d   : > { %3318 = vst [vmem:[#allocation1 + $0x3] ss:$4 sm:$0xff] %v3200_v25  ;;  %v7553_v14 = vld.sshfl [vmem:[#allocation1 + $0x20] sm:$0xff pattern:$0x73625140]  ;;  %v5888_v25 = vld [vmem:[%s6440_s6 + $0xe1] sm:$0xff] }
 0x45e   : > { %3319 = vst [vmem:[#allocation1 + $0x20] ss:$4 sm:$0xff] %v3201_v23  ;;  %v3206_v45 = vrot.slane %v5888_v25, 2  ;;  %v3207_v23 = vrot.slane %v5888_v25, 4 }
 0x45f   : > { %3320 = vst [vmem:[#allocation1 + $0x21] ss:$4 sm:$0xff] %v3202_v33 }
 0x460   : > { %3424 = vmatmul.f32.gmra.mxu3 %v3294_v43  ;;  %3322 = vst [vmem:[#allocation1 + $0x23] ss:$4 sm:$0xff] %v5887_v16  ;;  %v3208_v43 = vrot.slane %v5888_v25, 6  ;;  %v7568_v16 = vpop.f32.mrf.mxu3 }
 0x461   : > { %3321 = vst [vmem:[#allocation1 + $0x22] ss:$4 sm:$0xff] %v5886_v31  ;;  %v5890_v31 = vld [vmem:[%s6440_s6 + $0xf1] sm:$0xff] }
 0x462   : > { %9495 = vst [vmem:[#allocation60_spill] sm:$0xff] %v7561_v57  ;;  %v3209_v35 = vrot.slane %v5890_v31, 2 }
 0x463   : > { %9496 = vst [vmem:[#allocation61_spill] sm:$0xff] %v7568_v16  ;;  %v5893_v16 = vld [vmem:[%s6440_s6 + $0x109] sm:$0xff] }
 0x464   : > { %v7559_v46 = vld.sshfl [vmem:[#allocation1] sm:$0xff pattern:$0x73625140] }
 0x465   : > { %3325 = vst [vmem:[#allocation1] ss:$4 sm:$0xff] %v3203_v42  ;;  %v3210_v42 = vrot.slane %v5890_v31, 4 }
 0x466   : > { %3326 = vst [vmem:[#allocation1 + $0x1] ss:$4 sm:$0xff] %v3204_v7  ;;  %v7570_v7 = vpop.f32.mrf.mxu0 }
 0x467   : > { %3327 = vst [vmem:[#allocation1 + $0x2] ss:$4 sm:$0xff] %v3205_v32  ;;  %v3211_v32 = vrot.slane %v5890_v31, 6 }
 0x468   : > { %3427 = vmatmul.f32.gmra.mxu3 %v3303_v49  ;;  %3328 = vst [vmem:[#allocation1 + $0x3] ss:$4 sm:$0xff] %v5888_v25  ;;  %v7564_v33 = vld.sshfl [vmem:[#allocation1 + $0x20] sm:$0xff pattern:$0x73625140]  ;;  %v3213_v25 = vrot.slane %v5891_v22, 4 }
 0x469   : > { %3329 = vst [vmem:[#allocation1 + $0x20] ss:$4 sm:$0xff] %v3206_v45  ;;  %v3212_v45 = vrot.slane %v5891_v22, 2 }
 0x46a   : > { %3330 = vst [vmem:[#allocation1 + $0x21] ss:$4 sm:$0xff] %v3207_v23  ;;  %v3214_v23 = vrot.slane %v5891_v22, 6 }
 0x46b   : > { %3331 = vst [vmem:[#allocation1 + $0x22] ss:$4 sm:$0xff] %v3208_v43 }
 0x46c   : > { %3332 = vst [vmem:[#allocation1 + $0x23] ss:$4 sm:$0xff] %v5889_v28  ;;  %v7577_v28 = vpop.f32.mrf.mxu3 }
 0x46d   : > { %9497 = vst [vmem:[#allocation62_spill] sm:$0xff] %v7570_v7  ;;  %v6007_v7 = vld [vmem:[%s9399_s3 + $0x168] sm:$0xff] }
 0x46e   : > { %9498 = vst [vmem:[#allocation63_spill] sm:$0xff] %v7577_v28  ;;  %v5894_v28 = vld [vmem:[%s6440_s6 + $0x111] sm:$0xff] }
 0x46f   : > { %v7572_v49 = vld.sshfl [vmem:[#allocation1] sm:$0xff pattern:$0x73625140] }
 0x470   : > { %3430 = vmatmul.f32.gmra.mxu3 %v3304_v12  ;;  %3335 = vst [vmem:[#allocation1] ss:$4 sm:$0xff] %v5890_v31  ;;  %v7581_v12 = vpop.f32.mrf.mxu0  ;;  %v3216_v31 = vrot.slane %v5893_v16, 4 }
 0x471   : > { %3336 = vst [vmem:[#allocation1 + $0x1] ss:$4 sm:$0xff] %v3209_v35  ;;  %v3215_v35 = vrot.slane %v5893_v16, 2 }
 0x472   : > { %3337 = vst [vmem:[#allocation1 + $0x2] ss:$4 sm:$0xff] %v3210_v42 }
 0x473   : > { %3338 = vst [vmem:[#allocation1 + $0x3] ss:$4 sm:$0xff] %v3211_v32  ;;  %v7575_v43 = vld.sshfl [vmem:[#allocation1 + $0x20] sm:$0xff pattern:$0x73625140]  ;;  %v4425_v32 = vld [vmem:[%s9399_s3 + $0x68] sm:$0xff] }
 0x474   : > { %3339 = vst [vmem:[#allocation1 + $0x20] ss:$4 sm:$0xff] %v5891_v22  ;;  %4593 = vmatpush.msra.mxu2 %v4425_v32  ;;  %v3217_v22 = vrot.slane %v5893_v16, 6 }
 0x475   : > { %3340 = vst [vmem:[#allocation1 + $0x21] ss:$4 sm:$0xff] %v3212_v45  ;;  %v3219_v45 = vrot.slane %v5894_v28, 4 }
 0x476   : > { %3341 = vst [vmem:[#allocation1 + $0x22] ss:$4 sm:$0xff] %v3213_v25 }
 0x477   : > { %3342 = vst [vmem:[#allocation1 + $0x23] ss:$4 sm:$0xff] %v3214_v23  ;;  %v7591_v23 = vpop.f32.mrf.mxu3 }
 0x478   : > { %3433 = vmatmul.f32.gmra.mxu3 %v3313_v1  ;;  %9499 = vst [vmem:[#allocation64_spill] sm:$0xff] %v7581_v12  ;;  %v3218_v1 = vrot.slane %v5894_v28, 2 }
 0x479   : > { %9500 = vst [vmem:[#allocation65_spill] sm:$0xff] %v7591_v23 }
 0x47a   : > { %v7583_v42 = vld.sshfl [vmem:[#allocation1] sm:$0xff pattern:$0x73625140] }
 0x47b   : > { %3345 = vst [vmem:[#allocation1] ss:$4 sm:$0xff] %v5892_v61  ;;  %v3220_v61 = vrot.slane %v5894_v28, 6 }
 0x47c   : > { %3346 = vst [vmem:[#allocation1 + $0x1] ss:$4 sm:$0xff] %v5893_v16  ;;  %v5975_v16 = vld [vmem:[%s9399_s3 + $0xe8] sm:$0xff] }
 0x47d   : > { %3347 = vst [vmem:[#allocation1 + $0x2] ss:$4 sm:$0xff] %v3215_v35  ;;  %v7597_v35 = vpop.f32.mrf.mxu0  ;;  %4528 = vmatpush.msra.mxu1 %v5975_v16  ;;  %v5974_v16 = vld [vmem:[%s9399_s3 + $0xe0] sm:$0xff] }
 0x47e   : > { %3348 = vst [vmem:[#allocation1 + $0x3] ss:$4 sm:$0xff] %v3216_v31  ;;  %v7589_v25 = vld.sshfl [vmem:[#allocation1 + $0x20] sm:$0xff pattern:$0x73625140] }
 0x47f   : > { %3349 = vst [vmem:[#allocation1 + $0x20] ss:$4 sm:$0xff] %v3217_v22  ;;  %v5895_v31 = vld [vmem:[%s6440_s6 + $0x119] sm:$0x3]  ;;  %4529 = vmatpush.msra.mxu1 %v5974_v16  ;;  %v3559_v16 = vrot.slane %v5916_v39, 2 }
 0x480   : > { %3436 = vmatmul.f32.gmra.mxu3 %v7553_v14  ;;  %3350 = vst [vmem:[#allocation1 + $0x21] ss:$4 sm:$0xff] %v5894_v28  ;;  %v3553_v14 = vrot.slane %v5913_v34, 2  ;;  %v5912_v22 = vld [vmem:[%s6440_s6 + $0x32] sm:$0xff]  ;;  %v3554_v28 = vrot.slane %v5913_v34, 4 }
 0x481   : > { %3351 = vst [vmem:[#allocation1 + $0x22] ss:$4 sm:$0xff] %v3218_v1  ;;  %v7605_v1 = vpop.f32.mrf.mxu3 }
 0x482   : > { %9501 = vst [vmem:[#allocation66_spill] sm:$0xff] %v7597_v35  ;;  %v3552_v35 = vrot.slane %v5912_v22, 6 }
 0x483   : > { %3352 = vst [vmem:[#allocation1 + $0x23] ss:$4 sm:$0xff] %v3219_v45  ;;  %v4424_v45 = vld [vmem:[%s9399_s3 + $0x60] sm:$0xff] }
 0x484   : > { %9502 = vst [vmem:[#allocation67_spill] sm:$0xff] %v7605_v1  ;;  %4594 = vmatpush.msra.mxu2 %v4424_v45 }
 0x485   : > { %v7600_v32 = vld.sshfl [vmem:[#allocation1] sm:$0xff pattern:$0x73625140] }
 0x486   : > { %3355 = vst [vmem:[#allocation1] ss:$4 sm:$0xff] %v3220_v61  ;;  %v7615_v61 = vpop.f32.mrf.mxu0 }
 0x487   : > { %3356 = vst [vmem:[#allocation1 + $0x1] ss:$4 sm:$0xff] %v5895_v31  ;;  %v3551_v31 = vrot.slane %v5912_v22, 4 }
 0x488   : > { %3439 = vmatmul.f32.gmra.mxu3 %v7559_v46  ;;  %v3550_v46 = vrot.slane %v5912_v22, 2  ;;  %9503 = vst [vmem:[#allocation68_spill] sm:$0xff] %v7615_v61 }
 0x48a   : > { %v7607_v23 = vld.sshfl [vmem:[#allocation1 + $0x20] sm:$0xff pattern:$0x73625140] }
 0x48b   : > { %3635 = vst [vmem:[#allocation1 + $0x20] ss:$4 sm:$0xff] %v5913_v34  ;;  %v5915_v34 = vld [vmem:[%s6440_s6 + $0x4a] sm:$0xff] }
 0x48c   : > { %3637 = vst [vmem:[#allocation1 + $0x21] ss:$4 sm:$0xff] %v3553_v14  ;;  %v3558_v45 = vrot.slane %v5915_v34, 6  ;;  %v4423_v14 = vld [vmem:[%s9399_s3 + $0x58] sm:$0xff] }
 0x48d   : > { %3639 = vst [vmem:[#allocation1 + $0x22] ss:$4 sm:$0xff] %v3554_v28  ;;  %4595 = vmatpush.msra.mxu2 %v4423_v14  ;;  %v7625_v28 = vpop.f32.mrf.mxu3  ;;  %v5973_v14 = vld [vmem:[%s9399_s3 + $0xd8] sm:$0xff] }
 0x48e   : > { %v7617_v1 = vld.sshfl [vmem:[#allocation1] sm:$0xff pattern:$0x73625140]  ;;  %3641 = vst [vmem:[#allocation1 + $0x23] ss:$4 sm:$0xff] %v3555_v56  ;;  %v3560_v56 = vrot.slane %v5916_v39, 4  ;;  %4530 = vmatpush.msra.mxu1 %v5973_v14 }
 0x48f   : > { %3627 = vst [vmem:[#allocation1] ss:$4 sm:$0xff] %v5912_v22  ;;  %v7627_v22 = vpop.f32.mrf.mxu0 }
 0x490   : > { %3629 = vst [vmem:[#allocation1 + $0x1] ss:$4 sm:$0xff] %v3550_v46  ;;  %3442 = vmatmul.f32.gmra.mxu3 %v7564_v33  ;;  %v5914_v33 = vld [vmem:[%s6440_s6 + $0x42] sm:$0x3]  ;;  %v3556_v46 = vrot.slane %v5915_v34, 2 }
 0x491   : > { %3631 = vst [vmem:[#allocation1 + $0x2] ss:$4 sm:$0xff] %v3551_v31  ;;  %v3557_v31 = vrot.slane %v5915_v34, 4 }
 0x492   : > { %3633 = vst [vmem:[#allocation1 + $0x3] ss:$4 sm:$0xff] %v3552_v35 }
 0x493   : > { %9504 = vst [vmem:[#allocation69_spill] sm:$0xff] %v7625_v28 }
 0x494   : > { %9505 = vst [vmem:[#allocation70_spill] sm:$0xff] %v7627_v22  ;;  %v5919_v22 = vld [vmem:[%s6440_s6 + $0x6a] sm:$0xff] }
 0x495   : > { %v3643_v61 = vld.sshfl [vmem:[#allocation1 + $0x20] sm:$0xff pattern:$0x73625140] }
 0x496   : > { %3648 = vst [vmem:[#allocation1 + $0x20] ss:$4 sm:$0xff] %v3558_v45  ;;  %v5918_v45 = vld [vmem:[%s6440_s6 + $0x62] sm:$0xff] }
 0x497   : > { %3649 = vst [vmem:[#allocation1 + $0x21] ss:$4 sm:$0xff] %v5916_v39  ;;  %v3563_v28 = vrot.slane %v5918_v45, 4  ;;  %v3562_v14 = vrot.slane %v5918_v45, 2 }
 0x498   : > { %3650 = vst [vmem:[#allocation1 + $0x22] ss:$4 sm:$0xff] %v3559_v16  ;;  %3445 = vmatmul.f32.gmra.mxu3 %v7572_v49  ;;  %v7636_v16 = vpop.f32.mrf.mxu3  ;;  %v3564_v49 = vrot.slane %v5918_v45, 6 }
 0x499   : > { %v3642_v35 = vld.sshfl [vmem:[#allocation1] sm:$0xff pattern:$0x73625140]  ;;  %3651 = vst [vmem:[#allocation1 + $0x23] ss:$4 sm:$0xff] %v3560_v56  ;;  %v3565_v56 = vrot.slane %v5919_v22, 2 }
 0x49a   : > { %3786 = vmatmul.f32.vlgmr.msrb.gmra.mxu0 %v3642_v35  ;;  %3644 = vst [vmem:[#allocation1] ss:$4 sm:$0xff] %v5914_v33  ;;  %v7639_v33 = vpop.f32.mrf.mxu0  ;;  %v3561_v35 = vrot.slane %v5916_v39, 6  ;;  %v5921_v39 = vld [vmem:[%s6440_s6 + $0x7a] sm:$0xff] }
 0x49b   : > { %3645 = vst [vmem:[#allocation1 + $0x1] ss:$4 sm:$0xff] %v5915_v34  ;;  %v4422_v34 = vld [vmem:[%s9399_s3 + $0x50] sm:$0xff] }
 0x49c   : > { %3646 = vst [vmem:[#allocation1 + $0x2] ss:$4 sm:$0xff] %v3556_v46  ;;  %v5972_v46 = vld [vmem:[%s9399_s3 + $0xd0] sm:$0xff]  ;;  %4596 = vmatpush.msra.mxu2 %v4422_v34  ;;  %v4421_v34 = vld [vmem:[%s9399_s3 + $0x48] sm:$0xff] }
 0x49d   : > { %3647 = vst [vmem:[#allocation1 + $0x3] ss:$4 sm:$0xff] %v3557_v31  ;;  %v5917_v31 = vld [vmem:[%s6440_s6 + $0x5a] sm:$0x3]  ;;  %4531 = vmatpush.msra.mxu1 %v5972_v46  ;;  %v3566_v46 = vrot.slane %v5919_v22, 4 }
 0x49e   : > { %9506 = vst [vmem:[#allocation71_spill] sm:$0xff] %v7636_v16  ;;  %v3570_v16 = vrot.slane %v5921_v39, 6  ;;  %4597 = vmatpush.msra.mxu2 %v4421_v34  ;;  %v5924_v34 = vld [vmem:[%s6440_s6 + $0x92] sm:$0xff] }
 0x49f   : > { %9507 = vst [vmem:[#allocation72_spill] sm:$0xff] %v7639_v33 }
 0x4a0   : > { %v3653_v2 = vld.sshfl [vmem:[#allocation1 + $0x20] sm:$0xff pattern:$0x73625140]  ;;  %3448 = vmatmul.f32.gmra.mxu3 %v7575_v43 }
 0x4a1   : > { %3658 = vst [vmem:[#allocation1 + $0x20] ss:$4 sm:$0xff] %v3563_v28  ;;  %v3568_v28 = vrot.slane %v5921_v39, 2 }
 0x4a2   : > { %3789 = vmatmul.f32.gmra.mxu0 %v3643_v61  ;;  %3659 = vst [vmem:[#allocation1 + $0x21] ss:$4 sm:$0xff] %v3564_v49  ;;  %v7649_v61 = vpop.f32.mrf.mxu3  ;;  %v3569_v49 = vrot.slane %v5921_v39, 4 }
 0x4a3   : > { %3660 = vst [vmem:[#allocation1 + $0x22] ss:$4 sm:$0xff] %v5919_v22 }
 0x4a4   : > { %v3652_v43 = vld.sshfl [vmem:[#allocation1] sm:$0xff pattern:$0x73625140]  ;;  %3661 = vst [vmem:[#allocation1 + $0x23] ss:$4 sm:$0xff] %v3565_v56  ;;  %v7658_v56 = vpop.f32.mrf.mxu0 }
 0x4a5   : > { %3654 = vst [vmem:[#allocation1] ss:$4 sm:$0xff] %v3561_v35 }
 0x4a6   : > { %3655 = vst [vmem:[#allocation1 + $0x1] ss:$4 sm:$0xff] %v5917_v31  ;;  %v3567_v31 = vrot.slane %v5919_v22, 6 }
 0x4a7   : > { %3656 = vst [vmem:[#allocation1 + $0x2] ss:$4 sm:$0xff] %v5918_v45  ;;  %v5971_v45 = vld [vmem:[%s9399_s3 + $0xc8] sm:$0xff] }
 0x4a8   : > { %9508 = vst [vmem:[#allocation73_spill] sm:$0xff] %v7649_v61  ;;  %3451 = vmatmul.f32.gmra.mxu3 %v7583_v42  ;;  %4532 = vmatpush.msra.mxu1 %v5971_v45  ;;  %v5922_v42 = vld [vmem:[%s6440_s6 + $0x82] sm:$0xff] }
 0x4a9   : > { %3657 = vst [vmem:[#allocation1 + $0x3] ss:$4 sm:$0xff] %v3562_v14  ;;  %v3572_v45 = vrot.slane %v5922_v42, 4 }
 0x4aa   : > { %3792 = vmatmul.f32.gmra.mxu0 %v3652_v43  ;;  %9509 = vst [vmem:[#allocation74_spill] sm:$0xff] %v7658_v56  ;;  %v5920_v43 = vld [vmem:[%s6440_s6 + $0x72] sm:$0x3]  ;;  %v7663_v61 = vpop.f32.mrf.mxu3 }
 0x4ab   : > { %v3663_v35 = vld.sshfl [vmem:[#allocation1 + $0x20] sm:$0xff pattern:$0x73625140]  ;;  %9510 = vst [vmem:[#allocation75_spill] sm:$0xff] %v7663_v61  ;;  %v3576_v61 = vrot.slane %v5924_v34, 6 }
 0x4ac   : > { %3668 = vst [vmem:[#allocation1 + $0x20] ss:$4 sm:$0xff] %v3568_v28  ;;  %v4420_v28 = vld [vmem:[%s9399_s3 + $0x40] sm:$0xff]  ;;  %v7668_v22 = vpop.f32.mrf.mxu0 }
 0x4ad   : > { %3669 = vst [vmem:[#allocation1 + $0x21] ss:$4 sm:$0xff] %v3569_v49  ;;  %4598 = vmatpush.msra.mxu2 %v4420_v28 }
 0x4ae   : > { %3670 = vst [vmem:[#allocation1 + $0x22] ss:$4 sm:$0xff] %v3570_v16  ;;  %v3571_v16 = vrot.slane %v5922_v42, 2 }
 0x4af   : > { %3671 = vst [vmem:[#allocation1 + $0x23] ss:$4 sm:$0xff] %v5922_v42 }
 0x4b0   : > { %v3662_v14 = vld.sshfl [vmem:[#allocation1] sm:$0xff pattern:$0x73625140]  ;;  %3454 = vmatmul.f32.gmra.mxu3 %v7589_v25  ;;  %9511 = vst [vmem:[#allocation76_spill] sm:$0xff] %v7668_v22  ;;  %v3574_v25 = vrot.slane %v5924_v34, 2 }
 0x4b1   : > { %3664 = vst [vmem:[#allocation1] ss:$4 sm:$0xff] %v3566_v46  ;;  %v5929_v22 = vld [vmem:[%s6440_s6 + $0xba] sm:$0x3] }
 0x4b2   : > { %3665 = vst [vmem:[#allocation1 + $0x1] ss:$4 sm:$0xff] %v3567_v31  ;;  %3795 = vmatmul.f32.gmra.mxu0 %v3653_v2  ;;  %v3573_v2 = vrot.slane %v5922_v42, 6  ;;  %v5923_v31 = vld [vmem:[%s6440_s6 + $0x8a] sm:$0x3]  ;;  %v7678_v28 = vpop.f32.mrf.mxu3  ;;  %v5925_v42 = vld [vmem:[%s6440_s6 + $0x9a] sm:$0xff] }
 0x4b3   : > { %3666 = vst [vmem:[#allocation1 + $0x2] ss:$4 sm:$0xff] %v5920_v43  ;;  %v3575_v43 = vrot.slane %v5924_v34, 4 }
 0x4b4   : > { %3667 = vst [vmem:[#allocation1 + $0x3] ss:$4 sm:$0xff] %v5921_v39  ;;  %v5970_v39 = vld [vmem:[%s9399_s3 + $0xc0] sm:$0xff] }
 0x4b5   : > { %4533 = vmatpush.msra.mxu1 %v5970_v39  ;;  %9512 = vst [vmem:[#allocation77_spill] sm:$0xff] %v7678_v28  ;;  %v5927_v39 = vld [vmem:[%s6440_s6 + $0xaa] sm:$0xff] }
 0x4b6   : > { %v7670_v49 = vld.sshfl [vmem:[#allocation1 + $0x20] sm:$0xff pattern:$0x73625140]  ;;  %v3581_v28 = vrot.slane %v5927_v39, 4 }
 0x4b7   : > { %3678 = vst [vmem:[#allocation1 + $0x20] ss:$4 sm:$0xff] %v5924_v34  ;;  %v3577_v34 = vrot.slane %v5925_v42, 2 }
 0x4b8   : > { %3457 = vmatmul.f32.gmra.mxu3 %v7600_v32  ;;  %3679 = vst [vmem:[#allocation1 + $0x21] ss:$4 sm:$0xff] %v3574_v25  ;;  %v7680_v32 = vpop.f32.mrf.mxu0  ;;  %v3578_v25 = vrot.slane %v5925_v42, 4 }
 0x4b9   : > { %9513 = vst [vmem:[#allocation78_spill] sm:$0xff] %v7680_v32  ;;  %v5931_v32 = vld [vmem:[%s6440_s6 + $0xca] sm:$0xff] }
 0x4ba   : > { %3798 = vmatmul.f32.gmra.mxu0 %v3662_v14  ;;  %3680 = vst [vmem:[#allocation1 + $0x22] ss:$4 sm:$0xff] %v3575_v43  ;;  %v4419_v14 = vld [vmem:[%s9399_s3 + $0x38] sm:$0xff]  ;;  %v3580_v43 = vrot.slane %v5927_v39, 2 }
 0x4bb   : > { %v3672_v46 = vld.sshfl [vmem:[#allocation1] sm:$0xff pattern:$0x73625140]  ;;  %3681 = vst [vmem:[#allocation1 + $0x23] ss:$4 sm:$0xff] %v3576_v61  ;;  %4599 = vmatpush.msra.mxu2 %v4419_v14  ;;  %v3579_v61 = vrot.slane %v5925_v42, 6 }
 0x4bc   : > { %3674 = vst [vmem:[#allocation1] ss:$4 sm:$0xff] %v3571_v16  ;;  %v5969_v16 = vld [vmem:[%s9399_s3 + $0xb8] sm:$0xff] }
 0x4bd   : > { %3675 = vst [vmem:[#allocation1 + $0x1] ss:$4 sm:$0xff] %v3572_v45  ;;  %4534 = vmatpush.msra.mxu1 %v5969_v16  ;;  %v7690_v45 = vpop.f32.mrf.mxu2  ;;  %v5926_v16 = vld [vmem:[%s6440_s6 + $0xa2] sm:$0x3] }
 0x4be   : > { %3676 = vst [vmem:[#allocation1 + $0x2] ss:$4 sm:$0xff] %v3573_v2  ;;  %v7692_v2 = vpop.f32.mrf.mxu3 }
 0x4bf   : > { %3677 = vst [vmem:[#allocation1 + $0x3] ss:$4 sm:$0xff] %v5923_v31 }
 0x4c0   : > { %3460 = vmatmul.f32.gmra.mxu3 %v7607_v23  ;;  %9514 = vst [vmem:[#allocation79_spill] sm:$0xff] %v7690_v45  ;;  %v7698_v14 = vpop.f32.mrf.mxu0 }
 0x4c1   : > { %9515 = vst [vmem:[#allocation80_spill] sm:$0xff] %v7692_v2  ;;  %v5928_v2 = vld [vmem:[%s6440_s6 + $0xb2] sm:$0xff] }
 0x4c2   : > { %3801 = vmatmul.f32.gmra.mxu0 %v3663_v35  ;;  %v7694_v35 = vpop.f32.mrf.mxu1  ;;  %v3683_v31 = vld.sshfl [vmem:[#allocation1 + $0x20] sm:$0xff pattern:$0x73625140]  ;;  %9517 = vst [vmem:[#allocation82_spill] sm:$0xff] %v7698_v14 }
 0x4c3   : > { %9516 = vst [vmem:[#allocation81_spill] sm:$0xff] %v7694_v35 }
 0x4c4   : > { %3688 = vst [vmem:[#allocation1 + $0x20] ss:$4 sm:$0xff] %v5926_v16 }
 0x4c5   : > { %3689 = vst [vmem:[#allocation1 + $0x21] ss:$4 sm:$0xff] %v5927_v39 }
 0x4c6   : > { %v3682_v23 = vld.sshfl [vmem:[#allocation1] sm:$0xff pattern:$0x73625140]  ;;  %3690 = vst [vmem:[#allocation1 + $0x22] ss:$4 sm:$0xff] %v3580_v43  ;;  %v7707_v35 = vpop.f32.mrf.mxu3  ;;  %v5968_v43 = vld [vmem:[%s9399_s3 + $0xb0] sm:$0xff] }
 0x4c7   : > { %3684 = vst [vmem:[#allocation1] ss:$4 sm:$0xff] %v5925_v42  ;;  %v4418_v42 = vld [vmem:[%s9399_s3 + $0x30] sm:$0xff]  ;;  %4535 = vmatpush.msra.mxu1 %v5968_v43 }
 0x4c8   : > { %3685 = vst [vmem:[#allocation1 + $0x1] ss:$4 sm:$0xff] %v3577_v34  ;;  %3463 = vmatmul.f32.gmra.mxu3 %v7617_v1  ;;  %4600 = vmatpush.msra.mxu2 %v4418_v42  ;;  %v7704_v34 = vpop.f32.mrf.mxu2  ;;  %v3582_v1 = vrot.slane %v5927_v39, 6  ;;  %v3585_v39 = vrot.slane %v5928_v2, 6  ;;  %v5930_v42 = vld [vmem:[%s6440_s6 + $0xc2] sm:$0xff] }
 0x4c9   : > { %3686 = vst [vmem:[#allocation1 + $0x2] ss:$4 sm:$0xff] %v3578_v25  ;;  %v3583_v25 = vrot.slane %v5928_v2, 2  ;;  %v3587_v45 = vrot.slane %v5930_v42, 4  ;;  %v3588_v56 = vrot.slane %v5930_v42, 6 }
 0x4ca   : > { %3687 = vst [vmem:[#allocation1 + $0x3] ss:$4 sm:$0xff] %v3579_v61  ;;  %3804 = vmatmul.f32.gmra.mxu0 %v3672_v46  ;;  %v3584_v46 = vrot.slane %v5928_v2, 4  ;;  %v7711_v14 = vpop.f32.mrf.mxu1 }
 0x4cb   : > { %3691 = vst [vmem:[#allocation1 + $0x23] ss:$4 sm:$0xff] %v3581_v28  ;;  %v7717_v28 = vpop.f32.mrf.mxu0 }
 0x4cc   : > { %9518 = vst [vmem:[#allocation83_spill] sm:$0xff] %v7707_v35  ;;  %v3586_v35 = vrot.slane %v5930_v42, 2 }
 0x4cd   : > { %9519 = vst [vmem:[#allocation84_spill] sm:$0xff] %v7717_v28  ;;  %v5933_v28 = vld [vmem:[%s6440_s6 + $0xda] sm:$0xff] }
 0x4ce   : > { %v3594_v12 = vrot.slane %v5933_v28, 6 }
 0x4d1   : > { %v7709_v61 = vld.sshfl [vmem:[#allocation1] sm:$0xff pattern:$0x73625140] }
 0x4d2   : > { %3694 = vst [vmem:[#allocation1] ss:$4 sm:$0xff] %v3582_v1  ;;  %3807 = vmatmul.f32.gmra.mxu0 %v7670_v49  ;;  %v7719_v16 = vld.sshfl [vmem:[#allocation1 + $0x20] sm:$0xff pattern:$0x73625140]  ;;  %v7722_v1 = vpop.f32.mrf.mxu2  ;;  %v7724_v49 = vpop.f32.mrf.mxu3 }
 0x4d3   : > { %3695 = vst [vmem:[#allocation1 + $0x1] ss:$4 sm:$0xff] %v5928_v2  ;;  %v4417_v2 = vld [vmem:[%s9399_s3 + $0x28] sm:$0xff] }
 0x4d4   : > { %3696 = vst [vmem:[#allocation1 + $0x2] ss:$4 sm:$0xff] %v3583_v25  ;;  %v5967_v25 = vld [vmem:[%s9399_s3 + $0xa8] sm:$0xff]  ;;  %4601 = vmatpush.msra.mxu2 %v4417_v2  ;;  %v3591_v2 = vrot.slane %v5931_v32, 6 }
 0x4d5   : > { %3697 = vst [vmem:[#allocation1 + $0x3] ss:$4 sm:$0xff] %v3584_v46  ;;  %v7734_v46 = vpop.f32.mrf.mxu1  ;;  %4536 = vmatpush.msra.mxu1 %v5967_v25  ;;  %v3592_v25 = vrot.slane %v5933_v28, 2 }
 0x4d6   : > { %3698 = vst [vmem:[#allocation1 + $0x20] ss:$4 sm:$0xff] %v3585_v39  ;;  %v3589_v39 = vrot.slane %v5931_v32, 2 }
 0x4d7   : > { %3700 = vst [vmem:[#allocation1 + $0x22] ss:$4 sm:$0xff] %v5930_v42 }
 0x4d8   : > { %3699 = vst [vmem:[#allocation1 + $0x21] ss:$4 sm:$0xff] %v5929_v22 }
 0x4d9   : > { %3701 = vst [vmem:[#allocation1 + $0x23] ss:$4 sm:$0xff] %v3586_v35  ;;  %v6009_v35 = vld [vmem:[%s9399_s3 + $0x178] sm:$0xff] }
 0x4da   : > { %3810 = vmatmul.f32.gmra.mxu0 %v3682_v23  ;;  %v7738_v23 = vpop.f32.mrf.mxu0  ;;  %v7740_v42 = vpop.f32.mrf.mxu2  ;;  %4730 = vmatpush.msra.mxu3 %v6009_v35  ;;  %v5966_v35 = vld [vmem:[%s9399_s3 + $0xa0] sm:$0xff] }
 0x4db   : > { %9520 = vst [vmem:[#allocation85_spill] sm:$0xff] %v7738_v23  ;;  %v7743_v33 = vpop.f32.mrf.mxu3  ;;  %v5932_v23 = vld [vmem:[%s6440_s6 + $0xd2] sm:$0x3]  ;;  %4537 = vmatpush.msra.mxu1 %v5966_v35 }
 0x4dc   : > { %v7736_v43 = vld.sshfl [vmem:[#allocation1] sm:$0xff pattern:$0x73625140] }
 0x4dd   : > { %3704 = vst [vmem:[#allocation1] ss:$4 sm:$0xff] %v3587_v45  ;;  %v4416_v45 = vld [vmem:[%s9399_s3 + $0x20] sm:$0xff] }
 0x4de   : > { %3705 = vst [vmem:[#allocation1 + $0x1] ss:$4 sm:$0xff] %v3588_v56  ;;  %v3590_v56 = vrot.slane %v5931_v32, 4  ;;  %4602 = vmatpush.msra.mxu2 %v4416_v45  ;;  %v3595_v45 = vrot.slane %v5934_v24, 2 }
 0x4df   : > { %3706 = vst [vmem:[#allocation1 + $0x2] ss:$4 sm:$0xff] %v5931_v32 }
 0x4e0   : > { %3707 = vst [vmem:[#allocation1 + $0x3] ss:$4 sm:$0xff] %v3589_v39  ;;  %v7745_v22 = vld.sshfl [vmem:[#allocation1 + $0x20] sm:$0xff pattern:$0x73625140]  ;;  %v3593_v39 = vrot.slane %v5933_v28, 4 }
 0x4e1   : > { %3711 = vst [vmem:[#allocation1 + $0x23] ss:$4 sm:$0xff] %v5933_v28  ;;  %v6008_v28 = vld [vmem:[%s9399_s3 + $0x170] sm:$0xff] }
 0x4e2   : > { %3813 = vmatmul.f32.gmra.mxu0 %v3683_v31  ;;  %3708 = vst [vmem:[#allocation1 + $0x20] ss:$4 sm:$0xff] %v3590_v56  ;;  %v7753_v31 = vpop.f32.mrf.mxu1  ;;  %v7758_v60 = vpop.f32.mrf.mxu0  ;;  %4731 = vmatpush.msra.mxu3 %v6008_v28  ;;  %v3596_v56 = vrot.slane %v5934_v24, 4 }
 0x4e3   : > { %3709 = vst [vmem:[#allocation1 + $0x21] ss:$4 sm:$0xff] %v3591_v2  ;;  %v7761_v32 = vpop.f32.mrf.mxu2  ;;  %v5936_v2 = vld [vmem:[%s6440_s6 + $0xf2] sm:$0xff] }
 0x4e4   : > { %3710 = vst [vmem:[#allocation1 + $0x22] ss:$4 sm:$0xff] %v5932_v23  ;;  %v7770_v23 = vpop.f32.mrf.mxu3  ;;  %v3599_v20 = vrot.slane %v5936_v2, 4  ;;  %v3600_v28 = vrot.slane %v5936_v2, 6  ;;  %4732 = vmatpush.msra.mxu3 %v6007_v7 }
 0x4e5   : > { %9521 = vst [vmem:[#allocation86_spill] sm:$0xff] %v7758_v60  ;;  %v3598_v60 = vrot.slane %v5936_v2, 2 }
 0x4e7   : > { %v7756_v17 = vld.sshfl [vmem:[#allocation1] sm:$0xff pattern:$0x73625140] }
 0x4e8   : > { %3714 = vst [vmem:[#allocation1] ss:$4 sm:$0xff] %v3592_v25 }
 0x4e9   : > { %3715 = vst [vmem:[#allocation1 + $0x1] ss:$4 sm:$0xff] %v3593_v39 }
 0x4ea   : > { %3716 = vst [vmem:[#allocation1 + $0x2] ss:$4 sm:$0xff] %v3594_v12  ;;  %3816 = vmatmul.f32.gmra.mxu0 %v7709_v61  ;;  %v3597_v12 = vrot.slane %v5934_v24, 6  ;;  %v5935_v61 = vld [vmem:[%s6440_s6 + $0xea] sm:$0x3]  ;;  %v7776_v39 = vpop.f32.mrf.mxu1  ;;  %v7778_v36 = vpop.f32.mrf.mxu0 }
 0x4eb   : > { %3717 = vst [vmem:[#allocation1 + $0x3] ss:$4 sm:$0xff] %v5934_v24  ;;  %v7773_v25 = vld.sshfl [vmem:[#allocation1 + $0x20] sm:$0xff pattern:$0x73625140]  ;;  %v4415_v24 = vld [vmem:[%s9399_s3 + $0x18] sm:$0xff] }
 0x4ec   : > { %3718 = vst [vmem:[#allocation1 + $0x20] ss:$4 sm:$0xff] %v3595_v45  ;;  %v5965_v45 = vld [vmem:[%s9399_s3 + $0x98] sm:$0xff]  ;;  %4603 = vmatpush.msra.mxu2 %v4415_v24 }
 0x4ed   : > { %3719 = vst [vmem:[#allocation1 + $0x21] ss:$4 sm:$0xff] %v3596_v56  ;;  %4538 = vmatpush.msra.mxu1 %v5965_v45  ;;  %v7789_v56 = vpop.f32.mrf.mxu2 }
 0x4ee   : > { %3720 = vst [vmem:[#allocation1 + $0x22] ss:$4 sm:$0xff] %v3597_v12  ;;  %v5937_v12 = vld [vmem:[%s6440_s6 + $0xfa] sm:$0xff] }
 0x4ef   : > { %9522 = vst [vmem:[#allocation87_spill] sm:$0xff] %v7778_v36  ;;  %v3602_v36 = vrot.slane %v5937_v12, 4 }
 0x4f0   : > { %3721 = vst [vmem:[#allocation1 + $0x23] ss:$4 sm:$0xff] %v5935_v61  ;;  %v3601_v61 = vrot.slane %v5937_v12, 2 }
 0x4f2   : > { %v7780_v35 = vld.sshfl [vmem:[#allocation1] sm:$0xff pattern:$0x73625140]  ;;  %3819 = vmatmul.f32.gmra.mxu0 %v7719_v16  ;;  %v7792_v16 = vpop.f32.mrf.mxu3  ;;  %v7800_v24 = vpop.f32.mrf.mxu1 }
 0x4f3   : > { %3724 = vst [vmem:[#allocation1] ss:$4 sm:$0xff] %v5936_v2  ;;  %v5939_v2 = vld [vmem:[%s6440_s6 + $0x10a] sm:$0xff] }
 0x4f4   : > { %3725 = vst [vmem:[#allocation1 + $0x1] ss:$4 sm:$0xff] %v3598_v60  ;;  %v5938_v60 = vld [vmem:[%s6440_s6 + $0x102] sm:$0x3]  ;;  %v3604_v45 = vrot.slane %v5939_v2, 2  ;;  %v3605_v40 = vrot.slane %v5939_v2, 4 }
 0x4f5   : > { %3726 = vst [vmem:[#allocation1 + $0x2] ss:$4 sm:$0xff] %v3599_v20  ;;  %v6006_v20 = vld [vmem:[%s9399_s3 + $0x160] sm:$0xff]  ;;  %v7814_v57 = vpop.f32.mrf.mxu2 }
 0x4f6   : > { %3727 = vst [vmem:[#allocation1 + $0x3] ss:$4 sm:$0xff] %v3600_v28  ;;  %v7807_v28 = vpop.f32.mrf.mxu0  ;;  %4733 = vmatpush.msra.mxu3 %v6006_v20 }
 0x4f7   : > { %v7797_v4 = vld.sshfl [vmem:[#allocation1 + $0x20] sm:$0xff pattern:$0x73625140]  ;;  %9523 = vst [vmem:[#allocation88_spill] sm:$0xff] %v7807_v28  ;;  %v3606_v28 = vrot.slane %v5939_v2, 6 }
 0x4f8   : > { %3728 = vst [vmem:[#allocation1 + $0x20] ss:$4 sm:$0xff] %v5937_v12  ;;  %4734 = vmatpush.msra.mxu3 %v6005_v8  ;;  %v6003_v8 = vld [vmem:[%s9399_s3 + $0x148] sm:$0xff] }
 0x4f9   : > { %3729 = vst [vmem:[#allocation1 + $0x21] ss:$4 sm:$0xff] %v3601_v61  ;;  %v4414_v61 = vld [vmem:[%s9399_s3 + $0x10] sm:$0xff] }
 0x4fa   : > { %3822 = vmatmul.f32.gmra.mxu0 %v7736_v43  ;;  %3730 = vst [vmem:[#allocation1 + $0x22] ss:$4 sm:$0xff] %v3602_v36  ;;  %v3603_v43 = vrot.slane %v5937_v12, 6  ;;  %v6004_v36 = vld [vmem:[%s9399_s3 + $0x150] sm:$0xff]  ;;  %4604 = vmatpush.msra.mxu2 %v4414_v61  ;;  %v7822_v20 = vpop.f32.mrf.mxu3  ;;  %v5940_v12 = vld [vmem:[%s6440_s6 + $0x112] sm:$0xff]  ;;  %v7832_v61 = vpop.f32.mrf.mxu1 }
 0x4fb   : > { %9524 = vst [vmem:[#allocation89_spill] sm:$0xff] %v7814_v57  ;;  %4735 = vmatpush.msra.mxu3 %v6004_v36  ;;  %v4413_v36 = vld [vmem:[%s9399_s3 + $0x8] sm:$0xff]  ;;  %v3608_v38 = vrot.slane %v5940_v12, 4 }
 0x4fc   : > { %9525 = vst [vmem:[#allocation90_spill] sm:$0xff] %v7822_v20  ;;  %4605 = vmatpush.msra.mxu2 %v4413_v36 }
 0x4fd   : > { %v7812_v7 = vld.sshfl [vmem:[#allocation1] sm:$0xff pattern:$0x73625140]  ;;  %4736 = vmatpush.msra.mxu3 %v6003_v8  ;;  %3731 = vst [vmem:[#allocation1 + $0x23] ss:$4 sm:$0xff] %v3603_v43  ;;  %v3609_v43 = vrot.slane %v5940_v12, 6 }
 0x4fe   : > { %3734 = vst [vmem:[#allocation1] ss:$4 sm:$0xff] %v5938_v60  ;;  %v6002_v60 = vld [vmem:[%s9399_s3 + $0x140] sm:$0xff] }
 0x4ff   : > { %3735 = vst [vmem:[#allocation1 + $0x1] ss:$4 sm:$0xff] %v5939_v2  ;;  %4737 = vmatpush.msra.mxu3 %v6002_v60  ;;  %v5941_v8 = vld [vmem:[%s6440_s6 + $0x11a] sm:$0x3]  ;;  %v5964_v60 = vld [vmem:[%s9399_s3 + $0x90] sm:$0xff]  ;;  %v5999_v2 = vld [vmem:[%s9399_s3 + $0x128] sm:$0xff] }
 0x500   : > { %3736 = vst [vmem:[#allocation1 + $0x2] ss:$4 sm:$0xff] %v3604_v45  ;;  %v1086_v45 = vadd.f32 %v7204_v18, %v6813_v44  ;;  %v4412_v44 = vld [vmem:[%s9399_s3] sm:$0xff]  ;;  %v6000_v18 = vld [vmem:[%s9399_s3 + $0x130] sm:$0xff]  ;;  %4539 = vmatpush.msra.mxu1 %v5964_v60 }
 0x501   : > { %3737 = vst [vmem:[#allocation1 + $0x3] ss:$4 sm:$0xff] %v3605_v40  ;;  %v6001_v40 = vld [vmem:[%s9399_s3 + $0x138] sm:$0xff]  ;;  %4606 = vmatpush.msra.mxu2 %v4412_v44 }
 0x502   : > { %3825 = vmatmul.f32.gmra.mxu0 %v7745_v22  ;;  %9526 = vst [vmem:[#allocation91_spill] sm:$0xff] %v7832_v61  ;;  %v7842_v22 = vpop.f32.mrf.mxu0  ;;  %4738 = vmatpush.msra.mxu3 %v6001_v40  ;;  %v1520_v36 = vadd.f32 %v7331_v3, %v1086_v45  ;;  %v7857_v40 = vpop.f32.mrf.mxu2  ;;  %v1089_v3 = vadd.f32 %v7488_v10, %v6968_v5  ;;  %v5997_v5 = vld [vmem:[%s9399_s3 + $0x118] sm:$0xff] }
 0x503   : > { %9527 = vst [vmem:[#allocation92_spill] sm:$0xff] %v7842_v22  ;;  %v3607_v22 = vrot.slane %v5940_v12, 2  ;;  %v7861_v20 = vpop.f32.mrf.mxu3 }
 0x504   : > { %4739 = vmatpush.msra.mxu3 %v6000_v18  ;;  %v7859_v61 = vld.sshfl [vmem:[#allocation1 + $0x20] sm:$0xff pattern:$0x73625140]  ;;  %v1910_v45 = vadd.f32 %v7421_v6, %v1520_v36  ;;  %v1521_v10 = vadd.f32 %v7345_v30, %v1089_v3  ;;  %v1092_v30 = vadd.f32 %v7164_v50, %v6976_v15 }
 0x505   : > { %3738 = vst [vmem:[#allocation1 + $0x20] ss:$4 sm:$0xff] %v3606_v28  ;;  %v5962_v15 = vld [vmem:[%s9399_s3 + $0x80] sm:$0xff] }
 0x506   : > { %4740 = vmatpush.msra.mxu3 %v5999_v2  ;;  %3739 = vst [vmem:[#allocation1 + $0x21] ss:$4 sm:$0xff] %v5940_v12  ;;  %v2299_v28 = vadd.f32 %v7501_v27, %v1910_v45  ;;  %v1911_v60 = vadd.f32 %v7433_v21, %v1521_v10  ;;  %v5995_v27 = vld [vmem:[%s9399_s3 + $0x108] sm:$0xff]  ;;  %v5994_v50 = vld [vmem:[%s9399_s3 + $0x100] sm:$0xff]  ;;  %v6089_v21 = vld [vmem:[%s9399_s3 + $0x378] sm:$0xff]  ;;  %v4030_v45 = vlaneseq }
 0x507   : > { %3740 = vst [vmem:[#allocation1 + $0x22] ss:$4 sm:$0xff] %v3607_v22  ;;  %5139 = vmatpush.msra.mxu0 %v6089_v21 }
 0x508   : > { %v7854_v57 = vld.sshfl [vmem:[#allocation1] sm:$0xff pattern:$0x73625140]  ;;  %3741 = vst [vmem:[#allocation1 + $0x23] ss:$4 sm:$0xff] %v3608_v38  ;;  %v5996_v38 = vld [vmem:[%s9399_s3 + $0x110] sm:$0xff]  ;;  %v2688_v12 = vadd.f32 %v7711_v14, %v2299_v28  ;;  %v1095_v28 = vadd.f32 %v7181_v11, %v6986_v26 }
 0x509   : > { %3744 = vst [vmem:[#allocation1] ss:$4 sm:$0xff] %v3609_v43  ;;  %v5998_v43 = vld [vmem:[%s9399_s3 + $0x120] sm:$0xff]  ;;  %v6085_v26 = vld [vmem:[%s9399_s3 + $0x358] sm:$0xff] }
 0x50a   : > { %3745 = vst [vmem:[#allocation1 + $0x1] ss:$4 sm:$0xff] %v5941_v8  ;;  %3828 = vmatmul.f32.gmra.mxu0 %v7756_v17  ;;  %v7873_v8 = vpop.f32.mrf.mxu1  ;;  %4741 = vmatpush.msra.mxu3 %v5998_v43  ;;  %v5963_v17 = vld [vmem:[%s9399_s3 + $0x88] sm:$0xff]  ;;  %v7882_v6 = vpop.f32.mrf.mxu0  ;;  %v3078_v44 = vadd.f32 %v7704_v34, %v2688_v12  ;;  %v7904_v14 = vld [vmem:[%s9398_s2] ss:$0 sm:$0xff]  ;;  %v2300_v34 = vadd.f32 %v7510_v63, %v1911_v60  ;;  %v6088_v43 = vld [vmem:[%s9399_s3 + $0x370] sm:$0xff] }
 0x50b   : > { %4540 = vmatpush.msra.mxu1 %v5963_v17  ;;  %v7889_v22 = vpop.f32.mrf.mxu2  ;;  %v7896_v18 = vpop.f32.mrf.mxu3  ;;  %v6087_v63 = vld [vmem:[%s9399_s3 + $0x368] sm:$0xff]  ;;  %5140 = vmatpush.msra.mxu0 %v6088_v43  ;;  %v4031_v60 = vshrl.u32 %v4030_v45, 7  ;;  %v1523_v11 = vadd.f32 %v7377_v51, %v1095_v28  ;;  %v6057_v28 = vld [vmem:[%s9399_s3 + $0x278] sm:$0xff] }
 0x50c   : > { %4742 = vmatpush.msra.mxu3 %v5997_v5  ;;  %v2689_v17 = vadd.f32 %v7734_v46, %v2300_v34  ;;  %v6084_v34 = vld [vmem:[%s9399_s3 + $0x350] sm:$0xff]  ;;  %4936 = vmatpush.msrb.mxu2 %v6057_v28 }
 0x50d   : > { %4541 = vmatpush.msra.mxu1 %v5962_v15  ;;  %5141 = vmatpush.msra.mxu0 %v6087_v63  ;;  %v7944_v15 = vstv %s5958_s19  ;;  %v7951_v21 = vadd.s32 4294967295, %v4031_v60 }
 0x50e   : > { %4743 = vmatpush.msra.mxu3 %v5996_v38  ;;  %v3079_v10 = vadd.f32 %v7722_v1, %v2689_v17  ;;  %vm4037_vm0 = vcmp.ge.s32.totalorder %v7944_v15, 0  ;;  %vm4047_vm1 = vcmp.lt.s32.totalorder %v7944_v15, 16 }
 0x50f   : > { %vm7972_vm2 = vmand %vm4037_vm0, %vm4047_vm1  ;;  %vm9412_vm3 = vcmp.ge.s32.totalorder %v7951_v21, 0 }
 0x510   : > { %4744 = vmatpush.msra.mxu3 %v5995_v27  ;;  %vm7991_vm4 = vmand %vm7972_vm2, %vm9412_vm3 }
 0x512   : > { %3831 = vmatmul.f32.gmra.mxu0 %v7773_v25  ;;  %v3467_v25 = vadd.f32 %v7724_v49, %v3078_v44  ;;  %v7917_v36 = vpop.f32.mrf.mxu1  ;;  %4745 = vmatpush.msra.mxu3 %v5994_v50  ;;  %v1522_v49 = vadd.f32 %v7357_v41, %v1092_v30  ;;  %v7930_v41 = vld.sshfl [vmem:[#allocation1] sm:$0xff pattern:$0x73625140]  ;;  %v3468_v30 = vadd.f32 %v7743_v33, %v3079_v10 }
 0x513   : > { %v7936_v46 = vpop.f32.mrf.mxu2  ;;  %v7942_v1 = vpop.f32.mrf.mxu3 }
 0x514   : > { %v1912_v38 = vadd.f32 %v7446_v62, %v1522_v49 }
 0x516   : > { %v2301_v50 = vadd.f32 %v7527_v48, %v1912_v38 }
 0x517   : > { %v3787_v2 = vpop.f32.mrf.mxu0 }
 0x518   : > { %v3856_v3 = vadd.f32 %v3787_v2, %v3467_v25  ;;  %v1098_v2 = vadd.f32 %v7202_v53, %v6998_v37  ;;  %v2690_v51 = vadd.f32 %v7753_v31, %v2301_v50  ;;  %v7968_v37 = vld.sshfl [vmem:[#allocation1 + $0x20] sm:$0xff pattern:$0x73625140]  ;;  %v1913_v53 = vadd.f32 %v7461_v29, %v1523_v11 }
 0x51a   : > { %v3883_v5 = vadd.f32 %v7904_v14, %v3856_v3  ;;  %3834 = vmatmul.f32.gmra.mxu0 %v7780_v35  ;;  %v6086_v35 = vld [vmem:[%s9399_s3 + $0x360] sm:$0xff]  ;;  %v7958_v49 = vpop.f32.mrf.mxu1  ;;  %v6083_v3 = vld [vmem:[%s9399_s3 + $0x348] sm:$0xff]  ;;  %v3080_v45 = vadd.f32 %v7740_v42, %v2690_v51  ;;  %v1524_v31 = vadd.f32 %v7397_v13, %v1098_v2 }
 0x51b   : > { %5142 = vmatpush.msra.mxu0 %v6086_v35  ;;  %v2302_v35 = vadd.f32 %v7544_v19, %v1913_v53  ;;  %v6079_v19 = vld [vmem:[%s9399_s3 + $0x328] sm:$0xff] }
 0x51c   : > { %v3906_v12 = vmax.f32 %v3883_v5, 0.0  ;;  %v7981_v5 = vpop.f32.mrf.mxu2  ;;  %v3469_v29 = vadd.f32 %v7770_v23, %v3080_v45  ;;  %v6081_v23 = vld [vmem:[%s9399_s3 + $0x338] sm:$0xff] }
 0x51d   : > { %5143 = vmatpush.msra.mxu0 %v6085_v26  ;;  %v1914_v26 = vadd.f32 %v7472_v58, %v1524_v31  ;;  %v2691_v11 = vadd.f32 %v7776_v39, %v2302_v35  ;;  %v1101_v58 = vadd.f32 %v7222_v0, %v7009_v52  ;;  %v6056_v52 = vld [vmem:[%s9399_s3 + $0x270] sm:$0xff]  ;;  %v1104_v31 = vadd.f32 %v7239_v55, %v7016_v59  ;;  %v6075_v59 = vld [vmem:[%s9399_s3 + $0x308] sm:$0xff]  ;;  %v9534_v35 = vld [vmem:[#allocation90_spill] sm:$0xff] }
 0x51e   : > { %v3952_v44 = vrot.slane %v3906_v12, 2  ;;  %v3953_v27 = vrot.slane %v3906_v12, 4  ;;  %v3954_v25 = vrot.slane %v3906_v12, 6  ;;  %4225 = vst [vmem:[#allocation1] ss:$4 sm:$0xff] %v3906_v12  ;;  %v6025_v12 = vld [vmem:[%s9399_s3 + $0x1f8] sm:$0xff]  ;;  %4937 = vmatpush.msrb.mxu2 %v6056_v52 }
 0x51f   : > { %v3790_v62 = vpop.f32.mrf.mxu0  ;;  %5144 = vmatpush.msra.mxu0 %v6084_v34  ;;  %4828 = vmatpush.msrb.mxu1 %v6025_v12  ;;  %v3081_v39 = vadd.f32 %v7761_v32, %v2691_v11  ;;  %v2303_v2 = vadd.f32 %v7551_v47, %v1914_v26  ;;  %v1525_v0 = vadd.f32 %v7403_v9, %v1101_v58  ;;  %v6077_v47 = vld [vmem:[%s9399_s3 + $0x318] sm:$0xff] }
 0x520   : > { %v3857_v33 = vadd.f32 %v3790_v62, %v3468_v30  ;;  %4227 = vst [vmem:[#allocation1 + $0x1] ss:$4 sm:$0xff] %v3952_v44  ;;  %v8002_v30 = vpop.f32.mrf.mxu3 }
 0x521   : > { %4229 = vst [vmem:[#allocation1 + $0x2] ss:$4 sm:$0xff] %v3953_v27  ;;  %5145 = vmatpush.msra.mxu0 %v6083_v3  ;;  %v4033_v27 = vadd.s32 16, %v4031_v60  ;;  %v3470_v51 = vadd.f32 %v7792_v16, %v3081_v39  ;;  %v2692_v32 = vadd.f32 %v7800_v24, %v2303_v2  ;;  %v6024_v16 = vld [vmem:[%s9399_s3 + $0x1f0] sm:$0xff]  ;;  %v1915_v12 = vadd.f32 %v7480_v54, %v1525_v0  ;;  %v6055_v2 = vld [vmem:[%s9399_s3 + $0x268] sm:$0xff] }
 0x522   : > { %v3884_v48 = vadd.f32 %v7904_v14, %v3857_v33  ;;  %3837 = vmatmul.f32.gmra.mxu0 %v7797_v4  ;;  %4231 = vst [vmem:[#allocation1 + $0x3] ss:$4 sm:$0xff] %v3954_v25  ;;  %v6082_v4 = vld [vmem:[%s9399_s3 + $0x340] sm:$0xff]  ;;  %v6080_v25 = vld [vmem:[%s9399_s3 + $0x330] sm:$0xff]  ;;  %v8018_v60 = vpop.f32.mrf.mxu1  ;;  %4829 = vmatpush.msrb.mxu1 %v6024_v16 }
 0x523   : > { %5146 = vmatpush.msra.mxu0 %v6082_v4  ;;  %v8021_v34 = vadd.s32 4294967295, %v4033_v27  ;;  %v6076_v24 = vld [vmem:[%s9399_s3 + $0x310] sm:$0xff]  ;;  %4938 = vmatpush.msrb.mxu2 %v6055_v2 }
 0x524   : > { %v3907_v43 = vmax.f32 %v3884_v48, 0.0  ;;  %v8039_v45 = vpop.f32.mrf.mxu2  ;;  %v9535_v39 = vld [vmem:[#allocation44_spill] sm:$0xff] }
 0x525   : > { %5147 = vmatpush.msra.mxu0 %v6081_v23  ;;  %vm9417_vm5 = vcmp.lt.s32.totalorder %v8021_v34, 16 }
 0x526   : > { %v3955_v63 = vrot.slane %v3907_v43, 2  ;;  %v3956_v42 = vrot.slane %v3907_v43, 4  ;;  %v3957_v10 = vrot.slane %v3907_v43, 6  ;;  %4233 = vst [vmem:[#allocation1 + $0x20] ss:$4 sm:$0xff] %v3907_v43  ;;  %vm8066_vm8 = vmand %vm7972_vm2, %vm9417_vm5 }
 0x527   : > { %v3793_v38 = vpop.f32.mrf.mxu0  ;;  %5148 = vmatpush.msra.mxu0 %v6080_v25  ;;  %v6074_v25 = vld [vmem:[%s9399_s3 + $0x300] sm:$0xff] }
 0x528   : > { %v3858_v44 = vadd.f32 %v3793_v38, %v3469_v29  ;;  %4235 = vst [vmem:[#allocation1 + $0x21] ss:$4 sm:$0xff] %v3955_v63  ;;  %v3082_v29 = vadd.f32 %v7789_v56, %v2692_v32 }
 0x529   : > { %v4240_v62 = vld.sshfl [vmem:[#allocation1] sm:$0xff pattern:$0x73625140]  ;;  %4237 = vst [vmem:[#allocation1 + $0x22] ss:$4 sm:$0xff] %v3956_v42  ;;  %5149 = vmatpush.msra.mxu0 %v6079_v19  ;;  %v4021_v42 = vadd.s32 1, %v7944_v15 }
 0x52a   : > { %v3885_v50 = vadd.f32 %v7904_v14, %v3858_v44  ;;  %5978 = vmatmul.msk.f32.vlgmr.msra.gmra.mxu2 %vm7991_vm4, %v4240_v62  ;;  %3840 = vmatmul.f32.gmra.mxu0 %v7812_v7  ;;  %4239 = vst [vmem:[#allocation1 + $0x23] ss:$4 sm:$0xff] %v3957_v10  ;;  %v6078_v7 = vld [vmem:[%s9399_s3 + $0x320] sm:$0xff]  ;;  %v4382_v9 = vsel %vm7991_vm4, %v4240_v62, 0.0  ;;  %v8051_v10 = vpop.f32.mrf.mxu3  ;;  %v3471_v44 = vadd.f32 %v9534_v35, %v3082_v29  ;;  %v8075_v26 = vpop.f32.mrf.mxu1  ;;  %v9542_v29 = vld [vmem:[#allocation32_spill] sm:$0xff] }
 0x52b   : > { %5150 = vmatpush.msra.mxu0 %v6078_v7  ;;  %v4453_v55 = vrot.slane %v4382_v9, 1  ;;  %v4657_v13 = vrot.slane %v4382_v9, 2  ;;  %vm4038_vm9 = vcmp.ge.s32.totalorder %v4021_v42, 0  ;;  %vm4048_vm10 = vcmp.lt.s32.totalorder %v4021_v42, 16 }
 0x52c   : > { %v3908_v33 = vmax.f32 %v3885_v50, 0.0  ;;  %vm8091_vm11 = vmand %vm4038_vm9, %vm4048_vm10 }
 0x52d   : > { %5151 = vmatpush.msra.mxu0 %v6077_v47  ;;  %v9539_v47 = vld [vmem:[#allocation91_spill] sm:$0xff]  ;;  %vm8110_vm12 = vmand %vm8091_vm11, %vm9412_vm3 }
 0x52e   : > { %v3958_v48 = vrot.slane %v3908_v33, 2  ;;  %4242 = vst [vmem:[#allocation1] ss:$4 sm:$0xff] %v3908_v33  ;;  %v3959_v3 = vrot.slane %v3908_v33, 4  ;;  %v3960_v43 = vrot.slane %v3908_v33, 6  ;;  %v1526_v33 = vadd.f32 %v9535_v39, %v1104_v31  ;;  %v9541_v31 = vld [vmem:[#allocation12_spill] sm:$0xff]  ;;  %vm8161_vm14 = vmand %vm8091_vm11, %vm9417_vm5 }
 0x52f   : > { %v3796_v53 = vpop.f32.mrf.mxu0  ;;  %5152 = vmatpush.msra.mxu0 %v6076_v24  ;;  %v9548_v39 = vld [vmem:[#allocation14_spill] sm:$0xff] }
 0x530   : > { %v3859_v4 = vadd.f32 %v3796_v53, %v3470_v51  ;;  %v6023_v51 = vld [vmem:[%s9399_s3 + $0x1e8] sm:$0xff] }
 0x531   : > { %v4241_v63 = vld.sshfl [vmem:[#allocation1 + $0x20] sm:$0xff pattern:$0x73625140]  ;;  %5153 = vmatpush.msra.mxu0 %v6075_v59  ;;  %4830 = vmatpush.msrb.mxu1 %v6023_v51  ;;  %v9550_v51 = vld [vmem:[#allocation53_spill] sm:$0xff]  ;;  %v6131_v53 = vld [vmem:[%s9399_s3 + $0x448] sm:$0xff] }
 0x532   : > { %v3886_v28 = vadd.f32 %v7904_v14, %v3859_v4  ;;  %5979 = vmatmul.msk.f32.gmra.mxu2 %vm7972_vm2, %v4241_v63  ;;  %4244 = vst [vmem:[#allocation1 + $0x20] ss:$4 sm:$0xff] %v3958_v48  ;;  %3843 = vmatmul.f32.gmra.mxu0 %v7859_v61  ;;  %v4383_v38 = vsel %vm7972_vm2, %v4241_v63, 0.0  ;;  %v9536_v48 = vld [vmem:[#allocation60_spill] sm:$0xff]  ;;  %v9540_v4 = vld [vmem:[#allocation51_spill] sm:$0xff]  ;;  %v1107_v63 = vadd.f32 %v9542_v29, %v9541_v31  ;;  %v9551_v29 = vld [vmem:[#allocation46_spill] sm:$0xff] }
 0x533   : > { %4245 = vst [vmem:[#allocation1 + $0x21] ss:$4 sm:$0xff] %v3959_v3  ;;  %v4454_v56 = vrot.slane %v4383_v38, 1  ;;  %v4658_v23 = vrot.slane %v4383_v38, 2  ;;  %5154 = vmatpush.msra.mxu0 %v6074_v25  ;;  %v2304_v52 = vadd.f32 %v9536_v48, %v1915_v12  ;;  %v1916_v24 = vadd.f32 %v9540_v4, %v1526_v33  ;;  %v8104_v38 = vpop.f32.mrf.mxu3  ;;  %v8120_v25 = vpop.f32.mrf.mxu1  ;;  %v9549_v33 = vld [vmem:[#allocation33_spill] sm:$0xff] }
 0x534   : > { %v3909_v27 = vmax.f32 %v3886_v28, 0.0  ;;  %4246 = vst [vmem:[#allocation1 + $0x22] ss:$4 sm:$0xff] %v3960_v43  ;;  %v8096_v43 = vpop.f32.mrf.mxu2  ;;  %v9543_v28 = vld [vmem:[#allocation89_spill] sm:$0xff] }
 0x535   : > { %v4455_v62 = vsel %vm9425_vm6, %v4453_v55, %v4454_v56  ;;  %v4659_v17 = vsel %vm9424_vm7, %v4657_v13, %v4658_v23  ;;  %v4243_v11 = vld.sshfl [vmem:[#allocation1] sm:$0xff pattern:$0x73625140]  ;;  %v2693_v16 = vadd.f32 %v9539_v47, %v2304_v52 }
 0x536   : > { %v3961_v50 = vrot.slane %v3909_v27, 2  ;;  %v3962_v54 = vrot.slane %v3909_v27, 4  ;;  %v3963_v19 = vrot.slane %v3909_v27, 6  ;;  %4247 = vst [vmem:[#allocation1 + $0x23] ss:$4 sm:$0xff] %v3909_v27  ;;  %4542 = vmatmul.f32.vlgmr.msra.gmra.mxu1 %v4455_v62  ;;  %4746 = vmatmul.f32.vlgmr.msra.gmra.mxu3 %v4659_v17  ;;  %v4384_v58 = vsel %vm8066_vm8, %v4243_v11, 0.0 }
 0x537   : > { %v3799_v7 = vpop.f32.mrf.mxu0  ;;  %v4456_v32 = vrot.slane %v4384_v58, 1  ;;  %v4660_v3 = vrot.slane %v4384_v58, 2  ;;  %v3083_v42 = vadd.f32 %v9543_v28, %v2693_v16 }
 0x538   : > { %v3860_v0 = vadd.f32 %v3799_v7, %v3471_v44  ;;  %4249 = vst [vmem:[#allocation1] ss:$4 sm:$0xff] %v3961_v50  ;;  %v9546_v44 = vld [vmem:[#allocation62_spill] sm:$0xff]  ;;  %v4022_v50 = vadd.s32 2, %v7944_v15  ;;  %v1110_v7 = vadd.f32 %v9549_v33, %v9548_v39 }
 0x539   : > { %4250 = vst [vmem:[#allocation1 + $0x1] ss:$4 sm:$0xff] %v3962_v54  ;;  %v4661_v13 = vsel %vm9424_vm7, %v4658_v23, %v4660_v3  ;;  %v3472_v12 = vadd.f32 %v7861_v20, %v3083_v42  ;;  %v2305_v27 = vadd.f32 %v9546_v44, %v1916_v24  ;;  %v6022_v20 = vld [vmem:[%s9399_s3 + $0x1e0] sm:$0xff]  ;;  %v9547_v23 = vld [vmem:[#allocation45_spill] sm:$0xff] }
 0x53a   : > { %v3887_v9 = vadd.f32 %v7904_v14, %v3860_v0  ;;  %3846 = vmatmul.f32.gmra.mxu0 %v7854_v57  ;;  %4251 = vst [vmem:[#allocation1 + $0x2] ss:$4 sm:$0xff] %v3963_v19  ;;  %v4457_v57 = vsel %vm9425_vm6, %v4454_v56, %v4456_v32  ;;  %v6054_v56 = vld [vmem:[%s9399_s3 + $0x260] sm:$0xff]  ;;  %v1527_v17 = vadd.f32 %v9547_v23, %v1107_v63  ;;  %vm4039_vm13 = vcmp.ge.s32.totalorder %v4022_v50, 0 }
 0x53b   : > { %4939 = vmatpush.msrb.mxu2 %v6054_v56  ;;  %4831 = vmatpush.msrb.mxu1 %v6022_v20  ;;  %v2694_v54 = vadd.f32 %v7873_v8, %v2305_v27  ;;  %v1528_v63 = vadd.f32 %v9551_v29, %v1110_v7  ;;  %vm4049_vm15 = vcmp.lt.s32.totalorder %v4022_v50, 16  ;;  %v9559_v39 = vld [vmem:[#allocation34_spill] sm:$0xff] }
 0x53c   : > { %v3910_v59 = vmax.f32 %v3887_v9, 0.0  ;;  %v1917_v48 = vadd.f32 %v9550_v51, %v1527_v17  ;;  %v8143_v52 = vpop.f32.mrf.mxu2  ;;  %vm8190_vm0 = vmand %vm4039_vm13, %vm4049_vm15 }
 0x53d   : > { %v8116_v61 = vld.sshfl [vmem:[#allocation1 + $0x20] sm:$0xff pattern:$0x73625140]  ;;  %v3084_v2 = vadd.f32 %v7857_v40, %v2694_v54  ;;  %v9555_v54 = vld [vmem:[#allocation55_spill] sm:$0xff]  ;;  %vm8204_vm1 = vmand %vm8190_vm0, %vm9412_vm3 }
 0x53e   : > { %v3964_v35 = vrot.slane %v3910_v59, 2  ;;  %4545 = vmatmul.f32.gmra.mxu1 %v4457_v57  ;;  %4252 = vst [vmem:[#allocation1 + $0x3] ss:$4 sm:$0xff] %v3910_v59  ;;  %4749 = vmatmul.f32.gmra.mxu3 %v4661_v13  ;;  %v4385_v19 = vsel %vm8110_vm12, %v8116_v61, 0.0  ;;  %v3965_v0 = vrot.slane %v3910_v59, 4  ;;  %v3966_v3 = vrot.slane %v3910_v59, 6  ;;  %vm8269_vm2 = vmand %vm8190_vm0, %vm9417_vm5 }
 0x53f   : > { %5980 = vmatmul.msk.f32.gmra.mxu2 %vm8110_vm12, %v8116_v61  ;;  %v3802_v62 = vpop.f32.mrf.mxu0  ;;  %v3473_v8 = vadd.f32 %v7896_v18, %v3084_v2  ;;  %v4458_v16 = vrot.slane %v4385_v19, 1  ;;  %v4662_v9 = vrot.slane %v4385_v19, 2  ;;  %v6053_v57 = vld [vmem:[%s9399_s3 + $0x258] sm:$0xff]  ;;  %v1918_v19 = vadd.f32 %v9555_v54, %v1528_v63 }
 0x540   : > { %4253 = vst [vmem:[#allocation1 + $0x20] ss:$4 sm:$0xff] %v3964_v35  ;;  %v3861_v11 = vadd.f32 %v3802_v62, %v3472_v12  ;;  %v6021_v13 = vld [vmem:[%s9399_s3 + $0x1d8] sm:$0xff]  ;;  %v9554_v12 = vld [vmem:[#allocation64_spill] sm:$0xff]  ;;  %4940 = vmatpush.msrb.mxu2 %v6053_v57  ;;  %v8172_v62 = vpop.f32.mrf.mxu1 }
 0x541   : > { %v2306_v35 = vadd.f32 %v9554_v12, %v1917_v48  ;;  %4832 = vmatpush.msrb.mxu1 %v6021_v13  ;;  %v9564_v12 = vld [vmem:[#allocation18_spill] sm:$0xff] }
 0x542   : > { %v3888_v58 = vadd.f32 %v7904_v14, %v3861_v11  ;;  %3849 = vmatmul.f32.gmra.mxu0 %v7968_v37  ;;  %v8148_v37 = vpop.f32.mrf.mxu3 }
 0x543   : > { %v2695_v23 = vadd.f32 %v7917_v36, %v2306_v35  ;;  %v9558_v36 = vld [vmem:[#allocation16_spill] sm:$0xff] }
 0x544   : > { %v3911_v32 = vmax.f32 %v3888_v58, 0.0  ;;  %v8197_v51 = vpop.f32.mrf.mxu2  ;;  %v6113_v58 = vld [vmem:[%s9399_s3 + $0x3b8] sm:$0xff] }
 0x545   : > { %v8146_v47 = vld.sshfl [vmem:[#allocation1] sm:$0xff pattern:$0x73625140]  ;;  %v3085_v33 = vadd.f32 %v7889_v22, %v2695_v23  ;;  %v6052_v22 = vld [vmem:[%s9399_s3 + $0x250] sm:$0xff] }
 0x546   : > { %v3967_v4 = vrot.slane %v3911_v32, 2  ;;  %v3968_v24 = vrot.slane %v3911_v32, 4  ;;  %v3969_v31 = vrot.slane %v3911_v32, 6  ;;  %4256 = vst [vmem:[#allocation1] ss:$4 sm:$0xff] %v3965_v0  ;;  %v4386_v40 = vsel %vm8091_vm11, %v8146_v47, 0.0  ;;  %4941 = vmatpush.msrb.mxu2 %v6052_v22 }
 0x547   : > { %5981 = vmatmul.msk.f32.gmra.mxu2 %vm8091_vm11, %v8146_v47  ;;  %4257 = vst [vmem:[#allocation1 + $0x1] ss:$4 sm:$0xff] %v3966_v3  ;;  %v3805_v18 = vpop.f32.mrf.mxu0  ;;  %v4459_v28 = vrot.slane %v4386_v40, 1  ;;  %v4663_v42 = vrot.slane %v4386_v40, 2  ;;  %v3474_v48 = vadd.f32 %v7942_v1, %v3085_v33  ;;  %v9562_v3 = vld [vmem:[#allocation66_spill] sm:$0xff]  ;;  %v6020_v1 = vld [vmem:[%s9399_s3 + $0x1d0] sm:$0xff] }
 0x548   : > { %4258 = vst [vmem:[#allocation1 + $0x2] ss:$4 sm:$0xff] %v3911_v32  ;;  %v3862_v44 = vadd.f32 %v3805_v18, %v3473_v8  ;;  %v4255_v27 = vld.sshfl [vmem:[#allocation1 + $0x20] sm:$0xff pattern:$0x73625140]  ;;  %4833 = vmatpush.msrb.mxu1 %v6020_v1 }
 0x549   : > { %4259 = vst [vmem:[#allocation1 + $0x3] ss:$4 sm:$0xff] %v3967_v4  ;;  %v8175_v56 = vsel %vm9425_vm6, %v4458_v16, %v4459_v28  ;;  %v8178_v20 = vsel %vm9424_vm7, %v4662_v9, %v4663_v42  ;;  %v4387_v11 = vsel %vm8161_vm14, %v4255_v27, 0.0  ;;  %v2307_v16 = vadd.f32 %v9562_v3, %v1918_v19  ;;  %v9563_v4 = vld [vmem:[#allocation47_spill] sm:$0xff] }
 0x54a   : > { %v3889_v17 = vadd.f32 %v7904_v14, %v3862_v44  ;;  %3852 = vmatmul.f32.gmra.mxu0 %v7930_v41  ;;  %4548 = vmatmul.f32.gmra.mxu1 %v8175_v56  ;;  %4260 = vst [vmem:[#allocation1 + $0x20] ss:$4 sm:$0xff] %v3968_v24  ;;  %v1113_v41 = vadd.f32 %v9559_v39, %v9558_v36  ;;  %v4461_v2 = vrot.slane %v4387_v11, 1  ;;  %v4665_v8 = vrot.slane %v4387_v11, 2  ;;  %v9566_v44 = vld [vmem:[#allocation57_spill] sm:$0xff]  ;;  %v6019_v36 = vld [vmem:[%s9399_s3 + $0x1c8] sm:$0xff] }
 0x54b   : > { %4752 = vmatmul.f32.gmra.mxu3 %v8178_v20  ;;  %4261 = vst [vmem:[#allocation1 + $0x21] ss:$4 sm:$0xff] %v3969_v31  ;;  %v8216_v31 = vpop.f32.mrf.mxu3  ;;  %v2696_v63 = vadd.f32 %v7958_v49, %v2307_v16  ;;  %v8235_v49 = vpop.f32.mrf.mxu1  ;;  %v4023_v19 = vadd.s32 3, %v7944_v15  ;;  %4834 = vmatpush.msrb.mxu1 %v6019_v36 }
 0x54c   : > { %v3912_v7 = vmax.f32 %v3889_v17, 0.0  ;;  %v1529_v24 = vadd.f32 %v9563_v4, %v1113_v41  ;;  %v8225_v18 = vsel %vm9425_vm6, %v4459_v28, %v4461_v2  ;;  %v8230_v57 = vsel %vm9424_vm7, %v4663_v42, %v4665_v8  ;;  %v9565_v28 = vld [vmem:[#allocation35_spill] sm:$0xff] }
 0x54d   : > { %v3086_v13 = vadd.f32 %v7936_v46, %v2696_v63  ;;  %v1116_v35 = vadd.f32 %v9565_v28, %v9564_v12  ;;  %v6051_v46 = vld [vmem:[%s9399_s3 + $0x248] sm:$0xff]  ;;  %vm4040_vm4 = vcmp.ge.s32.totalorder %v4023_v19, 0  ;;  %vm4050_vm8 = vcmp.lt.s32.totalorder %v4023_v19, 16  ;;  %v9572_v12 = vld [vmem:[#allocation36_spill] sm:$0xff] }
 0x54e   : > { %v3970_v0 = vrot.slane %v3912_v7, 2  ;;  %v3971_v32 = vrot.slane %v3912_v7, 4  ;;  %4262 = vst [vmem:[#allocation1 + $0x22] ss:$4 sm:$0xff] %v3912_v7  ;;  %v1919_v27 = vadd.f32 %v9566_v44, %v1529_v24  ;;  %v3972_v42 = vrot.slane %v3912_v7, 6  ;;  %4942 = vmatpush.msrb.mxu2 %v6051_v46  ;;  %v9567_v7 = vld [vmem:[#allocation48_spill] sm:$0xff]  ;;  %vm8296_vm9 = vmand %vm4040_vm4, %vm4050_vm8 }
 0x54f   : > { %v3808_v9 = vpop.f32.mrf.mxu0  ;;  %v3475_v17 = vadd.f32 %v8002_v30, %v3086_v13  ;;  %v1530_v2 = vadd.f32 %v9567_v7, %v1116_v35  ;;  %v9571_v13 = vld [vmem:[#allocation20_spill] sm:$0xff]  ;;  %v9573_v44 = vld [vmem:[#allocation58_spill] sm:$0xff]  ;;  %vm8313_vm10 = vmand %vm8296_vm9, %vm9412_vm3 }
 0x550   : > { %v3863_v40 = vadd.f32 %v3808_v9, %v3474_v48  ;;  %v8218_v29 = vld.sshfl [vmem:[#allocation1] sm:$0xff pattern:$0x73625140]  ;;  %4263 = vst [vmem:[#allocation1 + $0x23] ss:$4 sm:$0xff] %v3970_v0  ;;  %v9568_v48 = vld [vmem:[#allocation68_spill] sm:$0xff]  ;;  %v1119_v28 = vadd.f32 %v9572_v12, %v9571_v13  ;;  %vm8371_vm14 = vmand %vm8296_vm9, %vm9417_vm5 }
 0x551   : > { %5982 = vmatmul.msk.f32.gmra.mxu2 %vm8204_vm1, %v8218_v29  ;;  %4266 = vst [vmem:[#allocation1] ss:$4 sm:$0xff] %v3971_v32  ;;  %v4388_v54 = vsel %vm8204_vm1, %v8218_v29, 0.0  ;;  %v2308_v0 = vadd.f32 %v9568_v48, %v1919_v27  ;;  %v8257_v32 = vpop.f32.mrf.mxu2  ;;  %v1920_v27 = vadd.f32 %v9573_v44, %v1530_v2 }
 0x552   : > { %v3890_v59 = vadd.f32 %v7904_v14, %v3863_v40  ;;  %4551 = vmatmul.f32.gmra.mxu1 %v8225_v18  ;;  %6090 = vmatmul.msk.f32.vlgmr.msra.gmra.mxu0 %vm8204_vm1, %v8218_v29  ;;  %v4463_v16 = vrot.slane %v4388_v54, 1  ;;  %v4667_v1 = vrot.slane %v4388_v54, 2  ;;  %v6127_v54 = vld [vmem:[%s9399_s3 + $0x428] sm:$0xff] }
 0x553   : > { %4755 = vmatmul.f32.gmra.mxu3 %v8230_v57  ;;  %v2697_v40 = vadd.f32 %v8018_v60, %v2308_v0  ;;  %v8274_v63 = vpop.f32.mrf.mxu3  ;;  %v6018_v0 = vld [vmem:[%s9399_s3 + $0x1c0] sm:$0xff] }
 0x554   : > { %v3913_v23 = vmax.f32 %v3890_v59, 0.0  ;;  %4835 = vmatpush.msrb.mxu1 %v6018_v0  ;;  %v9586_v0 = vld [vmem:[#allocation38_spill] sm:$0xff] }
 0x556   : > { %v3973_v11 = vrot.slane %v3913_v23, 2  ;;  %v3974_v39 = vrot.slane %v3913_v23, 4  ;;  %v3975_v41 = vrot.slane %v3913_v23, 6 }
 0x557   : > { %v3811_v33 = vpop.f32.mrf.mxu0  ;;  %v8253_v30 = vld.sshfl [vmem:[#allocation1 + $0x20] sm:$0xff pattern:$0x73625140] }
 0x558   : > { %v3864_v8 = vadd.f32 %v3811_v33, %v3475_v17  ;;  %4268 = vst [vmem:[#allocation1 + $0x20] ss:$4 sm:$0xff] %v3972_v42  ;;  %v4389_v22 = vsel %vm8190_vm0, %v8253_v30, 0.0  ;;  %v4267_v3 = vld.sshfl [vmem:[#allocation1] sm:$0xff pattern:$0x73625140] }
 0x559   : > { %5983 = vmatmul.msk.f32.gmra.mxu2 %vm8190_vm0, %v8253_v30  ;;  %4269 = vst [vmem:[#allocation1 + $0x21] ss:$4 sm:$0xff] %v3913_v23  ;;  %v4464_v9 = vrot.slane %v4389_v22, 1  ;;  %v4668_v4 = vrot.slane %v4389_v22, 2  ;;  %v3087_v23 = vadd.f32 %v7981_v5, %v2697_v40  ;;  %v4390_v42 = vsel %vm8269_vm2, %v4267_v3, 0.0  ;;  %v6050_v5 = vld [vmem:[%s9399_s3 + $0x240] sm:$0xff] }
 0x55a   : > { %v3891_v59 = vadd.f32 %v7904_v14, %v3864_v8  ;;  %4270 = vst [vmem:[#allocation1 + $0x22] ss:$4 sm:$0xff] %v3973_v11  ;;  %6091 = vmatmul.msk.f32.gmra.mxu0 %vm8190_vm0, %v8253_v30  ;;  %v8294_v11 = vpop.f32.mrf.mxu1  ;;  %v4670_v48 = vrot.slane %v4390_v42, 2  ;;  %4943 = vmatpush.msrb.mxu2 %v6050_v5  ;;  %v9577_v8 = vld [vmem:[#allocation70_spill] sm:$0xff]  ;;  %v6128_v3 = vld [vmem:[%s9399_s3 + $0x430] sm:$0xff] }
 0x55b   : > { %4271 = vst [vmem:[#allocation1 + $0x23] ss:$4 sm:$0xff] %v3974_v39  ;;  %v8283_v35 = vsel %vm9425_vm6, %v4463_v16, %v4464_v9  ;;  %v8286_v60 = vsel %vm9424_vm7, %v4667_v1, %v4668_v4  ;;  %v3476_v19 = vadd.f32 %v8051_v10, %v3087_v23  ;;  %v9576_v39 = vld [vmem:[#allocation49_spill] sm:$0xff]  ;;  %v2309_v10 = vadd.f32 %v9577_v8, %v1920_v27  ;;  %v9583_v5 = vld [vmem:[#allocation50_spill] sm:$0xff] }
 0x55c   : > { %v3914_v17 = vmax.f32 %v3891_v59, 0.0  ;;  %4554 = vmatmul.f32.gmra.mxu1 %v8283_v35  ;;  %4758 = vmatmul.f32.gmra.mxu3 %v8286_v60  ;;  %4273 = vst [vmem:[#allocation1] ss:$4 sm:$0xff] %v3975_v41  ;;  %v1531_v33 = vadd.f32 %v9576_v39, %v1119_v28  ;;  %v4466_v41 = vrot.slane %v4390_v42, 1  ;;  %v9580_v16 = vld [vmem:[#allocation21_spill] sm:$0xff]  ;;  %v8320_v59 = vpop.f32.mrf.mxu2  ;;  %v9582_v28 = vld [vmem:[#allocation59_spill] sm:$0xff] }
 0x55d   : > { %v9581_v1 = vld [vmem:[#allocation37_spill] sm:$0xff]  ;;  %v2698_v40 = vadd.f32 %v8075_v26, %v2309_v10  ;;  %v8336_v26 = vsel %vm9424_vm7, %v4668_v4, %v4670_v48  ;;  %v9585_v48 = vld [vmem:[#allocation22_spill] sm:$0xff] }
 0x55e   : > { %v3976_v46 = vrot.slane %v3914_v17, 2  ;;  %v3977_v36 = vrot.slane %v3914_v17, 4  ;;  %4274 = vst [vmem:[#allocation1 + $0x1] ss:$4 sm:$0xff] %v3914_v17  ;;  %v3978_v7 = vrot.slane %v3914_v17, 6  ;;  %v1122_v24 = vadd.f32 %v9581_v1, %v9580_v16  ;;  %v8339_v17 = vpop.f32.mrf.mxu3  ;;  %v6017_v4 = vld [vmem:[%s9399_s3 + $0x1b8] sm:$0xff] }
 0x55f   : > { %v3814_v2 = vpop.f32.mrf.mxu0  ;;  %v1921_v44 = vadd.f32 %v9582_v28, %v1531_v33  ;;  %v8333_v27 = vsel %vm9425_vm6, %v4464_v9, %v4466_v41  ;;  %v3088_v23 = vadd.f32 %v8039_v45, %v2698_v40  ;;  %v6049_v45 = vld [vmem:[%s9399_s3 + $0x238] sm:$0xff]  ;;  %v9584_v33 = vld [vmem:[#allocation72_spill] sm:$0xff]  ;;  %4836 = vmatpush.msrb.mxu1 %v6017_v4  ;;  %v1125_v8 = vadd.f32 %v9586_v0, %v9585_v48 }
 0x560   : > { %v3865_v22 = vadd.f32 %v3814_v2, %v3476_v19  ;;  %4275 = vst [vmem:[#allocation1 + $0x2] ss:$4 sm:$0xff] %v3976_v46  ;;  %v4024_v19 = vadd.s32 4, %v7944_v15  ;;  %v1532_v39 = vadd.f32 %v9583_v5, %v1122_v24  ;;  %4944 = vmatpush.msrb.mxu2 %v6049_v45 }
 0x561   : > { %4276 = vst [vmem:[#allocation1 + $0x3] ss:$4 sm:$0xff] %v3977_v36  ;;  %v3477_v46 = vadd.f32 %v8104_v38, %v3088_v23 }
 0x562   : > { %v3892_v13 = vadd.f32 %v7904_v14, %v3865_v22  ;;  %v8323_v12 = vld.sshfl [vmem:[#allocation1 + $0x20] sm:$0xff pattern:$0x73625140]  ;;  %v8356_v2 = vpop.f32.mrf.mxu1  ;;  %vm4041_vm13 = vcmp.ge.s32.totalorder %v4024_v19, 0  ;;  %vm4051_vm15 = vcmp.lt.s32.totalorder %v4024_v19, 16 }
 0x563   : > { %5984 = vmatmul.msk.f32.gmra.mxu2 %vm8313_vm10, %v8323_v12  ;;  %4277 = vst [vmem:[#allocation1 + $0x20] ss:$4 sm:$0xff] %v3978_v7  ;;  %6092 = vmatmul.msk.f32.gmra.mxu0 %vm8313_vm10, %v8323_v12  ;;  %v4391_v9 = vsel %vm8313_vm10, %v8323_v12, 0.0  ;;  %v2310_v7 = vadd.f32 %v9584_v33, %v1921_v44  ;;  %v9590_v33 = vld [vmem:[#allocation52_spill] sm:$0xff]  ;;  %vm8401_vm2 = vmand %vm4041_vm13, %vm4051_vm15 }
 0x564   : > { %v3915_v42 = vmax.f32 %v3892_v13, 0.0  ;;  %4557 = vmatmul.f32.gmra.mxu1 %v8333_v27  ;;  %4761 = vmatmul.f32.gmra.mxu3 %v8336_v26  ;;  %v4468_v40 = vrot.slane %v4391_v9, 1  ;;  %v4672_v44 = vrot.slane %v4391_v9, 2  ;;  %v8383_v45 = vpop.f32.mrf.mxu2  ;;  %vm8418_vm4 = vmand %vm8401_vm2, %vm9412_vm3 }
 0x565   : > { %v2699_v1 = vadd.f32 %v8120_v25, %v2310_v7  ;;  %v9589_v25 = vld [vmem:[#allocation61_spill] sm:$0xff]  ;;  %v1533_v7 = vadd.f32 %v9590_v33, %v1125_v8  ;;  %v6048_v8 = vld [vmem:[%s9399_s3 + $0x230] sm:$0xff]  ;;  %v9599_v33 = vld [vmem:[#allocation23_spill] sm:$0xff] }
 0x566   : > { %v3979_v36 = vrot.slane %v3915_v42, 2  ;;  %v3980_v38 = vrot.slane %v3915_v42, 4  ;;  %v3981_v10 = vrot.slane %v3915_v42, 6  ;;  %4945 = vmatpush.msrb.mxu2 %v6048_v8  ;;  %vm8477_vm8 = vmand %vm8401_vm2, %vm9417_vm5 }
 0x567   : > { %v3817_v41 = vpop.f32.mrf.mxu0  ;;  %v3089_v9 = vadd.f32 %v8096_v43, %v2699_v1 }
 0x568   : > { %v3866_v22 = vadd.f32 %v3817_v41, %v3477_v46  ;;  %v8360_v16 = vld.sshfl [vmem:[#allocation1] sm:$0xff pattern:$0x73625140]  ;;  %v8397_v41 = vpop.f32.mrf.mxu3 }
 0x569   : > { %4280 = vst [vmem:[#allocation1] ss:$4 sm:$0xff] %v3915_v42  ;;  %v4392_v24 = vsel %vm8296_vm9, %v8360_v16, 0.0  ;;  %v1922_v42 = vadd.f32 %v9589_v25, %v1532_v39  ;;  %v3478_v43 = vadd.f32 %v8148_v37, %v3089_v9  ;;  %v6016_v37 = vld [vmem:[%s9399_s3 + $0x1b0] sm:$0xff]  ;;  %v9595_v25 = vmov 0 }
 0x56a   : > { %v3893_v13 = vadd.f32 %v7904_v14, %v3866_v22  ;;  %4281 = vst [vmem:[#allocation1 + $0x1] ss:$4 sm:$0xff] %v3979_v36  ;;  %v4469_v28 = vrot.slane %v4392_v24, 1  ;;  %v4673_v23 = vrot.slane %v4392_v24, 2  ;;  %v9591_v22 = vmov 0  ;;  %v9594_v24 = vld [vmem:[#allocation74_spill] sm:$0xff]  ;;  %4837 = vmatpush.msrb.mxu1 %v6016_v37  ;;  %v8412_v46 = vpop.f32.mrf.mxu1 }
 0x56b   : > { %5985 = vmatmul.msk.f32.gmra.mxu2 %vm8296_vm9, %v8360_v16  ;;  %4282 = vst [vmem:[#allocation1 + $0x2] ss:$4 sm:$0xff] %v3980_v38  ;;  %6093 = vmatmul.msk.f32.gmra.mxu0 %vm8296_vm9, %v8360_v16  ;;  %v4279_v36 = vld.sshfl [vmem:[#allocation1 + $0x20] sm:$0xff pattern:$0x73625140]  ;;  %v9592_v22 = vsel %vm8401_vm2, 4294967295, %v9591_v22 }
 0x56c   : > { %v3916_v4 = vmax.f32 %v3893_v13, 0.0  ;;  %4283 = vst [vmem:[#allocation1 + $0x3] ss:$4 sm:$0xff] %v3981_v10  ;;  %v8386_v5 = vsel %vm9425_vm6, %v4468_v40, %v4469_v28  ;;  %v8389_v39 = vsel %vm9424_vm7, %v4672_v44, %v4673_v23  ;;  %v4393_v38 = vsel %vm8371_vm14, %v4279_v36, 0.0  ;;  %v9598_v36 = vld [vmem:[#allocation63_spill] sm:$0xff] }
 0x56d   : > { %4560 = vmatmul.f32.gmra.mxu1 %v8386_v5  ;;  %4764 = vmatmul.f32.gmra.mxu3 %v8389_v39  ;;  %9593 = vst [vmem:[#allocation90_spill] sm:$0xff] %v9592_v22  ;;  %v2311_v40 = vadd.f32 %v9594_v24, %v1922_v42  ;;  %v4471_v44 = vrot.slane %v4393_v38, 1  ;;  %v4675_v19 = vrot.slane %v4393_v38, 2  ;;  %v9596_v25 = vsel %vm8418_vm4, 4294967295, %v9595_v25  ;;  %v9600_v38 = vld [vmem:[#allocation39_spill] sm:$0xff] }
 0x56e   : > { %v3982_v48 = vrot.slane %v3916_v4, 2  ;;  %v3983_v0 = vrot.slane %v3916_v4, 4  ;;  %v3984_v10 = vrot.slane %v3916_v4, 6  ;;  %4284 = vst [vmem:[#allocation1 + $0x20] ss:$4 sm:$0xff] %v3916_v4  ;;  %v1923_v9 = vadd.f32 %v9598_v36, %v1533_v7 }
 0x56f   : > { %v3820_v1 = vpop.f32.mrf.mxu0  ;;  %9597 = vst [vmem:[#allocation44_spill] sm:$0xff] %v9596_v25  ;;  %v2700_v42 = vadd.f32 %v8172_v62, %v2311_v40  ;;  %v8437_v62 = vsel %vm9425_vm6, %v4469_v28, %v4471_v44  ;;  %v8440_v7 = vsel %vm9424_vm7, %v4673_v23, %v4675_v19  ;;  %v6047_v28 = vld [vmem:[%s9399_s3 + $0x228] sm:$0xff]  ;;  %v9603_v40 = vld [vmem:[#allocation54_spill] sm:$0xff] }
 0x570   : > { %v3867_v13 = vadd.f32 %v3820_v1, %v3478_v43  ;;  %4285 = vst [vmem:[#allocation1 + $0x21] ss:$4 sm:$0xff] %v3982_v48  ;;  %v1128_v43 = vadd.f32 %v9600_v38, %v9599_v33  ;;  %4946 = vmatpush.msrb.mxu2 %v6047_v28  ;;  %v6015_v19 = vld [vmem:[%s9399_s3 + $0x1a8] sm:$0xff]  ;;  %v4025_v38 = vadd.s32 5, %v7944_v15 }
 0x571   : > { %4286 = vst [vmem:[#allocation1 + $0x22] ss:$4 sm:$0xff] %v3983_v0  ;;  %v3090_v8 = vadd.f32 %v8143_v52, %v2700_v42  ;;  %v9602_v52 = vld [vmem:[#allocation76_spill] sm:$0xff]  ;;  %4838 = vmatpush.msrb.mxu1 %v6015_v19 }
 0x572   : > { %v3894_v4 = vadd.f32 %v7904_v14, %v3867_v13  ;;  %4287 = vst [vmem:[#allocation1 + $0x23] ss:$4 sm:$0xff] %v3984_v10  ;;  %v2312_v0 = vadd.f32 %v9602_v52, %v1923_v9  ;;  %v8445_v10 = vpop.f32.mrf.mxu2  ;;  %v1534_v13 = vadd.f32 %v9603_v40, %v1128_v43  ;;  %v8456_v9 = vpop.f32.mrf.mxu3  ;;  %v9605_v43 = vld [vmem:[#allocation24_spill] sm:$0xff]  ;;  %vm4042_vm13 = vcmp.ge.s32.totalorder %v4025_v38, 0 }
 0x573   : > { %v8427_v48 = vld.sshfl [vmem:[#allocation1] sm:$0xff pattern:$0x73625140]  ;;  %v3479_v37 = vadd.f32 %v8216_v31, %v3090_v8  ;;  %v9606_v8 = vld [vmem:[#allocation40_spill] sm:$0xff]  ;;  %vm4052_vm14 = vcmp.lt.s32.totalorder %v4025_v38, 16  ;;  %v9618_v38 = vld [vmem:[#allocation67_spill] sm:$0xff] }
 0x574   : > { %9601 = vst [vmem:[#allocation60_spill] sm:$0xff] %v8427_v48  ;;  %v3917_v1 = vmax.f32 %v3894_v4, 0.0  ;;  %5986 = vmatmul.msk.f32.gmra.mxu2 %vm8418_vm4, %v8427_v48  ;;  %6094 = vmatmul.msk.f32.gmra.mxu0 %vm8418_vm4, %v8427_v48  ;;  %v2701_v36 = vadd.f32 %v8235_v49, %v2312_v0  ;;  %v4394_v4 = vsel %vm8418_vm4, %v8427_v48, 0.0  ;;  %v1131_v52 = vadd.f32 %v9606_v8, %v9605_v43  ;;  %v8471_v0 = vpop.f32.mrf.mxu1  ;;  %vm8511_vm15 = vmand %vm4042_vm13, %vm4052_vm14 }
 0x575   : > { %4563 = vmatmul.f32.gmra.mxu1 %v8437_v62  ;;  %4767 = vmatmul.f32.gmra.mxu3 %v8440_v7 }
 0x576   : > { %v3985_v24 = vrot.slane %v3917_v1, 2  ;;  %4290 = vst [vmem:[#allocation1] ss:$4 sm:$0xff] %v3917_v1  ;;  %v3986_v23 = vrot.slane %v3917_v1, 4  ;;  %v3987_v31 = vrot.slane %v3917_v1, 6  ;;  %v3091_v28 = vadd.f32 %v8197_v51, %v2701_v36 }
 0x577   : > { %v3823_v44 = vpop.f32.mrf.mxu0 }
 0x578   : > { %v3868_v42 = vadd.f32 %v3823_v44, %v3479_v37  ;;  %v4473_v37 = vrot.slane %v4394_v4, 1  ;;  %v4677_v44 = vrot.slane %v4394_v4, 2  ;;  %v3480_v36 = vadd.f32 %v8274_v63, %v3091_v28  ;;  %v9611_v28 = vld [vmem:[#allocation56_spill] sm:$0xff] }
 0x579   : > { %v8461_v33 = vld.sshfl [vmem:[#allocation1 + $0x20] sm:$0xff pattern:$0x73625140] }
 0x57a   : > { %9604 = vst [vmem:[#allocation91_spill] sm:$0xff] %v8461_v33  ;;  %v3895_v49 = vadd.f32 %v7904_v14, %v3868_v42  ;;  %v4395_v1 = vsel %vm8401_vm2, %v8461_v33, 0.0  ;;  %v9609_v14 = vld [vmem:[#allocation65_spill] sm:$0xff]  ;;  %v8507_v22 = vpop.f32.mrf.mxu2 }
 0x57b   : > { %4292 = vst [vmem:[#allocation1 + $0x20] ss:$4 sm:$0xff] %v3985_v24  ;;  %v4474_v40 = vrot.slane %v4395_v1, 1  ;;  %v4678_v19 = vrot.slane %v4395_v1, 2  ;;  %v1924_v24 = vadd.f32 %v9609_v14, %v1534_v13  ;;  %v9612_v14 = vld [vmem:[#allocation78_spill] sm:$0xff] }
 0x57c   : > { %4293 = vst [vmem:[#allocation1 + $0x21] ss:$4 sm:$0xff] %v3986_v23  ;;  %v3918_v42 = vmax.f32 %v3895_v49, 0.0  ;;  %5987 = vmatmul.msk.f32.gmra.mxu2 %vm8401_vm2, %v8461_v33  ;;  %6095 = vmatmul.msk.f32.gmra.mxu0 %vm8401_vm2, %v8461_v33  ;;  %v1535_v49 = vadd.f32 %v9611_v28, %v1131_v52 }
 0x57d   : > { %4294 = vst [vmem:[#allocation1 + $0x22] ss:$4 sm:$0xff] %v3987_v31  ;;  %v8490_v23 = vsel %vm9425_vm6, %v4473_v37, %v4474_v40  ;;  %v8493_v4 = vsel %vm9424_vm7, %v4677_v44, %v4678_v19  ;;  %v4291_v43 = vld.sshfl [vmem:[#allocation1] sm:$0xff pattern:$0x73625140] }
 0x57e   : > { %9610 = vst [vmem:[#allocation51_spill] sm:$0xff] %v8493_v4  ;;  %v3988_v63 = vrot.slane %v3918_v42, 2  ;;  %v3989_v13 = vrot.slane %v3918_v42, 4  ;;  %v3990_v8 = vrot.slane %v3918_v42, 6  ;;  %4566 = vmatmul.f32.gmra.mxu1 %v8490_v23  ;;  %4770 = vmatmul.f32.gmra.mxu3 %v8493_v4  ;;  %v4396_v31 = vsel %vm8477_vm8, %v4291_v43, 0.0  ;;  %v6046_v37 = vld [vmem:[%s9399_s3 + $0x220] sm:$0xff]  ;;  %v8516_v4 = vpop.f32.mrf.mxu3  ;;  %vm8532_vm8 = vmand %vm8511_vm15, %vm9412_vm3 }
 0x57f   : > { %4295 = vst [vmem:[#allocation1 + $0x23] ss:$4 sm:$0xff] %v3918_v42  ;;  %v3826_v1 = vpop.f32.mrf.mxu0  ;;  %v6014_v44 = vld [vmem:[%s9399_s3 + $0x1a0] sm:$0xff]  ;;  %v2313_v42 = vadd.f32 %v9612_v14, %v1924_v24  ;;  %4947 = vmatpush.msrb.mxu2 %v6046_v37  ;;  %v4476_v51 = vrot.slane %v4396_v31, 1  ;;  %v4680_v52 = vrot.slane %v4396_v31, 2  ;;  %v9613_v43 = vmov 0  ;;  %v8536_v14 = vpop.f32.mrf.mxu1  ;;  %vm8609_vm3 = vmand %vm8511_vm15, %vm9417_vm5 }
 0x580   : > { %v3869_v33 = vadd.f32 %v3826_v1, %v3480_v36  ;;  %4297 = vst [vmem:[#allocation1] ss:$4 sm:$0xff] %v3988_v63  ;;  %4839 = vmatpush.msrb.mxu1 %v6014_v44  ;;  %v9614_v43 = vsel %vm8511_vm15, 4294967295, %v9613_v43  ;;  %v8521_v24 = vld [vmem:[%s9398_s2] ss:$0 sm:$0xff]  ;;  %v9616_v63 = vld [vmem:[#allocation25_spill] sm:$0xff]  ;;  %v1925_v1 = vadd.f32 %v9618_v38, %v1535_v49 }
 0x581   : > { %4298 = vst [vmem:[#allocation1 + $0x1] ss:$4 sm:$0xff] %v3989_v13  ;;  %v2702_v28 = vadd.f32 %v8294_v11, %v2313_v42  ;;  %v9617_v13 = vld [vmem:[#allocation41_spill] sm:$0xff]  ;;  %v9619_v11 = vmov 0 }
 0x582   : > { %9615 = vst [vmem:[#allocation12_spill] sm:$0xff] %v9614_v43  ;;  %v3896_v36 = vadd.f32 %v8521_v24, %v3869_v33  ;;  %v1134_v31 = vadd.f32 %v9617_v13, %v9616_v63  ;;  %v9620_v11 = vsel %vm8532_vm8, 4294967295, %v9619_v11  ;;  %v8539_v33 = vsel %vm9425_vm6, %v4474_v40, %v4476_v51  ;;  %v9626_v63 = vld [vmem:[#allocation82_spill] sm:$0xff]  ;;  %v6073_v51 = vld [vmem:[%s9399_s3 + $0x2f8] sm:$0xff]  ;;  %v6012_v43 = vld [vmem:[%s9399_s3 + $0x190] sm:$0xff] }
 0x583   : > { %4299 = vst [vmem:[#allocation1 + $0x2] ss:$4 sm:$0xff] %v3990_v8  ;;  %v3092_v37 = vadd.f32 %v8257_v32, %v2702_v28  ;;  %v8542_v8 = vsel %vm9424_vm7, %v4678_v19, %v4680_v52  ;;  %v9625_v28 = vld [vmem:[#allocation79_spill] sm:$0xff]  ;;  %v2314_v13 = vadd.f32 %v9626_v63, %v1925_v1  ;;  %v6013_v19 = vld [vmem:[%s9399_s3 + $0x198] sm:$0xff]  ;;  %5041 = vmatpush.msrb.mxu3 %v6073_v51  ;;  %v8568_v1 = vpop.f32.mrf.mxu2  ;;  %v9628_v63 = vld [vmem:[#allocation42_spill] sm:$0xff] }
 0x584   : > { %v3919_v44 = vmax.f32 %v3896_v36, 0.0  ;;  %9621 = vst [vmem:[#allocation32_spill] sm:$0xff] %v9620_v11  ;;  %v1536_v36 = vadd.f32 %v9625_v28, %v1134_v31  ;;  %v4026_v31 = vadd.s32 6, %v7944_v15  ;;  %4840 = vmatpush.msrb.mxu1 %v6013_v19  ;;  %v6071_v11 = vld [vmem:[%s9399_s3 + $0x2e8] sm:$0xff] }
 0x585   : > { %9622 = vst [vmem:[#allocation89_spill] sm:$0xff] %v8539_v33  ;;  %v3481_v32 = vadd.f32 %v8339_v17, %v3092_v37  ;;  %v6045_v17 = vld [vmem:[%s9399_s3 + $0x218] sm:$0xff]  ;;  %v2703_v38 = vadd.f32 %v8356_v2, %v2314_v13 }
 0x586   : > { %9623 = vst [vmem:[#allocation62_spill] sm:$0xff] %v8542_v8  ;;  %v8544_v49 = vld.sshfl [vmem:[#allocation1 + $0x20] sm:$0xff pattern:$0x73625140]  ;;  %v3991_v42 = vrot.slane %v3919_v44, 2  ;;  %4569 = vmatmul.f32.gmra.mxu1 %v8539_v33  ;;  %4773 = vmatmul.f32.gmra.mxu3 %v8542_v8  ;;  %v8581_v13 = vpop.f32.mrf.mxu3  ;;  %v3992_v51 = vrot.slane %v3919_v44, 4 }
 0x587   : > { %9624 = vst [vmem:[#allocation45_spill] sm:$0xff] %v8544_v49  ;;  %5988 = vmatmul.msk.f32.gmra.mxu2 %vm8532_vm8, %v8544_v49  ;;  %6096 = vmatmul.msk.f32.gmra.mxu0 %vm8532_vm8, %v8544_v49  ;;  %v3829_v40 = vpop.f32.mrf.mxu0  ;;  %v4397_v28 = vsel %vm8532_vm8, %v8544_v49, 0.0  ;;  %v3093_v2 = vadd.f32 %v8320_v59, %v2703_v38  ;;  %vm4043_vm13 = vcmp.ge.s32.totalorder %v4026_v31, 0  ;;  %vm4053_vm14 = vcmp.lt.s32.totalorder %v4026_v31, 16  ;;  %v8595_v48 = vpop.f32.mrf.mxu1 }
 0x588   : > { %4300 = vst [vmem:[#allocation1 + $0x3] ss:$4 sm:$0xff] %v3919_v44  ;;  %v3870_v52 = vadd.f32 %v3829_v40, %v3481_v32  ;;  %4948 = vmatpush.msrb.mxu2 %v6045_v17  ;;  %v9627_v32 = vld [vmem:[#allocation26_spill] sm:$0xff]  ;;  %v9629_v17 = vld [vmem:[#allocation69_spill] sm:$0xff]  ;;  %v3993_v8 = vrot.slane %v3919_v44, 6  ;;  %4841 = vmatpush.msrb.mxu1 %v6012_v43  ;;  %v6068_v43 = vld [vmem:[%s9399_s3 + $0x2d0] sm:$0xff] }
 0x589   : > { %4301 = vst [vmem:[#allocation1 + $0x20] ss:$4 sm:$0xff] %v3991_v42  ;;  %v6072_v42 = vld [vmem:[%s9399_s3 + $0x2f0] sm:$0xff]  ;;  %v1137_v40 = vadd.f32 %v9628_v63, %v9627_v32  ;;  %v1926_v19 = vadd.f32 %v9629_v17, %v1536_v36  ;;  %v3482_v49 = vadd.f32 %v8397_v41, %v3093_v2  ;;  %v4478_v32 = vrot.slane %v4397_v28, 1  ;;  %v9631_v63 = vld [vmem:[#allocation11_spill] sm:$0xff]  ;;  %vm8644_vm5 = vmand %vm4043_vm13, %vm4053_vm14 }
 0x58a   : > { %v3897_v37 = vadd.f32 %v8521_v24, %v3870_v52  ;;  %5042 = vmatpush.msrb.mxu3 %v6072_v42  ;;  %v4682_v36 = vrot.slane %v4397_v28, 2  ;;  %v9634_v2 = vld [vmem:[#allocation84_spill] sm:$0xff]  ;;  %vm9657_vm14 = vcmp.lt.s32.totalorder %v8021_v34, 16 }
 0x58b   : > { %v1537_v17 = vadd.f32 %v9631_v63, %v1137_v40  ;;  %v6070_v40 = vld [vmem:[%s9399_s3 + $0x2e0] sm:$0xff] }
 0x58c   : > { %v3920_v52 = vmax.f32 %v3897_v37, 0.0  ;;  %5043 = vmatpush.msrb.mxu3 %v6071_v11 }
 0x58e   : > { %v3994_v59 = vrot.slane %v3920_v52, 2  ;;  %v3995_v38 = vrot.slane %v3920_v52, 4  ;;  %v3996_v42 = vrot.slane %v3920_v52, 6  ;;  %5044 = vmatpush.msrb.mxu3 %v6070_v40 }
 0x58f   : > { %v8587_v25 = vld.sshfl [vmem:[#allocation1] sm:$0xff pattern:$0x73625140]  ;;  %v3832_v41 = vpop.f32.mrf.mxu0 }
 0x590   : > { %9630 = vst [vmem:[#allocation14_spill] sm:$0xff] %v8587_v25  ;;  %v8592_v37 = vsel %vm8511_vm15, %v8587_v25, 0.0  ;;  %5989 = vmatmul.msk.f32.gmra.mxu2 %vm8511_vm15, %v8587_v25  ;;  %6097 = vmatmul.msk.f32.gmra.mxu0 %vm8511_vm15, %v8587_v25  ;;  %v4303_v63 = vld.sshfl [vmem:[#allocation1 + $0x20] sm:$0xff pattern:$0x73625140] }
 0x591   : > { %4304 = vst [vmem:[#allocation1] ss:$4 sm:$0xff] %v3992_v51  ;;  %v4479_v44 = vrot.slane %v8592_v37, 1  ;;  %v4683_v11 = vrot.slane %v8592_v37, 2  ;;  %v2315_v51 = vadd.f32 %v9634_v2, %v1926_v19  ;;  %v3871_v37 = vadd.f32 %v3832_v41, %v3482_v49  ;;  %v6069_v19 = vld [vmem:[%s9399_s3 + $0x2d8] sm:$0xff]  ;;  %v9640_v41 = vld [vmem:[#allocation27_spill] sm:$0xff] }
 0x592   : > { %4305 = vst [vmem:[#allocation1 + $0x1] ss:$4 sm:$0xff] %v3993_v8  ;;  %v6044_v8 = vld [vmem:[%s9399_s3 + $0x210] sm:$0xff]  ;;  %5045 = vmatpush.msrb.mxu3 %v6069_v19 }
 0x593   : > { %4306 = vst [vmem:[#allocation1 + $0x2] ss:$4 sm:$0xff] %v3920_v52  ;;  %4949 = vmatpush.msrb.mxu2 %v6044_v8  ;;  %v8624_v25 = vsel %vm9425_vm6, %v4478_v32, %v4479_v44  ;;  %v8627_v33 = vsel %vm9424_vm7, %v4682_v36, %v4683_v11  ;;  %v2704_v49 = vadd.f32 %v8412_v46, %v2315_v51  ;;  %v4399_v32 = vsel %vm8609_vm3, %v4303_v63, 0.0  ;;  %v9636_v36 = vld [vmem:[#allocation71_spill] sm:$0xff]  ;;  %v9641_v8 = vld [vmem:[#allocation81_spill] sm:$0xff]  ;;  %v8657_v63 = vpop.f32.mrf.mxu3 }
 0x594   : > { %4307 = vst [vmem:[#allocation1 + $0x3] ss:$4 sm:$0xff] %v3994_v59  ;;  %v3898_v52 = vadd.f32 %v8521_v24, %v3871_v37  ;;  %4572 = vmatmul.f32.gmra.mxu1 %v8624_v25  ;;  %4776 = vmatmul.f32.gmra.mxu3 %v8627_v33  ;;  %v1927_v59 = vadd.f32 %v9636_v36, %v1537_v17  ;;  %v9637_v46 = vmov 0  ;;  %v6067_v17 = vld [vmem:[%s9399_s3 + $0x2c8] sm:$0xff]  ;;  %v4481_v51 = vrot.slane %v4399_v32, 1  ;;  %v9647_v36 = vld [vmem:[#allocation13_spill] sm:$0xff] }
 0x595   : > { %9635 = vst [vmem:[#allocation33_spill] sm:$0xff] %v8627_v33  ;;  %v9638_v46 = vsel %vm8644_vm5, 4294967295, %v9637_v46  ;;  %v1140_v40 = vadd.f32 %v9641_v8, %v9640_v41  ;;  %v3094_v28 = vadd.f32 %v8383_v45, %v2704_v49  ;;  %v4685_v31 = vrot.slane %v4399_v32, 2  ;;  %5046 = vmatpush.msrb.mxu3 %v6068_v43  ;;  %v6043_v49 = vld [vmem:[%s9399_s3 + $0x208] sm:$0xff]  ;;  %v6066_v33 = vld [vmem:[%s9399_s3 + $0x2c0] sm:$0xff] }
 0x596   : > { %4308 = vst [vmem:[#allocation1 + $0x20] ss:$4 sm:$0xff] %v3995_v38  ;;  %v8651_v38 = vpop.f32.mrf.mxu2  ;;  %v3921_v2 = vmax.f32 %v3898_v52, 0.0  ;;  %vm9642_vm3 = vcmp.ge.s32.totalorder %v7951_v21, 0  ;;  %v9643_v45 = vmov 0  ;;  %v9646_v52 = vld [vmem:[#allocation85_spill] sm:$0xff]  ;;  %4950 = vmatpush.msrb.mxu2 %v6043_v49 }
 0x597   : > { %9639 = vst [vmem:[#allocation53_spill] sm:$0xff] %v9638_v46  ;;  %v3483_v37 = vadd.f32 %v8456_v9, %v3094_v28  ;;  %vm8663_vm13 = vmand %vm8644_vm5, %vm9642_vm3  ;;  %v2316_v32 = vadd.f32 %v9646_v52, %v1927_v59  ;;  %v3835_v9 = vpop.f32.mrf.mxu0  ;;  %5047 = vmatpush.msrb.mxu3 %v6067_v17  ;;  %v6011_v43 = vld [vmem:[%s9399_s3 + $0x188] sm:$0xff]  ;;  %v1538_v41 = vadd.f32 %v9647_v36, %v1140_v40  ;;  %v8681_v52 = vpop.f32.mrf.mxu1 }
 0x598   : > { %4309 = vst [vmem:[#allocation1 + $0x21] ss:$4 sm:$0xff] %v3996_v42  ;;  %v3997_v42 = vrot.slane %v3921_v2, 2  ;;  %v3998_v19 = vrot.slane %v3921_v2, 4  ;;  %v9644_v45 = vsel %vm8663_vm13, 4294967295, %v9643_v45  ;;  %4842 = vmatpush.msrb.mxu1 %v6011_v43  ;;  %v8690_v40 = vsel %vm9425_vm6, %v4479_v44, %v4481_v51  ;;  %v9652_v51 = vld [vmem:[#allocation7_spill] sm:$0xff]  ;;  %vm8744_vm3 = vmand %vm8644_vm5, %vm9657_vm14 }
 0x599   : > { %9645 = vst [vmem:[#allocation46_spill] sm:$0xff] %v9644_v45  ;;  %v3872_v8 = vadd.f32 %v3835_v9, %v3483_v37  ;;  %v2705_v59 = vadd.f32 %v8471_v0, %v2316_v32  ;;  %v8693_v17 = vsel %vm9424_vm7, %v4683_v11, %v4685_v31  ;;  %v6065_v0 = vld [vmem:[%s9399_s3 + $0x2b8] sm:$0xff]  ;;  %5048 = vmatpush.msrb.mxu3 %v6066_v33  ;;  %v9651_v11 = vld [vmem:[#allocation28_spill] sm:$0xff]  ;;  %v4027_v33 = vadd.s32 7, %v7944_v15 }
 0x59a   : > { %4310 = vst [vmem:[#allocation1 + $0x22] ss:$4 sm:$0xff] %v3921_v2  ;;  %v1143_v31 = vadd.f32 %v9652_v51, %v9651_v11  ;;  %v6064_v9 = vld [vmem:[%s9399_s3 + $0x2b0] sm:$0xff]  ;;  %vm9662_vm14 = vcmask 1045504  }
 0x59b   : > { %v8675_v28 = vld.sshfl [vmem:[#allocation1] sm:$0xff pattern:$0x73625140]  ;;  %4311 = vst [vmem:[#allocation1 + $0x23] ss:$4 sm:$0xff] %v3997_v42  ;;  %v3899_v37 = vadd.f32 %v8521_v24, %v3872_v8  ;;  %v3095_v44 = vadd.f32 %v8445_v10, %v2705_v59  ;;  %5049 = vmatpush.msrb.mxu3 %v6065_v0  ;;  %v3999_v8 = vrot.slane %v3921_v2, 6  ;;  %v8725_v51 = vpop.f32.mrf.mxu3 }
 0x59c   : > { %9648 = vst [vmem:[#allocation64_spill] sm:$0xff] %v8675_v28  ;;  %5990 = vmatmul.msk.f32.gmra.mxu2 %vm8663_vm13, %v8675_v28  ;;  %6098 = vmatmul.msk.f32.gmra.mxu0 %vm8663_vm13, %v8675_v28  ;;  %v6042_v42 = vld [vmem:[%s9399_s3 + $0x200] sm:$0xff]  ;;  %v4400_v10 = vsel %vm8663_vm13, %v8675_v28, 0.0  ;;  %v9655_v0 = vld [vmem:[#allocation15_spill] sm:$0xff]  ;;  %vm4044_vm7 = vcmp.ge.s32.totalorder %v4027_v33, 0  ;;  %vm4054_vm6 = vcmp.lt.s32.totalorder %v4027_v33, 16 }
 0x59d   : > { %4314 = vst [vmem:[#allocation1] ss:$4 sm:$0xff] %v3998_v19  ;;  %4575 = vmatmul.f32.gmra.mxu1 %v8690_v40  ;;  %4779 = vmatmul.f32.gmra.mxu3 %v8693_v17  ;;  %v9653_v19 = vld [vmem:[#allocation73_spill] sm:$0xff]  ;;  %v3922_v32 = vmax.f32 %v3899_v37, 0.0  ;;  %v3484_v43 = vadd.f32 %v8516_v4, %v3095_v44  ;;  %v6063_v4 = vld [vmem:[%s9399_s3 + $0x2a8] sm:$0xff]  ;;  %v1539_v44 = vadd.f32 %v9655_v0, %v1143_v31  ;;  %v9656_v2 = vld [vmem:[#allocation86_spill] sm:$0xff] }
 0x59e   : > { %9649 = vst [vmem:[#allocation55_spill] sm:$0xff] %v8690_v40  ;;  %4951 = vmatpush.msrb.mxu2 %v6042_v42  ;;  %v1928_v49 = vadd.f32 %v9653_v19, %v1538_v41  ;;  %v8712_v36 = vpop.f32.mrf.mxu2  ;;  %5050 = vmatpush.msrb.mxu3 %v6064_v9  ;;  %v4483_v31 = vrot.slane %v4400_v10, 1  ;;  %v4687_v9 = vrot.slane %v4400_v10, 2  ;;  %vm9660_vm13 = vcmask 1046528   ;;  %v6060_v33 = vld [vmem:[%s9399_s3 + $0x290] sm:$0xff] }
 0x59f   : > { %9650 = vst [vmem:[#allocation16_spill] sm:$0xff] %v8693_v17  ;;  %v4000_v17 = vrot.slane %v3922_v32, 2  ;;  %v4001_v59 = vrot.slane %v3922_v32, 4  ;;  %v4002_v41 = vrot.slane %v3922_v32, 6  ;;  %v3838_v37 = vpop.f32.mrf.mxu0  ;;  %v8753_v10 = vpop.f32.mrf.mxu1 }
 0x5a0   : > { %v2317_v11 = vadd.f32 %v9656_v2, %v1928_v49  ;;  %v3873_v19 = vadd.f32 %v3838_v37, %v3484_v43  ;;  %5051 = vmatpush.msrb.mxu3 %v6063_v4 }
 0x5a2   : > { %v8718_v42 = vld.sshfl [vmem:[#allocation1 + $0x20] sm:$0xff pattern:$0x73625140]  ;;  %v3900_v37 = vadd.f32 %v8521_v24, %v3873_v19 }
 0x5a3   : > { %9654 = vst [vmem:[#allocation34_spill] sm:$0xff] %v8718_v42  ;;  %v8730_v45 = vsel %vm8644_vm5, %v8718_v42, 0.0 }
 0x5a4   : > { %4316 = vst [vmem:[#allocation1 + $0x20] ss:$4 sm:$0xff] %v3999_v8  ;;  %v4315_v28 = vld.sshfl [vmem:[#allocation1] sm:$0xff pattern:$0x73625140]  ;;  %5991 = vmatmul.msk.f32.gmra.mxu2 %vm8644_vm5, %v8718_v42  ;;  %6099 = vmatmul.msk.f32.gmra.mxu0 %vm8644_vm5, %v8718_v42  ;;  %v4484_v49 = vrot.slane %v8730_v45, 1 }
 0x5a5   : > { %4317 = vst [vmem:[#allocation1 + $0x21] ss:$4 sm:$0xff] %v3922_v32  ;;  %v4688_v43 = vrot.slane %v8730_v45, 2  ;;  %v2706_v32 = vadd.f32 %v8536_v14, %v2317_v11  ;;  %v6062_v45 = vld [vmem:[%s9399_s3 + $0x2a0] sm:$0xff]  ;;  %v9664_v14 = vld [vmem:[#allocation29_spill] sm:$0xff]  ;;  %v9665_v11 = vld [vmem:[#allocation8_spill] sm:$0xff] }
 0x5a6   : > { %4318 = vst [vmem:[#allocation1 + $0x22] ss:$4 sm:$0xff] %v4000_v17  ;;  %v8756_v0 = vsel %vm9660_vm13, %v4483_v31, %v4484_v49  ;;  %v1146_v19 = vadd.f32 %v9665_v11, %v9664_v14  ;;  %v3923_v46 = vmax.f32 %v3900_v37, 0.0  ;;  %v4402_v4 = vsel %vm8744_vm3, %v4315_v28, 0.0  ;;  %vm8773_vm13 = vmand %vm4044_vm7, %vm4054_vm6  ;;  %5052 = vmatpush.msrb.mxu3 %v6062_v45  ;;  %v9670_v42 = vld [vmem:[#allocation17_spill] sm:$0xff] }
 0x5a7   : > { %4319 = vst [vmem:[#allocation1 + $0x23] ss:$4 sm:$0xff] %v4001_v59  ;;  %v8759_v2 = vsel %vm9662_vm14, %v4687_v9, %v4688_v43  ;;  %v3096_v17 = vadd.f32 %v8507_v22, %v2706_v32  ;;  %4578 = vmatmul.f32.gmra.mxu1 %v8756_v0  ;;  %v6061_v59 = vld [vmem:[%s9399_s3 + $0x298] sm:$0xff]  ;;  %v9666_v31 = vmov 0  ;;  %v6010_v22 = vld [vmem:[%s9399_s3 + $0x180] sm:$0xff]  ;;  %v9669_v9 = vld [vmem:[#allocation75_spill] sm:$0xff]  ;;  %v3841_v14 = vpop.f32.mrf.mxu0 }
 0x5a8   : > { %9661 = vst [vmem:[#allocation66_spill] sm:$0xff] %v8756_v0  ;;  %4782 = vmatmul.f32.gmra.mxu3 %v8759_v2  ;;  %v9667_v31 = vsel %vm8773_vm13, 4294967295, %v9666_v31  ;;  %v1929_v32 = vadd.f32 %v9669_v9, %v1539_v44  ;;  %v4004_v8 = vrot.slane %v3923_v46, 4  ;;  %4843 = vmatpush.msrb.mxu1 %v6010_v22  ;;  %v4005_v37 = vrot.slane %v3923_v46, 6  ;;  %v9671_v0 = vld [vmem:[#allocation87_spill] sm:$0xff]  ;;  %v8787_v44 = vpop.f32.mrf.mxu2  ;;  %v6121_v22 = vld [vmem:[%s9399_s3 + $0x3f8] sm:$0xff] }
 0x5a9   : > { %9663 = vst [vmem:[#allocation47_spill] sm:$0xff] %v8759_v2  ;;  %v3485_v28 = vadd.f32 %v8581_v13, %v3096_v17  ;;  %v4486_v11 = vrot.slane %v4402_v4, 1  ;;  %v4690_v45 = vrot.slane %v4402_v4, 2  ;;  %5053 = vmatpush.msrb.mxu3 %v6061_v59  ;;  %v1540_v2 = vadd.f32 %v9670_v42, %v1146_v19  ;;  %v8798_v4 = vpop.f32.mrf.mxu3  ;;  %v6137_v19 = vld [vmem:[%s9399_s3 + $0x478] sm:$0xff]  ;;  %v6059_v59 = vld [vmem:[%s9399_s3 + $0x288] sm:$0xff]  ;;  %v9677_v9 = vld [vmem:[#allocation30_spill] sm:$0xff] }
 0x5aa   : > { %4321 = vst [vmem:[#allocation1] ss:$4 sm:$0xff] %v4002_v41  ;;  %v4003_v41 = vrot.slane %v3923_v46, 2  ;;  %v2318_v40 = vadd.f32 %v9671_v0, %v1929_v32  ;;  %vm9672_vm6 = vcmp.ge.s32.totalorder %v7951_v21, 0  ;;  %v9673_v17 = vmov 0  ;;  %v9678_v32 = vld [vmem:[#allocation9_spill] sm:$0xff]  ;;  %5352 = vmatpush.msra.mxu2 %v6137_v19  ;;  %5247 = vmatpush.msra.mxu1 %v6121_v22 }
 0x5ab   : > { %9668 = vst [vmem:[#allocation18_spill] sm:$0xff] %v9667_v31  ;;  %v3874_v13 = vadd.f32 %v3841_v14, %v3485_v28  ;;  %vm8793_vm7 = vmand %vm8773_vm13, %vm9672_vm6  ;;  %5054 = vmatpush.msrb.mxu3 %v6060_v33  ;;  %vm9676_vm3 = vcmask 1046528   ;;  %v1149_v28 = vadd.f32 %v9678_v32, %v9677_v9  ;;  %v4028_v14 = vadd.s32 8, %v7944_v15  ;;  %v9681_v9 = vld [vmem:[#allocation19_spill] sm:$0xff] }
 0x5ac   : > { %4322 = vst [vmem:[#allocation1 + $0x1] ss:$4 sm:$0xff] %v3923_v46  ;;  %v9674_v17 = vsel %vm8793_vm7, 4294967295, %v9673_v17  ;;  %v2707_v46 = vadd.f32 %v8595_v48, %v2318_v40  ;;  %v8816_v48 = vsel %vm9676_vm3, %v4484_v49, %v4486_v11  ;;  %v8819_v40 = vsel %vm9662_vm14, %v4688_v43, %v4690_v45  ;;  %v6058_v49 = vld [vmem:[%s9399_s3 + $0x280] sm:$0xff]  ;;  %v8833_v43 = vpop.f32.mrf.mxu1  ;;  %v9680_v11 = vld [vmem:[#allocation88_spill] sm:$0xff] }
 0x5ad   : > { %9675 = vst [vmem:[#allocation35_spill] sm:$0xff] %v9674_v17  ;;  %v3901_v42 = vadd.f32 %v8521_v24, %v3874_v13  ;;  %5055 = vmatpush.msrb.mxu3 %v6059_v59  ;;  %vm4055_vm3 = vcmp.lt.s32.totalorder %v4028_v14, 16  ;;  %vm9684_vm14 = vcmp.lt.s32.totalorder %v8021_v34, 16  ;;  %vm9688_vm6 = vcmask 1045504  }
 0x5ae   : > { %4323 = vst [vmem:[#allocation1 + $0x2] ss:$4 sm:$0xff] %v4003_v41  ;;  %v8801_v0 = vld.sshfl [vmem:[#allocation1 + $0x20] sm:$0xff pattern:$0x73625140]  ;;  %v9679_v41 = vld [vmem:[#allocation77_spill] sm:$0xff]  ;;  %v3097_v33 = vadd.f32 %v8568_v1, %v2707_v46 }
 0x5af   : > { %4324 = vst [vmem:[#allocation1 + $0x3] ss:$4 sm:$0xff] %v4004_v8  ;;  %5992 = vmatmul.msk.f32.gmra.mxu2 %vm8793_vm7, %v8801_v0  ;;  %6100 = vmatmul.msk.f32.gmra.mxu0 %vm8793_vm7, %v8801_v0  ;;  %v1930_v8 = vadd.f32 %v9679_v41, %v1540_v2  ;;  %v4403_v13 = vsel %vm8793_vm7, %v8801_v0, 0.0  ;;  %v6136_v46 = vld [vmem:[%s9399_s3 + $0x470] sm:$0xff]  ;;  %v3844_v59 = vpop.f32.mrf.mxu0  ;;  %vm8861_vm7 = vmand %vm8773_vm13, %vm9684_vm14  ;;  %vm9687_vm14 = vcmask 1046528  }
 0x5b0   : > { %4325 = vst [vmem:[#allocation1 + $0x20] ss:$4 sm:$0xff] %v4005_v37  ;;  %v3924_v37 = vmax.f32 %v3901_v42, 0.0  ;;  %4581 = vmatmul.f32.gmra.mxu1 %v8816_v48  ;;  %4785 = vmatmul.f32.gmra.mxu3 %v8819_v40  ;;  %v3486_v2 = vadd.f32 %v8657_v63, %v3097_v33  ;;  %v6120_v42 = vld [vmem:[%s9399_s3 + $0x3f0] sm:$0xff]  ;;  %v1541_v63 = vadd.f32 %v9681_v9, %v1149_v28  ;;  %v4488_v17 = vrot.slane %v4403_v13, 1  ;;  %v9689_v9 = vld [vmem:[#allocation31_spill] sm:$0xff] }
 0x5b1   : > { %v2319_v45 = vadd.f32 %v9680_v11, %v1930_v8  ;;  %5056 = vmatpush.msrb.mxu3 %v6058_v49  ;;  %5353 = vmatpush.msra.mxu2 %v6136_v46  ;;  %v8849_v8 = vpop.f32.mrf.mxu2  ;;  %v8875_v46 = vpop.f32.mrf.mxu3 }
 0x5b2   : > { %v4006_v1 = vrot.slane %v3924_v37, 2  ;;  %v4007_v19 = vrot.slane %v3924_v37, 4  ;;  %v4008_v41 = vrot.slane %v3924_v37, 6  ;;  %9682 = vst [vmem:[#allocation57_spill] sm:$0xff] %v8849_v8  ;;  %v3875_v22 = vadd.f32 %v3844_v59, %v3486_v2  ;;  %5248 = vmatpush.msra.mxu1 %v6120_v42  ;;  %v9691_v8 = vld [vmem:[#allocation80_spill] sm:$0xff] }
 0x5b3   : > { %v2708_v32 = vadd.f32 %v8681_v52, %v2319_v45  ;;  %v4692_v52 = vrot.slane %v4403_v13, 2  ;;  %v1931_v31 = vadd.f32 %v9691_v8, %v1541_v63  ;;  %v9695_v2 = vld [vmem:[#allocation92_spill] sm:$0xff] }
 0x5b4   : > { %v3902_v49 = vadd.f32 %v8521_v24, %v3875_v22  ;;  %v9690_v22 = vld [vmem:[#allocation10_spill] sm:$0xff] }
 0x5b5   : > { %v3098_v13 = vadd.f32 %v8651_v38, %v2708_v32 }
 0x5b6   : > { %v8851_v33 = vld.sshfl [vmem:[#allocation1] sm:$0xff pattern:$0x73625140]  ;;  %v3925_v42 = vmax.f32 %v3902_v49, 0.0 }
 0x5b7   : > { %9683 = vst [vmem:[#allocation48_spill] sm:$0xff] %v8851_v33  ;;  %v4404_v11 = vsel %vm8773_vm13, %v8851_v33, 0.0  ;;  %5993 = vmatmul.msk.f32.gmra.mxu2 %vm8773_vm13, %v8851_v33  ;;  %6101 = vmatmul.msk.f32.gmra.mxu0 %vm8773_vm13, %v8851_v33  ;;  %v8886_v33 = vpop.f32.mrf.mxu1  ;;  %v3487_v32 = vadd.f32 %v8725_v51, %v3098_v13  ;;  %v3847_v8 = vpop.f32.mrf.mxu0  ;;  %v9697_v51 = vmov 0 }
 0x5b8   : > { %4328 = vst [vmem:[#allocation1] ss:$4 sm:$0xff] %v3924_v37  ;;  %v4489_v28 = vrot.slane %v4404_v11, 1  ;;  %v4693_v45 = vrot.slane %v4404_v11, 2  ;;  %v1152_v11 = vadd.f32 %v9690_v22, %v9689_v9  ;;  %v4010_v49 = vrot.slane %v3925_v42, 4 }
 0x5b9   : > { %4329 = vst [vmem:[#allocation1 + $0x1] ss:$4 sm:$0xff] %v4006_v1  ;;  %v4327_v37 = vld.sshfl [vmem:[#allocation1 + $0x20] sm:$0xff pattern:$0x73625140]  ;;  %v6135_v1 = vld [vmem:[%s9399_s3 + $0x468] sm:$0xff] }
 0x5ba   : > { %4330 = vst [vmem:[#allocation1 + $0x2] ss:$4 sm:$0xff] %v4007_v19  ;;  %v8878_v59 = vsel %vm9687_vm14, %v4488_v17, %v4489_v28  ;;  %v8881_v19 = vsel %vm9688_vm6, %v4692_v52, %v4693_v45  ;;  %5354 = vmatpush.msra.mxu2 %v6135_v1  ;;  %v4405_v38 = vsel %vm8861_vm7, %v4327_v37, 0.0  ;;  %v6119_v17 = vld [vmem:[%s9399_s3 + $0x3e8] sm:$0xff]  ;;  %v4011_v52 = vrot.slane %v3925_v42, 6 }
 0x5bb   : > { %4331 = vst [vmem:[#allocation1 + $0x3] ss:$4 sm:$0xff] %v4008_v41  ;;  %4584 = vmatmul.f32.gmra.mxu1 %v8878_v59  ;;  %4788 = vmatmul.f32.gmra.mxu3 %v8881_v19  ;;  %v4009_v41 = vrot.slane %v3925_v42, 2  ;;  %vm9692_vm6 = vcmp.ge.s32.totalorder %v4028_v14, 0  ;;  %v2320_v37 = vadd.f32 %v9695_v2, %v1931_v31  ;;  %v3876_v1 = vadd.f32 %v3847_v8, %v3487_v32  ;;  %v9699_v14 = vld [vmem:[#allocation43_spill] sm:$0xff]  ;;  %v6134_v32 = vld [vmem:[%s9399_s3 + $0x460] sm:$0xff]  ;;  %v8923_v8 = vpop.f32.mrf.mxu3 }
 0x5bc   : > { %vm8898_vm14 = vmand %vm9692_vm6, %vm4055_vm3  ;;  %4332 = vst [vmem:[#allocation1 + $0x20] ss:$4 sm:$0xff] %v3925_v42  ;;  %5249 = vmatpush.msra.mxu1 %v6119_v17  ;;  %v4491_v9 = vrot.slane %v4405_v38, 1  ;;  %v4695_v22 = vrot.slane %v4405_v38, 2  ;;  %vm9696_vm7 = vcmp.ge.s32.totalorder %v7951_v21, 0  ;;  %v1542_v13 = vadd.f32 %v9699_v14, %v1152_v11  ;;  %v8913_v17 = vpop.f32.mrf.mxu2  ;;  %5355 = vmatpush.msra.mxu2 %v6134_v32  ;;  %v9703_v11 = vld [vmem:[#allocation83_spill] sm:$0xff] }
 0x5bd   : > { %4333 = vst [vmem:[#allocation1 + $0x21] ss:$4 sm:$0xff] %v4009_v41  ;;  %vm8907_vm13 = vmand %vm8898_vm14, %vm9696_vm7  ;;  %v2709_v42 = vadd.f32 %v8753_v10, %v2320_v37  ;;  %v3903_v31 = vadd.f32 %v8521_v24, %v3876_v1  ;;  %vm9701_vm3 = vcmask 1046528   ;;  %vm9702_vm6 = vcmask 1045504  }
 0x5be   : > { %v9698_v51 = vsel %vm8907_vm13, 4294967295, %v9697_v51  ;;  %4334 = vst [vmem:[#allocation1 + $0x22] ss:$4 sm:$0xff] %v4010_v49  ;;  %v8929_v10 = vsel %vm9701_vm3, %v4489_v28, %v4491_v9 }
 0x5bf   : > { %9700 = vst [vmem:[#allocation68_spill] sm:$0xff] %v8913_v17  ;;  %4952 = vmatmul.f32.vlgmr.msrb.gmra.mxu2 %v8175_v56  ;;  %v3099_v41 = vadd.f32 %v8712_v36, %v2709_v42  ;;  %v3926_v49 = vmax.f32 %v3903_v31, 0.0  ;;  %v8932_v56 = vsel %vm9702_vm6, %v4693_v45, %v4695_v22  ;;  %v6118_v36 = vld [vmem:[%s9399_s3 + $0x3e0] sm:$0xff]  ;;  %v8941_v1 = vpop.f32.mrf.mxu1  ;;  %v3850_v45 = vpop.f32.mrf.mxu0  ;;  %v4029_v31 = vadd.s32 9, %v7944_v15 }
 0x5c0   : > { %4335 = vst [vmem:[#allocation1 + $0x23] ss:$4 sm:$0xff] %v4011_v52  ;;  %v1932_v52 = vadd.f32 %v9703_v11, %v1542_v13  ;;  %5250 = vmatpush.msra.mxu1 %v6118_v36  ;;  %v6117_v11 = vld [vmem:[%s9399_s3 + $0x3d8] sm:$0xff]  ;;  %vm9709_vm6 = vcmp.ge.s32.totalorder %v7951_v21, 0 }
 0x5c1   : > { %v3488_v2 = vadd.f32 %v8798_v4, %v3099_v41  ;;  %v4012_v37 = vrot.slane %v3926_v49, 2  ;;  %v4013_v28 = vrot.slane %v3926_v49, 4  ;;  %v4014_v22 = vrot.slane %v3926_v49, 6 }
 0x5c2   : > { %v8917_v38 = vld.sshfl [vmem:[#allocation1] sm:$0xff pattern:$0x73625140]  ;;  %v2321_v9 = vadd.f32 %v7882_v6, %v1932_v52  ;;  %v6133_v6 = vld [vmem:[%s9399_s3 + $0x458] sm:$0xff]  ;;  %vm4046_vm7 = vcmp.ge.s32.totalorder %v4029_v31, 0  ;;  %vm4056_vm3 = vcmp.lt.s32.totalorder %v4029_v31, 16  ;;  %5251 = vmatpush.msra.mxu1 %v6117_v11 }
 0x5c3   : > { %6102 = vmatmul.msk.f32.gmra.mxu0 %vm8907_vm13, %v8917_v38  ;;  %4587 = vmatmul.f32.gmra.mxu1 %v8929_v10  ;;  %4338 = vst [vmem:[#allocation1] ss:$4 sm:$0xff] %v3926_v49  ;;  %v3877_v14 = vadd.f32 %v3850_v45, %v3488_v2  ;;  %v8964_v36 = vpop.f32.mrf.mxu3 }
 0x5c4   : > { %4791 = vmatmul.f32.gmra.mxu3 %v8932_v56  ;;  %v2710_v32 = vadd.f32 %v8833_v43, %v2321_v9  ;;  %v8949_v4 = vpop.f32.mrf.mxu2  ;;  %5356 = vmatpush.msra.mxu2 %v6133_v6  ;;  %9705 = vst [vmem:[#allocation36_spill] sm:$0xff] %v8964_v36 }
 0x5c5   : > { %v3904_v13 = vadd.f32 %v8521_v24, %v3877_v14  ;;  %9704 = vst [vmem:[#allocation20_spill] sm:$0xff] %v8949_v4  ;;  %v6116_v14 = vld [vmem:[%s9399_s3 + $0x3d0] sm:$0xff] }
 0x5c6   : > { %v3100_v41 = vadd.f32 %v8787_v44, %v2710_v32  ;;  %5252 = vmatpush.msra.mxu1 %v6116_v14  ;;  %v6129_v14 = vld [vmem:[%s9399_s3 + $0x438] sm:$0xff] }
 0x5c7   : > { %v8944_v42 = vld.sshfl [vmem:[#allocation1 + $0x20] sm:$0xff pattern:$0x73625140]  ;;  %4955 = vmatmul.f32.gmra.mxu2 %v8225_v18  ;;  %v3927_v49 = vmax.f32 %v3904_v13, 0.0  ;;  %v3853_v55 = vpop.f32.mrf.mxu0 }
 0x5c8   : > { %4340 = vst [vmem:[#allocation1 + $0x20] ss:$4 sm:$0xff] %v4012_v37  ;;  %v3489_v15 = vadd.f32 %v8875_v46, %v3100_v41  ;;  %v6132_v37 = vld [vmem:[%s9399_s3 + $0x450] sm:$0xff]  ;;  %v6130_v46 = vld [vmem:[%s9399_s3 + $0x440] sm:$0xff] }
 0x5c9   : > { %4341 = vst [vmem:[#allocation1 + $0x21] ss:$4 sm:$0xff] %v4013_v28  ;;  %v4015_v18 = vrot.slane %v3927_v49, 2  ;;  %v4016_v43 = vrot.slane %v3927_v49, 4  ;;  %v4017_v44 = vrot.slane %v3927_v49, 6  ;;  %5357 = vmatpush.msra.mxu2 %v6132_v37 }
 0x5ca   : > { %4342 = vst [vmem:[#allocation1 + $0x22] ss:$4 sm:$0xff] %v4014_v22  ;;  %v8969_v52 = vld.sshfl [vmem:[#allocation1] sm:$0xff pattern:$0x73625140] }
 0x5cb   : > { %6103 = vmatmul.msk.f32.gmra.mxu0 %vm8898_vm14, %v8944_v42  ;;  %6026 = vmatmul.msk.f32.vlgmr.msrb.gmra.mxu1 %vm8110_vm12, %v8116_v61  ;;  %4343 = vst [vmem:[#allocation1 + $0x23] ss:$4 sm:$0xff] %v3927_v49  ;;  %v8971_v61 = vpop.f32.mrf.mxu1  ;;  %vm8974_vm12 = vmand %vm4046_vm7, %vm4056_vm3  ;;  %v6115_v49 = vld [vmem:[%s9399_s3 + $0x3c8] sm:$0xff]  ;;  %vm9718_vm7 = vcmask 1046528  }
 0x5cc   : > { %5057 = vmatmul.f32.vlgmr.msrb.gmra.mxu3 %v8178_v20  ;;  %9706 = vst [vmem:[#allocation58_spill] sm:$0xff] %v8971_v61  ;;  %v3878_v20 = vadd.f32 %v3853_v55, %v3489_v15  ;;  %vm4123_vm13 = vmand %vm8974_vm12, %vm9709_vm6  ;;  %v8987_v45 = vpop.f32.mrf.mxu2  ;;  %5358 = vmatpush.msra.mxu2 %v6131_v53 }
 0x5cd   : > { %4345 = vst [vmem:[#allocation1] ss:$4 sm:$0xff] %v4015_v18  ;;  %5253 = vmatpush.msra.mxu1 %v6115_v49  ;;  %v9729_v49 = vld [vmem:[#allocation51_spill] sm:$0xff] }
 0x5ce   : > { %4346 = vst [vmem:[#allocation1 + $0x1] ss:$4 sm:$0xff] %v4016_v43  ;;  %v3905_v2 = vadd.f32 %v8521_v24, %v3878_v20  ;;  %v8993_v21 = vpop.f32.mrf.mxu3  ;;  %5359 = vmatpush.msra.mxu2 %v6130_v46  ;;  %v6126_v46 = vld [vmem:[%s9399_s3 + $0x420] sm:$0xff] }
 0x5cf   : > { %4347 = vst [vmem:[#allocation1 + $0x2] ss:$4 sm:$0xff] %v4017_v44  ;;  %4958 = vmatmul.f32.gmra.mxu2 %v8283_v35 }
 0x5d0   : > { %v3928_v28 = vmax.f32 %v3905_v2, 0.0  ;;  %9710 = vst [vmem:[#allocation49_spill] sm:$0xff] %v8987_v45  ;;  %5360 = vmatpush.msra.mxu2 %v6129_v14  ;;  %v9734_v14 = vld [vmem:[#allocation45_spill] sm:$0xff] }
 0x5d1   : > { %9711 = vst [vmem:[#allocation70_spill] sm:$0xff] %v8993_v21 }
 0x5d2   : > { %v4344_v24 = vld.sshfl [vmem:[#allocation1 + $0x20] sm:$0xff pattern:$0x73625140]  ;;  %v4018_v9 = vrot.slane %v3928_v28, 2  ;;  %4348 = vst [vmem:[#allocation1 + $0x3] ss:$4 sm:$0xff] %v3928_v28  ;;  %5361 = vmatpush.msra.mxu2 %v6128_v3 }
 0x5d3   : > { %6027 = vmatmul.msk.f32.gmra.mxu1 %vm8091_vm11, %v8146_v47  ;;  %v4409_v22 = vsel %vm4123_vm13, %v4344_v24, 0.0  ;;  %6104 = vmatmul.msk.f32.gmra.mxu0 %vm4123_vm13, %v4344_v24  ;;  %v8998_v31 = vpop.f32.mrf.mxu1  ;;  %vm9714_vm11 = vcmp.lt.s32.totalorder %v8021_v34, 16  ;;  %v6110_v3 = vld [vmem:[%s9399_s3 + $0x3a0] sm:$0xff] }
 0x5d4   : > { %5060 = vmatmul.f32.gmra.mxu3 %v8230_v57  ;;  %4349 = vst [vmem:[#allocation1 + $0x20] ss:$4 sm:$0xff] %v4018_v9  ;;  %v9004_v47 = vpop.f32.mrf.mxu2  ;;  %vm4164_vm13 = vmand %vm8974_vm12, %vm9714_vm11  ;;  %v5223_v32 = vrot.slane %v4409_v22, 1  ;;  %v5328_v13 = vrot.slane %v4409_v22, 2  ;;  %v6114_v9 = vld [vmem:[%s9399_s3 + $0x3c0] sm:$0xff]  ;;  %5362 = vmatpush.msra.mxu2 %v6127_v54 }
 0x5d5   : > { %9712 = vst [vmem:[#allocation21_spill] sm:$0xff] %v8998_v31  ;;  %5254 = vmatpush.msra.mxu1 %v6114_v9  ;;  %v9730_v9 = vld [vmem:[#allocation91_spill] sm:$0xff] }
 0x5d6   : > { %9713 = vst [vmem:[#allocation37_spill] sm:$0xff] %v9004_v47  ;;  %v9018_v41 = vpop.f32.mrf.mxu3  ;;  %5363 = vmatpush.msra.mxu2 %v6126_v46  ;;  %v6125_v46 = vld [vmem:[%s9399_s3 + $0x418] sm:$0xff] }
 0x5d7   : > { %4961 = vmatmul.f32.gmra.mxu2 %v8333_v27  ;;  %9715 = vst [vmem:[#allocation59_spill] sm:$0xff] %v9018_v41  ;;  %5255 = vmatpush.msra.mxu1 %v6113_v58  ;;  %v9732_v58 = vld [vmem:[#allocation62_spill] sm:$0xff] }
 0x5d8   : > { %5364 = vmatpush.msra.mxu2 %v6125_v46  ;;  %v6124_v46 = vld [vmem:[%s9399_s3 + $0x410] sm:$0xff] }
 0x5d9   : > { %v4350_v57 = vld.sshfl [vmem:[#allocation1] sm:$0xff pattern:$0x73625140] }
 0x5da   : > { %v4410_v6 = vsel %vm8974_vm12, %v4350_v57, 0.0  ;;  %5365 = vmatpush.msra.mxu2 %v6124_v46  ;;  %v9741_v46 = vld [vmem:[#allocation64_spill] sm:$0xff] }
 0x5db   : > { %6028 = vmatmul.msk.f32.gmra.mxu1 %vm8204_vm1, %v8218_v29  ;;  %6105 = vmatmul.msk.f32.gmra.mxu0 %vm8974_vm12, %v4350_v57  ;;  %v5224_v50 = vrot.slane %v4410_v6, 1  ;;  %v5329_v29 = vrot.slane %v4410_v6, 2  ;;  %v4351_v15 = vld.sshfl [vmem:[#allocation1 + $0x20] sm:$0xff pattern:$0x73625140]  ;;  %v9023_v43 = vpop.f32.mrf.mxu1  ;;  %vm9717_vm1 = vcmask 1045504   ;;  %vm9720_vm12 = vmmov %vm9718_vm7 }
 0x5dc   : > { %5063 = vmatmul.f32.gmra.mxu3 %v8286_v60  ;;  %v4411_v18 = vsel %vm4164_vm13, %v4351_v15, 0.0  ;;  %9716 = vst [vmem:[#allocation50_spill] sm:$0xff] %v9023_v43  ;;  %vm9719_vm3 = vmmov %vm9717_vm1  ;;  %v9041_v28 = vpop.f32.mrf.mxu2  ;;  %v6111_v15 = vld [vmem:[%s9399_s3 + $0x3a8] sm:$0xff] }
 0x5dd   : > { %v9026_v44 = vsel %vm9717_vm1, %v5328_v13, %v5329_v29  ;;  %v5331_v11 = vrot.slane %v4411_v18, 2  ;;  %v9029_v55 = vsel %vm9718_vm7, %v5223_v32, %v5224_v50  ;;  %v5226_v20 = vrot.slane %v4411_v18, 1  ;;  %9722 = vst [vmem:[#allocation22_spill] sm:$0xff] %v9041_v28  ;;  %v9736_v28 = vld [vmem:[#allocation33_spill] sm:$0xff]  ;;  %vm9756_vm6 = vmmov %vm9717_vm1 }
 0x5df   : > { %4964 = vmatmul.f32.gmra.mxu2 %v8386_v5  ;;  %v9036_v2 = vsel %vm9719_vm3, %v5329_v29, %v5331_v11  ;;  %v9039_v37 = vsel %vm9720_vm12, %v5224_v50, %v5226_v20  ;;  %v9047_v24 = vpop.f32.mrf.mxu3  ;;  %v9726_v50 = vld [vmem:[#allocation89_spill] sm:$0xff] }
 0x5e0   : > { %9721 = vst [vmem:[#allocation72_spill] sm:$0xff] %v9039_v37 }
 0x5e1   : > { %9723 = vst [vmem:[#allocation38_spill] sm:$0xff] %v9047_v24  ;;  %v9740_v24 = vld [vmem:[#allocation16_spill] sm:$0xff] }
 0x5e3   : > { %6029 = vmatmul.msk.f32.gmra.mxu1 %vm8190_vm0, %v8253_v30  ;;  %v9052_v22 = vpop.f32.mrf.mxu1 }
 0x5e4   : > { %5066 = vmatmul.f32.gmra.mxu3 %v8336_v26  ;;  %9724 = vst [vmem:[#allocation61_spill] sm:$0xff] %v9052_v22  ;;  %v9737_v22 = vld [vmem:[#allocation66_spill] sm:$0xff] }
 0x5e6   : > { %v9065_v30 = vpop.f32.mrf.mxu2 }
 0x5e7   : > { %4967 = vmatmul.f32.gmra.mxu2 %v8437_v62  ;;  %v9067_v53 = vpop.f32.mrf.mxu3 }
 0x5e8   : > { %9725 = vst [vmem:[#allocation52_spill] sm:$0xff] %v9067_v53  ;;  %v9738_v53 = vld [vmem:[#allocation14_spill] sm:$0xff] }
 0x5eb   : > { %6030 = vmatmul.msk.f32.gmra.mxu1 %vm8313_vm10, %v8323_v12  ;;  %v9069_v57 = vpop.f32.mrf.mxu1  ;;  %v6112_v12 = vld [vmem:[%s9399_s3 + $0x3b0] sm:$0xff]  ;;  %vm9750_vm10 = vmmov %vm9714_vm11 }
 0x5ec   : > { %5069 = vmatmul.f32.gmra.mxu3 %v8389_v39  ;;  %5256 = vmatpush.msra.mxu1 %v6112_v12  ;;  %vm9757_vm11 = vmmov %vm9717_vm1 }
 0x5ee   : > { %v9082_v32 = vpop.f32.mrf.mxu2  ;;  %5257 = vmatpush.msra.mxu1 %v6111_v15  ;;  %v9733_v15 = vld [vmem:[#allocation55_spill] sm:$0xff] }
 0x5ef   : > { %4970 = vmatmul.f32.gmra.mxu2 %v8490_v23 }
 0x5f0   : > { %v9084_v13 = vpop.f32.mrf.mxu3  ;;  %5258 = vmatpush.msra.mxu1 %v6110_v3 }
 0x5f3   : > { %6031 = vmatmul.msk.f32.gmra.mxu1 %vm8296_vm9, %v8360_v16  ;;  %v9086_v6 = vpop.f32.mrf.mxu1  ;;  %v9727_v16 = vld [vmem:[#allocation60_spill] sm:$0xff] }
 0x5f4   : > { %5072 = vmatmul.f32.gmra.mxu3 %v8440_v7 }
 0x5f7   : > { %4973 = vmatmul.f32.gmra.mxu2 %v9726_v50  ;;  %v4632_v18 = vpop.f32.mrf.mxu2 }
 0x5f8   : > { %v9099_v11 = vpop.f32.mrf.mxu3 }
 0x5fb   : > { %6032 = vmatmul.msk.f32.gmra.mxu1 %vm8418_vm4, %v9727_v16  ;;  %v4567_v20 = vpop.f32.mrf.mxu1  ;;  %vm9751_vm4 = vmmov %vm9718_vm7 }
 0x5fc   : > { %5075 = vmatmul.f32.gmra.mxu3 %v9729_v49  ;;  %v4633_v12 = vadd.f32 %v4632_v18, %v4567_v20  ;;  %v6109_v18 = vld [vmem:[%s9399_s3 + $0x398] sm:$0xff] }
 0x5fd   : > { %5259 = vmatpush.msra.mxu1 %v6109_v18  ;;  %v6123_v18 = vld [vmem:[%s9399_s3 + $0x408] sm:$0xff] }
 0x5fe   : > { %5366 = vmatpush.msra.mxu2 %v6123_v18 }
 0x5ff   : > { %4976 = vmatmul.f32.gmra.mxu2 %v8624_v25  ;;  %v4635_v16 = vpop.f32.mrf.mxu2 }
 0x601   : > { %v4771_v54 = vpop.f32.mrf.mxu3 }
 0x602   : > { %v9112_v29 = vadd.f32 %v4771_v54, %v4633_v12 }
 0x603   : > { %6033 = vmatmul.msk.f32.gmra.mxu1 %vm8401_vm2, %v9730_v9  ;;  %v4570_v9 = vpop.f32.mrf.mxu1  ;;  %vm4161_vm2 = vmand %vm8898_vm14, %vm9750_vm10 }
 0x604   : > { %5078 = vmatmul.f32.gmra.mxu3 %v9732_v58  ;;  %v4636_v20 = vadd.f32 %v4635_v16, %v4570_v9  ;;  %v6108_v16 = vld [vmem:[%s9399_s3 + $0x390] sm:$0xff] }
 0x605   : > { %5260 = vmatpush.msra.mxu1 %v6108_v16  ;;  %v6107_v16 = vld [vmem:[%s9399_s3 + $0x388] sm:$0xff] }
 0x607   : > { %4979 = vmatmul.f32.gmra.mxu2 %v9733_v15  ;;  %5261 = vmatpush.msra.mxu1 %v6107_v16  ;;  %v6106_v16 = vld [vmem:[%s9399_s3 + $0x380] sm:$0xff] }
 0x609   : > { %v4774_v3 = vpop.f32.mrf.mxu3  ;;  %5262 = vmatpush.msra.mxu1 %v6106_v16 }
 0x60a   : > { %v9125_v12 = vadd.f32 %v4774_v3, %v4636_v20  ;;  %v4638_v54 = vpop.f32.mrf.mxu2 }
 0x60b   : > { %6034 = vmatmul.msk.f32.gmra.mxu1 %vm8532_vm8, %v9734_v14  ;;  %v9742_v14 = vld [vmem:[#allocation46_spill] sm:$0xff]  ;;  %vm9755_vm8 = vmmov %vm9751_vm4 }
 0x60c   : > { %5081 = vmatmul.f32.gmra.mxu3 %v9736_v28  ;;  %vm9743_vm0 = vnez %v9742_v14 }
 0x60f   : > { %4982 = vmatmul.f32.gmra.mxu2 %v9737_v22 }
 0x611   : > { %v4573_v9 = vpop.f32.mrf.mxu1 }
 0x612   : > { %v4639_v20 = vadd.f32 %v4638_v54, %v4573_v9  ;;  %v6122_v54 = vld [vmem:[%s9399_s3 + $0x400] sm:$0xff] }
 0x613   : > { %6035 = vmatmul.msk.f32.gmra.mxu1 %vm8511_vm15, %v9738_v53  ;;  %v4641_v3 = vpop.f32.mrf.mxu2  ;;  %v9744_v53 = vld [vmem:[#allocation47_spill] sm:$0xff]  ;;  %5367 = vmatpush.msra.mxu2 %v6122_v54 }
 0x614   : > { %5084 = vmatmul.f32.gmra.mxu3 %v9740_v24 }
 0x617   : > { %4985 = vmatmul.f32.gmra.mxu2 %v8816_v48  ;;  %v4777_v47 = vpop.f32.mrf.mxu3 }
 0x618   : > { %v9146_v43 = vadd.f32 %v4777_v47, %v4639_v20 }
 0x61a   : > { %v4576_v41 = vpop.f32.mrf.mxu1 }
 0x61b   : > { %6036 = vmatmul.msk.f32.gmra.mxu1 %vm9743_vm0, %v9741_v46  ;;  %v4642_v9 = vadd.f32 %v4641_v3, %v4576_v41  ;;  %v9745_v46 = vld [vmem:[#allocation34_spill] sm:$0xff]  ;;  %v4407_v41 = vsel %vm8898_vm14, %v8944_v42, 0.0 }
 0x61c   : > { %5087 = vmatmul.f32.gmra.mxu3 %v9744_v53  ;;  %v4913_v14 = vrot.slane %v4407_v41, 1  ;;  %v5018_v37 = vrot.slane %v4407_v41, 2 }
 0x61f   : > { %4988 = vmatmul.f32.gmra.mxu2 %v8878_v59  ;;  %v4644_v18 = vpop.f32.mrf.mxu2 }
 0x620   : > { %v4780_v47 = vpop.f32.mrf.mxu3 }
 0x621   : > { %v9159_v20 = vadd.f32 %v4780_v47, %v4642_v9  ;;  %v9748_v9 = vld [vmem:[#allocation35_spill] sm:$0xff] }
 0x622   : > { %vm9749_vm9 = vnez %v9748_v9  ;;  %v9752_v9 = vld [vmem:[#allocation48_spill] sm:$0xff] }
 0x623   : > { %6037 = vmatmul.msk.f32.gmra.mxu1 %vm8644_vm5, %v9745_v46  ;;  %vm9747_vm5 = vnez %v9698_v51 }
 0x624   : > { %5090 = vmatmul.f32.gmra.mxu3 %v8819_v40  ;;  %v4579_v45 = vpop.f32.mrf.mxu1  ;;  %v4406_v54 = vsel %vm9747_vm5, %v8917_v38, 0.0 }
 0x625   : > { %v4645_v46 = vadd.f32 %v4644_v18, %v4579_v45  ;;  %v4912_v31 = vrot.slane %v4406_v54, 1  ;;  %v9753_v45 = vld [vmem:[#allocation18_spill] sm:$0xff]  ;;  %v5017_v17 = vrot.slane %v4406_v54, 2 }
 0x626   : > { %vm9754_vm15 = vnez %v9753_v45 }
 0x627   : > { %4991 = vmatmul.f32.gmra.mxu2 %v8929_v10  ;;  %v4647_v3 = vpop.f32.mrf.mxu2  ;;  %v9182_v4 = vsel %vm9751_vm4, %v4912_v31, %v4913_v14 }
 0x62b   : > { %6038 = vmatmul.msk.f32.gmra.mxu1 %vm9749_vm9, %v8801_v0  ;;  %v4783_v47 = vpop.f32.mrf.mxu3  ;;  %v4408_v0 = vsel %vm4161_vm2, %v8969_v52, 0.0  ;;  %v9197_v52 = vsel %vm9756_vm6, %v5017_v17, %v5018_v37 }
 0x62c   : > { %5093 = vmatmul.f32.gmra.mxu3 %v8881_v19  ;;  %v9175_v16 = vadd.f32 %v4783_v47, %v4645_v46  ;;  %v4915_v34 = vrot.slane %v4408_v0, 1  ;;  %v5020_v41 = vrot.slane %v4408_v0, 2 }
 0x62d   : > { %v4582_v21 = vpop.f32.mrf.mxu1 }
 0x62e   : > { %v4648_v18 = vadd.f32 %v4647_v3, %v4582_v21  ;;  %v9193_v31 = vsel %vm9755_vm8, %v4913_v14, %v4915_v34  ;;  %v9207_v54 = vsel %vm9757_vm11, %v5018_v37, %v5020_v41 }
 0x62f   : > { %4994 = vmatmul.f32.gmra.mxu2 %v9182_v4 }
 0x632   : > { %v4650_v46 = vpop.f32.mrf.mxu2 }
 0x633   : > { %6039 = vmatmul.msk.f32.gmra.mxu1 %vm9754_vm15, %v9752_v9  ;;  %v4786_v47 = vpop.f32.mrf.mxu3 }
 0x634   : > { %5096 = vmatmul.f32.gmra.mxu3 %v8932_v56  ;;  %v9190_v61 = vadd.f32 %v4786_v47, %v4648_v18 }
 0x637   : > { %4997 = vmatmul.f32.gmra.mxu2 %v9193_v31 }
 0x638   : > { %v4585_v36 = vpop.f32.mrf.mxu1 }
 0x639   : > { %v4651_v3 = vadd.f32 %v4650_v46, %v4585_v36 }
 0x63a   : > { %v4653_v21 = vpop.f32.mrf.mxu2 }
 0x63b   : > { %6040 = vmatmul.msk.f32.gmra.mxu1 %vm9747_vm5, %v8917_v38 }
 0x63c   : > { %5099 = vmatmul.f32.gmra.mxu3 %v9197_v52 }
 0x63e   : > { %v4789_v9 = vpop.f32.mrf.mxu3 }
 0x63f   : > { %v9203_v45 = vadd.f32 %v4789_v9, %v4651_v3  ;;  %5368 = vmatmul.f32.vlgmr.msra.gmra.mxu2 %v8286_v60 }
 0x640   : > { %v4588_v14 = vpop.f32.mrf.mxu1 }
 0x641   : > { %v4654_v17 = vadd.f32 %v4653_v21, %v4588_v14 }
 0x642   : > { %v9213_v51 = vpop.f32.mrf.mxu2 }
 0x643   : > { %6041 = vmatmul.msk.f32.gmra.mxu1 %vm8898_vm14, %v8944_v42 }
 0x644   : > { %5102 = vmatmul.f32.gmra.mxu3 %v9207_v54 }
 0x647   : > { %v4792_v38 = vpop.f32.mrf.mxu3  ;;  %5371 = vmatmul.f32.gmra.mxu2 %v8336_v26 }
 0x648   : > { %v9215_v36 = vadd.f32 %v4792_v38, %v4654_v17  ;;  %v9217_v0 = vpop.f32.mrf.mxu1  ;;  %v5156_v38 = vpop.f32.mrf.mxu0 }
 0x64a   : > { %v9221_v60 = vpop.f32.mrf.mxu2 }
 0x64b   : > { %5263 = vmatmul.f32.vlgmr.msra.gmra.mxu1 %v8283_v35 }
 0x64f   : > { %5374 = vmatmul.f32.gmra.mxu2 %v8389_v39  ;;  %v5058_v41 = vpop.f32.mrf.mxu3 }
 0x650   : > { %v9223_v37 = vpop.f32.mrf.mxu1 }
 0x652   : > { %v9227_v63 = vpop.f32.mrf.mxu2 }
 0x653   : > { %5266 = vmatmul.f32.gmra.mxu1 %v8333_v27 }
 0x657   : > { %5377 = vmatmul.f32.gmra.mxu2 %v8440_v7 }
 0x658   : > { %v9229_v42 = vpop.f32.mrf.mxu1 }
 0x65a   : > { %v9233_v18 = vpop.f32.mrf.mxu2 }
 0x65b   : > { %5269 = vmatmul.f32.gmra.mxu1 %v8386_v5 }
 0x65f   : > { %5380 = vmatmul.f32.gmra.mxu2 %v9729_v49 }
 0x660   : > { %v9235_v26 = vpop.f32.mrf.mxu1 }
 0x662   : > { %v9239_v35 = vpop.f32.mrf.mxu2 }
 0x663   : > { %5272 = vmatmul.f32.gmra.mxu1 %v8437_v62  ;;  %v4627_v62 = vadd.f32 %v9065_v30, %v9069_v57 }
 0x665   : > { %v4801_v49 = vadd.f32 %v9084_v13, %v4627_v62  ;;  %v5159_v62 = vpop.f32.mrf.mxu0 }
 0x667   : > { %5383 = vmatmul.f32.gmra.mxu2 %v9732_v58 }
 0x668   : > { %v9241_v39 = vpop.f32.mrf.mxu1 }
 0x66a   : > { %v9245_v27 = vpop.f32.mrf.mxu2 }
 0x66b   : > { %5275 = vmatmul.f32.gmra.mxu1 %v8490_v23 }
 0x66f   : > { %5386 = vmatmul.f32.gmra.mxu2 %v9736_v28  ;;  %v4630_v28 = vadd.f32 %v9082_v32, %v9086_v6 }
 0x670   : > { %v9247_v7 = vpop.f32.mrf.mxu1 }
 0x672   : > { %v4971_v5 = vpop.f32.mrf.mxu2 }
 0x673   : > { %5278 = vmatmul.f32.gmra.mxu1 %v9726_v50  ;;  %v4802_v50 = vadd.f32 %v9099_v11, %v4630_v28 }
 0x677   : > { %5389 = vmatmul.f32.gmra.mxu2 %v9740_v24 }
 0x678   : > { %v4863_v46 = vpop.f32.mrf.mxu1 }
 0x679   : > { %v4899_v58 = vadd.f32 %v4863_v46, %v4801_v49  ;;  %v9758_v49 = vld [vmem:[#allocation57_spill] sm:$0xff] }
 0x67a   : > { %v4974_v34 = vpop.f32.mrf.mxu2 }
 0x67b   : > { %5281 = vmatmul.f32.gmra.mxu1 %v8624_v25  ;;  %v9256_v23 = vadd.f32 %v4971_v5, %v4899_v58 }
 0x67f   : > { %5392 = vmatmul.f32.gmra.mxu2 %v9744_v53 }
 0x680   : > { %v4866_v47 = vpop.f32.mrf.mxu1 }
 0x681   : > { %v4900_v30 = vadd.f32 %v4866_v47, %v4802_v50  ;;  %v9759_v50 = vld [vmem:[#allocation68_spill] sm:$0xff] }
 0x682   : > { %v4977_v24 = vpop.f32.mrf.mxu2  ;;  %v4612_v47 = vadd.f32 %v9759_v50, %v8941_v1 }
 0x683   : > { %5284 = vmatmul.f32.gmra.mxu1 %v9733_v15  ;;  %v9263_v57 = vadd.f32 %v4974_v34, %v4900_v30  ;;  %v5162_v30 = vpop.f32.mrf.mxu0 }
 0x687   : > { %5395 = vmatmul.f32.gmra.mxu2 %v8819_v40 }
 0x688   : > { %v4869_v13 = vpop.f32.mrf.mxu1 }
 0x689   : > { %v4901_v25 = vadd.f32 %v4869_v13, %v9112_v29  ;;  %v9761_v13 = vld [vmem:[#allocation72_spill] sm:$0xff] }
 0x68a   : > { %v4980_v32 = vpop.f32.mrf.mxu2 }
 0x68b   : > { %5287 = vmatmul.f32.gmra.mxu1 %v9737_v22  ;;  %v9268_v21 = vadd.f32 %v4977_v24, %v4901_v25 }
 0x68f   : > { %5398 = vmatmul.f32.gmra.mxu2 %v8881_v19 }
 0x690   : > { %v4872_v6 = vpop.f32.mrf.mxu1 }
 0x691   : > { %v4902_v11 = vadd.f32 %v4872_v6, %v9125_v12 }
 0x692   : > { %v4983_v53 = vpop.f32.mrf.mxu2 }
 0x693   : > { %5290 = vmatmul.f32.gmra.mxu1 %v8816_v48  ;;  %v9273_v15 = vadd.f32 %v4980_v32, %v4902_v11  ;;  %v9762_v11 = vld [vmem:[#allocation58_spill] sm:$0xff] }
 0x697   : > { %5401 = vmatmul.f32.gmra.mxu2 %v8932_v56 }
 0x698   : > { %v4875_v3 = vpop.f32.mrf.mxu1 }
 0x699   : > { %v4903_v40 = vadd.f32 %v4875_v3, %v9146_v43 }
 0x69a   : > { %v4986_v29 = vpop.f32.mrf.mxu2 }
 0x69b   : > { %5293 = vmatmul.f32.gmra.mxu1 %v8878_v59  ;;  %v9278_v22 = vadd.f32 %v4983_v53, %v4903_v40  ;;  %v5061_v59 = vpop.f32.mrf.mxu3  ;;  %v9763_v53 = vld [vmem:[#allocation20_spill] sm:$0xff]  ;;  %v9319_v40 = vld [vmem:[%s9400_s4] ss:$0 sm:$0xff] }
 0x69c   : > { %v4615_v1 = vadd.f32 %v9763_v53, %v9762_v11 }
 0x69f   : > { %5404 = vmatmul.f32.gmra.mxu2 %v9197_v52 }
 0x6a0   : > { %v4878_v9 = vpop.f32.mrf.mxu1 }
 0x6a1   : > { %v4904_v19 = vadd.f32 %v4878_v9, %v9159_v20 }
 0x6a2   : > { %v4989_v12 = vpop.f32.mrf.mxu2 }
 0x6a3   : > { %5296 = vmatmul.f32.gmra.mxu1 %v8929_v10  ;;  %v9283_v48 = vadd.f32 %v4986_v29, %v4904_v19  ;;  %v9764_v29 = vld [vmem:[#allocation70_spill] sm:$0xff] }
 0x6a4   : > { %v4797_v9 = vadd.f32 %v9764_v29, %v4615_v1  ;;  %v9772_v29 = vld [vmem:[#allocation22_spill] sm:$0xff] }
 0x6a7   : > { %5407 = vmatmul.f32.gmra.mxu2 %v9207_v54  ;;  %v5064_v54 = vpop.f32.mrf.mxu3 }
 0x6a8   : > { %v4881_v14 = vpop.f32.mrf.mxu1 }
 0x6a9   : > { %v4905_v56 = vadd.f32 %v4881_v14, %v9175_v16  ;;  %v4895_v14 = vadd.f32 %v9229_v42, %v4797_v9 }
 0x6aa   : > { %v4992_v17 = vpop.f32.mrf.mxu2 }
 0x6ab   : > { %5299 = vmatmul.f32.gmra.mxu1 %v9182_v4  ;;  %v9288_v43 = vadd.f32 %v4989_v12, %v4905_v56  ;;  %v4609_v4 = vadd.f32 %v9758_v49, %v8886_v33 }
 0x6ad   : > { %v4795_v58 = vadd.f32 %v8923_v8, %v4609_v4  ;;  %v9767_v4 = vld [vmem:[#allocation59_spill] sm:$0xff] }
 0x6af   : > { %5410 = vmatmul.f32.gmra.mxu2 %v9026_v44  ;;  %v5067_v34 = vpop.f32.mrf.mxu3 }
 0x6b0   : > { %v4884_v52 = vpop.f32.mrf.mxu1 }
 0x6b1   : > { %v4906_v10 = vadd.f32 %v4884_v52, %v9190_v61  ;;  %v9765_v52 = vld [vmem:[#allocation21_spill] sm:$0xff] }
 0x6b2   : > { %v4995_v5 = vpop.f32.mrf.mxu2 }
 0x6b3   : > { %5302 = vmatmul.f32.gmra.mxu1 %v9193_v31  ;;  %v9293_v20 = vadd.f32 %v4992_v17, %v4906_v10  ;;  %v4893_v31 = vadd.f32 %v9217_v0, %v4795_v58  ;;  %v9766_v10 = vld [vmem:[#allocation49_spill] sm:$0xff] }
 0x6b5   : > { %v5001_v33 = vadd.f32 %v9213_v51, %v4893_v31 }
 0x6b7   : > { %5413 = vmatmul.f32.gmra.mxu2 %v9036_v2  ;;  %v5106_v8 = vadd.f32 %v5058_v41, %v5001_v33 }
 0x6b8   : > { %v4887_v16 = vpop.f32.mrf.mxu1 }
 0x6b9   : > { %v4907_v46 = vadd.f32 %v4887_v16, %v9203_v45  ;;  %v9760_v45 = vld [vmem:[#allocation36_spill] sm:$0xff]  ;;  %v5204_v32 = vadd.f32 %v5156_v38, %v5106_v8  ;;  %v5003_v16 = vadd.f32 %v9227_v63, %v4895_v14 }
 0x6ba   : > { %v4998_v44 = vpop.f32.mrf.mxu2  ;;  %v4796_v24 = vadd.f32 %v9760_v45, %v4612_v47  ;;  %v9769_v45 = vld [vmem:[#allocation37_spill] sm:$0xff] }
 0x6bb   : > { %5305 = vmatmul.f32.gmra.mxu1 %v9029_v55  ;;  %v9301_v61 = vadd.f32 %v4995_v5, %v4907_v46  ;;  %v4618_v5 = vadd.f32 %v9766_v10, %v9765_v52  ;;  %v5108_v46 = vadd.f32 %v5064_v54, %v5003_v16  ;;  %v9770_v54 = vld [vmem:[#allocation38_spill] sm:$0xff] }
 0x6bc   : > { %v4894_v0 = vadd.f32 %v9223_v37, %v4796_v24  ;;  %v5165_v37 = vpop.f32.mrf.mxu0 }
 0x6bd   : > { %v5206_v47 = vadd.f32 %v5162_v30, %v5108_v46 }
 0x6be   : > { %v5002_v51 = vadd.f32 %v9221_v60, %v4894_v0 }
 0x6c0   : > { %v4890_v28 = vpop.f32.mrf.mxu1  ;;  %v5107_v41 = vadd.f32 %v5061_v59, %v5002_v51  ;;  %v4798_v59 = vadd.f32 %v9767_v4, %v4618_v5 }
 0x6c1   : > { %v4908_v2 = vadd.f32 %v4890_v28, %v9215_v36  ;;  %v5070_v36 = vpop.f32.mrf.mxu3 }
 0x6c2   : > { %v5369_v25 = vpop.f32.mrf.mxu2  ;;  %v5205_v60 = vadd.f32 %v5159_v62, %v5107_v41  ;;  %v4896_v42 = vadd.f32 %v9235_v26, %v4798_v59 }
 0x6c3   : > { %5308 = vmatmul.f32.gmra.mxu1 %v9761_v13  ;;  %v9310_v55 = vadd.f32 %v4998_v44, %v4908_v2  ;;  %v9768_v2 = vld [vmem:[#allocation50_spill] sm:$0xff] }
 0x6c4   : > { %v5168_v62 = vpop.f32.mrf.mxu0  ;;  %v4621_v63 = vadd.f32 %v9769_v45, %v9768_v2  ;;  %v5004_v24 = vadd.f32 %v9233_v18, %v4896_v42 }
 0x6c6   : > { %v4799_v13 = vadd.f32 %v9770_v54, %v4621_v63 }
 0x6c8   : > { %v5264_v6 = vpop.f32.mrf.mxu1  ;;  %v4897_v26 = vadd.f32 %v9241_v39, %v4799_v13 }
 0x6c9   : > { %v5312_v3 = vadd.f32 %v5264_v6, %v5204_v32  ;;  %v5073_v58 = vpop.f32.mrf.mxu3 }
 0x6ca   : > { %v5372_v12 = vpop.f32.mrf.mxu2  ;;  %v5005_v9 = vadd.f32 %v9239_v35, %v4897_v26 }
 0x6cb   : > { %v5417_v19 = vadd.f32 %v5369_v25, %v5312_v3  ;;  %v5109_v25 = vadd.f32 %v5067_v34, %v5004_v24  ;;  %v9771_v3 = vld [vmem:[#allocation61_spill] sm:$0xff]  ;;  %v9773_v34 = vld [vmem:[#allocation52_spill] sm:$0xff] }
 0x6cc   : > { %v5171_v1 = vpop.f32.mrf.mxu0  ;;  %v4624_v18 = vadd.f32 %v9772_v29, %v9771_v3 }
 0x6cd   : > { %v5437_v56 = vadd.f32 %v9319_v40, %v5417_v19  ;;  %v5207_v53 = vadd.f32 %v5165_v37, %v5109_v25 }
 0x6ce   : > { %v4800_v19 = vadd.f32 %v9773_v34, %v4624_v18 }
 0x6cf   : > { %v5453_v17 = vmax.f32 %v5437_v56, 0.0 }
 0x6d0   : > { %v5267_v38 = vpop.f32.mrf.mxu1  ;;  %v4898_v56 = vadd.f32 %v9247_v7, %v4800_v19 }
 0x6d1   : > { %5469 = vst [vmem:[%s6352_s13] sm:$0xff] %v5453_v17  ;;  %v5313_v49 = vadd.f32 %v5267_v38, %v5205_v60  ;;  %v5076_v6 = vpop.f32.mrf.mxu3 }
 0x6d2   : > { %v5375_v31 = vpop.f32.mrf.mxu2  ;;  %v5006_v5 = vadd.f32 %v9245_v27, %v4898_v56 }
 0x6d3   : > { %v5418_v44 = vadd.f32 %v5372_v12, %v5313_v49  ;;  %v5110_v12 = vadd.f32 %v5070_v36, %v5005_v9 }
 0x6d4   : > { %v5174_v52 = vpop.f32.mrf.mxu0  ;;  %v5111_v16 = vadd.f32 %v5073_v58, %v5006_v5 }
 0x6d5   : > { %v5438_v28 = vadd.f32 %v9319_v40, %v5418_v44  ;;  %v5208_v38 = vadd.f32 %v5168_v62, %v5110_v12 }
 0x6d6   : > { %v5209_v7 = vadd.f32 %v5171_v1, %v5111_v16 }
 0x6d7   : > { %v5454_v50 = vmax.f32 %v5438_v28, 0.0  ;;  %v5112_v28 = vadd.f32 %v5076_v6, %v9256_v23 }
 0x6d8   : > { %v5270_v33 = vpop.f32.mrf.mxu1 }
 0x6d9   : > { %5470 = vst [vmem:[%s6352_s13 + $0x8] sm:$0xff] %v5454_v50  ;;  %v5314_v8 = vadd.f32 %v5270_v33, %v5206_v47  ;;  %v5079_v37 = vpop.f32.mrf.mxu3  ;;  %v5210_v47 = vadd.f32 %v5174_v52, %v5112_v28 }
 0x6da   : > { %v5378_v32 = vpop.f32.mrf.mxu2  ;;  %v5113_v63 = vadd.f32 %v5079_v37, %v9263_v57 }
 0x6db   : > { %v5419_v0 = vadd.f32 %v5375_v31, %v5314_v8 }
 0x6dc   : > { %v5177_v42 = vpop.f32.mrf.mxu0 }
 0x6dd   : > { %v5439_v11 = vadd.f32 %v9319_v40, %v5419_v0  ;;  %v5211_v25 = vadd.f32 %v5177_v42, %v5113_v63 }
 0x6df   : > { %v5455_v30 = vmax.f32 %v5439_v11, 0.0 }
 0x6e0   : > { %v5273_v51 = vpop.f32.mrf.mxu1 }
 0x6e1   : > { %5471 = vst [vmem:[%s6352_s13 + $0x10] sm:$0xff] %v5455_v30  ;;  %v5315_v41 = vadd.f32 %v5273_v51, %v5207_v53  ;;  %v5082_v44 = vpop.f32.mrf.mxu3 }
 0x6e2   : > { %v5381_v39 = vpop.f32.mrf.mxu2  ;;  %v5114_v26 = vadd.f32 %v5082_v44, %v9268_v21 }
 0x6e3   : > { %v5420_v14 = vadd.f32 %v5378_v32, %v5315_v41 }
 0x6e4   : > { %v5180_v45 = vpop.f32.mrf.mxu0 }
 0x6e5   : > { %v5440_v17 = vadd.f32 %v9319_v40, %v5420_v14  ;;  %v5212_v51 = vadd.f32 %v5180_v45, %v5114_v26 }
 0x6e7   : > { %v5456_v60 = vmax.f32 %v5440_v17, 0.0 }
 0x6e8   : > { %v5276_v10 = vpop.f32.mrf.mxu1 }
 0x6e9   : > { %5472 = vst [vmem:[%s6352_s13 + $0x18] sm:$0xff] %v5456_v60  ;;  %v5316_v35 = vadd.f32 %v5276_v10, %v5208_v38  ;;  %v5085_v24 = vpop.f32.mrf.mxu3 }
 0x6ea   : > { %v5384_v4 = vpop.f32.mrf.mxu2  ;;  %v5115_v18 = vadd.f32 %v5085_v24, %v9273_v15 }
 0x6eb   : > { %v5421_v49 = vadd.f32 %v5381_v39, %v5316_v35 }
 0x6ec   : > { %v5183_v11 = vpop.f32.mrf.mxu0 }
 0x6ed   : > { %v5441_v36 = vadd.f32 %v9319_v40, %v5421_v49  ;;  %v5213_v14 = vadd.f32 %v5183_v11, %v5115_v18 }
 0x6ef   : > { %v5457_v59 = vmax.f32 %v5441_v36, 0.0 }
 0x6f0   : > { %v5279_v46 = vpop.f32.mrf.mxu1 }
 0x6f1   : > { %5473 = vst [vmem:[%s6352_s13 + $0x20] sm:$0xff] %v5457_v59  ;;  %v5317_v31 = vadd.f32 %v5279_v46, %v5209_v7  ;;  %v5088_v53 = vpop.f32.mrf.mxu3 }
 0x6f2   : > { %v5387_v50 = vpop.f32.mrf.mxu2  ;;  %v5116_v17 = vadd.f32 %v5088_v53, %v9278_v22 }
 0x6f3   : > { %v5422_v62 = vadd.f32 %v5384_v4, %v5317_v31 }
 0x6f4   : > { %v5186_v19 = vpop.f32.mrf.mxu0 }
 0x6f5   : > { %v5442_v27 = vadd.f32 %v9319_v40, %v5422_v62  ;;  %v5214_v52 = vadd.f32 %v5186_v19, %v5116_v17 }
 0x6f7   : > { %v5458_v58 = vmax.f32 %v5442_v27, 0.0 }
 0x6f8   : > { %v5282_v33 = vpop.f32.mrf.mxu1 }
 0x6f9   : > { %5474 = vst [vmem:[%s6352_s13 + $0x28] sm:$0xff] %v5458_v58  ;;  %v5318_v2 = vadd.f32 %v5282_v33, %v5210_v47  ;;  %v5091_v21 = vpop.f32.mrf.mxu3 }
 0x6fa   : > { %v5390_v54 = vpop.f32.mrf.mxu2  ;;  %v5117_v49 = vadd.f32 %v5091_v21, %v9283_v48 }
 0x6fb   : > { %v5423_v8 = vadd.f32 %v5387_v50, %v5318_v2 }
 0x6fc   : > { %v5189_v10 = vpop.f32.mrf.mxu0 }
 0x6fd   : > { %v5443_v13 = vadd.f32 %v9319_v40, %v5423_v8  ;;  %v5215_v7 = vadd.f32 %v5189_v10, %v5117_v49 }
 0x6ff   : > { %v5459_v23 = vmax.f32 %v5443_v13, 0.0 }
 0x700   : > { %v5285_v0 = vpop.f32.mrf.mxu1 }
 0x701   : > { %5475 = vst [vmem:[%s6352_s13 + $0x30] sm:$0xff] %v5459_v23  ;;  %v5319_v32 = vadd.f32 %v5285_v0, %v5211_v25  ;;  %v5094_v35 = vpop.f32.mrf.mxu3 }
 0x702   : > { %v5393_v30 = vpop.f32.mrf.mxu2  ;;  %v5118_v42 = vadd.f32 %v5094_v35, %v9288_v43 }
 0x703   : > { %v5424_v6 = vadd.f32 %v5390_v54, %v5319_v32 }
 0x704   : > { %v5192_v31 = vpop.f32.mrf.mxu0 }
 0x705   : > { %v5444_v57 = vadd.f32 %v9319_v40, %v5424_v6  ;;  %v5216_v58 = vadd.f32 %v5192_v31, %v5118_v42 }
 0x707   : > { %v5460_v1 = vmax.f32 %v5444_v57, 0.0 }
 0x708   : > { %v5288_v3 = vpop.f32.mrf.mxu1 }
 0x709   : > { %5476 = vst [vmem:[%s6352_s13 + $0x38] sm:$0xff] %v5460_v1  ;;  %v5320_v29 = vadd.f32 %v5288_v3, %v5212_v51  ;;  %v5097_v28 = vpop.f32.mrf.mxu3 }
 0x70a   : > { %v5396_v41 = vpop.f32.mrf.mxu2  ;;  %v5119_v2 = vadd.f32 %v5097_v28, %v9293_v20 }
 0x70b   : > { %v5425_v9 = vadd.f32 %v5393_v30, %v5320_v29 }
 0x70c   : > { %v5195_v63 = vpop.f32.mrf.mxu0 }
 0x70d   : > { %v5445_v34 = vadd.f32 %v9319_v40, %v5425_v9  ;;  %v5217_v13 = vadd.f32 %v5195_v63, %v5119_v2 }
 0x70f   : > { %v5461_v12 = vmax.f32 %v5445_v34, 0.0 }
 0x710   : > { %v5291_v39 = vpop.f32.mrf.mxu1 }
 0x711   : > { %5477 = vst [vmem:[%s6352_s13 + $0x40] sm:$0xff] %v5461_v12  ;;  %v5321_v56 = vadd.f32 %v5291_v39, %v5213_v14  ;;  %v5100_v24 = vpop.f32.mrf.mxu3 }
 0x712   : > { %v5399_v60 = vpop.f32.mrf.mxu2  ;;  %v5120_v0 = vadd.f32 %v5100_v24, %v9301_v61 }
 0x713   : > { %v5426_v37 = vadd.f32 %v5396_v41, %v5321_v56 }
 0x714   : > { %v5198_v26 = vpop.f32.mrf.mxu0 }
 0x715   : > { %v5446_v38 = vadd.f32 %v9319_v40, %v5426_v37  ;;  %v5218_v30 = vadd.f32 %v5198_v26, %v5120_v0 }
 0x717   : > { %v5462_v15 = vmax.f32 %v5446_v38, 0.0 }
 0x718   : > { %v5294_v5 = vpop.f32.mrf.mxu1 }
 0x719   : > { %5478 = vst [vmem:[%s6352_s13 + $0x48] sm:$0xff] %v5462_v15  ;;  %v5322_v16 = vadd.f32 %v5294_v5, %v5214_v52  ;;  %v5103_v20 = vpop.f32.mrf.mxu3 }
 0x71a   : > { %v5402_v36 = vpop.f32.mrf.mxu2  ;;  %v5121_v51 = vadd.f32 %v5103_v20, %v9310_v55 }
 0x71b   : > { %v5427_v4 = vadd.f32 %v5399_v60, %v5322_v16 }
 0x71c   : > { %v5201_v18 = vpop.f32.mrf.mxu0 }
 0x71d   : > { %v5447_v59 = vadd.f32 %v9319_v40, %v5427_v4  ;;  %v5219_v9 = vadd.f32 %v5201_v18, %v5121_v51 }
 0x71f   : > { %v5463_v22 = vmax.f32 %v5447_v59, 0.0 }
 0x720   : > { %v5297_v46 = vpop.f32.mrf.mxu1 }
 0x721   : > { %5479 = vst [vmem:[%s6352_s13 + $0x50] sm:$0xff] %v5463_v22  ;;  %v5323_v44 = vadd.f32 %v5297_v46, %v5215_v7 }
 0x722   : > { %v5405_v50 = vpop.f32.mrf.mxu2 }
 0x723   : > { %v5428_v62 = vadd.f32 %v5402_v36, %v5323_v44 }
 0x725   : > { %v5448_v27 = vadd.f32 %v9319_v40, %v5428_v62 }
 0x727   : > { %v5464_v48 = vmax.f32 %v5448_v27, 0.0 }
 0x728   : > { %v5300_v47 = vpop.f32.mrf.mxu1 }
 0x729   : > { %5480 = vst [vmem:[%s6352_s13 + $0x58] sm:$0xff] %v5464_v48  ;;  %v5324_v33 = vadd.f32 %v5300_v47, %v5216_v58 }
 0x72a   : > { %v5408_v43 = vpop.f32.mrf.mxu2 }
 0x72b   : > { %v5429_v45 = vadd.f32 %v5405_v50, %v5324_v33 }
 0x72d   : > { %v5449_v8 = vadd.f32 %v9319_v40, %v5429_v45 }
 0x72f   : > { %v5465_v54 = vmax.f32 %v5449_v8, 0.0 }
 0x730   : > { %v5303_v23 = vpop.f32.mrf.mxu1 }
 0x731   : > { %5481 = vst [vmem:[%s6352_s13 + $0x60] sm:$0xff] %v5465_v54  ;;  %v5325_v25 = vadd.f32 %v5303_v23, %v5217_v13 }
 0x732   : > { %v5411_v53 = vpop.f32.mrf.mxu2 }
 0x733   : > { %v5430_v32 = vadd.f32 %v5408_v43, %v5325_v25 }
 0x735   : > { %v5450_v6 = vadd.f32 %v9319_v40, %v5430_v32 }
 0x737   : > { %v5466_v11 = vmax.f32 %v5450_v6, 0.0 }
 0x738   : > { %v5306_v57 = vpop.f32.mrf.mxu1 }
 0x739   : > { %5482 = vst [vmem:[%s6352_s13 + $0x68] sm:$0xff] %v5466_v11  ;;  %v5326_v1 = vadd.f32 %v5306_v57, %v5218_v30 }
 0x73a   : > { %v5414_v19 = vpop.f32.mrf.mxu2 }
 0x73b   : > { %v5431_v3 = vadd.f32 %v5411_v53, %v5326_v1 }
 0x73d   : > { %v5451_v29 = vadd.f32 %v9319_v40, %v5431_v3 }
 0x73f   : > { %v5467_v61 = vmax.f32 %v5451_v29, 0.0 }
 0x740   : > { %v5309_v41 = vpop.f32.mrf.mxu1 }
 0x741   : > { %5483 = vst [vmem:[%s6352_s13 + $0x70] sm:$0xff] %v5467_v61  ;;  %v5327_v34 = vadd.f32 %v5309_v41, %v5219_v9 }
 0x743   : > { %v5432_v21 = vadd.f32 %v5414_v19, %v5327_v34 }
 0x745   : > { %v5452_v12 = vadd.f32 %v9319_v40, %v5432_v21 }
 0x747   : > { %v5468_v14 = vmax.f32 %v5452_v12, 0.0 }
 0x749   : > { %5484 = vst [vmem:[%s6352_s13 + $0x78] sm:$0xff] %v5468_v14 }
 0x74a PF: > { %s15_s22 = sadd.s32 1, %s6273_s22   ;;  %s9774_s18 = smov %s6265_s20 }
 0x74b   : > { %p12_p11 = scmp.ge.s32.totalorder %s15_s22, 6   ;;  %s9775_s19 = smov %s6269_s21 }
 0x74c   : > { %s9776_s20 = smov %s9779_s23  ;;  %s9777_s21 = smov %s9783_s24 }
 0x74d   :  { %14 = sbr.rel (!%p12_p11) target bundleno = 3 (0x3), region = 214 }
 0x752   :  { %5517 = vsyncmov [#allocation3] }
 0x755   :  { %s5518_s13 = vpop.sfrf %5517 }
 0x756   :  { %p6140_p12 = scmp.ne.s32.totalorder %s5518_s13, 0 }
 0x758   :  { %5522 = shalt.err (%p6140_p12)  }
 0x759   :  { %5524 = vsyncmov [#allocation3 + $0x1] }
 0x75c   :  { %s5525_s27 = vpop.sfrf %5524 }
 0x75d   :  { %p6141_p13 = scmp.ne.s32.totalorder %s5525_s27, 0 }
 0x75f   :  { %5529 = shalt.err (%p6141_p13)  }

</bundles_post_ra>
